<compile_context>
chip_gen: v6e
topology: v6e:2x2x1
jax: 0.10.0
libtpu: 0.0.40
codegen_flags: <defaults>
</compile_context>

<pallas_src>
import jax
import jax.numpy as jnp
from jax.experimental import pallas as pl
from jax.experimental.pallas import tpu as pltpu

_BN_EPS = 1e-5


# ---------------------------------------------------------------------------
# Fused forward kernel: G graphs per grid step.
# ---------------------------------------------------------------------------

def _fused_forward_kernel(a_ref,                       # (G, Np, Np) bf16  per-graph normalized adjacency
                          w1t_ref, b1_ref,             # (hc, Np) bf16, (hc, 1) f32
                          w2t_ref, b2_ref,             # (hc, hc) f32,  (hc, 1) f32
                          s1t_ref, s2t_ref,            # (hc, Np) f32   eval-BN scales (shifts folded into MLP bias)
                          wn_ref,                      # (Np, hc*H) f32 repacked MLP linear-1 weight
                          mscale1_ref, mshift1_ref,    # (1, H) f32
                          w2m_ref, mscale2_ref, mshift2_ref,   # (H, H/2), (1, H/2), (1, H/2)
                          w3m_ref, mscale3_ref, mshift3_ref,   # (H/2, H/2), (1, H/2), (1, H/2)
                          w4m_ref, b4_ref,             # (H/2, CP), (1, CP)   (class dim zero-padded to CP)
                          o_ref):                      # (G, CP)  padded logits (log_softmax done in JAX)
    G = a_ref.shape[0]
    hc = w1t_ref.shape[0]
    H = mscale1_ref.shape[-1]

    w1t = w1t_ref[...]
    b1 = b1_ref[...]
    w2t = w2t_ref[...]
    b2 = b2_ref[...]
    s1t = s1t_ref[...]
    s2t = s2t_ref[...]

    # --- GNN stage, per graph (trace-time unrolled; relies on A symmetric, X = eye) ---
    hsum_rows = []
    for g in range(G):
        A = a_ref[g]                                                       # (Np, Np) bf16
        # layer 1: H1^T = tanh(W1^T @ A + b1)     (X = eye so X @ W1 == W1)
        h1t = jnp.tanh(jnp.dot(w1t, A, preferred_element_type=jnp.float32) + b1)      # (hc, Np) f32
        # layer 2: H2^T = tanh(W2^T @ H1^T @ A + b2)
        t2 = jnp.dot(w2t, h1t, preferred_element_type=jnp.float32)                    # (hc, Np) f32
        h2t = jnp.tanh(jnp.dot(t2.astype(jnp.bfloat16), A,
                               preferred_element_type=jnp.float32) + b2)              # (hc, Np) f32
        # eval-BN scale part + layer sum (shift terms folded into mshift1 in the wrapper)
        hsum_rows.append(s1t * h1t + s2t * h2t)                                       # (hc, Np) f32
    hsum = hsum_rows[0] if G == 1 else jnp.concatenate(hsum_rows, axis=0)             # (G*hc, Np)

    # --- MLP linear 1: single (G*hc, Np) @ (Np, hc*H) matmul + block-diagonal extraction ---
    z = jnp.dot(hsum, wn_ref[...], preferred_element_type=jnp.float32)                # (G*hc, hc*H)
    z1_rows = []
    for g in range(G):
        acc = z[g * hc:g * hc + 1, 0:H]                                    # channel 0 block
        for c in range(1, hc):
            acc = acc + z[g * hc + c:g * hc + c + 1, c * H:(c + 1) * H]    # tiny static lane slices
        z1_rows.append(acc)                                                # (1, H)
    z1 = z1_rows[0] if G == 1 else jnp.concatenate(z1_rows, axis=0)        # (G, H)

    # Linear-1 + folded BN + ReLU (Dropout = identity in eval mode)
    y = jnp.maximum(z1 * mscale1_ref[...] + mshift1_ref[...], 0.0)

    # MLP hidden layers 2 and 3 (BN folded into per-column scale/shift)
    y = jnp.maximum(jnp.dot(y, w2m_ref[...], preferred_element_type=jnp.float32)
                    * mscale2_ref[...] + mshift2_ref[...], 0.0)
    y = jnp.maximum(jnp.dot(y, w3m_ref[...], preferred_element_type=jnp.float32)
                    * mscale3_ref[...] + mshift3_ref[...], 0.0)

    # Output linear -> lane-dense padded logits (pad columns are exactly 0 by construction)
    logits = jnp.dot(y, w4m_ref[...], preferred_element_type=jnp.float32) + b4_ref[...]
    o_ref[...] = logits.astype(o_ref.dtype)


# ---------------------------------------------------------------------------
# Wrapper: parameter folding, padding, pallas_call
# ---------------------------------------------------------------------------

def _bn_affine(gamma, beta, rmean, rvar):
    s = gamma * jax.lax.rsqrt(rvar + _BN_EPS)
    t = beta - rmean * s
    return s, t


def _pad_last(x, target):
    pad = target - x.shape[-1]
    if pad == 0:
        return x
    return jnp.pad(x, [(0, 0)] * (x.ndim - 1) + [(0, pad)])


def forward(params, data_x, a_blocks, num_nodes, hidden_channels, graphs_per_step=1):
    """Mirrors ResidualGNNsWithGNNOnlyNodeIndexInputWithoutAggr.forward (eval mode).

    Requires: A_norm blocks symmetric (guaranteed by build_gcn_adjacency_blocks) and
    node features == identity (hardcoded torch.eye(1000) in the reference module).
    """
    n = num_nodes
    hc = hidden_channels
    assert data_x.shape[-1] == n, "forward() requires num_features == num_nodes (torch.eye(1000) input)"
    batchsize = data_x.shape[0] // data_x.shape[-1]
    assert a_blocks.shape == (batchsize, n, n)
    assert len(params["convs"]) == 2, "fused kernel is specialized to num_layers == 2"
    G = graphs_per_step
    assert batchsize % G == 0

    n_pad = ((n + 127) // 128) * 128          # 1000 -> 1024: exact (8,128) tiles everywhere

    # --- GCN params in transposed form (relies on symmetric A_norm) ---------
    (w1, b1), (w2, b2) = params["convs"]              # w1: (N, hc), w2: (hc, hc)
    w1t = _pad_last(w1.T, n_pad).astype(jnp.bfloat16)         # (hc, Np) bf16 (big-matmul operand)
    b1c = b1.reshape(hc, 1).astype(jnp.float32)
    w2t = w2.T.astype(jnp.float32)                            # tiny, keep f32
    b2c = b2.reshape(hc, 1).astype(jnp.float32)

    # --- eval BatchNorm1d(hc*N) per conv layer -> per-feature affine --------
    s1, t1 = _bn_affine(*params["bnhs"][0])
    s2, t2 = _bn_affine(*params["bnhs"][1])
    # feature index is node*hc + channel; zero-pad so padded nodes contribute nothing downstream
    s1t = _pad_last(s1.reshape(n, hc).T, n_pad)               # (hc, Np) f32
    s2t = _pad_last(s2.reshape(n, hc).T, n_pad)

    # --- MLP params; fold eval-BN into per-column scale/shift ---------------
    (wm1, bm1, g1, be1, rm1, rv1), \
    (wm2, bm2, g2, be2, rm2, rv2), \
    (wm3, bm3, g3, be3, rm3, rv3) = params["mlp_hidden"]
    hidden = wm1.shape[1]

    # BN shift terms of the GNN stage, pushed through the first MLP linear.
    const1 = (t1 + t2) @ wm1                                  # (hidden,)
    sb1, tb1 = _bn_affine(g1, be1, rm1, rv1)
    mscale1 = sb1.reshape(1, hidden)
    mshift1 = ((bm1 + const1) * sb1 + tb1).reshape(1, hidden)
    # Repacked MLP linear-1 weight: Wn[m, c*H + j] = wm1[m*hc + c, j]  (row-major reshape),
    # zero-padded K rows for the padded nodes.  K = Np, lane dim = hc*hidden (=128 here).
    wn = jnp.pad(wm1.reshape(n, hc * hidden), ((0, n_pad - n), (0, 0))).astype(jnp.float32)

    sb2, tb2 = _bn_affine(g2, be2, rm2, rv2)
    mscale2 = sb2.reshape(1, -1)
    mshift2 = (bm2 * sb2 + tb2).reshape(1, -1)
    sb3, tb3 = _bn_affine(g3, be3, rm3, rv3)
    mscale3 = sb3.reshape(1, -1)
    mshift3 = (bm3 * sb3 + tb3).reshape(1, -1)

    wm4, bm4 = params["mlp_out"]
    num_classes = wm4.shape[1]
    c_pad = ((num_classes + 127) // 128) * 128                # lane-dense logits store
    w4p = _pad_last(wm4, c_pad)
    b4p = _pad_last(bm4.reshape(1, num_classes), c_pad)

    # Only large HBM operand: per-graph adjacency, zero-padded then cast to bf16.
    a_pad = jnp.pad(a_blocks, ((0, 0), (0, n_pad - n), (0, n_pad - n))).astype(jnp.bfloat16)

    h2 = hidden // 2
    num_steps = batchsize // G

    # VMEM footprint: ~2*G MB per adjacency buffer (x2 buffers) + ~1 MB of weights; far under the
    # 32 MiB default scoped limit for small G, so no vmem_limit_bytes override is needed here.
    out = pl.pallas_call(
        _fused_forward_kernel,
        out_shape=jax.ShapeDtypeStruct((num_steps, G, c_pad), jnp.float32),
        grid_spec=pltpu.PrefetchScalarGridSpec(
            num_scalar_prefetch=0,
            grid=(num_steps,),
            in_specs=[
                pl.BlockSpec((G, n_pad, n_pad), lambda s: (s, 0, 0)),       # adjacency blocks (G per step)
                pl.BlockSpec((hc, n_pad), lambda s: (0, 0)),                # w1^T
                pl.BlockSpec((hc, 1), lambda s: (0, 0)),                    # b1
                pl.BlockSpec((hc, hc), lambda s: (0, 0)),                   # w2^T
                pl.BlockSpec((hc, 1), lambda s: (0, 0)),                    # b2
                pl.BlockSpec((hc, n_pad), lambda s: (0, 0)),                # BN scale layer 1
                pl.BlockSpec((hc, n_pad), lambda s: (0, 0)),                # BN scale layer 2
                pl.BlockSpec((n_pad, hc * hidden), lambda s: (0, 0)),       # repacked MLP linear-1 weight
                pl.BlockSpec((1, hidden), lambda s: (0, 0)),                # MLP1 scale
                pl.BlockSpec((1, hidden), lambda s: (0, 0)),                # MLP1 shift
                pl.BlockSpec((hidden, h2), lambda s: (0, 0)),               # MLP2 weight
                pl.BlockSpec((1, h2), lambda s: (0, 0)),                    # MLP2 scale
                pl.BlockSpec((1, h2), lambda s: (0, 0)),                    # MLP2 shift
                pl.BlockSpec((h2, h2), lambda s: (0, 0)),                   # MLP3 weight
                pl.BlockSpec((1, h2), lambda s: (0, 0)),                    # MLP3 scale
                pl.BlockSpec((1, h2), lambda s: (0, 0)),                    # MLP3 shift
                pl.BlockSpec((h2, c_pad), lambda s: (0, 0)),                # output weight (class-padded)
                pl.BlockSpec((1, c_pad), lambda s: (0, 0)),                 # output bias (class-padded)
            ],
            out_specs=pl.BlockSpec((None, G, c_pad), lambda s: (s, 0, 0)),
        ),
        compiler_params=pltpu.CompilerParams(dimension_semantics=("parallel",)),
    )(a_pad, w1t, b1c, w2t, b2c, s1t, s2t, wn,
      mscale1, mshift1, wm2, mscale2, mshift2, wm3, mscale3, mshift3, w4p, b4p)

    logits = out.reshape(batchsize, c_pad)[:, :num_classes]
    return jax.nn.log_softmax(logits, axis=-1)


# ---------------------------------------------------------------------------
# Graph preprocessing, parameter init, pure-JAX f32 reference
# ---------------------------------------------------------------------------

def build_gcn_adjacency_blocks(edge_index, batch_size, num_nodes):
    """Per-graph dense GCN-normalized adjacency blocks: D^-1/2 (A + I) D^-1/2, shape (B, N, N)."""
    src, dst = edge_index[0], edge_index[1]
    g = src // num_nodes
    ls, ld = src % num_nodes, dst % num_nodes
    a = jnp.zeros((batch_size, num_nodes, num_nodes), jnp.float32)
    a = a.at[g, ls, ld].set(1.0)
    a = jnp.maximum(a, jnp.swapaxes(a, 1, 2))               # symmetrize (kernel relies on this)
    idx = jnp.arange(num_nodes)
    a = a.at[:, idx, idx].set(1.0)                          # self loops
    deg = jnp.sum(a, axis=2)
    dinv = jax.lax.rsqrt(deg)
    return a * dinv[:, :, None] * dinv[:, None, :]


def init_params(key, num_features, hc, hidden, num_layers, num_classes, num_nodes):
    keys = iter(jax.random.split(key, 128))

    def linear_init(fan_in, fan_out):
        bound = float(fan_in) ** -0.5
        w = jax.random.uniform(next(keys), (fan_in, fan_out), jnp.float32, -bound, bound)
        b = jax.random.uniform(next(keys), (fan_out,), jnp.float32, -bound, bound)
        return w, b

    def bn_init(nf):
        gamma = 1.0 + 0.1 * jax.random.normal(next(keys), (nf,), jnp.float32)
        beta = 0.1 * jax.random.normal(next(keys), (nf,), jnp.float32)
        rmean = jnp.zeros((nf,), jnp.float32)
        rvar = jnp.ones((nf,), jnp.float32)
        return gamma, beta, rmean, rvar

    convs = []
    in_dim = num_features
    for _ in range(num_layers):
        convs.append(linear_init(in_dim, hc))
        in_dim = hc

    # The PyTorch module always constructs 3 BatchNorm1d(hc*1000); forward consumes num_layers of them.
    bnhs = [bn_init(hc * num_nodes) for _ in range(3)]

    mlp_hidden = []
    w, b = linear_init(hc * num_nodes, hidden)
    mlp_hidden.append((w, b) + bn_init(hidden))
    w, b = linear_init(hidden, hidden // 2)
    mlp_hidden.append((w, b) + bn_init(hidden // 2))
    w, b = linear_init(hidden // 2, hidden // 2)
    mlp_hidden.append((w, b) + bn_init(hidden // 2))
    mlp_out = linear_init(hidden // 2, num_classes)

    return {"convs": convs, "bnhs": bnhs, "mlp_hidden": mlp_hidden, "mlp_out": mlp_out}


def reference_forward(params, a_blocks, num_nodes, hidden_channels):
    """Pure-JAX f32 reference (untransposed, unfused, unpadded) for numerical validation."""
    b, n, _ = a_blocks.shape
    hc = hidden_channels
    (w1, b1), (w2, b2) = params["convs"]
    h1 = jnp.tanh(jnp.einsum("bnm,mh->bnh", a_blocks, w1) + b1)            # (B, N, hc)
    h2 = jnp.tanh(jnp.einsum("bnm,bmh->bnh", a_blocks, h1 @ w2) + b2)      # (B, N, hc)

    def bn(x, p):
        s, t = _bn_affine(*p)
        return x * s + t

    h = bn(h1.reshape(b, n * hc), params["bnhs"][0]) + bn(h2.reshape(b, n * hc), params["bnhs"][1])
    for (w, bb, gamma, beta, rmean, rvar) in params["mlp_hidden"]:
        z = h @ w + bb
        h = jnp.maximum(bn(z, (gamma, beta, rmean, rvar)), 0.0)
    w4, b4 = params["mlp_out"]
    logits = h @ w4 + b4
    return jax.nn.log_softmax(logits, axis=1)


# ---------------------------------------------------------------------------
# Main
# ---------------------------------------------------------------------------

if __name__ == "__main__":
    NUM_NODES = 1000        # hardcoded in the reference forward (torch.eye(1000), BatchNorm1d(hc*1000))
    NUM_FEATURES = 1000     # must equal NUM_NODES for batchsize = rows // cols to hold
    HIDDEN_CHANNELS = 4
    HIDDEN = 32
    NUM_LAYERS = 2
    NUM_CLASSES = 2
    BATCH = 2
    EDGES_PER_GRAPH = 4000

    key = jax.random.PRNGKey(0)
    kx, ks, kd, kp = jax.random.split(key, 4)

    # data.x -- only its shape is consumed by the forward pass
    data_x = jax.random.normal(kx, (BATCH * NUM_NODES, NUM_FEATURES), jnp.float32)

    # deterministic random edge_index, block-diagonal over the batch
    src = jax.random.randint(ks, (BATCH, EDGES_PER_GRAPH), 0, NUM_NODES)
    dst = jax.random.randint(kd, (BATCH, EDGES_PER_GRAPH), 0, NUM_NODES)
    offs = (jnp.arange(BATCH) * NUM_NODES)[:, None]
    edge_index = jnp.stack([(src + offs).reshape(-1), (dst + offs).reshape(-1)], axis=0)

    a_blocks = build_gcn_adjacency_blocks(edge_index, BATCH, NUM_NODES)
    # The transposed GNN formulation requires a symmetric normalized adjacency.
    assert bool(jnp.allclose(a_blocks, jnp.swapaxes(a_blocks, 1, 2)))

    params = init_params(kp, NUM_FEATURES, HIDDEN_CHANNELS, HIDDEN,
                         NUM_LAYERS, NUM_CLASSES, NUM_NODES)

    # Primary run: 1 graph per grid step (B=2 -> 2 steps; both v7x TensorCores get work).
    out = jax.block_until_ready(
        forward(params, data_x, a_blocks, NUM_NODES, HIDDEN_CHANNELS, graphs_per_step=1))
    # Multi-graph-per-step path (MLP weight-tile reuse across graphs); must match exactly.
    out_g2 = jax.block_until_ready(
        forward(params, data_x, a_blocks, NUM_NODES, HIDDEN_CHANNELS, graphs_per_step=2))

    ref = jax.block_until_ready(reference_forward(params, a_blocks, NUM_NODES, HIDDEN_CHANNELS))

    assert out.shape == (BATCH, NUM_CLASSES)
    assert bool(jnp.all(jnp.isfinite(out)))
    # log-softmax rows must (approximately) exponentiate-sum to 1
    assert bool(jnp.all(jnp.abs(jnp.sum(jnp.exp(out), axis=1) - 1.0) < 1e-4))
    # G=1 vs G=2 kernel paths compute the same thing
    assert bool(jnp.allclose(out, out_g2, atol=1e-5, rtol=1e-5)), "graphs_per_step=1 vs 2 mismatch"
    # bf16-adjacency kernel vs f32 reference
    max_diff = float(jnp.max(jnp.abs(out - ref)))
    assert max_diff < 0.1, f"kernel vs f32 reference max diff {max_diff}"
    # argmax agreement on confidently-separated rows (review: max-abs alone is loose for 2 classes)
    top2 = jnp.sort(ref, axis=1)[:, -2:]
    margin = top2[:, 1] - top2[:, 0]
    agree = (jnp.argmax(out, axis=1) == jnp.argmax(ref, axis=1)) | (margin < 0.05)
    assert bool(jnp.all(agree)), "argmax disagreement on a confidently-separated row"
    print("KERNEL_OK")
</pallas_src>

<mosaic_0001>
module attributes {stable_mosaic.version = 11 : i64} {
  func.func @_fused_forward_kernel(%arg0: i32, %arg1: memref<1x1024x1024xbf16, #tpu.memory_space<vmem>>, %arg2: memref<4x1024xbf16, #tpu.memory_space<vmem>>, %arg3: memref<4x1xf32, #tpu.memory_space<vmem>>, %arg4: memref<4x4xf32, #tpu.memory_space<vmem>>, %arg5: memref<4x1xf32, #tpu.memory_space<vmem>>, %arg6: memref<4x1024xf32, #tpu.memory_space<vmem>>, %arg7: memref<4x1024xf32, #tpu.memory_space<vmem>>, %arg8: memref<1024x128xf32, #tpu.memory_space<vmem>>, %arg9: memref<1x32xf32, #tpu.memory_space<vmem>>, %arg10: memref<1x32xf32, #tpu.memory_space<vmem>>, %arg11: memref<32x16xf32, #tpu.memory_space<vmem>>, %arg12: memref<1x16xf32, #tpu.memory_space<vmem>>, %arg13: memref<1x16xf32, #tpu.memory_space<vmem>>, %arg14: memref<16x16xf32, #tpu.memory_space<vmem>>, %arg15: memref<1x16xf32, #tpu.memory_space<vmem>>, %arg16: memref<1x16xf32, #tpu.memory_space<vmem>>, %arg17: memref<16x128xf32, #tpu.memory_space<vmem>>, %arg18: memref<1x128xf32, #tpu.memory_space<vmem>>, %arg19: memref<1x1x128xf32, #tpu.memory_space<vmem>>) attributes {dimension_semantics = [#tpu.dimension_semantics<parallel>], iteration_bounds = array<i64: 2>, scalar_prefetch = 0 : i64, scratch_operands = 0 : i64, tpu.core_type = #tpu.core_type<tc>, window_params = [{transform_indices = @transform_0, window_bounds = array<i64: 1, 1024, 1024>}, {pipeline_mode = #tpu.pipeline_mode<synchronous>, transform_indices = @transform_1, window_bounds = array<i64: 4, 1024>}, {pipeline_mode = #tpu.pipeline_mode<synchronous>, transform_indices = @transform_2, window_bounds = array<i64: 4, 1>}, {pipeline_mode = #tpu.pipeline_mode<synchronous>, transform_indices = @transform_3, window_bounds = array<i64: 4, 4>}, {pipeline_mode = #tpu.pipeline_mode<synchronous>, transform_indices = @transform_4, window_bounds = array<i64: 4, 1>}, {pipeline_mode = #tpu.pipeline_mode<synchronous>, transform_indices = @transform_5, window_bounds = array<i64: 4, 1024>}, {pipeline_mode = #tpu.pipeline_mode<synchronous>, transform_indices = @transform_6, window_bounds = array<i64: 4, 1024>}, {pipeline_mode = #tpu.pipeline_mode<synchronous>, transform_indices = @transform_7, window_bounds = array<i64: 1024, 128>}, {pipeline_mode = #tpu.pipeline_mode<synchronous>, transform_indices = @transform_8, window_bounds = array<i64: 1, 32>}, {pipeline_mode = #tpu.pipeline_mode<synchronous>, transform_indices = @transform_9, window_bounds = array<i64: 1, 32>}, {pipeline_mode = #tpu.pipeline_mode<synchronous>, transform_indices = @transform_10, window_bounds = array<i64: 32, 16>}, {pipeline_mode = #tpu.pipeline_mode<synchronous>, transform_indices = @transform_11, window_bounds = array<i64: 1, 16>}, {pipeline_mode = #tpu.pipeline_mode<synchronous>, transform_indices = @transform_12, window_bounds = array<i64: 1, 16>}, {pipeline_mode = #tpu.pipeline_mode<synchronous>, transform_indices = @transform_13, window_bounds = array<i64: 16, 16>}, {pipeline_mode = #tpu.pipeline_mode<synchronous>, transform_indices = @transform_14, window_bounds = array<i64: 1, 16>}, {pipeline_mode = #tpu.pipeline_mode<synchronous>, transform_indices = @transform_15, window_bounds = array<i64: 1, 16>}, {pipeline_mode = #tpu.pipeline_mode<synchronous>, transform_indices = @transform_16, window_bounds = array<i64: 16, 128>}, {pipeline_mode = #tpu.pipeline_mode<synchronous>, transform_indices = @transform_17, window_bounds = array<i64: 1, 128>}, {transform_indices = @transform_18, window_bounds = array<i64: 1, 1, 128>}]} {
    %c0 = arith.constant 0 : index
    %c0_0 = arith.constant 0 : index
    %0 = vector.load %arg2[%c0, %c0_0] : memref<4x1024xbf16, #tpu.memory_space<vmem>>, vector<4x1024xbf16>
    %c0_1 = arith.constant 0 : index
    %c0_2 = arith.constant 0 : index
    %1 = vector.load %arg3[%c0_1, %c0_2] : memref<4x1xf32, #tpu.memory_space<vmem>>, vector<4x1xf32>
    %c0_3 = arith.constant 0 : index
    %c0_4 = arith.constant 0 : index
    %2 = vector.load %arg4[%c0_3, %c0_4] : memref<4x4xf32, #tpu.memory_space<vmem>>, vector<4x4xf32>
    %c0_5 = arith.constant 0 : index
    %c0_6 = arith.constant 0 : index
    %3 = vector.load %arg5[%c0_5, %c0_6] : memref<4x1xf32, #tpu.memory_space<vmem>>, vector<4x1xf32>
    %c0_7 = arith.constant 0 : index
    %c0_8 = arith.constant 0 : index
    %4 = vector.load %arg6[%c0_7, %c0_8] : memref<4x1024xf32, #tpu.memory_space<vmem>>, vector<4x1024xf32>
    %c0_9 = arith.constant 0 : index
    %c0_10 = arith.constant 0 : index
    %5 = vector.load %arg7[%c0_9, %c0_10] : memref<4x1024xf32, #tpu.memory_space<vmem>>, vector<4x1024xf32>
    %c0_11 = arith.constant 0 : index
    %c0_12 = arith.constant 0 : index
    %c0_13 = arith.constant 0 : index
    %6 = vector.load %arg1[%c0_11, %c0_12, %c0_13] : memref<1x1024x1024xbf16, #tpu.memory_space<vmem>>, vector<1x1024x1024xbf16>
    %7 = vector.shape_cast %6 : vector<1x1024x1024xbf16> to vector<1024x1024xbf16>
    %cst = arith.constant dense<0.000000e+00> : vector<4x1024xf32>
    %8 = tpu.matmul %0, %7, %cst {dimension_numbers = #tpu.dot_dimension_numbers<[1], [0], [0], [1], [0, 0, 1, 1], [], []>} : vector<4x1024xbf16>, vector<1024x1024xbf16>, vector<4x1024xf32> -> vector<4x1024xf32>
    %9 = vector.broadcast %1 : vector<4x1xf32> to vector<4x1024xf32>
    %10 = arith.addf %8, %9 : vector<4x1024xf32>
    %11 = math.tanh %10 : vector<4x1024xf32>
    %cst_14 = arith.constant dense<0.000000e+00> : vector<4x1024xf32>
    %12 = tpu.matmul %2, %11, %cst_14 {dimension_numbers = #tpu.dot_dimension_numbers<[1], [0], [0], [1], [0, 0, 1, 1], [], []>} : vector<4x4xf32>, vector<4x1024xf32>, vector<4x1024xf32> -> vector<4x1024xf32>
    %13 = arith.truncf %12 : vector<4x1024xf32> to vector<4x1024xbf16>
    %cst_15 = arith.constant dense<0.000000e+00> : vector<4x1024xf32>
    %14 = tpu.matmul %13, %7, %cst_15 {dimension_numbers = #tpu.dot_dimension_numbers<[1], [0], [0], [1], [0, 0, 1, 1], [], []>} : vector<4x1024xbf16>, vector<1024x1024xbf16>, vector<4x1024xf32> -> vector<4x1024xf32>
    %15 = vector.broadcast %3 : vector<4x1xf32> to vector<4x1024xf32>
    %16 = arith.addf %14, %15 : vector<4x1024xf32>
    %17 = math.tanh %16 : vector<4x1024xf32>
    %18 = arith.mulf %4, %11 : vector<4x1024xf32>
    %19 = arith.mulf %5, %17 : vector<4x1024xf32>
    %20 = arith.addf %18, %19 : vector<4x1024xf32>
    %c0_16 = arith.constant 0 : index
    %c0_17 = arith.constant 0 : index
    %21 = vector.load %arg8[%c0_16, %c0_17] : memref<1024x128xf32, #tpu.memory_space<vmem>>, vector<1024x128xf32>
    %cst_18 = arith.constant dense<0.000000e+00> : vector<4x128xf32>
    %22 = tpu.matmul %20, %21, %cst_18 {dimension_numbers = #tpu.dot_dimension_numbers<[1], [0], [0], [1], [0, 0, 1, 1], [], []>} : vector<4x1024xf32>, vector<1024x128xf32>, vector<4x128xf32> -> vector<4x128xf32>
    %23 = vector.extract_strided_slice %22 {offsets = [0, 0], sizes = [1, 32], strides = [1, 1]} : vector<4x128xf32> to vector<1x32xf32>
    %24 = vector.extract_strided_slice %22 {offsets = [1, 32], sizes = [1, 32], strides = [1, 1]} : vector<4x128xf32> to vector<1x32xf32>
    %25 = arith.addf %23, %24 : vector<1x32xf32>
    %26 = vector.extract_strided_slice %22 {offsets = [2, 64], sizes = [1, 32], strides = [1, 1]} : vector<4x128xf32> to vector<1x32xf32>
    %27 = arith.addf %25, %26 : vector<1x32xf32>
    %28 = vector.extract_strided_slice %22 {offsets = [3, 96], sizes = [1, 32], strides = [1, 1]} : vector<4x128xf32> to vector<1x32xf32>
    %29 = arith.addf %27, %28 : vector<1x32xf32>
    %c0_19 = arith.constant 0 : index
    %c0_20 = arith.constant 0 : index
    %30 = vector.load %arg9[%c0_19, %c0_20] : memref<1x32xf32, #tpu.memory_space<vmem>>, vector<1x32xf32>
    %31 = arith.mulf %29, %30 : vector<1x32xf32>
    %c0_21 = arith.constant 0 : index
    %c0_22 = arith.constant 0 : index
    %32 = vector.load %arg10[%c0_21, %c0_22] : memref<1x32xf32, #tpu.memory_space<vmem>>, vector<1x32xf32>
    %33 = arith.addf %31, %32 : vector<1x32xf32>
    %cst_23 = arith.constant 0.000000e+00 : f32
    %34 = vector.broadcast %cst_23 : f32 to vector<1x32xf32>
    %35 = arith.maximumf %33, %34 : vector<1x32xf32>
    %c0_24 = arith.constant 0 : index
    %c0_25 = arith.constant 0 : index
    %36 = vector.load %arg11[%c0_24, %c0_25] : memref<32x16xf32, #tpu.memory_space<vmem>>, vector<32x16xf32>
    %cst_26 = arith.constant dense<0.000000e+00> : vector<1x16xf32>
    %37 = tpu.matmul %35, %36, %cst_26 {dimension_numbers = #tpu.dot_dimension_numbers<[1], [0], [0], [1], [0, 0, 1, 1], [], []>} : vector<1x32xf32>, vector<32x16xf32>, vector<1x16xf32> -> vector<1x16xf32>
    %c0_27 = arith.constant 0 : index
    %c0_28 = arith.constant 0 : index
    %38 = vector.load %arg12[%c0_27, %c0_28] : memref<1x16xf32, #tpu.memory_space<vmem>>, vector<1x16xf32>
    %39 = arith.mulf %37, %38 : vector<1x16xf32>
    %c0_29 = arith.constant 0 : index
    %c0_30 = arith.constant 0 : index
    %40 = vector.load %arg13[%c0_29, %c0_30] : memref<1x16xf32, #tpu.memory_space<vmem>>, vector<1x16xf32>
    %41 = arith.addf %39, %40 : vector<1x16xf32>
    %cst_31 = arith.constant 0.000000e+00 : f32
    %42 = vector.broadcast %cst_31 : f32 to vector<1x16xf32>
    %43 = arith.maximumf %41, %42 : vector<1x16xf32>
    %c0_32 = arith.constant 0 : index
    %c0_33 = arith.constant 0 : index
    %44 = vector.load %arg14[%c0_32, %c0_33] : memref<16x16xf32, #tpu.memory_space<vmem>>, vector<16x16xf32>
    %cst_34 = arith.constant dense<0.000000e+00> : vector<1x16xf32>
    %45 = tpu.matmul %43, %44, %cst_34 {dimension_numbers = #tpu.dot_dimension_numbers<[1], [0], [0], [1], [0, 0, 1, 1], [], []>} : vector<1x16xf32>, vector<16x16xf32>, vector<1x16xf32> -> vector<1x16xf32>
    %c0_35 = arith.constant 0 : index
    %c0_36 = arith.constant 0 : index
    %46 = vector.load %arg15[%c0_35, %c0_36] : memref<1x16xf32, #tpu.memory_space<vmem>>, vector<1x16xf32>
    %47 = arith.mulf %45, %46 : vector<1x16xf32>
    %c0_37 = arith.constant 0 : index
    %c0_38 = arith.constant 0 : index
    %48 = vector.load %arg16[%c0_37, %c0_38] : memref<1x16xf32, #tpu.memory_space<vmem>>, vector<1x16xf32>
    %49 = arith.addf %47, %48 : vector<1x16xf32>
    %cst_39 = arith.constant 0.000000e+00 : f32
    %50 = vector.broadcast %cst_39 : f32 to vector<1x16xf32>
    %51 = arith.maximumf %49, %50 : vector<1x16xf32>
    %c0_40 = arith.constant 0 : index
    %c0_41 = arith.constant 0 : index
    %52 = vector.load %arg17[%c0_40, %c0_41] : memref<16x128xf32, #tpu.memory_space<vmem>>, vector<16x128xf32>
    %cst_42 = arith.constant dense<0.000000e+00> : vector<1x128xf32>
    %53 = tpu.matmul %51, %52, %cst_42 {dimension_numbers = #tpu.dot_dimension_numbers<[1], [0], [0], [1], [0, 0, 1, 1], [], []>} : vector<1x16xf32>, vector<16x128xf32>, vector<1x128xf32> -> vector<1x128xf32>
    %c0_43 = arith.constant 0 : index
    %c0_44 = arith.constant 0 : index
    %54 = vector.load %arg18[%c0_43, %c0_44] : memref<1x128xf32, #tpu.memory_space<vmem>>, vector<1x128xf32>
    %55 = arith.addf %53, %54 : vector<1x128xf32>
    %c0_45 = arith.constant 0 : index
    %c0_46 = arith.constant 0 : index
    %c0_47 = arith.constant 0 : index
    %56 = vector.load %arg19[%c0_45, %c0_46, %c0_47] : memref<1x1x128xf32, #tpu.memory_space<vmem>>, vector<1x1x128xf32>
    %57 = vector.shape_cast %56 : vector<1x1x128xf32> to vector<1x128xf32>
    %58 = vector.shape_cast %55 : vector<1x128xf32> to vector<1x1x128xf32>
    tpu.vector_store %arg19[%c0_45, %c0_46, %c0_47], %58 {strides = array<i32>} : memref<1x1x128xf32, #tpu.memory_space<vmem>>, vector<1x1x128xf32>,
    return
  }
  func.func @transform_0(%arg0: i32) -> (i32, i32, i32) {
    %c0_i32 = arith.constant 0 : i32
    %c0_i32_0 = arith.constant 0 : i32
    %c0_i32_1 = arith.constant 0 : i32
    return %arg0, %c0_i32, %c0_i32_0 : i32, i32, i32
  }
  func.func @transform_1(%arg0: i32) -> (i32, i32) {
    %c0_i32 = arith.constant 0 : i32
    %c0_i32_0 = arith.constant 0 : i32
    %c0_i32_1 = arith.constant 0 : i32
    return %c0_i32, %c0_i32_0 : i32, i32
  }
  func.func @transform_2(%arg0: i32) -> (i32, i32) {
    %c0_i32 = arith.constant 0 : i32
    %c0_i32_0 = arith.constant 0 : i32
    %c0_i32_1 = arith.constant 0 : i32
    return %c0_i32, %c0_i32_0 : i32, i32
  }
  func.func @transform_3(%arg0: i32) -> (i32, i32) {
    %c0_i32 = arith.constant 0 : i32
    %c0_i32_0 = arith.constant 0 : i32
    %c0_i32_1 = arith.constant 0 : i32
    return %c0_i32, %c0_i32_0 : i32, i32
  }
  func.func @transform_4(%arg0: i32) -> (i32, i32) {
    %c0_i32 = arith.constant 0 : i32
    %c0_i32_0 = arith.constant 0 : i32
    %c0_i32_1 = arith.constant 0 : i32
    return %c0_i32, %c0_i32_0 : i32, i32
  }
  func.func @transform_5(%arg0: i32) -> (i32, i32) {
    %c0_i32 = arith.constant 0 : i32
    %c0_i32_0 = arith.constant 0 : i32
    %c0_i32_1 = arith.constant 0 : i32
    return %c0_i32, %c0_i32_0 : i32, i32
  }
  func.func @transform_6(%arg0: i32) -> (i32, i32) {
    %c0_i32 = arith.constant 0 : i32
    %c0_i32_0 = arith.constant 0 : i32
    %c0_i32_1 = arith.constant 0 : i32
    return %c0_i32, %c0_i32_0 : i32, i32
  }
  func.func @transform_7(%arg0: i32) -> (i32, i32) {
    %c0_i32 = arith.constant 0 : i32
    %c0_i32_0 = arith.constant 0 : i32
    %c0_i32_1 = arith.constant 0 : i32
    return %c0_i32, %c0_i32_0 : i32, i32
  }
  func.func @transform_8(%arg0: i32) -> (i32, i32) {
    %c0_i32 = arith.constant 0 : i32
    %c0_i32_0 = arith.constant 0 : i32
    %c0_i32_1 = arith.constant 0 : i32
    return %c0_i32, %c0_i32_0 : i32, i32
  }
  func.func @transform_9(%arg0: i32) -> (i32, i32) {
    %c0_i32 = arith.constant 0 : i32
    %c0_i32_0 = arith.constant 0 : i32
    %c0_i32_1 = arith.constant 0 : i32
    return %c0_i32, %c0_i32_0 : i32, i32
  }
  func.func @transform_10(%arg0: i32) -> (i32, i32) {
    %c0_i32 = arith.constant 0 : i32
    %c0_i32_0 = arith.constant 0 : i32
    %c0_i32_1 = arith.constant 0 : i32
    return %c0_i32, %c0_i32_0 : i32, i32
  }
  func.func @transform_11(%arg0: i32) -> (i32, i32) {
    %c0_i32 = arith.constant 0 : i32
    %c0_i32_0 = arith.constant 0 : i32
    %c0_i32_1 = arith.constant 0 : i32
    return %c0_i32, %c0_i32_0 : i32, i32
  }
  func.func @transform_12(%arg0: i32) -> (i32, i32) {
    %c0_i32 = arith.constant 0 : i32
    %c0_i32_0 = arith.constant 0 : i32
    %c0_i32_1 = arith.constant 0 : i32
    return %c0_i32, %c0_i32_0 : i32, i32
  }
  func.func @transform_13(%arg0: i32) -> (i32, i32) {
    %c0_i32 = arith.constant 0 : i32
    %c0_i32_0 = arith.constant 0 : i32
    %c0_i32_1 = arith.constant 0 : i32
    return %c0_i32, %c0_i32_0 : i32, i32
  }
  func.func @transform_14(%arg0: i32) -> (i32, i32) {
    %c0_i32 = arith.constant 0 : i32
    %c0_i32_0 = arith.constant 0 : i32
    %c0_i32_1 = arith.constant 0 : i32
    return %c0_i32, %c0_i32_0 : i32, i32
  }
  func.func @transform_15(%arg0: i32) -> (i32, i32) {
    %c0_i32 = arith.constant 0 : i32
    %c0_i32_0 = arith.constant 0 : i32
    %c0_i32_1 = arith.constant 0 : i32
    return %c0_i32, %c0_i32_0 : i32, i32
  }
  func.func @transform_16(%arg0: i32) -> (i32, i32) {
    %c0_i32 = arith.constant 0 : i32
    %c0_i32_0 = arith.constant 0 : i32
    %c0_i32_1 = arith.constant 0 : i32
    return %c0_i32, %c0_i32_0 : i32, i32
  }
  func.func @transform_17(%arg0: i32) -> (i32, i32) {
    %c0_i32 = arith.constant 0 : i32
    %c0_i32_0 = arith.constant 0 : i32
    %c0_i32_1 = arith.constant 0 : i32
    return %c0_i32, %c0_i32_0 : i32, i32
  }
  func.func @transform_18(%arg0: i32) -> (i32, i32, i32) {
    %c0_i32 = arith.constant 0 : i32
    %c0_i32_0 = arith.constant 0 : i32
    %c0_i32_1 = arith.constant 0 : i32
    return %arg0, %c0_i32, %c0_i32_0 : i32, i32, i32
  }
}

</mosaic_0001>

<bundles_post_ra>
// kernel: tpu_custom_call.1
= control target key start
LH: loop header
LB: loop body
LE: loop exit
PB: predicated region body
PF: predicated region fallthrough
CT: control target
= control target key end

     0   :  { %s11268_s0 = inlined_call_operand.hbm [shape: bf16[2,1024,1024], index: 0, kind: input, shape index: {}]   ;;  %s11269_s1 = inlined_call_operand.hbm [shape: bf16[4,1024], index: 1, kind: input, shape index: {}]   ;;  %s11270_s2 = inlined_call_operand.vmem [shape: f32[4,1], index: 2, kind: input, shape index: {}]   ;;  %s11271_s3 = inlined_call_operand.hbm [shape: f32[4,4], index: 3, kind: input, shape index: {}]   ;;  %s11272_s4 = inlined_call_operand.vmem [shape: f32[4,1], index: 4, kind: input, shape index: {}]   ;;  %s11273_s5 = inlined_call_operand.hbm [shape: f32[4,1024], index: 5, kind: input, shape index: {}]   ;;  %s11274_s6 = inlined_call_operand.hbm [shape: f32[4,1024], index: 6, kind: input, shape index: {}]   ;;  %s11275_s7 = inlined_call_operand.hbm [shape: f32[1024,128], index: 7, kind: input, shape index: {}]   ;;  %s11276_s8 = inlined_call_operand.hbm [shape: f32[1,32], index: 8, kind: input, shape index: {}]   ;;  %s11277_s9 = inlined_call_operand.hbm [shape: f32[1,32], index: 9, kind: input, shape index: {}]   ;;  %s11278_s10 = inlined_call_operand.vmem [shape: f32[32,16], index: 10, kind: input, shape index: {}]   ;;  %s11279_s11 = inlined_call_operand.hbm [shape: f32[1,16], index: 11, kind: input, shape index: {}]   ;;  %s11280_s12 = inlined_call_operand.hbm [shape: f32[1,16], index: 12, kind: input, shape index: {}]   ;;  %s11281_s13 = inlined_call_operand.hbm [shape: f32[16,16], index: 13, kind: input, shape index: {}]   ;;  %s11282_s14 = inlined_call_operand.hbm [shape: f32[1,16], index: 14, kind: input, shape index: {}]   ;;  %s11283_s15 = inlined_call_operand.hbm [shape: f32[1,16], index: 15, kind: input, shape index: {}]   ;;  %s11284_s16 = inlined_call_operand.hbm [shape: f32[16,128], index: 16, kind: input, shape index: {}]   ;;  %s11285_s17 = inlined_call_operand.hbm [shape: f32[1,128], index: 17, kind: input, shape index: {}]   ;;  %s11286_s18 = inlined_call_operand.hbm [shape: f32[2,1,128], index: 18, kind: output, shape index: {}]  }
   0x1   :  { %11774 = sst [smem:[#allocation511_spill]] %s11268_s0 }
   0x2   :  { %11775 = sst [smem:[#allocation512_spill]] %s11269_s1 }
   0x3   :  { %11776 = sst [smem:[#allocation513_spill]] %s11270_s2 }
   0x4   :  { %11777 = sst [smem:[#allocation514_spill]] %s11271_s3 }
   0x5   :  { %11778 = sst [smem:[#allocation515_spill]] %s11272_s4 }
   0x6   :  { %11779 = sst [smem:[#allocation516_spill]] %s11273_s5 }
   0x7   :  { %11780 = sst [smem:[#allocation517_spill]] %s11274_s6 }
   0x8   :  { %11781 = sst [smem:[#allocation518_spill]] %s11275_s7 }
   0x9   :  { %11782 = sst [smem:[#allocation519_spill]] %s11276_s8 }
   0xa   :  { %11783 = sst [smem:[#allocation520_spill]] %s11277_s9 }
   0xb   :  { %11784 = sst [smem:[#allocation521_spill]] %s11278_s10 }
   0xc   :  { %11785 = sst [smem:[#allocation522_spill]] %s11279_s11 }
   0xd   :  { %11786 = sst [smem:[#allocation523_spill]] %s11286_s18 }
   0xe   :  { %23 = vsyncpa [#allocation3], 0 }
   0xf   :  { %25 = vsyncpa [#allocation3 + $0x1], 0 }
  0x10   :  { %26 = vsyncpa [#allocation6], 0 }
  0x11   :  { %27 = vsyncpa [#allocation9], 0 }
  0x12   :  { %28 = vsyncpa [#allocation12], 0 }
  0x13   :  { %29 = vsyncpa [#allocation15], 0 }
  0x14   :  { %30 = vsyncpa [#allocation18], 0 }
  0x15   :  { %31 = vsyncpa [#allocation21], 0 }
  0x16   :  { %32 = vsyncpa [#allocation24], 0 }
  0x17   :  { %33 = vsyncpa [#allocation4], 0 }
  0x18   :  { %35 = vsyncpa [#allocation4 + $0x1], 0  ;;  %s8076_s27 = smov 0   ;;  %s8078_s28 = smov 0  }
  0x19   :  { %s8080_s29 = smov 0   ;;  %s8082_s30 = smov 0  }
  0x1a LB: > { %s7954_s0 = smov [#allocation5]   ;;  %s8097_s1 = sadd.s32 4294967295, %s7952_s30   ;;  %s7952_s30 = sphi %s8082_s30, %s12785_s30   ;;  %s7948_s29 = sphi %s8080_s29, %s12784_s29   ;;  %s7944_s28 = sphi %s8078_s28, %s12783_s28   ;;  %s7940_s27 = sphi %s8076_s27, %s12782_s27  }
  0x1b   : > { %s468_s19 = sshll.u32 %s7954_s0, 4  ;;  %p6493_p0 = scmp.ge.s32.totalorder %s7952_s30, 1  ;;  %s469_s19 = int_to_ptr.vmem [resolvable:$true] %s468_s19 }
  0x1c   : > { %p11289_p1 = scmp.eq.s32.totalorder %s8097_s1, 0  ;;  %p455_p2 = scmp.lt.s32.totalorder %s7952_s30, 3 }
  0x1d   : > { %s7955_s21 = smov [#allocation8]   ;;  %s7956_s2 = smov [#allocation11]  }
  0x1e   : > { %p8102_p3 = pnand %p6493_p0, %p455_p2  ;;  %s496_s22 = sshll.u32 %s7955_s21, 4  ;;  %s497_s22 = int_to_ptr.vmem [resolvable:$true] %s496_s22 }
  0x1f   : > { %s517_s23 = sshll.u32 %s7956_s2, 4  ;;  %s7479_s26 = scalar_lea.vmem %s469_s19, 256  ;;  %s8115_s23 = int_to_ptr.vmem [resolvable:$true] %s517_s23 }
  0x20   : > { %s11787_s20 = scalar_select %p8102_p3, 1, 0 }
  0x21   : > { %p7295_p5 = pneg %p8102_p3  ;;  %p7480_p8 = scmp.ne.s32.totalorder %s469_s19, %s7479_s26 }
  0x22   : > { %p7487_p11 = scmp.lt.s32.totalorder %s469_s19, %s469_s19  ;;  %p7488_p12 = scmp.lt.s32.totalorder %s7479_s26, %s7479_s26 }
  0x23   : > { %p8111_p6 = pnand %p7295_p5, %p11289_p1 }
  0x24   : > { %p7489_p13 = por %p7488_p12, %p7487_p11 }
  0x25   : > { %p8119_p7 = pneg %p8111_p6 }
  0x27   : > { %p7482_p9 = pnand %p7480_p8, %p8119_p7 }
  0x29   : > { %p7483_p10 = pneg %p7482_p9 }
  0x2b   : > { %p7490_p0 = pnand %p7489_p13, %p7483_p10 }
  0x2d   : > { %7493 = shalt.err (!%p7490_p0)
}
  0x2e   : > { %s11790_s2 = sld [smem:[#allocation512_spill]]  ;;  %s7505_s18 = scalar_lea.vmem %s497_s22, 512 }
  0x2f   : > { %p7506_p2 = scmp.ne.s32.totalorder %s497_s22, %s7505_s18  ;;  %p7513_p1 = scmp.lt.s32.totalorder %s497_s22, %s497_s22 }
  0x30   : > { %p7514_p8 = scmp.lt.s32.totalorder %s7505_s18, %s7505_s18 }
  0x31   : > { %p7508_p5 = pnand %p7506_p2, %p8119_p7 }
  0x32   : > { %p7515_p9 = por %p7514_p8, %p7513_p1 }
  0x33   : > { %p7509_p4 = pneg %p7508_p5 }
  0x34   : > { %7298 = dma.hbm_to_vmem [thread:$0]  (!%p8111_p6), %s11790_s2, 256, %s469_s19, [#allocation6]  }
  0x35   : > { %p7516_p3 = pnand %p7515_p9, %p7509_p4 }
  0x37   : > { %7519 = shalt.err (!%p7516_p3)
}
  0x38   : > { %s11791_s5 = sld [smem:[#allocation516_spill]]  ;;  %s7531_s19 = scalar_lea.vmem %s8115_s23, 16384 }
  0x39   : > { %p7532_p10 = scmp.ne.s32.totalorder %s8115_s23, %s7531_s19  ;;  %p7539_p13 = scmp.lt.s32.totalorder %s8115_s23, %s8115_s23 }
  0x3a   : > { %p7540_p1 = scmp.lt.s32.totalorder %s7531_s19, %s7531_s19 }
  0x3b   : > { %p7534_p11 = pnand %p7532_p10, %p8119_p7 }
  0x3c   : > { %p7541_p4 = por %p7540_p1, %p7539_p13 }
  0x3d   : > { %p7535_p12 = pneg %p7534_p11 }
  0x3e   : > { %7304 = dma.hbm_to_vmem [thread:$0]  (!%p8111_p6), %s11791_s5, 512, %s497_s22, [#allocation9]  }
  0x3f   : > { %p7542_p3 = pnand %p7541_p4, %p7535_p12 }
  0x41   : > { %7545 = shalt.err (!%p7542_p3)
}
  0x42   : > { %s11292_s18 = smov 128   ;;  %s11294_s10 = smov 8  }
  0x43   : > { %s11792_s7 = sld [smem:[#allocation518_spill]]  ;;  %s7959_s21 = smov [#allocation14]  }
  0x44   : > { %s542_s2 = sshll.u32 %s7959_s21, 4  ;;  %s7960_s26 = smov [#allocation17]   ;;  %s543_s2 = int_to_ptr.vmem [resolvable:$true] %s542_s2 }
  0x45   : > { %s567_s19 = sshll.u32 %s7960_s26, 4  ;;  %s7557_s5 = scalar_lea.vmem %s543_s2, 16  ;;  %s568_s19 = int_to_ptr.vmem [resolvable:$true] %s567_s19 }
  0x46   : > { %p7558_p0 = scmp.ne.s32.totalorder %s543_s2, %s7557_s5  ;;  %s7564_s4 = scalar_lea.vmem %s543_s2, 32 }
  0x47   : > { %p7565_p8 = scmp.lt.s32.totalorder %s543_s2, %s543_s2  ;;  %p7566_p9 = scmp.lt.s32.totalorder %s7564_s4, %s7557_s5 }
  0x48   : > { %p7560_p2 = pnand %p7558_p0, %p8119_p7 }
  0x49   : > { %7310 = dma.hbm_to_vmem [thread:$0]  (!%p8111_p6), %s11792_s7, 16384, %s8115_s23, [#allocation12], %s11292_s18, %s11292_s18, %s11294_s10  }
  0x4a   : > { %p7561_p5 = pneg %p7560_p2  ;;  %p7567_p10 = por %p7566_p9, %p7565_p8 }
  0x4c   : > { %p7568_p11 = pnand %p7567_p10, %p7561_p5 }
  0x4e   : > { %7571 = shalt.err (!%p7568_p11)
}
  0x4f   : > { %s11793_s9 = sld [smem:[#allocation520_spill]]  ;;  %s7583_s0 = scalar_lea.vmem %s568_s19, 16 }
  0x50   : > { %p7584_p12 = scmp.ne.s32.totalorder %s568_s19, %s7583_s0  ;;  %s7590_s21 = scalar_lea.vmem %s568_s19, 32 }
  0x51   : > { %p7591_p4 = scmp.lt.s32.totalorder %s568_s19, %s568_s19  ;;  %p7592_p3 = scmp.lt.s32.totalorder %s7590_s21, %s7583_s0 }
  0x52   : > { %p7586_p13 = pnand %p7584_p12, %p8119_p7 }
  0x53   : > { %p7593_p0 = por %p7592_p3, %p7591_p4 }
  0x54   : > { %p7587_p1 = pneg %p7586_p13 }
  0x55   : > { %7316 = dma.hbm_to_vmem [thread:$0]  (!%p8111_p6), %s11793_s9, 16, %s543_s2, [#allocation15]  }
  0x56   : > { %p7594_p2 = pnand %p7593_p0, %p7587_p1 }
  0x58   : > { %7597 = shalt.err (!%p7594_p2)
}
  0x59   : > { %7322 = dma.hbm_to_vmem [thread:$0]  (!%p8111_p6), %s11280_s12, 16, %s568_s19, [#allocation18]  }
  0x5a   : > { %s7961_s2 = smov [#allocation20]   ;;  %s7962_s22 = smov [#allocation23]  }
  0x5b   : > { %s591_s26 = sshll.u32 %s7961_s2, 4  ;;  %s612_s23 = sshll.u32 %s7962_s22, 4  ;;  %s592_s26 = int_to_ptr.vmem [resolvable:$true] %s591_s26  ;;  %s613_s23 = int_to_ptr.vmem [resolvable:$true] %s612_s23 }
  0x5c   : > { %s7609_s18 = scalar_lea.vmem %s592_s26, 16  ;;  %s7616_s0 = scalar_lea.vmem %s592_s26, 32 }
  0x5d   : > { %p7610_p5 = scmp.ne.s32.totalorder %s592_s26, %s7609_s18  ;;  %p7617_p10 = scmp.lt.s32.totalorder %s592_s26, %s592_s26 }
  0x5e   : > { %p7618_p11 = scmp.lt.s32.totalorder %s7616_s0, %s7609_s18 }
  0x5f   : > { %p7612_p8 = pnand %p7610_p5, %p8119_p7 }
  0x60   : > { %p7619_p12 = por %p7618_p11, %p7617_p10 }
  0x61   : > { %p7613_p9 = pneg %p7612_p8 }
  0x63   : > { %p7620_p13 = pnand %p7619_p12, %p7613_p9 }
  0x65   : > { %7623 = shalt.err (!%p7620_p13)
}
  0x66   : > { %7328 = dma.hbm_to_vmem [thread:$0]  (!%p8111_p6), %s11282_s14, 16, %s592_s26, [#allocation21]  }
  0x67   : > { %s7635_s4 = scalar_lea.vmem %s613_s23, 256  ;;  %p7643_p0 = scmp.lt.s32.totalorder %s613_s23, %s613_s23 }
  0x68   : > { %p7636_p1 = scmp.ne.s32.totalorder %s613_s23, %s7635_s4  ;;  %p7644_p2 = scmp.lt.s32.totalorder %s7635_s4, %s7635_s4 }
  0x6a   : > { %p7638_p4 = pnand %p7636_p1, %p8119_p7  ;;  %p7645_p5 = por %p7644_p2, %p7643_p0 }
  0x6c   : > { %p7639_p3 = pneg %p7638_p4 }
  0x6e   : > { %p7646_p8 = pnand %p7645_p5, %p7639_p3 }
  0x70   : > { %7649 = shalt.err (!%p7646_p8)
}
  0x71   : > { %s11794_s18 = smov 128   ;;  %s7963_s26 = smov [#allocation7]  }
  0x72   : > { %7334 = dma.hbm_to_vmem [thread:$0]  (!%p8111_p6), %s11284_s16, 256, %s613_s23, [#allocation24], %s11794_s18, %s11794_s18, %s11294_s10  }
  0x73   : > { %s482_s22 = sshll.u32 %s7963_s26, 4  ;;  %s7964_s0 = smov [#allocation10]   ;;  %s483_s22 = int_to_ptr.vmem [resolvable:$true] %s482_s22 }
  0x74   : > { %s507_s21 = sshll.u32 %s7964_s0, 4  ;;  %s7661_s19 = scalar_lea.vmem %s483_s22, 64  ;;  %s508_s21 = int_to_ptr.vmem [resolvable:$true] %s507_s21 }
  0x75   : > { %p7662_p9 = scmp.ne.s32.totalorder %s483_s22, %s7661_s19  ;;  %p7669_p12 = scmp.lt.s32.totalorder %s483_s22, %s483_s22 }
  0x76   : > { %p7670_p13 = scmp.lt.s32.totalorder %s7661_s19, %s7661_s19 }
  0x77   : > { %p7664_p10 = pnand %p7662_p9, %p8119_p7 }
  0x78   : > { %p7671_p1 = por %p7670_p13, %p7669_p12 }
  0x79   : > { %p7665_p11 = pneg %p7664_p10 }
  0x7b   : > { %p7672_p4 = pnand %p7671_p1, %p7665_p11 }
  0x7d   : > { %7675 = shalt.err (!%p7672_p4)
}
  0x7e   : > { %s11795_s3 = sld [smem:[#allocation514_spill]]  ;;  %s7687_s23 = scalar_lea.vmem %s508_s21, 512 }
  0x7f   : > { %p7688_p3 = scmp.ne.s32.totalorder %s508_s21, %s7687_s23  ;;  %p7695_p5 = scmp.lt.s32.totalorder %s508_s21, %s508_s21 }
  0x80   : > { %p7696_p8 = scmp.lt.s32.totalorder %s7687_s23, %s7687_s23 }
  0x81   : > { %p7690_p0 = pnand %p7688_p3, %p8119_p7 }
  0x82   : > { %p7697_p9 = por %p7696_p8, %p7695_p5 }
  0x83   : > { %p7691_p2 = pneg %p7690_p0 }
  0x84   : > { %7301 = dma.hbm_to_vmem [thread:$0]  (!%p8111_p6), %s11795_s3, 64, %s483_s22, [#allocation6]  }
  0x85   : > { %p7698_p10 = pnand %p7697_p9, %p7691_p2 }
  0x87   : > { %7701 = shalt.err (!%p7698_p10)
}
  0x88   : > { %s11796_s6 = sld [smem:[#allocation517_spill]]  ;;  %s7965_s0 = smov [#allocation13]  }
  0x89   : > { %s531_s22 = sshll.u32 %s7965_s0, 4  ;;  %s7966_s19 = smov [#allocation16]   ;;  %s532_s22 = int_to_ptr.vmem [resolvable:$true] %s531_s22 }
  0x8a   : > { %s556_s4 = sshll.u32 %s7966_s19, 4  ;;  %s7713_s5 = scalar_lea.vmem %s532_s22, 16  ;;  %s557_s4 = int_to_ptr.vmem [resolvable:$true] %s556_s4 }
  0x8b   : > { %p7714_p11 = scmp.ne.s32.totalorder %s532_s22, %s7713_s5  ;;  %s7720_s23 = scalar_lea.vmem %s532_s22, 32 }
  0x8c   : > { %p7721_p1 = scmp.lt.s32.totalorder %s532_s22, %s532_s22  ;;  %p7722_p4 = scmp.lt.s32.totalorder %s7720_s23, %s7713_s5 }
  0x8d   : > { %p7716_p12 = pnand %p7714_p11, %p8119_p7 }
  0x8e   : > { %7307 = dma.hbm_to_vmem [thread:$0]  (!%p8111_p6), %s11796_s6, 512, %s508_s21, [#allocation9]  }
  0x8f   : > { %p7717_p13 = pneg %p7716_p12  ;;  %p7723_p3 = por %p7722_p4, %p7721_p1 }
  0x91   : > { %p7724_p0 = pnand %p7723_p3, %p7717_p13 }
  0x93   : > { %7727 = shalt.err (!%p7724_p0)
}
  0x94   : > { %s11797_s8 = sld [smem:[#allocation519_spill]]  ;;  %s7739_s26 = scalar_lea.vmem %s557_s4, 16 }
  0x95   : > { %p7740_p2 = scmp.ne.s32.totalorder %s557_s4, %s7739_s26  ;;  %s7746_s0 = scalar_lea.vmem %s557_s4, 32 }
  0x96   : > { %p7747_p9 = scmp.lt.s32.totalorder %s557_s4, %s557_s4  ;;  %p7748_p10 = scmp.lt.s32.totalorder %s7746_s0, %s7739_s26 }
  0x97   : > { %p7742_p5 = pnand %p7740_p2, %p8119_p7 }
  0x98   : > { %p7749_p11 = por %p7748_p10, %p7747_p9 }
  0x99   : > { %p7743_p8 = pneg %p7742_p5 }
  0x9a   : > { %7313 = dma.hbm_to_vmem [thread:$0]  (!%p8111_p6), %s11797_s8, 16, %s532_s22, [#allocation12]  }
  0x9b   : > { %p7750_p12 = pnand %p7749_p11, %p7743_p8 }
  0x9d   : > { %7753 = shalt.err (!%p7750_p12)
}
  0x9e   : > { %s11798_s11 = sld [smem:[#allocation522_spill]]  ;;  %s7967_s22 = smov [#allocation19]  }
  0x9f   : > { %s577_s23 = sshll.u32 %s7967_s22, 4  ;;  %s7968_s2 = smov [#allocation22]   ;;  %s578_s23 = int_to_ptr.vmem [resolvable:$true] %s577_s23 }
  0xa0   : > { %s602_s21 = sshll.u32 %s7968_s2, 4  ;;  %s7765_s10 = scalar_lea.vmem %s578_s23, 256  ;;  %s603_s21 = int_to_ptr.vmem [resolvable:$true] %s602_s21 }
  0xa1   : > { %p7766_p13 = scmp.ne.s32.totalorder %s578_s23, %s7765_s10  ;;  %p7773_p3 = scmp.lt.s32.totalorder %s578_s23, %s578_s23 }
  0xa2   : > { %p7774_p0 = scmp.lt.s32.totalorder %s7765_s10, %s7765_s10 }
  0xa3   : > { %p7768_p1 = pnand %p7766_p13, %p8119_p7 }
  0xa4   : > { %7319 = dma.hbm_to_vmem [thread:$0]  (!%p8111_p6), %s11798_s11, 16, %s557_s4, [#allocation15]  }
  0xa5   : > { %p7769_p4 = pneg %p7768_p1  ;;  %p7775_p2 = por %p7774_p0, %p7773_p3 }
  0xa7   : > { %p7776_p5 = pnand %p7775_p2, %p7769_p4 }
  0xa9   : > { %7779 = shalt.err (!%p7776_p5)
}
  0xaa   : > { %s11799_s26 = smov 8   ;;  %s7791_s19 = scalar_lea.vmem %s603_s21, 16 }
  0xab   : > { %7325 = dma.hbm_to_vmem [thread:$0]  (!%p8111_p6), %s11281_s13, 256, %s578_s23, [#allocation18], %s11794_s18, %s11794_s18, %s11799_s26  }
  0xac   : > { %p7792_p8 = scmp.ne.s32.totalorder %s603_s21, %s7791_s19  ;;  %s7798_s10 = scalar_lea.vmem %s603_s21, 32 }
  0xad   : > { %p7799_p11 = scmp.lt.s32.totalorder %s603_s21, %s603_s21  ;;  %p7800_p12 = scmp.lt.s32.totalorder %s7798_s10, %s7791_s19 }
  0xae   : > { %p7794_p9 = pnand %p7792_p8, %p8119_p7 }
  0xaf   : > { %p7801_p13 = por %p7800_p12, %p7799_p11 }
  0xb0   : > { %p7795_p10 = pneg %p7794_p9 }
  0xb2   : > { %p7802_p1 = pnand %p7801_p13, %p7795_p10 }
  0xb4   : > { %7805 = shalt.err (!%p7802_p1)
}
  0xb5   : > { %7331 = dma.hbm_to_vmem [thread:$0]  (!%p8111_p6), %s11283_s15, 16, %s603_s21, [#allocation21]  }
  0xb6   : > { %s7969_s18 = smov [#allocation25]  }
  0xb7   : > { %s626_s23 = sshll.u32 %s7969_s18, 4  ;;  %s627_s23 = int_to_ptr.vmem [resolvable:$true] %s626_s23 }
  0xb8   : > { %s7817_s2 = scalar_lea.vmem %s627_s23, 16  ;;  %s7824_s26 = scalar_lea.vmem %s627_s23, 32 }
  0xb9   : > { %p7818_p4 = scmp.ne.s32.totalorder %s627_s23, %s7817_s2  ;;  %p7825_p2 = scmp.lt.s32.totalorder %s627_s23, %s627_s23 }
  0xba   : > { %p7826_p5 = scmp.lt.s32.totalorder %s7824_s26, %s7817_s2 }
  0xbb   : > { %p7820_p3 = pnand %p7818_p4, %p8119_p7 }
  0xbc   : > { %p7827_p8 = por %p7826_p5, %p7825_p2 }
  0xbd   : > { %p7821_p0 = pneg %p7820_p3 }
  0xbf   : > { %p7828_p9 = pnand %p7827_p8, %p7821_p0 }
  0xc1   : > { %7831 = shalt.err (!%p7828_p9)
}
  0xc2   : > { %7337 = dma.hbm_to_vmem [thread:$0]  (!%p8111_p6), %s11285_s17, 16, %s627_s23, [#allocation24]  }
  0xc3   : > { %s6492_s25 = sadd.s32 4294967294, %s7952_s30   ;;  %s8237_s24 = sadd.s32 1, %s7952_s30  }
  0xc4   : > { %s45_s21 = ssub.s32 %s7952_s30, %s8237_s24  ;;  %s48_s19 = sadd.s32 1, %s7948_s29 }
  0xc5   : > { %p46_p7 = scmp.eq.s32.totalorder %s45_s21, 0  ;;  %p55_p10 = scmp.ne.s32.totalorder %s7948_s29, %s7944_s28 }
  0xc6   : > { %p56_p11 = scmp.eq.s32.totalorder %s7952_s30, 0  ;;  %p61_p12 = scmp.ne.s32.totalorder %s7944_s28, %s7940_s27 }
  0xc7   : > { %s8248_s10 = scalar_select %p46_p7, %s7948_s29, %s48_s19  }
  0xc8   : > { %p8250_p13 = por %p56_p11, %p55_p10  ;;  %p11801_p1 = scmp.eq.s32.totalorder %s8097_s1, 0 }
  0xc9   : > { %p442_p4 = scmp.eq.s32.totalorder %s8097_s1, 1  ;;  %p448_p3 = scmp.eq.s32.totalorder %s6492_s25, 1 }
  0xca   : > { %p8256_p6 = por %p11801_p1, %p61_p12  ;;  %p7360_p0 = scmp.lt.s32.totalorder %s7952_s30, 2 }
  0xcb   : > { %s637_s18 = sand.u32 1, %s7948_s29   ;;  %p8263_p2 = por %p442_p4, %p55_p10 }
  0xcc   : > { %s11802_s22 = scalar_select %p8256_p6, 1, 0 }
  0xcd   : > { %s11803_s23 = scalar_select %p8263_p2, 1, 0 }
  0xce   : > { %p8267_p5 = por %p448_p3, %p61_p12  ;;  %s6509_s26 = sshll.u32 %s637_s18, 12 }
  0xcf   : > { %s7058_s4 = sshll.u32 %s7952_s30, 16  ;;  %s11805_s19 = sld [smem:[#allocation511_spill]] }
  0xd0   : > { %s11804_s2 = scalar_select %p8267_p5, 1, 0 }
  0xd1   : > { %s641_s25 = scalar_lea.vmem [#allocation2], %s6509_s26  ;;  %p8281_p8 = pnand %p7360_p0, %p8250_p13 }
  0xd2   : > { %s648_s6 = sshll.u32 %s641_s25, 4  ;;  %s8285_s8 = scalar_lea.sflag [#allocation3], %s637_s18  ;;  %s8277_s6 = int_to_ptr.vmem [resolvable:$true] %s648_s6 }
  0xd3   : > { %p7834_p7 = pneg %p8281_p8 }
  0xd5   : > { %s8275_s3 = scalar_lea.hbm %s11805_s19, %s7058_s4  ;;  %s7837_s26 = scalar_lea.hbm %s11805_s19, 131072 }
  0xd6   : > { %s7832_s9 = scalar_lea.hbm %s8275_s3, 65536  ;;  %p7838_p12 = scmp.lt.s32.totalorder %s8275_s3, %s11805_s19 }
  0xd7   : > { %p7833_p9 = scmp.ne.s32.totalorder %s8275_s3, %s7832_s9  ;;  %p7839_p13 = scmp.lt.s32.totalorder %s7837_s26, %s7832_s9 }
  0xd9   : > { %p7835_p10 = pnand %p7834_p7, %p7833_p9  ;;  %p7840_p1 = por %p7839_p13, %p7838_p12 }
  0xdb   : > { %p7836_p11 = pneg %p7835_p10 }
  0xdd   : > { %p7841_p4 = pnand %p7840_p1, %p7836_p11 }
  0xdf   : > { %7844 = shalt.err (!%p7841_p4)
}
  0xe0   : > { %s7845_s5 = scalar_lea.vmem %s8277_s6, 65536  ;;  %s7970_s18 = smov [#allocation2]  }
  0xe1   : > { %p7846_p3 = scmp.ne.s32.totalorder %s8277_s6, %s7845_s5  ;;  %s7850_s11 = sshll.u32 %s7970_s18, 4  ;;  %s7851_s11 = int_to_ptr.vmem [resolvable:$false] %s7850_s11 }
  0xe2   : > { %s7852_s4 = scalar_lea.vmem %s7851_s11, 131072  ;;  %p7853_p10 = scmp.lt.s32.totalorder %s8277_s6, %s7851_s11 }
  0xe3   : > { %p7848_p0 = pnand %p7846_p3, %p7834_p7  ;;  %p7854_p5 = scmp.lt.s32.totalorder %s7852_s4, %s7845_s5 }
  0xe5   : > { %p7849_p9 = pneg %p7848_p0  ;;  %p7855_p2 = por %p7854_p5, %p7853_p10 }
  0xe7   : > { %p7856_p6 = pnand %p7855_p2, %p7849_p9 }
  0xe9   : > { %7859 = shalt.err (!%p7856_p6)
}
  0xea   : > { %s7971_s9 = smov 512   ;;  %s7972_s0 = smov 32  }
  0xeb   : > { %7341 = dma.hbm_to_vmem [thread:$0]  (!%p8281_p8), %s8275_s3, 65536, %s8277_s6, %s8285_s8, %s7971_s9, %s7971_s9, %s7972_s0  }
  0xec   : > { %p11807_p7 = scmp.ne.s32.totalorder %s11787_s20, 0 }
  0xee   : > { %660 = sbr.rel (%p11807_p7) target bundleno = 2740 (0xab4), region = 92 }
  0xf3   : > { %s8309_s26 = sand.u32 1, %s7944_s28   ;;  %p11808_p6 = scmp.ne.s32.totalorder %s11802_s22, 0 }
  0xf4   : > { %s6513_s11 = sshll.u32 %s8309_s26, 12  ;;  %s663_s21 = scalar_lea.sflag [#allocation3], %s8309_s26 }
  0xf5   : > { %s8313_s25 = scalar_lea.vmem [#allocation2], %s6513_s11 }
  0xf6   : > { %7903 = dma.done.wait (%p11808_p6), %s663_s21, 65536  }
  0xf7   : > { %7905 = vsyncadd (%p11808_p6), %s663_s21, 4294901760  ;;  %p11809_p2 = scmp.eq.s32.totalorder %s8097_s1, 0 }
  0xf9   : > { %7907 = dma.done.wait (%p11809_p2), [#allocation6], 320   ;;  %p11810_p5 = pmov %p11809_p2 }
  0xfa   : > { %p11811_p8 = pmov %p11809_p2 }
  0xfb   : > { %7909 = vsyncadd (%p11810_p5), [#allocation6], 4294966976 }
  0xfc   : > { %7911 = dma.done.wait (%p11811_p8), [#allocation9], 1024   ;;  %p11812_p11 = pmov %p11809_p2 }
  0xfd   : > { %p11813_p12 = pmov %p11809_p2 }
  0xfe   : > { %7913 = vsyncadd (%p11812_p11), [#allocation9], 4294966272 }
  0xff   : > { %7915 = dma.done.wait (%p11813_p12), [#allocation12], 16400   ;;  %p11814_p13 = pmov %p11809_p2 }
 0x100   : > { %p11815_p1 = pmov %p11809_p2 }
 0x101   : > { %7917 = vsyncadd (%p11814_p13), [#allocation12], 4294950896 }
 0x102   : > { %7919 = dma.done.wait (%p11815_p1), [#allocation15], 32   ;;  %p11816_p4 = pmov %p11815_p1 }
 0x103   : > { %p11817_p3 = pmov %p11815_p1 }
 0x104   : > { %7921 = vsyncadd (%p11816_p4), [#allocation15], 4294967264 }
 0x105   : > { %7923 = dma.done.wait (%p11817_p3), [#allocation18], 272   ;;  %p11818_p0 = pmov %p11815_p1 }
 0x107   : > { %7925 = vsyncadd (%p11818_p0), [#allocation18], 4294967024  ;;  %p11819_p9 = pmov %p11818_p0 }
 0x108   : > { %p11820_p10 = pmov %p11818_p0 }
 0x109   : > { %7927 = dma.done.wait (%p11819_p9), [#allocation21], 32  }
 0x10a   : > { %7929 = vsyncadd (%p11820_p10), [#allocation21], 4294967264  ;;  %p11821_p7 = pmov %p11818_p0 }
 0x10b   : > { %p11822_p6 = pmov %p11818_p0 }
 0x10c   : > { %7931 = dma.done.wait (%p11821_p7), [#allocation24], 272  }
 0x10d   : > { %7933 = vsyncadd (%p11822_p6), [#allocation24], 4294967024  ;;  %v843_v0 = vld [vmem:[%s8313_s25 + $0x1c0] sm:$0xff]  ;;  %v7973_v32 = vmov 1983009808   ;;  %v1310_v34 = vlaneseq  ;;  %v7974_v37 = vmov 0  }
 0x10e   : > { %v847_v1 = vld [vmem:[%s8313_s25 + $0x1e0] sm:$0xff]  ;;  %v1308_v33 = vunpack.c.l.s4 %v7973_v32  ;;  %7433 = vset.pattern.permute.xlu0 %v7974_v37  ;;  %s11848_s7 = sld [smem:[#allocation513_spill]]  ;;  %vm4576_vm0 = vcmask 1043456   ;;  %vm4572_vm1 = vcmask 31744   ;;  %s7977_s3 = smov 96   ;;  %vm7978_vm2 = vmmov 0  }
 0x10f   : > { %v971_v2 = vld [vmem:[%s8313_s25 + $0x5c0] sm:$0xff]  ;;  %v8350_v3 = vcombine.high %v843_v0, %v847_v1  ;;  %v8353_v5 = vcombine.low %v843_v0, %v847_v1  ;;  %v1311_v45 = vshrl.u32 %v1310_v34, 7  ;;  %s12178_s22 = sld [smem:[#allocation515_spill]]  ;;  %s7979_s8 = smov 64   ;;  %vm6043_vm3 = vcmask 261120  }
 0x110   : > { %v975_v4 = vld [vmem:[%s8313_s25 + $0x5e0] sm:$0xff]  ;;  %v1309_v44 = vunpack.c.0.s8 %v1308_v33  ;;  %s12777_s4 = sld [smem:[#allocation521_spill]]  ;;  %vm6124_vm4 = vcmask 130048   ;;  %s7055_s20 = sshll.u32 %s8097_s1, 4 }
 0x111   : > { %v835_v6 = vld [vmem:[%s8313_s25 + $0x180] sm:$0xff]  ;;  %v8357_v8 = vcombine.high %v971_v2, %v975_v4  ;;  %v8359_v9 = vcombine.low %v971_v2, %v975_v4  ;;  %3908 = vmatprep.subr.bf16.mxu0 %v8350_v3  ;;  %s12778_s0 = sld [smem:[#allocation523_spill]]  ;;  %s6281_s21 = scalar_lea.sflag [#allocation4], %s8309_s26 }
 0x112   : > { %v839_v7 = vld [vmem:[%s8313_s25 + $0x1a0] sm:$0xff]  ;;  %3909 = vmatpush1.bf16.msra.mxu0 %v8353_v5  ;;  %v8435_v54 = vsub.s32 %v1309_v44, %v1311_v45  ;;  %p12779_p5 = scmp.ne.s32.totalorder %s11803_s23, 0 }
 0x113   : > { %11823 = vst [vmem:[#allocation36_spill] sm:$0xff] %v8357_v8  ;;  %11824 = vst [vmem:[#allocation37_spill] sm:$0xff] %v8359_v9  ;;  %v8361_v10 = vcombine.high %v835_v6, %v839_v7  ;;  %v963_v11 = vld [vmem:[%s8313_s25 + $0x580] sm:$0xff]  ;;  %3949 = vmatprep.subr.bf16.mxu1 %v8357_v8  ;;  %v8374_v18 = vcombine.low %v835_v6, %v839_v7  ;;  %v833_v8 = vld [vmem:[%s8313_s25 + $0x170] sm:$0xff] }
 0x114   : > { %v967_v12 = vld [vmem:[%s8313_s25 + $0x5a0] sm:$0xff]  ;;  %3950 = vmatpush1.bf16.msra.mxu1 %v8359_v9  ;;  %v832_v9 = vld [vmem:[%s8313_s25 + $0x168] sm:$0xff] }
 0x115   : > { %v827_v13 = vld [vmem:[%s8313_s25 + $0x140] sm:$0xff]  ;;  %v8367_v14 = vcombine.high %v963_v11, %v967_v12  ;;  %3910 = vmatprep.subr.bf16.mxu0 %v8361_v10  ;;  %v8378_v19 = vcombine.low %v963_v11, %v967_v12 }
 0x116   : > { %v831_v15 = vld [vmem:[%s8313_s25 + $0x160] sm:$0xff]  ;;  %3911 = vmatpush1.bf16.msra.mxu0 %v8374_v18 }
 0x117   : > { %11825 = vst [vmem:[#allocation38_spill] sm:$0xff] %v8367_v14  ;;  %v955_v16 = vld [vmem:[%s8313_s25 + $0x540] sm:$0xff]  ;;  %11826 = vst [vmem:[#allocation39_spill] sm:$0xff] %v8378_v19  ;;  %v8380_v20 = vcombine.high %v827_v13, %v831_v15  ;;  %3951 = vmatprep.subr.bf16.mxu1 %v8367_v14  ;;  %v8390_v26 = vcombine.low %v827_v13, %v831_v15  ;;  %s11231_s11 = scalar_lea.hbm %s12778_s0, %s7055_s20 }
 0x118   : > { %v959_v17 = vld [vmem:[%s8313_s25 + $0x560] sm:$0xff]  ;;  %3952 = vmatpush1.bf16.msra.mxu1 %v8378_v19 }
 0x119   : > { %v8383_v21 = vcombine.high %v955_v16, %v959_v17  ;;  %v819_v22 = vld [vmem:[%s8313_s25 + $0x100] sm:$0xff]  ;;  %3912 = vmatprep.subr.bf16.mxu0 %v8380_v20  ;;  %v8394_v27 = vcombine.low %v955_v16, %v959_v17 }
 0x11a   : > { %v823_v23 = vld [vmem:[%s8313_s25 + $0x120] sm:$0xff]  ;;  %3913 = vmatpush1.bf16.msra.mxu0 %v8390_v26 }
 0x11b   : > { %11827 = vst [vmem:[#allocation40_spill] sm:$0xff] %v8383_v21  ;;  %v947_v24 = vld [vmem:[%s8313_s25 + $0x500] sm:$0xff]  ;;  %11828 = vst [vmem:[#allocation41_spill] sm:$0xff] %v8394_v27  ;;  %v8396_v28 = vcombine.high %v819_v22, %v823_v23  ;;  %3953 = vmatprep.subr.bf16.mxu1 %v8383_v21  ;;  %v8406_v38 = vcombine.low %v819_v22, %v823_v23 }
 0x11c   : > { %v951_v25 = vld [vmem:[%s8313_s25 + $0x520] sm:$0xff]  ;;  %3954 = vmatpush1.bf16.msra.mxu1 %v8394_v27 }
 0x11d   : > { %v8399_v29 = vcombine.high %v947_v24, %v951_v25  ;;  %v811_v30 = vld [vmem:[%s8313_s25 + $0xc0] sm:$0xff]  ;;  %3914 = vmatprep.subr.bf16.mxu0 %v8396_v28  ;;  %v8410_v39 = vcombine.low %v947_v24, %v951_v25 }
 0x11e   : > { %v815_v31 = vld [vmem:[%s8313_s25 + $0xe0] sm:$0xff]  ;;  %3915 = vmatpush1.bf16.msra.mxu0 %v8406_v38 }
 0x11f   : > { %11829 = vst [vmem:[#allocation42_spill] sm:$0xff] %v8399_v29  ;;  %v939_v35 = vld [vmem:[%s8313_s25 + $0x4c0] sm:$0xff]  ;;  %11830 = vst [vmem:[#allocation43_spill] sm:$0xff] %v8410_v39  ;;  %v8412_v40 = vcombine.high %v811_v30, %v815_v31  ;;  %3955 = vmatprep.subr.bf16.mxu1 %v8399_v29  ;;  %v8422_v48 = vcombine.low %v811_v30, %v815_v31 }
 0x120   : > { %v943_v36 = vld [vmem:[%s8313_s25 + $0x4e0] sm:$0xff]  ;;  %3956 = vmatpush1.bf16.msra.mxu1 %v8410_v39 }
 0x121   : > { %v8415_v41 = vcombine.high %v939_v35, %v943_v36  ;;  %v803_v42 = vld [vmem:[%s8313_s25 + $0x80] sm:$0xff]  ;;  %3916 = vmatprep.subr.bf16.mxu0 %v8412_v40  ;;  %v8426_v49 = vcombine.low %v939_v35, %v943_v36 }
 0x122   : > { %v807_v43 = vld [vmem:[%s8313_s25 + $0xa0] sm:$0xff]  ;;  %3917 = vmatpush1.bf16.msra.mxu0 %v8422_v48 }
 0x123   : > { %11831 = vst [vmem:[#allocation44_spill] sm:$0xff] %v8415_v41  ;;  %v931_v46 = vld [vmem:[%s8313_s25 + $0x480] sm:$0xff]  ;;  %11832 = vst [vmem:[#allocation45_spill] sm:$0xff] %v8426_v49  ;;  %v8428_v50 = vcombine.high %v803_v42, %v807_v43  ;;  %3957 = vmatprep.subr.bf16.mxu1 %v8415_v41  ;;  %v8440_v57 = vcombine.low %v803_v42, %v807_v43 }
 0x124   : > { %v935_v47 = vld [vmem:[%s8313_s25 + $0x4a0] sm:$0xff]  ;;  %3958 = vmatpush1.bf16.msra.mxu1 %v8426_v49 }
 0x125   : > { %v8431_v51 = vcombine.high %v931_v46, %v935_v47  ;;  %v795_v52 = vld [vmem:[%s8313_s25 + $0x40] sm:$0xff]  ;;  %3918 = vmatprep.subr.bf16.mxu0 %v8428_v50  ;;  %v8444_v58 = vcombine.low %v931_v46, %v935_v47 }
 0x126   : > { %v799_v53 = vld [vmem:[%s8313_s25 + $0x60] sm:$0xff]  ;;  %3919 = vmatpush1.bf16.msra.mxu0 %v8440_v57 }
 0x127   : > { %11833 = vst [vmem:[#allocation46_spill] sm:$0xff] %v8431_v51  ;;  %v923_v55 = vld [vmem:[%s8313_s25 + $0x440] sm:$0xff]  ;;  %11834 = vst [vmem:[#allocation47_spill] sm:$0xff] %v8444_v58  ;;  %v8446_v59 = vcombine.high %v795_v52, %v799_v53  ;;  %3959 = vmatprep.subr.bf16.mxu1 %v8431_v51  ;;  %v8459_v6 = vcombine.low %v795_v52, %v799_v53 }
 0x128   : > { %v927_v56 = vld [vmem:[%s8313_s25 + $0x460] sm:$0xff]  ;;  %3960 = vmatpush1.bf16.msra.mxu1 %v8444_v58 }
 0x129   : > { %v774_v60 = vld [vmem:[#allocation5] sm:$0xff]  ;;  %v8449_v61 = vcombine.high %v923_v55, %v927_v56  ;;  %3920 = vmatprep.subr.bf16.mxu0 %v8446_v59  ;;  %v8470_v12 = vcombine.low %v923_v55, %v927_v56 }
 0x12a   : > { %v787_v62 = vld [vmem:[%s8313_s25] sm:$0xff]  ;;  %v8454_v0 = vrot.slane %v774_v60, %v8435_v54  ;;  %v1306_v1 = vcombine.high %v774_v60, %v774_v60  ;;  %3921 = vmatpush1.bf16.msra.mxu0 %v8459_v6 }
 0x12b   : > { %11835 = vst [vmem:[#allocation48_spill] sm:$0xff] %v8449_v61  ;;  %v791_v63 = vld [vmem:[%s8313_s25 + $0x20] sm:$0xff]  ;;  %11836 = vst [vmem:[#allocation49_spill] sm:$0xff] %v8470_v12  ;;  %3961 = vmatprep.subr.bf16.mxu1 %v8449_v61 }
 0x12c   : > { %v915_v2 = vld [vmem:[%s8313_s25 + $0x400] sm:$0xff]  ;;  %v8463_v7 = vcombine.high %v8454_v0, %v8454_v0  ;;  %v8466_v11 = vrot.slane %v1306_v1, %v8435_v54  ;;  %v8472_v13 = vcombine.high %v787_v62, %v791_v63  ;;  %v8487_v25 = vcombine.low %v787_v62, %v791_v63  ;;  %3962 = vmatpush1.bf16.msra.mxu1 %v8470_v12 }
 0x12d   : > { %v919_v4 = vld [vmem:[%s8313_s25 + $0x420] sm:$0xff] }
 0x12e   : > { %v8475_v15 = vcombine.high %v915_v2, %v919_v4  ;;  %v907_v16 = vld [vmem:[%s8313_s25 + $0x3c0] sm:$0xff]  ;;  %3940 = vmatprep.mubr.bf16.mxu0 %v8463_v7  ;;  %v8482_v22 = vcombine.high %v8466_v11, %v8466_v11  ;;  %3922 = vmatprep.subr.bf16.mxu0 %v8472_v13  ;;  %v8492_v30 = vcombine.low %v915_v2, %v919_v4 }
 0x12f   : > { %v911_v17 = vld [vmem:[%s8313_s25 + $0x3e0] sm:$0xff]  ;;  %3923 = vmatpush1.bf16.msra.mxu0 %v8487_v25 }
 0x130   : > { %11837 = vst [vmem:[#allocation50_spill] sm:$0xff] %v8475_v15  ;;  %v1035_v23 = vld [vmem:[%s8313_s25 + $0x7c0] sm:$0xff]  ;;  %3981 = vmatprep.mubr.bf16.mxu1 %v8482_v22  ;;  %11838 = vst [vmem:[#allocation51_spill] sm:$0xff] %v8492_v30  ;;  %v8494_v31 = vcombine.high %v907_v16, %v911_v17  ;;  %3963 = vmatprep.subr.bf16.mxu1 %v8475_v15  ;;  %v8504_v37 = vcombine.low %v907_v16, %v911_v17 }
 0x131   : > { %v1039_v24 = vld [vmem:[%s8313_s25 + $0x7e0] sm:$0xff]  ;;  %3964 = vmatpush1.bf16.msra.mxu1 %v8492_v30 }
 0x132   : > { %v8497_v32 = vcombine.high %v1035_v23, %v1039_v24  ;;  %v899_v33 = vld [vmem:[%s8313_s25 + $0x380] sm:$0xff]  ;;  %3924 = vmatprep.subr.bf16.mxu0 %v8494_v31  ;;  %v8508_v42 = vcombine.low %v1035_v23, %v1039_v24 }
 0x133   : > { %v903_v34 = vld [vmem:[%s8313_s25 + $0x3a0] sm:$0xff]  ;;  %3925 = vmatpush2.bf16.msra.mxu0 %v8504_v37 }
 0x134   : > { %11839 = vst [vmem:[#allocation52_spill] sm:$0xff] %v8497_v32  ;;  %v1027_v35 = vld [vmem:[%s8313_s25 + $0x780] sm:$0xff]  ;;  %11840 = vst [vmem:[#allocation53_spill] sm:$0xff] %v8508_v42  ;;  %v8510_v43 = vcombine.high %v899_v33, %v903_v34  ;;  %3965 = vmatprep.subr.bf16.mxu1 %v8497_v32  ;;  %v8520_v53 = vcombine.low %v899_v33, %v903_v34 }
 0x135   : > { %v1031_v36 = vld [vmem:[%s8313_s25 + $0x7a0] sm:$0xff]  ;;  %3966 = vmatpush2.bf16.msra.mxu1 %v8508_v42 }
 0x136   : > { %v8513_v44 = vcombine.high %v1027_v35, %v1031_v36  ;;  %v891_v45 = vld [vmem:[%s8313_s25 + $0x340] sm:$0xff]  ;;  %3926 = vmatprep.subr.bf16.mxu0 %v8510_v43  ;;  %v8524_v55 = vcombine.low %v1027_v35, %v1031_v36 }
 0x137   : > { %v895_v46 = vld [vmem:[%s8313_s25 + $0x360] sm:$0xff]  ;;  %3927 = vmatpush2.bf16.msra.mxu0 %v8520_v53 }
 0x138   : > { %11841 = vst [vmem:[#allocation54_spill] sm:$0xff] %v8513_v44  ;;  %v1019_v47 = vld [vmem:[%s8313_s25 + $0x740] sm:$0xff]  ;;  %11842 = vst [vmem:[#allocation55_spill] sm:$0xff] %v8524_v55  ;;  %v8526_v56 = vcombine.high %v891_v45, %v895_v46  ;;  %3967 = vmatprep.subr.bf16.mxu1 %v8513_v44  ;;  %v8536_v4 = vcombine.low %v891_v45, %v895_v46 }
 0x139   : > { %v1023_v52 = vld [vmem:[%s8313_s25 + $0x760] sm:$0xff]  ;;  %3968 = vmatpush2.bf16.msra.mxu1 %v8524_v55 }
 0x13a   : > { %v8529_v60 = vcombine.high %v1019_v47, %v1023_v52  ;;  %v883_v62 = vld [vmem:[%s8313_s25 + $0x300] sm:$0xff]  ;;  %3928 = vmatprep.subr.bf16.mxu0 %v8526_v56  ;;  %v8540_v16 = vcombine.low %v1019_v47, %v1023_v52 }
 0x13b   : > { %v887_v63 = vld [vmem:[%s8313_s25 + $0x320] sm:$0xff]  ;;  %3929 = vmatpush2.bf16.msra.mxu0 %v8536_v4 }
 0x13c   : > { %11843 = vst [vmem:[#allocation56_spill] sm:$0xff] %v8529_v60  ;;  %v1011_v1 = vld [vmem:[%s8313_s25 + $0x700] sm:$0xff]  ;;  %11844 = vst [vmem:[#allocation57_spill] sm:$0xff] %v8540_v16  ;;  %v8542_v17 = vcombine.high %v883_v62, %v887_v63  ;;  %3969 = vmatprep.subr.bf16.mxu1 %v8529_v60  ;;  %v8552_v36 = vcombine.low %v883_v62, %v887_v63 }
 0x13d   : > { %v1015_v2 = vld [vmem:[%s8313_s25 + $0x720] sm:$0xff]  ;;  %3970 = vmatpush2.bf16.msra.mxu1 %v8540_v16 }
 0x13e   : > { %v8545_v23 = vcombine.high %v1011_v1, %v1015_v2  ;;  %v875_v24 = vld [vmem:[%s8313_s25 + $0x2c0] sm:$0xff]  ;;  %3930 = vmatprep.subr.bf16.mxu0 %v8542_v17  ;;  %v8556_v45 = vcombine.low %v1011_v1, %v1015_v2 }
 0x13f   : > { %v879_v33 = vld [vmem:[%s8313_s25 + $0x2e0] sm:$0xff]  ;;  %3931 = vmatpush2.bf16.msra.mxu0 %v8552_v36 }
 0x140   : > { %11845 = vst [vmem:[#allocation58_spill] sm:$0xff] %v8545_v23  ;;  %v1003_v34 = vld [vmem:[%s8313_s25 + $0x6c0] sm:$0xff]  ;;  %11846 = vst [vmem:[#allocation59_spill] sm:$0xff] %v8556_v45  ;;  %v8558_v46 = vcombine.high %v875_v24, %v879_v33  ;;  %3971 = vmatprep.subr.bf16.mxu1 %v8545_v23  ;;  %v8571_v1 = vcombine.low %v875_v24, %v879_v33 }
 0x141   : > { %v1007_v35 = vld [vmem:[%s8313_s25 + $0x6e0] sm:$0xff]  ;;  %3972 = vmatpush2.bf16.msra.mxu1 %v8556_v45 }
 0x142   : > { %v8561_v47 = vcombine.high %v1003_v34, %v1007_v35  ;;  %v867_v52 = vld [vmem:[%s8313_s25 + $0x280] sm:$0xff]  ;;  %3932 = vmatprep.subr.bf16.mxu0 %v8558_v46  ;;  %v8575_v2 = vcombine.low %v1003_v34, %v1007_v35 }
 0x143   : > { %v871_v60 = vld [vmem:[%s8313_s25 + $0x2a0] sm:$0xff]  ;;  %3933 = vmatpush2.bf16.msra.mxu0 %v8571_v1 }
 0x144   : > { %11847 = vst [vmem:[#allocation60_spill] sm:$0xff] %v8561_v47  ;;  %v776_v62 = vld [vmem:[%s11848_s7] sm:$0xf]  ;;  %11849 = vst [vmem:[#allocation61_spill] sm:$0xff] %v8575_v2  ;;  %v8577_v23 = vcombine.high %v867_v52, %v871_v60  ;;  %3973 = vmatprep.subr.bf16.mxu1 %v8561_v47  ;;  %v8587_v45 = vcombine.low %v867_v52, %v871_v60 }
 0x145   : > { %v995_v63 = vld [vmem:[%s8313_s25 + $0x680] sm:$0xff]  ;;  %1301 = vperm.xlu0 %7433, %v776_v62   ;;  %3974 = vmatpush2.bf16.msra.mxu1 %v8575_v2 }
 0x146   : > { %v999_v16 = vld [vmem:[%s8313_s25 + $0x6a0] sm:$0xff]  ;;  %3934 = vmatprep.subr.bf16.mxu0 %v8577_v23 }
 0x147   : > { %v8580_v55 = vcombine.high %v995_v63, %v999_v16  ;;  %v859_v62 = vld [vmem:[%s8313_s25 + $0x240] sm:$0xff]  ;;  %v8591_v34 = vcombine.low %v995_v63, %v999_v16  ;;  %3935 = vmatpush2.bf16.msra.mxu0 %v8587_v45  ;;  %v775_v16 = vld [vmem:[#allocation5 + $0x8] sm:$0xff] }
 0x148   : > { %v863_v44 = vld [vmem:[%s8313_s25 + $0x260] sm:$0xff]  ;;  %v1323_v61 = vcombine.high %v775_v16, %v775_v16  ;;  %v8633_v49 = vrot.slane %v775_v16, %v8435_v54 }
 0x149   : > { %11850 = vst [vmem:[#allocation62_spill] sm:$0xff] %v8580_v55  ;;  %v987_v24 = vld [vmem:[%s8313_s25 + $0x640] sm:$0xff]  ;;  %11851 = vst [vmem:[#allocation63_spill] sm:$0xff] %v8591_v34  ;;  %v8593_v35 = vcombine.high %v859_v62, %v863_v44  ;;  %3975 = vmatprep.subr.bf16.mxu1 %v8580_v55  ;;  %v8603_v2 = vcombine.low %v859_v62, %v863_v44 }
 0x14a   : > { %v991_v33 = vld [vmem:[%s8313_s25 + $0x660] sm:$0xff]  ;;  %3976 = vmatpush2.bf16.msra.mxu1 %v8591_v34 }
 0x14b   : > { %v8596_v47 = vcombine.high %v987_v24, %v991_v33  ;;  %v851_v42 = vld [vmem:[%s8313_s25 + $0x200] sm:$0xff]  ;;  %3936 = vmatprep.subr.bf16.mxu0 %v8593_v35  ;;  %v8607_v63 = vcombine.low %v987_v24, %v991_v33 }
 0x14c   : > { %v855_v32 = vld [vmem:[%s8313_s25 + $0x220] sm:$0xff]  ;;  %3937 = vmatpush2.bf16.msra.mxu0 %v8603_v2 }
 0x14d   : > { %11852 = vst [vmem:[#allocation64_spill] sm:$0xff] %v8596_v47  ;;  %v979_v60 = vld [vmem:[%s8313_s25 + $0x600] sm:$0xff]  ;;  %11853 = vst [vmem:[#allocation65_spill] sm:$0xff] %v8607_v63  ;;  %v8609_v55 = vcombine.high %v851_v42, %v855_v32  ;;  %3977 = vmatprep.subr.bf16.mxu1 %v8596_v47  ;;  %v8619_v34 = vcombine.low %v851_v42, %v855_v32 }
 0x14e   : > { %v983_v52 = vld [vmem:[%s8313_s25 + $0x620] sm:$0xff]  ;;  %3978 = vmatpush2.bf16.msra.mxu1 %v8607_v63 }
 0x14f   : > { %v8612_v30 = vcombine.high %v979_v60, %v983_v52  ;;  %v1099_v15 = vld [vmem:[%s8313_s25 + $0x9c0] sm:$0xff]  ;;  %3938 = vmatprep.subr.bf16.mxu0 %v8609_v55  ;;  %v8623_v24 = vcombine.low %v979_v60, %v983_v52  ;;  %v8638_v60 = vrot.slane %v1323_v61, %v8435_v54  ;;  %v8656_v61 = vcombine.high %v8633_v49, %v8633_v49 }
 0x150   : > { %v1103_v12 = vld [vmem:[%s8313_s25 + $0x9e0] sm:$0xff]  ;;  %3939 = vmatpush2.bf16.msra.mxu0 %v8619_v34 }
 0x151   : > { %11854 = vst [vmem:[#allocation66_spill] sm:$0xff] %v8612_v30  ;;  %v1227_v44 = vld [vmem:[%s8313_s25 + $0xdc0] sm:$0xff]  ;;  %11855 = vst [vmem:[#allocation67_spill] sm:$0xff] %v8623_v24  ;;  %v8625_v33 = vcombine.high %v1099_v15, %v1103_v12  ;;  %3979 = vmatprep.subr.bf16.mxu1 %v8612_v30  ;;  %v8641_v52 = vcombine.low %v1099_v15, %v1103_v12 }
 0x152   : > { %v1231_v62 = vld [vmem:[%s8313_s25 + $0xde0] sm:$0xff]  ;;  %3980 = vmatpush2.bf16.msra.mxu1 %v8623_v24 }
 0x153   : > { %11856 = vst [vmem:[#allocation68_spill] sm:$0xff] %v8625_v33  ;;  %v8628_v47 = vcombine.high %v1227_v44, %v1231_v62  ;;  %v1091_v58 = vld [vmem:[%s8313_s25 + $0x980] sm:$0xff]  ;;  %11858 = vst [vmem:[#allocation70_spill] sm:$0xff] %v8641_v52  ;;  %3990 = vmatprep.subr.bf16.mxu0 %v8625_v33  ;;  %v8645_v30 = vcombine.low %v1227_v44, %v1231_v62  ;;  %3941 = vmatmul.mubr.bf16.vlgmr.msra.gmra.mxu0 %v8454_v0 }
 0x154   : > { %v1095_v51 = vld [vmem:[%s8313_s25 + $0x9a0] sm:$0xff]  ;;  %v8663_v44 = vcombine.high %v8638_v60, %v8638_v60  ;;  %3991 = vmatpush1.bf16.msra.mxu0 %v8641_v52  ;;  %4022 = vmatprep.mubr.bf16.mxu0 %v8656_v61 }
 0x155   : > { %11857 = vst [vmem:[#allocation69_spill] sm:$0xff] %v8628_v47  ;;  %v1219_v32 = vld [vmem:[%s8313_s25 + $0xd80] sm:$0xff]  ;;  %11859 = vst [vmem:[#allocation71_spill] sm:$0xff] %v8645_v30  ;;  %v8647_v63 = vcombine.high %v1091_v58, %v1095_v51  ;;  %4031 = vmatprep.subr.bf16.mxu1 %v8628_v47  ;;  %3982 = vmatmul.mubr.bf16.vlgmr.msra.gmra.mxu1 %v8466_v11  ;;  %v8667_v62 = vcombine.low %v1091_v58, %v1095_v51 }
 0x156   : > { %v1223_v42 = vld [vmem:[%s8313_s25 + $0xda0] sm:$0xff]  ;;  %4032 = vmatpush1.bf16.msra.mxu1 %v8645_v30  ;;  %4063 = vmatprep.mubr.bf16.mxu1 %v8663_v44 }
 0x157   : > { %11860 = vst [vmem:[#allocation72_spill] sm:$0xff] %v8647_v63  ;;  %v8650_v16 = vcombine.high %v1219_v32, %v1223_v42  ;;  %v1083_v41 = vld [vmem:[%s8313_s25 + $0x940] sm:$0xff]  ;;  %11862 = vst [vmem:[#allocation74_spill] sm:$0xff] %v8667_v62  ;;  %3992 = vmatprep.subr.bf16.mxu0 %v8647_v63  ;;  %v8671_v47 = vcombine.low %v1219_v32, %v1223_v42 }
 0x158   : > { %v1087_v54 = vld [vmem:[%s8313_s25 + $0x960] sm:$0xff]  ;;  %3993 = vmatpush1.bf16.msra.mxu0 %v8667_v62 }
 0x159   : > { %11861 = vst [vmem:[#allocation73_spill] sm:$0xff] %v8650_v16  ;;  %v1211_v12 = vld [vmem:[%s8313_s25 + $0xd40] sm:$0xff]  ;;  %11863 = vst [vmem:[#allocation75_spill] sm:$0xff] %v8671_v47  ;;  %v8673_v24 = vcombine.high %v1083_v41, %v1087_v54  ;;  %4033 = vmatprep.subr.bf16.mxu1 %v8650_v16  ;;  %v8685_v32 = vcombine.low %v1083_v41, %v1087_v54 }
 0x15a   : > { %v1215_v15 = vld [vmem:[%s8313_s25 + $0xd60] sm:$0xff]  ;;  %4034 = vmatpush1.bf16.msra.mxu1 %v8671_v47 }
 0x15b   : > { %11864 = vst [vmem:[#allocation76_spill] sm:$0xff] %v8673_v24  ;;  %v8676_v39 = vcombine.high %v1211_v12, %v1215_v15  ;;  %v1075_v29 = vld [vmem:[%s8313_s25 + $0x900] sm:$0xff]  ;;  %11866 = vst [vmem:[#allocation78_spill] sm:$0xff] %v8685_v32  ;;  %3994 = vmatprep.subr.bf16.mxu0 %v8673_v24  ;;  %v8689_v42 = vcombine.low %v1211_v12, %v1215_v15 }
 0x15c   : > { %v1079_v27 = vld [vmem:[%s8313_s25 + $0x920] sm:$0xff]  ;;  %3995 = vmatpush1.bf16.msra.mxu0 %v8685_v32 }
 0x15d   : > { %11865 = vst [vmem:[#allocation77_spill] sm:$0xff] %v8676_v39  ;;  %v1203_v51 = vld [vmem:[%s8313_s25 + $0xd00] sm:$0xff]  ;;  %11867 = vst [vmem:[#allocation79_spill] sm:$0xff] %v8689_v42  ;;  %v8691_v16 = vcombine.high %v1075_v29, %v1079_v27  ;;  %4035 = vmatprep.subr.bf16.mxu1 %v8676_v39  ;;  %v8701_v47 = vcombine.low %v1075_v29, %v1079_v27 }
 0x15e   : > { %v1207_v58 = vld [vmem:[%s8313_s25 + $0xd20] sm:$0xff]  ;;  %4036 = vmatpush1.bf16.msra.mxu1 %v8689_v42 }
 0x15f   : > { %11868 = vst [vmem:[#allocation80_spill] sm:$0xff] %v8691_v16  ;;  %v8694_v30 = vcombine.high %v1203_v51, %v1207_v58  ;;  %v1067_v21 = vld [vmem:[%s8313_s25 + $0x8c0] sm:$0xff]  ;;  %11870 = vst [vmem:[#allocation82_spill] sm:$0xff] %v8701_v47  ;;  %3996 = vmatprep.subr.bf16.mxu0 %v8691_v16  ;;  %v8705_v12 = vcombine.low %v1203_v51, %v1207_v58 }
 0x160   : > { %v1071_v19 = vld [vmem:[%s8313_s25 + $0x8e0] sm:$0xff]  ;;  %3997 = vmatpush1.bf16.msra.mxu0 %v8701_v47 }
 0x161   : > { %11869 = vst [vmem:[#allocation81_spill] sm:$0xff] %v8694_v30  ;;  %v1195_v41 = vld [vmem:[%s8313_s25 + $0xcc0] sm:$0xff]  ;;  %11871 = vst [vmem:[#allocation83_spill] sm:$0xff] %v8705_v12  ;;  %v8707_v15 = vcombine.high %v1067_v21, %v1071_v19  ;;  %4037 = vmatprep.subr.bf16.mxu1 %v8694_v30  ;;  %v8717_v42 = vcombine.low %v1067_v21, %v1071_v19 }
 0x162   : > { %v1199_v54 = vld [vmem:[%s8313_s25 + $0xce0] sm:$0xff]  ;;  %4038 = vmatpush1.bf16.msra.mxu1 %v8705_v12 }
 0x163   : > { %11872 = vst [vmem:[#allocation84_spill] sm:$0xff] %v8707_v15  ;;  %v8710_v39 = vcombine.high %v1195_v41, %v1199_v54  ;;  %v1059_v14 = vld [vmem:[%s8313_s25 + $0x880] sm:$0xff]  ;;  %11874 = vst [vmem:[#allocation86_spill] sm:$0xff] %v8717_v42  ;;  %3998 = vmatprep.subr.bf16.mxu0 %v8707_v15  ;;  %v8721_v51 = vcombine.low %v1195_v41, %v1199_v54 }
 0x164   : > { %v1063_v32 = vld [vmem:[%s8313_s25 + $0x8a0] sm:$0xff]  ;;  %3999 = vmatpush1.bf16.msra.mxu0 %v8717_v42 }
 0x165   : > { %11873 = vst [vmem:[#allocation85_spill] sm:$0xff] %v8710_v39  ;;  %v1187_v27 = vld [vmem:[%s8313_s25 + $0xc80] sm:$0xff]  ;;  %11875 = vst [vmem:[#allocation87_spill] sm:$0xff] %v8721_v51  ;;  %v8723_v58 = vcombine.high %v1059_v14, %v1063_v32  ;;  %4039 = vmatprep.subr.bf16.mxu1 %v8710_v39  ;;  %v8733_v12 = vcombine.low %v1059_v14, %v1063_v32 }
 0x166   : > { %v1191_v29 = vld [vmem:[%s8313_s25 + $0xca0] sm:$0xff]  ;;  %4040 = vmatpush1.bf16.msra.mxu1 %v8721_v51 }
 0x167   : > { %11876 = vst [vmem:[#allocation88_spill] sm:$0xff] %v8723_v58  ;;  %v8726_v30 = vcombine.high %v1187_v27, %v1191_v29  ;;  %v1051_v16 = vld [vmem:[%s8313_s25 + $0x840] sm:$0xff]  ;;  %11878 = vst [vmem:[#allocation90_spill] sm:$0xff] %v8733_v12  ;;  %4000 = vmatprep.subr.bf16.mxu0 %v8723_v58  ;;  %v8737_v41 = vcombine.low %v1187_v27, %v1191_v29 }
 0x168   : > { %v1055_v47 = vld [vmem:[%s8313_s25 + $0x860] sm:$0xff]  ;;  %4001 = vmatpush1.bf16.msra.mxu0 %v8733_v12 }
 0x169   : > { %11877 = vst [vmem:[#allocation89_spill] sm:$0xff] %v8726_v30  ;;  %v1179_v19 = vld [vmem:[%s8313_s25 + $0xc40] sm:$0xff]  ;;  %11879 = vst [vmem:[#allocation91_spill] sm:$0xff] %v8737_v41  ;;  %v8739_v54 = vcombine.high %v1051_v16, %v1055_v47  ;;  %4041 = vmatprep.subr.bf16.mxu1 %v8726_v30  ;;  %v8749_v51 = vcombine.low %v1051_v16, %v1055_v47 }
 0x16a   : > { %v1183_v21 = vld [vmem:[%s8313_s25 + $0xc60] sm:$0xff]  ;;  %4042 = vmatpush1.bf16.msra.mxu1 %v8737_v41 }
 0x16b   : > { %11880 = vst [vmem:[#allocation92_spill] sm:$0xff] %v8739_v54  ;;  %v8742_v39 = vcombine.high %v1179_v19, %v1183_v21  ;;  %v1043_v15 = vld [vmem:[%s8313_s25 + $0x800] sm:$0xff]  ;;  %11882 = vst [vmem:[#allocation94_spill] sm:$0xff] %v8749_v51  ;;  %4002 = vmatprep.subr.bf16.mxu0 %v8739_v54  ;;  %v8753_v27 = vcombine.low %v1179_v19, %v1183_v21 }
 0x16c   : > { %v1047_v42 = vld [vmem:[%s8313_s25 + $0x820] sm:$0xff]  ;;  %4003 = vmatpush1.bf16.msra.mxu0 %v8749_v51 }
 0x16d   : > { %11881 = vst [vmem:[#allocation93_spill] sm:$0xff] %v8742_v39  ;;  %v1171_v14 = vld [vmem:[%s8313_s25 + $0xc00] sm:$0xff]  ;;  %11883 = vst [vmem:[#allocation95_spill] sm:$0xff] %v8753_v27  ;;  %v8755_v29 = vcombine.high %v1043_v15, %v1047_v42  ;;  %4043 = vmatprep.subr.bf16.mxu1 %v8742_v39  ;;  %v8765_v41 = vcombine.low %v1043_v15, %v1047_v42 }
 0x16e   : > { %v1175_v32 = vld [vmem:[%s8313_s25 + $0xc20] sm:$0xff]  ;;  %4044 = vmatpush1.bf16.msra.mxu1 %v8753_v27 }
 0x16f   : > { %11884 = vst [vmem:[#allocation96_spill] sm:$0xff] %v8755_v29  ;;  %v8758_v30 = vcombine.high %v1171_v14, %v1175_v32  ;;  %v1163_v58 = vld [vmem:[%s8313_s25 + $0xbc0] sm:$0xff]  ;;  %11886 = vst [vmem:[#allocation98_spill] sm:$0xff] %v8765_v41  ;;  %4004 = vmatprep.subr.bf16.mxu0 %v8755_v29  ;;  %v8769_v19 = vcombine.low %v1171_v14, %v1175_v32 }
 0x170   : > { %v1167_v12 = vld [vmem:[%s8313_s25 + $0xbe0] sm:$0xff]  ;;  %4005 = vmatpush1.bf16.msra.mxu0 %v8765_v41 }
 0x171   : > { %11885 = vst [vmem:[#allocation97_spill] sm:$0xff] %v8758_v30  ;;  %v1291_v47 = vld [vmem:[%s8313_s25 + $0xfc0] sm:$0xff]  ;;  %11887 = vst [vmem:[#allocation99_spill] sm:$0xff] %v8769_v19  ;;  %v8771_v21 = vcombine.high %v1163_v58, %v1167_v12  ;;  %4045 = vmatprep.subr.bf16.mxu1 %v8758_v30  ;;  %v8781_v27 = vcombine.low %v1163_v58, %v1167_v12 }
 0x172   : > { %v1295_v16 = vld [vmem:[%s8313_s25 + $0xfe0] sm:$0xff]  ;;  %4046 = vmatpush1.bf16.msra.mxu1 %v8769_v19 }
 0x173   : > { %11888 = vst [vmem:[#allocation100_spill] sm:$0xff] %v8771_v21  ;;  %v8774_v39 = vcombine.high %v1291_v47, %v1295_v16  ;;  %v1155_v54 = vld [vmem:[%s8313_s25 + $0xb80] sm:$0xff]  ;;  %11890 = vst [vmem:[#allocation102_spill] sm:$0xff] %v8781_v27  ;;  %4006 = vmatprep.subr.bf16.mxu0 %v8771_v21  ;;  %v8785_v14 = vcombine.low %v1291_v47, %v1295_v16 }
 0x174   : > { %v1159_v51 = vld [vmem:[%s8313_s25 + $0xba0] sm:$0xff]  ;;  %4007 = vmatpush2.bf16.msra.mxu0 %v8781_v27 }
 0x175   : > { %11889 = vst [vmem:[#allocation101_spill] sm:$0xff] %v8774_v39  ;;  %v1283_v42 = vld [vmem:[%s8313_s25 + $0xf80] sm:$0xff]  ;;  %11891 = vst [vmem:[#allocation103_spill] sm:$0xff] %v8785_v14  ;;  %v8787_v32 = vcombine.high %v1155_v54, %v1159_v51  ;;  %4047 = vmatprep.subr.bf16.mxu1 %v8774_v39  ;;  %v8797_v19 = vcombine.low %v1155_v54, %v1159_v51 }
 0x176   : > { %v1287_v15 = vld [vmem:[%s8313_s25 + $0xfa0] sm:$0xff]  ;;  %4048 = vmatpush2.bf16.msra.mxu1 %v8785_v14 }
 0x177   : > { %11892 = vst [vmem:[#allocation104_spill] sm:$0xff] %v8787_v32  ;;  %v8790_v30 = vcombine.high %v1283_v42, %v1287_v15  ;;  %v1147_v29 = vld [vmem:[%s8313_s25 + $0xb40] sm:$0xff]  ;;  %11894 = vst [vmem:[#allocation106_spill] sm:$0xff] %v8797_v19  ;;  %4008 = vmatprep.subr.bf16.mxu0 %v8787_v32  ;;  %v8801_v47 = vcombine.low %v1283_v42, %v1287_v15 }
 0x178   : > { %v1151_v41 = vld [vmem:[%s8313_s25 + $0xb60] sm:$0xff]  ;;  %4009 = vmatpush2.bf16.msra.mxu0 %v8797_v19 }
 0x179   : > { %11893 = vst [vmem:[#allocation105_spill] sm:$0xff] %v8790_v30  ;;  %v1275_v12 = vld [vmem:[%s8313_s25 + $0xf40] sm:$0xff]  ;;  %11895 = vst [vmem:[#allocation107_spill] sm:$0xff] %v8801_v47  ;;  %v8803_v16 = vcombine.high %v1147_v29, %v1151_v41  ;;  %4049 = vmatprep.subr.bf16.mxu1 %v8790_v30  ;;  %v8813_v14 = vcombine.low %v1147_v29, %v1151_v41 }
 0x17a   : > { %v1279_v58 = vld [vmem:[%s8313_s25 + $0xf60] sm:$0xff]  ;;  %4050 = vmatpush2.bf16.msra.mxu1 %v8801_v47 }
 0x17b   : > { %11896 = vst [vmem:[#allocation108_spill] sm:$0xff] %v8803_v16  ;;  %v8806_v39 = vcombine.high %v1275_v12, %v1279_v58  ;;  %v1139_v21 = vld [vmem:[%s8313_s25 + $0xb00] sm:$0xff]  ;;  %11898 = vst [vmem:[#allocation110_spill] sm:$0xff] %v8813_v14  ;;  %4010 = vmatprep.subr.bf16.mxu0 %v8803_v16  ;;  %v8817_v42 = vcombine.low %v1275_v12, %v1279_v58 }
 0x17c   : > { %v1143_v27 = vld [vmem:[%s8313_s25 + $0xb20] sm:$0xff]  ;;  %4011 = vmatpush2.bf16.msra.mxu0 %v8813_v14 }
 0x17d   : > { %11897 = vst [vmem:[#allocation109_spill] sm:$0xff] %v8806_v39  ;;  %v1267_v51 = vld [vmem:[%s8313_s25 + $0xf00] sm:$0xff]  ;;  %11899 = vst [vmem:[#allocation111_spill] sm:$0xff] %v8817_v42  ;;  %v8819_v15 = vcombine.high %v1139_v21, %v1143_v27  ;;  %4051 = vmatprep.subr.bf16.mxu1 %v8806_v39  ;;  %v8829_v47 = vcombine.low %v1139_v21, %v1143_v27 }
 0x17e   : > { %v1271_v54 = vld [vmem:[%s8313_s25 + $0xf20] sm:$0xff]  ;;  %4052 = vmatpush2.bf16.msra.mxu1 %v8817_v42 }
 0x17f   : > { %11900 = vst [vmem:[#allocation112_spill] sm:$0xff] %v8819_v15  ;;  %v8822_v30 = vcombine.high %v1267_v51, %v1271_v54  ;;  %v1131_v32 = vld [vmem:[%s8313_s25 + $0xac0] sm:$0xff]  ;;  %11902 = vst [vmem:[#allocation114_spill] sm:$0xff] %v8829_v47  ;;  %4012 = vmatprep.subr.bf16.mxu0 %v8819_v15  ;;  %v8833_v12 = vcombine.low %v1267_v51, %v1271_v54 }
 0x180   : > { %v1135_v19 = vld [vmem:[%s8313_s25 + $0xae0] sm:$0xff]  ;;  %4013 = vmatpush2.bf16.msra.mxu0 %v8829_v47 }
 0x181   : > { %11901 = vst [vmem:[#allocation113_spill] sm:$0xff] %v8822_v30  ;;  %v1259_v41 = vld [vmem:[%s8313_s25 + $0xec0] sm:$0xff]  ;;  %11903 = vst [vmem:[#allocation115_spill] sm:$0xff] %v8833_v12  ;;  %v8835_v58 = vcombine.high %v1131_v32, %v1135_v19  ;;  %4053 = vmatprep.subr.bf16.mxu1 %v8822_v30  ;;  %v8845_v42 = vcombine.low %v1131_v32, %v1135_v19 }
 0x182   : > { %v1263_v29 = vld [vmem:[%s8313_s25 + $0xee0] sm:$0xff]  ;;  %4054 = vmatpush2.bf16.msra.mxu1 %v8833_v12 }
 0x183   : > { %11904 = vst [vmem:[#allocation116_spill] sm:$0xff] %v8835_v58  ;;  %v8838_v39 = vcombine.high %v1259_v41, %v1263_v29  ;;  %v1123_v16 = vld [vmem:[%s8313_s25 + $0xa80] sm:$0xff]  ;;  %11906 = vst [vmem:[#allocation118_spill] sm:$0xff] %v8845_v42  ;;  %4014 = vmatprep.subr.bf16.mxu0 %v8835_v58  ;;  %v8849_v51 = vcombine.low %v1259_v41, %v1263_v29 }
 0x184   : > { %v1127_v14 = vld [vmem:[%s8313_s25 + $0xaa0] sm:$0xff]  ;;  %4015 = vmatpush2.bf16.msra.mxu0 %v8845_v42 }
 0x185   : > { %11905 = vst [vmem:[#allocation117_spill] sm:$0xff] %v8838_v39  ;;  %v1251_v27 = vld [vmem:[%s8313_s25 + $0xe80] sm:$0xff]  ;;  %11907 = vst [vmem:[#allocation119_spill] sm:$0xff] %v8849_v51  ;;  %v8851_v54 = vcombine.high %v1123_v16, %v1127_v14  ;;  %4055 = vmatprep.subr.bf16.mxu1 %v8838_v39  ;;  %v8861_v12 = vcombine.low %v1123_v16, %v1127_v14 }
 0x186   : > { %v1255_v21 = vld [vmem:[%s8313_s25 + $0xea0] sm:$0xff]  ;;  %4056 = vmatpush2.bf16.msra.mxu1 %v8849_v51 }
 0x187   : > { %11908 = vst [vmem:[#allocation120_spill] sm:$0xff] %v8851_v54  ;;  %v8854_v30 = vcombine.high %v1251_v27, %v1255_v21  ;;  %v1115_v15 = vld [vmem:[%s8313_s25 + $0xa40] sm:$0xff]  ;;  %11910 = vst [vmem:[#allocation122_spill] sm:$0xff] %v8861_v12  ;;  %4016 = vmatprep.subr.bf16.mxu0 %v8851_v54  ;;  %v8865_v41 = vcombine.low %v1251_v27, %v1255_v21  ;;  %v844_v54 = vld [vmem:[%s8313_s25 + $0x1c8] sm:$0xff] }
 0x188   : > { %v1119_v47 = vld [vmem:[%s8313_s25 + $0xa60] sm:$0xff]  ;;  %4017 = vmatpush2.bf16.msra.mxu0 %v8861_v12  ;;  %v848_v12 = vld [vmem:[%s8313_s25 + $0x1e8] sm:$0xff] }
 0x189   : > { %11909 = vst [vmem:[#allocation121_spill] sm:$0xff] %v8854_v30  ;;  %v1243_v19 = vld [vmem:[%s8313_s25 + $0xe40] sm:$0xff]  ;;  %11911 = vst [vmem:[#allocation123_spill] sm:$0xff] %v8865_v41  ;;  %v8867_v29 = vcombine.high %v1115_v15, %v1119_v47  ;;  %4057 = vmatprep.subr.bf16.mxu1 %v8854_v30  ;;  %v8877_v51 = vcombine.low %v1115_v15, %v1119_v47  ;;  %v972_v47 = vld [vmem:[%s8313_s25 + $0x5c8] sm:$0xff] }
 0x18a   : > { %v1247_v32 = vld [vmem:[%s8313_s25 + $0xe60] sm:$0xff]  ;;  %4058 = vmatpush2.bf16.msra.mxu1 %v8865_v41  ;;  %v976_v15 = vld [vmem:[%s8313_s25 + $0x5e8] sm:$0xff] }
 0x18b   : > { %11912 = vst [vmem:[#allocation124_spill] sm:$0xff] %v8867_v29  ;;  %v8870_v39 = vcombine.high %v1243_v19, %v1247_v32  ;;  %v1107_v58 = vld [vmem:[%s8313_s25 + $0xa00] sm:$0xff]  ;;  %11914 = vst [vmem:[#allocation126_spill] sm:$0xff] %v8877_v51  ;;  %4018 = vmatprep.subr.bf16.mxu0 %v8867_v29  ;;  %v8881_v27 = vcombine.low %v1243_v19, %v1247_v32  ;;  %v8899_v32 = vcombine.high %v844_v54, %v848_v12  ;;  %v836_v29 = vld [vmem:[%s8313_s25 + $0x188] sm:$0xff] }
 0x18c   : > { %v1111_v42 = vld [vmem:[%s8313_s25 + $0xa20] sm:$0xff]  ;;  %4019 = vmatpush2.bf16.msra.mxu0 %v8877_v51  ;;  %v840_v51 = vld [vmem:[%s8313_s25 + $0x1a8] sm:$0xff] }
 0x18d   : > { %11913 = vst [vmem:[#allocation125_spill] sm:$0xff] %v8870_v39  ;;  %v1235_v14 = vld [vmem:[%s8313_s25 + $0xe00] sm:$0xff]  ;;  %11915 = vst [vmem:[#allocation127_spill] sm:$0xff] %v8881_v27  ;;  %v8883_v21 = vcombine.high %v1107_v58, %v1111_v42  ;;  %4059 = vmatprep.subr.bf16.mxu1 %v8870_v39  ;;  %v8893_v41 = vcombine.low %v1107_v58, %v1111_v42  ;;  %v8902_v39 = vcombine.high %v972_v47, %v976_v15  ;;  %v964_v42 = vld [vmem:[%s8313_s25 + $0x588] sm:$0xff] }
 0x18e   : > { %v1239_v16 = vld [vmem:[%s8313_s25 + $0xe20] sm:$0xff]  ;;  %4060 = vmatpush2.bf16.msra.mxu1 %v8881_v27  ;;  %11920 = vst [vmem:[#allocation132_spill] sm:$0xff] %v8899_v32  ;;  %v968_v58 = vld [vmem:[%s8313_s25 + $0x5a8] sm:$0xff]  ;;  %v8909_v27 = vcombine.low %v844_v54, %v848_v12 }
 0x18f   : > { %11916 = vst [vmem:[#allocation128_spill] sm:$0xff] %v8883_v21  ;;  %v8886_v30 = vcombine.high %v1235_v14, %v1239_v16  ;;  %11918 = vst [vmem:[#allocation130_spill] sm:$0xff] %v8893_v41  ;;  %4020 = vmatprep.subr.bf16.mxu0 %v8883_v21  ;;  %v8897_v19 = vcombine.low %v1235_v14, %v1239_v16  ;;  %v8913_v14 = vcombine.low %v972_v47, %v976_v15  ;;  %v828_v21 = vld [vmem:[%s8313_s25 + $0x148] sm:$0xff] }
 0x190   : > { %11921 = vst [vmem:[#allocation133_spill] sm:$0xff] %v8902_v39  ;;  %4021 = vmatpush2.bf16.msra.mxu0 %v8893_v41  ;;  %11922 = vst [vmem:[#allocation134_spill] sm:$0xff] %v8909_v27  ;;  %v8915_v16 = vcombine.high %v836_v29, %v840_v51  ;;  %v956_v12 = vld [vmem:[%s8313_s25 + $0x548] sm:$0xff]  ;;  %v8927_v47 = vcombine.low %v836_v29, %v840_v51  ;;  %v8931_v15 = vcombine.low %v964_v42, %v968_v58 }
 0x191   : > { %11917 = vst [vmem:[#allocation129_spill] sm:$0xff] %v8886_v30  ;;  %11919 = vst [vmem:[#allocation131_spill] sm:$0xff] %v8897_v19  ;;  %4061 = vmatprep.subr.bf16.mxu1 %v8886_v30  ;;  %4072 = vmatprep.subr.bf16.mxu0 %v8899_v32  ;;  %v8918_v30 = vcombine.high %v964_v42, %v968_v58  ;;  %v960_v54 = vld [vmem:[%s8313_s25 + $0x568] sm:$0xff]  ;;  %v8945_v42 = vcombine.low %v828_v21, %v832_v9 }
 0x192   : > { %4062 = vmatpush2.bf16.msra.mxu1 %v8897_v19  ;;  %11923 = vst [vmem:[#allocation135_spill] sm:$0xff] %v8913_v14  ;;  %11924 = vst [vmem:[#allocation136_spill] sm:$0xff] %v8915_v16  ;;  %v8936_v19 = vcombine.high %v956_v12, %v960_v54  ;;  %v820_v32 = vld [vmem:[%s8313_s25 + $0x108] sm:$0xff]  ;;  %v8949_v58 = vcombine.low %v956_v12, %v960_v54 }
 0x193   : > { %4113 = vmatprep.subr.bf16.mxu1 %v8902_v39  ;;  %11925 = vst [vmem:[#allocation137_spill] sm:$0xff] %v8918_v30  ;;  %4023 = vmatmul.mubr.bf16.vlgmr.msra.gmra.mxu0 %v8633_v49  ;;  %11926 = vst [vmem:[#allocation138_spill] sm:$0xff] %v8927_v47  ;;  %v8933_v39 = vcombine.high %v828_v21, %v832_v9  ;;  %v824_v41 = vld [vmem:[%s8313_s25 + $0x128] sm:$0xff] }
 0x194   : > { %4073 = vmatpush1.bf16.msra.mxu0 %v8909_v27  ;;  %11927 = vst [vmem:[#allocation139_spill] sm:$0xff] %v8931_v15  ;;  %11929 = vst [vmem:[#allocation141_spill] sm:$0xff] %v8936_v19  ;;  %4104 = vmatprep.mubr.bf16.mxu0 %v8463_v7  ;;  %v948_v51 = vld [vmem:[%s8313_s25 + $0x508] sm:$0xff] }
 0x195   : > { %4064 = vmatmul.mubr.bf16.vlgmr.msra.gmra.mxu1 %v8638_v60  ;;  %4074 = vmatprep.subr.bf16.mxu0 %v8915_v16  ;;  %11928 = vst [vmem:[#allocation140_spill] sm:$0xff] %v8933_v39  ;;  %v952_v29 = vld [vmem:[%s8313_s25 + $0x528] sm:$0xff]  ;;  %11930 = vst [vmem:[#allocation142_spill] sm:$0xff] %v8945_v42 }
 0x196   : > { %4114 = vmatpush1.bf16.msra.mxu1 %v8913_v14  ;;  %4145 = vmatprep.mubr.bf16.mxu1 %v8482_v22  ;;  %11931 = vst [vmem:[#allocation143_spill] sm:$0xff] %v8949_v58  ;;  %v8954_v14 = vcombine.high %v948_v51, %v952_v29  ;;  %v812_v16 = vld [vmem:[%s8313_s25 + $0xc8] sm:$0xff]  ;;  %v8965_v12 = vcombine.low %v948_v51, %v952_v29 }
 0x197   : > { %4115 = vmatprep.subr.bf16.mxu1 %v8918_v30  ;;  %v8951_v30 = vcombine.high %v820_v32, %v824_v41  ;;  %v940_v9 = vld [vmem:[%s8313_s25 + $0x4c8] sm:$0xff] }
 0x198   : > { %4075 = vmatpush1.bf16.msra.mxu0 %v8927_v47  ;;  %11933 = vst [vmem:[#allocation145_spill] sm:$0xff] %v8954_v14  ;;  %v816_v47 = vld [vmem:[%s8313_s25 + $0xe8] sm:$0xff]  ;;  %11935 = vst [vmem:[#allocation147_spill] sm:$0xff] %v8965_v12 }
 0x199   : > { %4076 = vmatprep.subr.bf16.mxu0 %v8933_v39  ;;  %11932 = vst [vmem:[#allocation144_spill] sm:$0xff] %v8951_v30  ;;  %v944_v21 = vld [vmem:[%s8313_s25 + $0x4e8] sm:$0xff]  ;;  %v8967_v54 = vcombine.high %v812_v16, %v816_v47 }
 0x19a   : > { %4116 = vmatpush1.bf16.msra.mxu1 %v8931_v15  ;;  %v8961_v15 = vcombine.low %v820_v32, %v824_v41  ;;  %v804_v39 = vld [vmem:[%s8313_s25 + $0x88] sm:$0xff]  ;;  %v8981_v51 = vcombine.low %v940_v9, %v944_v21 }
 0x19b   : > { %4117 = vmatprep.subr.bf16.mxu1 %v8936_v19  ;;  %11936 = vst [vmem:[#allocation148_spill] sm:$0xff] %v8967_v54  ;;  %v8970_v19 = vcombine.high %v940_v9, %v944_v21  ;;  %v932_v41 = vld [vmem:[%s8313_s25 + $0x488] sm:$0xff] }
 0x19c   : > { %4077 = vmatpush1.bf16.msra.mxu0 %v8945_v42  ;;  %11934 = vst [vmem:[#allocation146_spill] sm:$0xff] %v8961_v15  ;;  %v808_v42 = vld [vmem:[%s8313_s25 + $0xa8] sm:$0xff]  ;;  %11939 = vst [vmem:[#allocation151_spill] sm:$0xff] %v8981_v51 }
 0x19d   : > { %4078 = vmatprep.subr.bf16.mxu0 %v8951_v30  ;;  %11937 = vst [vmem:[#allocation149_spill] sm:$0xff] %v8970_v19  ;;  %v936_v32 = vld [vmem:[%s8313_s25 + $0x4a8] sm:$0xff]  ;;  %v8983_v29 = vcombine.high %v804_v39, %v808_v42 }
 0x19e   : > { %4118 = vmatpush1.bf16.msra.mxu1 %v8949_v58  ;;  %v8977_v58 = vcombine.low %v812_v16, %v816_v47  ;;  %v796_v30 = vld [vmem:[%s8313_s25 + $0x48] sm:$0xff]  ;;  %v8997_v9 = vcombine.low %v932_v41, %v936_v32 }
 0x19f   : > { %4119 = vmatprep.subr.bf16.mxu1 %v8954_v14  ;;  %11940 = vst [vmem:[#allocation152_spill] sm:$0xff] %v8983_v29  ;;  %v8986_v14 = vcombine.high %v932_v41, %v936_v32  ;;  %v924_v16 = vld [vmem:[%s8313_s25 + $0x448] sm:$0xff] }
 0x1a0   : > { %4079 = vmatpush1.bf16.msra.mxu0 %v8961_v15  ;;  %11938 = vst [vmem:[#allocation150_spill] sm:$0xff] %v8977_v58  ;;  %v800_v15 = vld [vmem:[%s8313_s25 + $0x68] sm:$0xff]  ;;  %11943 = vst [vmem:[#allocation155_spill] sm:$0xff] %v8997_v9 }
 0x1a1   : > { %4080 = vmatprep.subr.bf16.mxu0 %v8967_v54  ;;  %11941 = vst [vmem:[#allocation153_spill] sm:$0xff] %v8986_v14  ;;  %v928_v47 = vld [vmem:[%s8313_s25 + $0x468] sm:$0xff]  ;;  %v8999_v21 = vcombine.high %v796_v30, %v800_v15 }
 0x1a2   : > { %4120 = vmatpush1.bf16.msra.mxu1 %v8965_v12  ;;  %v8993_v12 = vcombine.low %v804_v39, %v808_v42  ;;  %v788_v54 = vld [vmem:[%s8313_s25 + $0x8] sm:$0xff]  ;;  %v9013_v41 = vcombine.low %v924_v16, %v928_v47 }
 0x1a3   : > { %4121 = vmatprep.subr.bf16.mxu1 %v8970_v19  ;;  %11944 = vst [vmem:[#allocation156_spill] sm:$0xff] %v8999_v21  ;;  %v9002_v19 = vcombine.high %v924_v16, %v928_v47  ;;  %v916_v39 = vld [vmem:[%s8313_s25 + $0x408] sm:$0xff] }
 0x1a4   : > { %4081 = vmatpush1.bf16.msra.mxu0 %v8977_v58  ;;  %11942 = vst [vmem:[#allocation154_spill] sm:$0xff] %v8993_v12  ;;  %v792_v58 = vld [vmem:[%s8313_s25 + $0x28] sm:$0xff]  ;;  %11947 = vst [vmem:[#allocation159_spill] sm:$0xff] %v9013_v41 }
 0x1a5   : > { %4082 = vmatprep.subr.bf16.mxu0 %v8983_v29  ;;  %11945 = vst [vmem:[#allocation157_spill] sm:$0xff] %v9002_v19  ;;  %v920_v42 = vld [vmem:[%s8313_s25 + $0x428] sm:$0xff]  ;;  %v9015_v32 = vcombine.high %v788_v54, %v792_v58 }
 0x1a6   : > { %4122 = vmatpush1.bf16.msra.mxu1 %v8981_v51  ;;  %v9009_v51 = vcombine.low %v796_v30, %v800_v15  ;;  %v908_v29 = vld [vmem:[%s8313_s25 + $0x3c8] sm:$0xff]  ;;  %v9029_v16 = vcombine.low %v916_v39, %v920_v42 }
 0x1a7   : > { %4123 = vmatprep.subr.bf16.mxu1 %v8986_v14  ;;  %11948 = vst [vmem:[#allocation160_spill] sm:$0xff] %v9015_v32  ;;  %v9018_v14 = vcombine.high %v916_v39, %v920_v42  ;;  %v1036_v30 = vld [vmem:[%s8313_s25 + $0x7c8] sm:$0xff] }
 0x1a8   : > { %4083 = vmatpush1.bf16.msra.mxu0 %v8993_v12  ;;  %11946 = vst [vmem:[#allocation158_spill] sm:$0xff] %v9009_v51  ;;  %v912_v12 = vld [vmem:[%s8313_s25 + $0x3e8] sm:$0xff]  ;;  %11951 = vst [vmem:[#allocation163_spill] sm:$0xff] %v9029_v16 }
 0x1a9   : > { %4084 = vmatprep.subr.bf16.mxu0 %v8999_v21  ;;  %11949 = vst [vmem:[#allocation161_spill] sm:$0xff] %v9018_v14  ;;  %v1040_v15 = vld [vmem:[%s8313_s25 + $0x7e8] sm:$0xff]  ;;  %v9031_v47 = vcombine.high %v908_v29, %v912_v12 }
 0x1aa   : > { %4124 = vmatpush1.bf16.msra.mxu1 %v8997_v9  ;;  %v9025_v9 = vcombine.low %v788_v54, %v792_v58  ;;  %v900_v21 = vld [vmem:[%s8313_s25 + $0x388] sm:$0xff]  ;;  %v9045_v39 = vcombine.low %v1036_v30, %v1040_v15 }
 0x1ab   : > { %4125 = vmatprep.subr.bf16.mxu1 %v9002_v19  ;;  %11952 = vst [vmem:[#allocation164_spill] sm:$0xff] %v9031_v47  ;;  %v9034_v19 = vcombine.high %v1036_v30, %v1040_v15  ;;  %v1028_v58 = vld [vmem:[%s8313_s25 + $0x788] sm:$0xff] }
 0x1ac   : > { %4085 = vmatpush1.bf16.msra.mxu0 %v9009_v51  ;;  %11950 = vst [vmem:[#allocation162_spill] sm:$0xff] %v9025_v9  ;;  %v904_v51 = vld [vmem:[%s8313_s25 + $0x3a8] sm:$0xff]  ;;  %11955 = vst [vmem:[#allocation167_spill] sm:$0xff] %v9045_v39 }
 0x1ad   : > { %4086 = vmatprep.subr.bf16.mxu0 %v9015_v32  ;;  %11953 = vst [vmem:[#allocation165_spill] sm:$0xff] %v9034_v19  ;;  %v1032_v54 = vld [vmem:[%s8313_s25 + $0x7a8] sm:$0xff]  ;;  %v9047_v42 = vcombine.high %v900_v21, %v904_v51 }
 0x1ae   : > { %4126 = vmatpush1.bf16.msra.mxu1 %v9013_v41  ;;  %v9041_v41 = vcombine.low %v908_v29, %v912_v12  ;;  %v892_v32 = vld [vmem:[%s8313_s25 + $0x348] sm:$0xff]  ;;  %v9061_v30 = vcombine.low %v1028_v58, %v1032_v54 }
 0x1af   : > { %4127 = vmatprep.subr.bf16.mxu1 %v9018_v14  ;;  %11956 = vst [vmem:[#allocation168_spill] sm:$0xff] %v9047_v42  ;;  %v9050_v14 = vcombine.high %v1028_v58, %v1032_v54  ;;  %v1020_v12 = vld [vmem:[%s8313_s25 + $0x748] sm:$0xff] }
 0x1b0   : > { %4087 = vmatpush1.bf16.msra.mxu0 %v9025_v9  ;;  %11954 = vst [vmem:[#allocation166_spill] sm:$0xff] %v9041_v41  ;;  %v896_v9 = vld [vmem:[%s8313_s25 + $0x368] sm:$0xff]  ;;  %11959 = vst [vmem:[#allocation171_spill] sm:$0xff] %v9061_v30 }
 0x1b1   : > { %4088 = vmatprep.subr.bf16.mxu0 %v9031_v47  ;;  %11957 = vst [vmem:[#allocation169_spill] sm:$0xff] %v9050_v14  ;;  %v1024_v29 = vld [vmem:[%s8313_s25 + $0x768] sm:$0xff]  ;;  %v9063_v15 = vcombine.high %v892_v32, %v896_v9 }
 0x1b2   : > { %4128 = vmatpush1.bf16.msra.mxu1 %v9029_v16  ;;  %v9057_v16 = vcombine.low %v900_v21, %v904_v51  ;;  %v884_v47 = vld [vmem:[%s8313_s25 + $0x308] sm:$0xff]  ;;  %v9077_v58 = vcombine.low %v1020_v12, %v1024_v29 }
 0x1b3   : > { %4129 = vmatprep.subr.bf16.mxu1 %v9034_v19  ;;  %11960 = vst [vmem:[#allocation172_spill] sm:$0xff] %v9063_v15  ;;  %v9066_v19 = vcombine.high %v1020_v12, %v1024_v29  ;;  %v1012_v51 = vld [vmem:[%s8313_s25 + $0x708] sm:$0xff] }
 0x1b4   : > { %4089 = vmatpush2.bf16.msra.mxu0 %v9041_v41  ;;  %11958 = vst [vmem:[#allocation170_spill] sm:$0xff] %v9057_v16  ;;  %v888_v41 = vld [vmem:[%s8313_s25 + $0x328] sm:$0xff]  ;;  %11963 = vst [vmem:[#allocation175_spill] sm:$0xff] %v9077_v58 }
 0x1b5   : > { %4090 = vmatprep.subr.bf16.mxu0 %v9047_v42  ;;  %11961 = vst [vmem:[#allocation173_spill] sm:$0xff] %v9066_v19  ;;  %v1016_v21 = vld [vmem:[%s8313_s25 + $0x728] sm:$0xff]  ;;  %v9079_v54 = vcombine.high %v884_v47, %v888_v41 }
 0x1b6   : > { %4130 = vmatpush2.bf16.msra.mxu1 %v9045_v39  ;;  %v9073_v39 = vcombine.low %v892_v32, %v896_v9  ;;  %v876_v42 = vld [vmem:[%s8313_s25 + $0x2c8] sm:$0xff]  ;;  %v9093_v12 = vcombine.low %v1012_v51, %v1016_v21 }
 0x1b7   : > { %4131 = vmatprep.subr.bf16.mxu1 %v9050_v14  ;;  %11964 = vst [vmem:[#allocation176_spill] sm:$0xff] %v9079_v54  ;;  %v9082_v14 = vcombine.high %v1012_v51, %v1016_v21  ;;  %v1004_v9 = vld [vmem:[%s8313_s25 + $0x6c8] sm:$0xff] }
 0x1b8   : > { %4091 = vmatpush2.bf16.msra.mxu0 %v9057_v16  ;;  %11962 = vst [vmem:[#allocation174_spill] sm:$0xff] %v9073_v39  ;;  %v880_v16 = vld [vmem:[%s8313_s25 + $0x2e8] sm:$0xff]  ;;  %11967 = vst [vmem:[#allocation179_spill] sm:$0xff] %v9093_v12 }
 0x1b9   : > { %4092 = vmatprep.subr.bf16.mxu0 %v9063_v15  ;;  %11965 = vst [vmem:[#allocation177_spill] sm:$0xff] %v9082_v14  ;;  %v1008_v32 = vld [vmem:[%s8313_s25 + $0x6e8] sm:$0xff]  ;;  %v9095_v29 = vcombine.high %v876_v42, %v880_v16 }
 0x1ba   : > { %4132 = vmatpush2.bf16.msra.mxu1 %v9061_v30  ;;  %v9089_v30 = vcombine.low %v884_v47, %v888_v41  ;;  %v868_v15 = vld [vmem:[%s8313_s25 + $0x288] sm:$0xff]  ;;  %v9109_v51 = vcombine.low %v1004_v9, %v1008_v32 }
 0x1bb   : > { %4133 = vmatprep.subr.bf16.mxu1 %v9066_v19  ;;  %11968 = vst [vmem:[#allocation180_spill] sm:$0xff] %v9095_v29  ;;  %v9098_v19 = vcombine.high %v1004_v9, %v1008_v32  ;;  %v996_v41 = vld [vmem:[%s8313_s25 + $0x688] sm:$0xff] }
 0x1bc   : > { %4093 = vmatpush2.bf16.msra.mxu0 %v9073_v39  ;;  %11966 = vst [vmem:[#allocation178_spill] sm:$0xff] %v9089_v30  ;;  %v872_v39 = vld [vmem:[%s8313_s25 + $0x2a8] sm:$0xff]  ;;  %11971 = vst [vmem:[#allocation183_spill] sm:$0xff] %v9109_v51 }
 0x1bd   : > { %4094 = vmatprep.subr.bf16.mxu0 %v9079_v54  ;;  %11969 = vst [vmem:[#allocation181_spill] sm:$0xff] %v9098_v19  ;;  %v1000_v47 = vld [vmem:[%s8313_s25 + $0x6a8] sm:$0xff]  ;;  %v9111_v21 = vcombine.high %v868_v15, %v872_v39 }
 0x1be   : > { %4134 = vmatpush2.bf16.msra.mxu1 %v9077_v58  ;;  %v9105_v58 = vcombine.low %v876_v42, %v880_v16  ;;  %v860_v54 = vld [vmem:[%s8313_s25 + $0x248] sm:$0xff]  ;;  %v9125_v9 = vcombine.low %v996_v41, %v1000_v47 }
 0x1bf   : > { %4135 = vmatprep.subr.bf16.mxu1 %v9082_v14  ;;  %11972 = vst [vmem:[#allocation184_spill] sm:$0xff] %v9111_v21  ;;  %v9114_v14 = vcombine.high %v996_v41, %v1000_v47  ;;  %v988_v16 = vld [vmem:[%s8313_s25 + $0x648] sm:$0xff] }
 0x1c0   : > { %4095 = vmatpush2.bf16.msra.mxu0 %v9089_v30  ;;  %11970 = vst [vmem:[#allocation182_spill] sm:$0xff] %v9105_v58  ;;  %v864_v30 = vld [vmem:[%s8313_s25 + $0x268] sm:$0xff]  ;;  %11975 = vst [vmem:[#allocation187_spill] sm:$0xff] %v9125_v9 }
 0x1c1   : > { %4096 = vmatprep.subr.bf16.mxu0 %v9095_v29  ;;  %11973 = vst [vmem:[#allocation185_spill] sm:$0xff] %v9114_v14  ;;  %v992_v42 = vld [vmem:[%s8313_s25 + $0x668] sm:$0xff]  ;;  %v9127_v32 = vcombine.high %v860_v54, %v864_v30 }
 0x1c2   : > { %4136 = vmatpush2.bf16.msra.mxu1 %v9093_v12  ;;  %v9121_v12 = vcombine.low %v868_v15, %v872_v39  ;;  %v852_v29 = vld [vmem:[%s8313_s25 + $0x208] sm:$0xff]  ;;  %v9141_v41 = vcombine.low %v988_v16, %v992_v42 }
 0x1c3   : > { %4137 = vmatprep.subr.bf16.mxu1 %v9098_v19  ;;  %11976 = vst [vmem:[#allocation188_spill] sm:$0xff] %v9127_v32  ;;  %v9130_v19 = vcombine.high %v988_v16, %v992_v42  ;;  %v980_v39 = vld [vmem:[%s8313_s25 + $0x608] sm:$0xff] }
 0x1c4   : > { %4097 = vmatpush2.bf16.msra.mxu0 %v9105_v58  ;;  %11974 = vst [vmem:[#allocation186_spill] sm:$0xff] %v9121_v12  ;;  %v856_v58 = vld [vmem:[%s8313_s25 + $0x228] sm:$0xff]  ;;  %11979 = vst [vmem:[#allocation191_spill] sm:$0xff] %v9141_v41 }
 0x1c5   : > { %4098 = vmatprep.subr.bf16.mxu0 %v9111_v21  ;;  %11977 = vst [vmem:[#allocation189_spill] sm:$0xff] %v9130_v19  ;;  %v984_v15 = vld [vmem:[%s8313_s25 + $0x628] sm:$0xff]  ;;  %v9143_v47 = vcombine.high %v852_v29, %v856_v58 }
 0x1c6   : > { %4138 = vmatpush2.bf16.msra.mxu1 %v9109_v51  ;;  %v9137_v51 = vcombine.low %v860_v54, %v864_v30  ;;  %v1100_v21 = vld [vmem:[%s8313_s25 + $0x9c8] sm:$0xff]  ;;  %v9157_v16 = vcombine.low %v980_v39, %v984_v15 }
 0x1c7   : > { %4139 = vmatprep.subr.bf16.mxu1 %v9114_v14  ;;  %11980 = vst [vmem:[#allocation192_spill] sm:$0xff] %v9143_v47  ;;  %v9146_v14 = vcombine.high %v980_v39, %v984_v15  ;;  %v1228_v30 = vld [vmem:[%s8313_s25 + $0xdc8] sm:$0xff] }
 0x1c8   : > { %4099 = vmatpush2.bf16.msra.mxu0 %v9121_v12  ;;  %11978 = vst [vmem:[#allocation190_spill] sm:$0xff] %v9137_v51  ;;  %v1104_v12 = vld [vmem:[%s8313_s25 + $0x9e8] sm:$0xff]  ;;  %11983 = vst [vmem:[#allocation195_spill] sm:$0xff] %v9157_v16 }
 0x1c9   : > { %4100 = vmatprep.subr.bf16.mxu0 %v9127_v32  ;;  %11981 = vst [vmem:[#allocation193_spill] sm:$0xff] %v9146_v14  ;;  %v1232_v54 = vld [vmem:[%s8313_s25 + $0xde8] sm:$0xff]  ;;  %v9159_v42 = vcombine.high %v1100_v21, %v1104_v12 }
 0x1ca   : > { %4140 = vmatpush2.bf16.msra.mxu1 %v9125_v9  ;;  %v9153_v9 = vcombine.low %v852_v29, %v856_v58  ;;  %v1092_v32 = vld [vmem:[%s8313_s25 + $0x988] sm:$0xff]  ;;  %v9173_v39 = vcombine.low %v1228_v30, %v1232_v54 }
 0x1cb   : > { %4141 = vmatprep.subr.bf16.mxu1 %v9130_v19  ;;  %11984 = vst [vmem:[#allocation196_spill] sm:$0xff] %v9159_v42  ;;  %v9162_v19 = vcombine.high %v1228_v30, %v1232_v54  ;;  %v1220_v58 = vld [vmem:[%s8313_s25 + $0xd88] sm:$0xff] }
 0x1cc   : > { %4101 = vmatpush2.bf16.msra.mxu0 %v9137_v51  ;;  %11982 = vst [vmem:[#allocation194_spill] sm:$0xff] %v9153_v9  ;;  %v1096_v51 = vld [vmem:[%s8313_s25 + $0x9a8] sm:$0xff]  ;;  %11987 = vst [vmem:[#allocation199_spill] sm:$0xff] %v9173_v39 }
 0x1cd   : > { %4102 = vmatprep.subr.bf16.mxu0 %v9143_v47  ;;  %11985 = vst [vmem:[#allocation197_spill] sm:$0xff] %v9162_v19  ;;  %v1224_v29 = vld [vmem:[%s8313_s25 + $0xda8] sm:$0xff]  ;;  %v9175_v15 = vcombine.high %v1092_v32, %v1096_v51  ;;  %v9187_v30 = vcombine.low %v1092_v32, %v1096_v51 }
 0x1ce   : > { %4142 = vmatpush2.bf16.msra.mxu1 %v9141_v41  ;;  %v9169_v41 = vcombine.low %v1100_v21, %v1104_v12  ;;  %v1084_v47 = vld [vmem:[%s8313_s25 + $0x948] sm:$0xff]  ;;  %v9191_v54 = vcombine.low %v1220_v58, %v1224_v29 }
 0x1cf   : > { %4143 = vmatprep.subr.bf16.mxu1 %v9146_v14  ;;  %11988 = vst [vmem:[#allocation200_spill] sm:$0xff] %v9175_v15  ;;  %v9178_v14 = vcombine.high %v1220_v58, %v1224_v29  ;;  %v1088_v27 = vld [vmem:[%s8313_s25 + $0x968] sm:$0xff]  ;;  %11990 = vst [vmem:[#allocation202_spill] sm:$0xff] %v9187_v30 }
 0x1d0   : > { %4103 = vmatpush2.bf16.msra.mxu0 %v9153_v9  ;;  %11986 = vst [vmem:[#allocation198_spill] sm:$0xff] %v9169_v41  ;;  %v1212_v12 = vld [vmem:[%s8313_s25 + $0xd48] sm:$0xff]  ;;  %11991 = vst [vmem:[#allocation203_spill] sm:$0xff] %v9191_v54  ;;  %v9205_v58 = vcombine.low %v1084_v47, %v1088_v27 }
 0x1d1   : > { %4154 = vmatprep.subr.bf16.mxu0 %v9159_v42  ;;  %11989 = vst [vmem:[#allocation201_spill] sm:$0xff] %v9178_v14  ;;  %v1216_v21 = vld [vmem:[%s8313_s25 + $0xd68] sm:$0xff] }
 0x1d2   : > { %4144 = vmatpush2.bf16.msra.mxu1 %v9157_v16  ;;  %v9196_v16 = vcombine.high %v1212_v12, %v1216_v21  ;;  %v1076_v42 = vld [vmem:[%s8313_s25 + $0x908] sm:$0xff]  ;;  %11994 = vst [vmem:[#allocation206_spill] sm:$0xff] %v9205_v58  ;;  %v9209_v29 = vcombine.low %v1212_v12, %v1216_v21 }
 0x1d3   : > { %4195 = vmatprep.subr.bf16.mxu1 %v9162_v19  ;;  %4105 = vmatmul.mubr.bf16.vlgmr.msra.gmra.mxu0 %v8454_v0  ;;  %v9193_v19 = vcombine.high %v1084_v47, %v1088_v27  ;;  %v1080_v9 = vld [vmem:[%s8313_s25 + $0x928] sm:$0xff] }
 0x1d4   : > { %4155 = vmatpush1.bf16.msra.mxu0 %v9169_v41  ;;  %11993 = vst [vmem:[#allocation205_spill] sm:$0xff] %v9196_v16  ;;  %4186 = vmatprep.mubr.bf16.mxu0 %v8656_v61  ;;  %v1204_v51 = vld [vmem:[%s8313_s25 + $0xd08] sm:$0xff]  ;;  %11995 = vst [vmem:[#allocation207_spill] sm:$0xff] %v9209_v29  ;;  %v841_v41 = vld [vmem:[%s8313_s25 + $0x1b0] sm:$0xff] }
 0x1d5   : > { %4146 = vmatmul.mubr.bf16.vlgmr.msra.gmra.mxu1 %v8466_v11  ;;  %4156 = vmatprep.subr.bf16.mxu0 %v9175_v15  ;;  %11992 = vst [vmem:[#allocation204_spill] sm:$0xff] %v9193_v19  ;;  %v1208_v32 = vld [vmem:[%s8313_s25 + $0xd28] sm:$0xff] }
 0x1d6   : > { %4196 = vmatpush1.bf16.msra.mxu1 %v9173_v39  ;;  %4227 = vmatprep.mubr.bf16.mxu1 %v8663_v44  ;;  %v9214_v39 = vcombine.high %v1204_v51, %v1208_v32  ;;  %v1068_v15 = vld [vmem:[%s8313_s25 + $0x8c8] sm:$0xff]  ;;  %v9225_v12 = vcombine.low %v1204_v51, %v1208_v32 }
 0x1d7   : > { %4197 = vmatprep.subr.bf16.mxu1 %v9178_v14  ;;  %v9211_v14 = vcombine.high %v1076_v42, %v1080_v9  ;;  %v1196_v27 = vld [vmem:[%s8313_s25 + $0xcc8] sm:$0xff] }
 0x1d8   : > { %4157 = vmatpush1.bf16.msra.mxu0 %v9187_v30  ;;  %11997 = vst [vmem:[#allocation209_spill] sm:$0xff] %v9214_v39  ;;  %v1072_v30 = vld [vmem:[%s8313_s25 + $0x8e8] sm:$0xff]  ;;  %11999 = vst [vmem:[#allocation211_spill] sm:$0xff] %v9225_v12 }
 0x1d9   : > { %4158 = vmatprep.subr.bf16.mxu0 %v9193_v19  ;;  %11996 = vst [vmem:[#allocation208_spill] sm:$0xff] %v9211_v14  ;;  %v1200_v47 = vld [vmem:[%s8313_s25 + $0xce8] sm:$0xff]  ;;  %v9227_v21 = vcombine.high %v1068_v15, %v1072_v30 }
 0x1da   : > { %4198 = vmatpush1.bf16.msra.mxu1 %v9191_v54  ;;  %v9221_v54 = vcombine.low %v1076_v42, %v1080_v9  ;;  %v1060_v19 = vld [vmem:[%s8313_s25 + $0x888] sm:$0xff]  ;;  %v9241_v51 = vcombine.low %v1196_v27, %v1200_v47 }
 0x1db   : > { %4199 = vmatprep.subr.bf16.mxu1 %v9196_v16  ;;  %12000 = vst [vmem:[#allocation212_spill] sm:$0xff] %v9227_v21  ;;  %v9230_v16 = vcombine.high %v1196_v27, %v1200_v47  ;;  %v1188_v9 = vld [vmem:[%s8313_s25 + $0xc88] sm:$0xff] }
 0x1dc   : > { %4159 = vmatpush1.bf16.msra.mxu0 %v9205_v58  ;;  %11998 = vst [vmem:[#allocation210_spill] sm:$0xff] %v9221_v54  ;;  %v1064_v58 = vld [vmem:[%s8313_s25 + $0x8a8] sm:$0xff]  ;;  %12003 = vst [vmem:[#allocation215_spill] sm:$0xff] %v9241_v51 }
 0x1dd   : > { %4160 = vmatprep.subr.bf16.mxu0 %v9211_v14  ;;  %12001 = vst [vmem:[#allocation213_spill] sm:$0xff] %v9230_v16  ;;  %v1192_v42 = vld [vmem:[%s8313_s25 + $0xca8] sm:$0xff]  ;;  %v9243_v32 = vcombine.high %v1060_v19, %v1064_v58 }
 0x1de   : > { %4200 = vmatpush1.bf16.msra.mxu1 %v9209_v29  ;;  %v9237_v29 = vcombine.low %v1068_v15, %v1072_v30  ;;  %v1052_v14 = vld [vmem:[%s8313_s25 + $0x848] sm:$0xff]  ;;  %v9257_v27 = vcombine.low %v1188_v9, %v1192_v42 }
 0x1df   : > { %4201 = vmatprep.subr.bf16.mxu1 %v9214_v39  ;;  %12004 = vst [vmem:[#allocation216_spill] sm:$0xff] %v9243_v32  ;;  %v9246_v39 = vcombine.high %v1188_v9, %v1192_v42  ;;  %v1180_v15 = vld [vmem:[%s8313_s25 + $0xc48] sm:$0xff] }
 0x1e0   : > { %4161 = vmatpush1.bf16.msra.mxu0 %v9221_v54  ;;  %12002 = vst [vmem:[#allocation214_spill] sm:$0xff] %v9237_v29  ;;  %v1056_v54 = vld [vmem:[%s8313_s25 + $0x868] sm:$0xff]  ;;  %12007 = vst [vmem:[#allocation219_spill] sm:$0xff] %v9257_v27 }
 0x1e1   : > { %4162 = vmatprep.subr.bf16.mxu0 %v9227_v21  ;;  %12005 = vst [vmem:[#allocation217_spill] sm:$0xff] %v9246_v39  ;;  %v1184_v30 = vld [vmem:[%s8313_s25 + $0xc68] sm:$0xff]  ;;  %v9259_v47 = vcombine.high %v1052_v14, %v1056_v54 }
 0x1e2   : > { %4202 = vmatpush1.bf16.msra.mxu1 %v9225_v12  ;;  %v9253_v12 = vcombine.low %v1060_v19, %v1064_v58  ;;  %v1044_v21 = vld [vmem:[%s8313_s25 + $0x808] sm:$0xff]  ;;  %v9273_v9 = vcombine.low %v1180_v15, %v1184_v30 }
 0x1e3   : > { %4203 = vmatprep.subr.bf16.mxu1 %v9230_v16  ;;  %12008 = vst [vmem:[#allocation220_spill] sm:$0xff] %v9259_v47  ;;  %v9262_v16 = vcombine.high %v1180_v15, %v1184_v30  ;;  %v1172_v19 = vld [vmem:[%s8313_s25 + $0xc08] sm:$0xff] }
 0x1e4   : > { %4163 = vmatpush1.bf16.msra.mxu0 %v9237_v29  ;;  %12006 = vst [vmem:[#allocation218_spill] sm:$0xff] %v9253_v12  ;;  %v1048_v29 = vld [vmem:[%s8313_s25 + $0x828] sm:$0xff]  ;;  %12011 = vst [vmem:[#allocation223_spill] sm:$0xff] %v9273_v9 }
 0x1e5   : > { %4164 = vmatprep.subr.bf16.mxu0 %v9243_v32  ;;  %12009 = vst [vmem:[#allocation221_spill] sm:$0xff] %v9262_v16  ;;  %v1176_v58 = vld [vmem:[%s8313_s25 + $0xc28] sm:$0xff]  ;;  %v9275_v42 = vcombine.high %v1044_v21, %v1048_v29 }
 0x1e6   : > { %4204 = vmatpush1.bf16.msra.mxu1 %v9241_v51  ;;  %v9269_v51 = vcombine.low %v1052_v14, %v1056_v54  ;;  %v1164_v32 = vld [vmem:[%s8313_s25 + $0xbc8] sm:$0xff]  ;;  %v9289_v15 = vcombine.low %v1172_v19, %v1176_v58 }
 0x1e7   : > { %4205 = vmatprep.subr.bf16.mxu1 %v9246_v39  ;;  %12012 = vst [vmem:[#allocation224_spill] sm:$0xff] %v9275_v42  ;;  %v9278_v39 = vcombine.high %v1172_v19, %v1176_v58  ;;  %v1292_v14 = vld [vmem:[%s8313_s25 + $0xfc8] sm:$0xff] }
 0x1e8   : > { %4165 = vmatpush1.bf16.msra.mxu0 %v9253_v12  ;;  %12010 = vst [vmem:[#allocation222_spill] sm:$0xff] %v9269_v51  ;;  %v1168_v12 = vld [vmem:[%s8313_s25 + $0xbe8] sm:$0xff]  ;;  %12015 = vst [vmem:[#allocation227_spill] sm:$0xff] %v9289_v15 }
 0x1e9   : > { %4166 = vmatprep.subr.bf16.mxu0 %v9259_v47  ;;  %12013 = vst [vmem:[#allocation225_spill] sm:$0xff] %v9278_v39  ;;  %v1296_v54 = vld [vmem:[%s8313_s25 + $0xfe8] sm:$0xff]  ;;  %v9291_v30 = vcombine.high %v1164_v32, %v1168_v12 }
 0x1ea   : > { %4206 = vmatpush1.bf16.msra.mxu1 %v9257_v27  ;;  %v9285_v27 = vcombine.low %v1044_v21, %v1048_v29  ;;  %v1156_v47 = vld [vmem:[%s8313_s25 + $0xb88] sm:$0xff]  ;;  %v9305_v19 = vcombine.low %v1292_v14, %v1296_v54 }
 0x1eb   : > { %4207 = vmatprep.subr.bf16.mxu1 %v9262_v16  ;;  %12016 = vst [vmem:[#allocation228_spill] sm:$0xff] %v9291_v30  ;;  %v9294_v16 = vcombine.high %v1292_v14, %v1296_v54  ;;  %v1284_v29 = vld [vmem:[%s8313_s25 + $0xf88] sm:$0xff] }
 0x1ec   : > { %4167 = vmatpush1.bf16.msra.mxu0 %v9269_v51  ;;  %12014 = vst [vmem:[#allocation226_spill] sm:$0xff] %v9285_v27  ;;  %v1160_v51 = vld [vmem:[%s8313_s25 + $0xba8] sm:$0xff]  ;;  %12019 = vst [vmem:[#allocation231_spill] sm:$0xff] %v9305_v19 }
 0x1ed   : > { %4168 = vmatprep.subr.bf16.mxu0 %v9275_v42  ;;  %12017 = vst [vmem:[#allocation229_spill] sm:$0xff] %v9294_v16  ;;  %v1288_v21 = vld [vmem:[%s8313_s25 + $0xfa8] sm:$0xff]  ;;  %v9307_v58 = vcombine.high %v1156_v47, %v1160_v51 }
 0x1ee   : > { %4208 = vmatpush1.bf16.msra.mxu1 %v9273_v9  ;;  %v9301_v9 = vcombine.low %v1164_v32, %v1168_v12  ;;  %v1148_v42 = vld [vmem:[%s8313_s25 + $0xb48] sm:$0xff]  ;;  %v9321_v14 = vcombine.low %v1284_v29, %v1288_v21 }
 0x1ef   : > { %4209 = vmatprep.subr.bf16.mxu1 %v9278_v39  ;;  %12020 = vst [vmem:[#allocation232_spill] sm:$0xff] %v9307_v58  ;;  %v9310_v39 = vcombine.high %v1284_v29, %v1288_v21  ;;  %v1276_v12 = vld [vmem:[%s8313_s25 + $0xf48] sm:$0xff] }
 0x1f0   : > { %4169 = vmatpush1.bf16.msra.mxu0 %v9285_v27  ;;  %12018 = vst [vmem:[#allocation230_spill] sm:$0xff] %v9301_v9  ;;  %v1152_v27 = vld [vmem:[%s8313_s25 + $0xb68] sm:$0xff]  ;;  %12023 = vst [vmem:[#allocation235_spill] sm:$0xff] %v9321_v14 }
 0x1f1   : > { %4170 = vmatprep.subr.bf16.mxu0 %v9291_v30  ;;  %12021 = vst [vmem:[#allocation233_spill] sm:$0xff] %v9310_v39  ;;  %v1280_v32 = vld [vmem:[%s8313_s25 + $0xf68] sm:$0xff]  ;;  %v9323_v54 = vcombine.high %v1148_v42, %v1152_v27 }
 0x1f2   : > { %4210 = vmatpush1.bf16.msra.mxu1 %v9289_v15  ;;  %v9317_v15 = vcombine.low %v1156_v47, %v1160_v51  ;;  %v1140_v30 = vld [vmem:[%s8313_s25 + $0xb08] sm:$0xff]  ;;  %v9337_v29 = vcombine.low %v1276_v12, %v1280_v32 }
 0x1f3   : > { %4211 = vmatprep.subr.bf16.mxu1 %v9294_v16  ;;  %12024 = vst [vmem:[#allocation236_spill] sm:$0xff] %v9323_v54  ;;  %v9326_v16 = vcombine.high %v1276_v12, %v1280_v32  ;;  %v1268_v51 = vld [vmem:[%s8313_s25 + $0xf08] sm:$0xff] }
 0x1f4   : > { %4171 = vmatpush2.bf16.msra.mxu0 %v9301_v9  ;;  %12022 = vst [vmem:[#allocation234_spill] sm:$0xff] %v9317_v15  ;;  %v1144_v9 = vld [vmem:[%s8313_s25 + $0xb28] sm:$0xff]  ;;  %12027 = vst [vmem:[#allocation239_spill] sm:$0xff] %v9337_v29 }
 0x1f5   : > { %4172 = vmatprep.subr.bf16.mxu0 %v9307_v58  ;;  %12025 = vst [vmem:[#allocation237_spill] sm:$0xff] %v9326_v16  ;;  %v1272_v47 = vld [vmem:[%s8313_s25 + $0xf28] sm:$0xff]  ;;  %v9339_v21 = vcombine.high %v1140_v30, %v1144_v9 }
 0x1f6   : > { %4212 = vmatpush2.bf16.msra.mxu1 %v9305_v19  ;;  %v9333_v19 = vcombine.low %v1148_v42, %v1152_v27  ;;  %v1132_v58 = vld [vmem:[%s8313_s25 + $0xac8] sm:$0xff]  ;;  %v9353_v12 = vcombine.low %v1268_v51, %v1272_v47 }
 0x1f7   : > { %4213 = vmatprep.subr.bf16.mxu1 %v9310_v39  ;;  %12028 = vst [vmem:[#allocation240_spill] sm:$0xff] %v9339_v21  ;;  %v9342_v39 = vcombine.high %v1268_v51, %v1272_v47  ;;  %v1260_v27 = vld [vmem:[%s8313_s25 + $0xec8] sm:$0xff] }
 0x1f8   : > { %4173 = vmatpush2.bf16.msra.mxu0 %v9317_v15  ;;  %12026 = vst [vmem:[#allocation238_spill] sm:$0xff] %v9333_v19  ;;  %v1136_v15 = vld [vmem:[%s8313_s25 + $0xae8] sm:$0xff]  ;;  %12031 = vst [vmem:[#allocation243_spill] sm:$0xff] %v9353_v12 }
 0x1f9   : > { %4174 = vmatprep.subr.bf16.mxu0 %v9323_v54  ;;  %12029 = vst [vmem:[#allocation241_spill] sm:$0xff] %v9342_v39  ;;  %v1264_v42 = vld [vmem:[%s8313_s25 + $0xee8] sm:$0xff]  ;;  %v9355_v32 = vcombine.high %v1132_v58, %v1136_v15 }
 0x1fa   : > { %4214 = vmatpush2.bf16.msra.mxu1 %v9321_v14  ;;  %v9349_v14 = vcombine.low %v1140_v30, %v1144_v9  ;;  %v1124_v54 = vld [vmem:[%s8313_s25 + $0xa88] sm:$0xff]  ;;  %v9369_v51 = vcombine.low %v1260_v27, %v1264_v42 }
 0x1fb   : > { %4215 = vmatprep.subr.bf16.mxu1 %v9326_v16  ;;  %12032 = vst [vmem:[#allocation244_spill] sm:$0xff] %v9355_v32  ;;  %v9358_v16 = vcombine.high %v1260_v27, %v1264_v42  ;;  %v1252_v9 = vld [vmem:[%s8313_s25 + $0xe88] sm:$0xff] }
 0x1fc   : > { %4175 = vmatpush2.bf16.msra.mxu0 %v9333_v19  ;;  %12030 = vst [vmem:[#allocation242_spill] sm:$0xff] %v9349_v14  ;;  %v1128_v19 = vld [vmem:[%s8313_s25 + $0xaa8] sm:$0xff]  ;;  %12035 = vst [vmem:[#allocation247_spill] sm:$0xff] %v9369_v51 }
 0x1fd   : > { %4176 = vmatprep.subr.bf16.mxu0 %v9339_v21  ;;  %12033 = vst [vmem:[#allocation245_spill] sm:$0xff] %v9358_v16  ;;  %v1256_v30 = vld [vmem:[%s8313_s25 + $0xea8] sm:$0xff]  ;;  %v9371_v47 = vcombine.high %v1124_v54, %v1128_v19 }
 0x1fe   : > { %4216 = vmatpush2.bf16.msra.mxu1 %v9337_v29  ;;  %v9365_v29 = vcombine.low %v1132_v58, %v1136_v15  ;;  %v1116_v21 = vld [vmem:[%s8313_s25 + $0xa48] sm:$0xff]  ;;  %v9385_v27 = vcombine.low %v1252_v9, %v1256_v30 }
 0x1ff   : > { %4217 = vmatprep.subr.bf16.mxu1 %v9342_v39  ;;  %12036 = vst [vmem:[#allocation248_spill] sm:$0xff] %v9371_v47  ;;  %v9374_v39 = vcombine.high %v1252_v9, %v1256_v30  ;;  %v1244_v15 = vld [vmem:[%s8313_s25 + $0xe48] sm:$0xff] }
 0x200   : > { %4177 = vmatpush2.bf16.msra.mxu0 %v9349_v14  ;;  %12034 = vst [vmem:[#allocation246_spill] sm:$0xff] %v9365_v29  ;;  %v1120_v14 = vld [vmem:[%s8313_s25 + $0xa68] sm:$0xff]  ;;  %12039 = vst [vmem:[#allocation251_spill] sm:$0xff] %v9385_v27 }
 0x201   : > { %4178 = vmatprep.subr.bf16.mxu0 %v9355_v32  ;;  %12037 = vst [vmem:[#allocation249_spill] sm:$0xff] %v9374_v39  ;;  %v1248_v58 = vld [vmem:[%s8313_s25 + $0xe68] sm:$0xff]  ;;  %v9387_v42 = vcombine.high %v1116_v21, %v1120_v14 }
 0x202   : > { %4218 = vmatpush2.bf16.msra.mxu1 %v9353_v12  ;;  %v9381_v12 = vcombine.low %v1124_v54, %v1128_v19  ;;  %v1108_v32 = vld [vmem:[%s8313_s25 + $0xa08] sm:$0xff]  ;;  %v9401_v9 = vcombine.low %v1244_v15, %v1248_v58 }
 0x203   : > { %4219 = vmatprep.subr.bf16.mxu1 %v9358_v16  ;;  %12040 = vst [vmem:[#allocation252_spill] sm:$0xff] %v9387_v42  ;;  %v9390_v16 = vcombine.high %v1244_v15, %v1248_v58  ;;  %v1236_v19 = vld [vmem:[%s8313_s25 + $0xe08] sm:$0xff] }
 0x204   : > { %4179 = vmatpush2.bf16.msra.mxu0 %v9365_v29  ;;  %12038 = vst [vmem:[#allocation250_spill] sm:$0xff] %v9381_v12  ;;  %v1112_v29 = vld [vmem:[%s8313_s25 + $0xa28] sm:$0xff]  ;;  %12043 = vst [vmem:[#allocation255_spill] sm:$0xff] %v9401_v9 }
 0x205   : > { %4180 = vmatprep.subr.bf16.mxu0 %v9371_v47  ;;  %12041 = vst [vmem:[#allocation253_spill] sm:$0xff] %v9390_v16  ;;  %v1240_v54 = vld [vmem:[%s8313_s25 + $0xe28] sm:$0xff]  ;;  %v9403_v30 = vcombine.high %v1108_v32, %v1112_v29  ;;  %v845_v47 = vld [vmem:[%s8313_s25 + $0x1d0] sm:$0xff] }
 0x206   : > { %4220 = vmatpush2.bf16.msra.mxu1 %v9369_v51  ;;  %v9397_v51 = vcombine.low %v1116_v21, %v1120_v14  ;;  %v973_v14 = vld [vmem:[%s8313_s25 + $0x5d0] sm:$0xff]  ;;  %v9417_v15 = vcombine.low %v1236_v19, %v1240_v54 }
 0x207   : > { %4221 = vmatprep.subr.bf16.mxu1 %v9374_v39  ;;  %12044 = vst [vmem:[#allocation256_spill] sm:$0xff] %v9403_v30  ;;  %v9406_v39 = vcombine.high %v1236_v19, %v1240_v54  ;;  %v977_v21 = vld [vmem:[%s8313_s25 + $0x5f0] sm:$0xff]  ;;  %v9435_v54 = vpop.permute.xlu0 %1301 }
 0x208   : > { %4181 = vmatpush2.bf16.msra.mxu0 %v9381_v12  ;;  %12042 = vst [vmem:[#allocation254_spill] sm:$0xff] %v9397_v51  ;;  %v849_v12 = vld [vmem:[%s8313_s25 + $0x1f0] sm:$0xff]  ;;  %12047 = vst [vmem:[#allocation259_spill] sm:$0xff] %v9417_v15  ;;  %v9433_v19 = vcombine.low %v973_v14, %v977_v21 }
 0x209   : > { %4182 = vmatprep.subr.bf16.mxu0 %v9387_v42  ;;  %12045 = vst [vmem:[#allocation257_spill] sm:$0xff] %v9406_v39  ;;  %v9419_v58 = vcombine.high %v845_v47, %v849_v12  ;;  %v837_v42 = vld [vmem:[%s8313_s25 + $0x190] sm:$0xff] }
 0x20a   : > { %4222 = vmatpush2.bf16.msra.mxu1 %v9385_v27  ;;  %v9413_v27 = vcombine.low %v1108_v32, %v1112_v29  ;;  %v969_v29 = vld [vmem:[%s8313_s25 + $0x5b0] sm:$0xff]  ;;  %v9429_v32 = vcombine.low %v845_v47, %v849_v12  ;;  %12051 = vst [vmem:[#allocation263_spill] sm:$0xff] %v9433_v19 }
 0x20b   : > { %4223 = vmatprep.subr.bf16.mxu1 %v9390_v16  ;;  %12048 = vst [vmem:[#allocation260_spill] sm:$0xff] %v9419_v58  ;;  %v9422_v16 = vcombine.high %v973_v14, %v977_v21  ;;  %v957_v12 = vld [vmem:[%s8313_s25 + $0x550] sm:$0xff]  ;;  %v9449_v14 = vcombine.low %v837_v42, %v841_v41 }
 0x20c   : > { %4183 = vmatpush2.bf16.msra.mxu0 %v9397_v51  ;;  %12046 = vst [vmem:[#allocation258_spill] sm:$0xff] %v9413_v27  ;;  %v965_v51 = vld [vmem:[%s8313_s25 + $0x590] sm:$0xff]  ;;  %12050 = vst [vmem:[#allocation262_spill] sm:$0xff] %v9429_v32 }
 0x20d   : > { %4184 = vmatprep.subr.bf16.mxu0 %v9403_v30  ;;  %12049 = vst [vmem:[#allocation261_spill] sm:$0xff] %v9422_v16  ;;  %v829_v30 = vld [vmem:[%s8313_s25 + $0x150] sm:$0xff]  ;;  %12054 = vst [vmem:[#allocation266_spill] sm:$0xff] %v9449_v14 }
 0x20e   : > { %4224 = vmatpush2.bf16.msra.mxu1 %v9401_v9  ;;  %v9440_v9 = vcombine.high %v965_v51, %v969_v29  ;;  %v961_v47 = vld [vmem:[%s8313_s25 + $0x570] sm:$0xff] }
 0x20f   : > { %4225 = vmatprep.subr.bf16.mxu1 %v9406_v39  ;;  %v9437_v39 = vcombine.high %v837_v42, %v841_v41  ;;  %v9460_v41 = vcombine.high %v957_v12, %v961_v47  ;;  %v821_v42 = vld [vmem:[%s8313_s25 + $0x110] sm:$0xff] }
 0x210   : > { %4185 = vmatpush2.bf16.msra.mxu0 %v9413_v27  ;;  %12053 = vst [vmem:[#allocation265_spill] sm:$0xff] %v9440_v9  ;;  %v9456_v27 = vcombine.high %v829_v30, %v833_v8 }
 0x211   : > { %4236 = vmatprep.subr.bf16.mxu0 %v9419_v58  ;;  %12052 = vst [vmem:[#allocation264_spill] sm:$0xff] %v9437_v39  ;;  %v9454_v58 = vcombine.low %v965_v51, %v969_v29  ;;  %12057 = vst [vmem:[#allocation269_spill] sm:$0xff] %v9460_v41  ;;  %v953_v51 = vld [vmem:[%s8313_s25 + $0x530] sm:$0xff] }
 0x212   : > { %4226 = vmatpush2.bf16.msra.mxu1 %v9417_v15  ;;  %12056 = vst [vmem:[#allocation268_spill] sm:$0xff] %v9456_v27 }
 0x213   : > { %4277 = vmatprep.subr.bf16.mxu1 %v9422_v16  ;;  %v3942_v24 = vpop.f32.mrf.mxu0  ;;  %4187 = vmatmul.mubr.bf16.vlgmr.msra.gmra.mxu0 %v8633_v49  ;;  %12055 = vst [vmem:[#allocation267_spill] sm:$0xff] %v9454_v58 }
 0x214   : > { %4237 = vmatpush1.bf16.msra.mxu0 %v9429_v32  ;;  %v3943_v21 = vadd.f32 %v3942_v24, %v9435_v54  ;;  %v825_v32 = vld [vmem:[%s8313_s25 + $0x130] sm:$0xff]  ;;  %4268 = vmatprep.mubr.bf16.mxu0 %v8463_v7 }
 0x215   : > { %v3983_v15 = vpop.f32.mrf.mxu1  ;;  %4228 = vmatmul.mubr.bf16.vlgmr.msra.gmra.mxu1 %v8638_v60  ;;  %v3944_v16 = vpop.f32.mrf.mxu0  ;;  %4238 = vmatprep.subr.bf16.mxu0 %v9437_v39  ;;  %v949_v39 = vld [vmem:[%s8313_s25 + $0x510] sm:$0xff] }
 0x216   : > { %4278 = vmatpush1.bf16.msra.mxu1 %v9433_v19  ;;  %v3945_v62 = vadd.f32 %v3944_v16, %v9435_v54  ;;  %v9465_v24 = vadd.f32 %v3983_v15, %v3943_v21  ;;  %4309 = vmatprep.mubr.bf16.mxu1 %v8482_v22  ;;  %v9479_v21 = vcombine.high %v821_v42, %v825_v32 }
 0x217   : > { %v3985_v63 = vpop.f32.mrf.mxu1  ;;  %4279 = vmatprep.subr.bf16.mxu1 %v9440_v9  ;;  %v3946_v19 = vpop.f32.mrf.mxu0  ;;  %v9473_v9 = vcombine.low %v829_v30, %v833_v8  ;;  %v813_v8 = vld [vmem:[%s8313_s25 + $0xd0] sm:$0xff] }
 0x218   : > { %v9470_v16 = vadd.f32 %v3985_v63, %v3945_v62  ;;  %4239 = vmatpush1.bf16.msra.mxu0 %v9449_v14  ;;  %v9477_v19 = vcombine.low %v957_v12, %v961_v47  ;;  %12060 = vst [vmem:[#allocation272_spill] sm:$0xff] %v9479_v21  ;;  %v9482_v63 = vcombine.high %v949_v39, %v953_v51  ;;  %v817_v62 = vld [vmem:[%s8313_s25 + $0xf0] sm:$0xff] }
 0x219   : > { %v3987_v29 = vpop.f32.mrf.mxu1  ;;  %12058 = vst [vmem:[#allocation270_spill] sm:$0xff] %v9473_v9  ;;  %v3947_v15 = vpop.f32.mrf.mxu0  ;;  %4240 = vmatprep.subr.bf16.mxu0 %v9456_v27  ;;  %v941_v30 = vld [vmem:[%s8313_s25 + $0x4d0] sm:$0xff]  ;;  %v9495_v12 = vcombine.high %v813_v8, %v817_v62 }
 0x21a   : > { %4280 = vmatpush1.bf16.msra.mxu1 %v9454_v58  ;;  %12059 = vst [vmem:[#allocation271_spill] sm:$0xff] %v9477_v19  ;;  %12061 = vst [vmem:[#allocation273_spill] sm:$0xff] %v9482_v63  ;;  %v945_v29 = vld [vmem:[%s8313_s25 + $0x4f0] sm:$0xff]  ;;  %v9489_v15 = vcombine.low %v821_v42, %v825_v32 }
 0x21b   : > { %v3988_v52 = vpop.f32.mrf.mxu1  ;;  %4281 = vmatprep.subr.bf16.mxu1 %v9460_v41  ;;  %12064 = vst [vmem:[#allocation276_spill] sm:$0xff] %v9495_v12  ;;  %v9498_v47 = vcombine.high %v941_v30, %v945_v29  ;;  %v805_v41 = vld [vmem:[%s8313_s25 + $0x90] sm:$0xff] }
 0x21c   : > { %4241 = vmatpush1.bf16.msra.mxu0 %v9473_v9  ;;  %12062 = vst [vmem:[#allocation274_spill] sm:$0xff] %v9489_v15  ;;  %v9493_v52 = vcombine.low %v949_v39, %v953_v51  ;;  %v809_v58 = vld [vmem:[%s8313_s25 + $0xb0] sm:$0xff]  ;;  %v9509_v39 = vcombine.low %v941_v30, %v945_v29 }
 0x21d   : > { %4242 = vmatprep.subr.bf16.mxu0 %v9479_v21  ;;  %12065 = vst [vmem:[#allocation277_spill] sm:$0xff] %v9498_v47  ;;  %v933_v32 = vld [vmem:[%s8313_s25 + $0x490] sm:$0xff]  ;;  %v9511_v51 = vcombine.high %v805_v41, %v809_v58 }
 0x21e   : > { %4282 = vmatpush1.bf16.msra.mxu1 %v9477_v19  ;;  %12063 = vst [vmem:[#allocation275_spill] sm:$0xff] %v9493_v52  ;;  %v937_v42 = vld [vmem:[%s8313_s25 + $0x4b0] sm:$0xff]  ;;  %v9505_v19 = vcombine.low %v813_v8, %v817_v62  ;;  %12067 = vst [vmem:[#allocation279_spill] sm:$0xff] %v9509_v39 }
 0x21f   : > { %4283 = vmatprep.subr.bf16.mxu1 %v9482_v63  ;;  %12068 = vst [vmem:[#allocation280_spill] sm:$0xff] %v9511_v51  ;;  %v9514_v63 = vcombine.high %v933_v32, %v937_v42  ;;  %v797_v21 = vld [vmem:[%s8313_s25 + $0x50] sm:$0xff]  ;;  %v9525_v30 = vcombine.low %v933_v32, %v937_v42 }
 0x220   : > { %4243 = vmatpush1.bf16.msra.mxu0 %v9489_v15  ;;  %12066 = vst [vmem:[#allocation278_spill] sm:$0xff] %v9505_v19  ;;  %v801_v15 = vld [vmem:[%s8313_s25 + $0x70] sm:$0xff] }
 0x221   : > { %4244 = vmatprep.subr.bf16.mxu0 %v9495_v12  ;;  %12069 = vst [vmem:[#allocation281_spill] sm:$0xff] %v9514_v63  ;;  %v925_v8 = vld [vmem:[%s8313_s25 + $0x450] sm:$0xff]  ;;  %12071 = vst [vmem:[#allocation283_spill] sm:$0xff] %v9525_v30  ;;  %v9527_v29 = vcombine.high %v797_v21, %v801_v15 }
 0x222   : > { %4284 = vmatpush1.bf16.msra.mxu1 %v9493_v52  ;;  %v929_v62 = vld [vmem:[%s8313_s25 + $0x470] sm:$0xff]  ;;  %v9521_v52 = vcombine.low %v805_v41, %v809_v58 }
 0x223   : > { %4285 = vmatprep.subr.bf16.mxu1 %v9498_v47  ;;  %12072 = vst [vmem:[#allocation284_spill] sm:$0xff] %v9527_v29  ;;  %v9530_v47 = vcombine.high %v925_v8, %v929_v62  ;;  %v789_v12 = vld [vmem:[%s8313_s25 + $0x10] sm:$0xff]  ;;  %v9541_v32 = vcombine.low %v925_v8, %v929_v62 }
 0x224   : > { %4245 = vmatpush1.bf16.msra.mxu0 %v9505_v19  ;;  %12070 = vst [vmem:[#allocation282_spill] sm:$0xff] %v9521_v52  ;;  %v793_v19 = vld [vmem:[%s8313_s25 + $0x30] sm:$0xff] }
 0x225   : > { %4246 = vmatprep.subr.bf16.mxu0 %v9511_v51  ;;  %12073 = vst [vmem:[#allocation285_spill] sm:$0xff] %v9530_v47  ;;  %v917_v58 = vld [vmem:[%s8313_s25 + $0x410] sm:$0xff]  ;;  %12075 = vst [vmem:[#allocation287_spill] sm:$0xff] %v9541_v32  ;;  %v9543_v42 = vcombine.high %v789_v12, %v793_v19 }
 0x226   : > { %4286 = vmatpush1.bf16.msra.mxu1 %v9509_v39  ;;  %v921_v41 = vld [vmem:[%s8313_s25 + $0x430] sm:$0xff]  ;;  %v9537_v39 = vcombine.low %v797_v21, %v801_v15 }
 0x227   : > { %4287 = vmatprep.subr.bf16.mxu1 %v9514_v63  ;;  %12076 = vst [vmem:[#allocation288_spill] sm:$0xff] %v9543_v42  ;;  %v9546_v63 = vcombine.high %v917_v58, %v921_v41  ;;  %v909_v51 = vld [vmem:[%s8313_s25 + $0x3d0] sm:$0xff]  ;;  %v9557_v8 = vcombine.low %v917_v58, %v921_v41 }
 0x228   : > { %4247 = vmatpush1.bf16.msra.mxu0 %v9521_v52  ;;  %12074 = vst [vmem:[#allocation286_spill] sm:$0xff] %v9537_v39  ;;  %v913_v52 = vld [vmem:[%s8313_s25 + $0x3f0] sm:$0xff] }
 0x229   : > { %4248 = vmatprep.subr.bf16.mxu0 %v9527_v29  ;;  %12077 = vst [vmem:[#allocation289_spill] sm:$0xff] %v9546_v63  ;;  %v1037_v21 = vld [vmem:[%s8313_s25 + $0x7d0] sm:$0xff]  ;;  %12079 = vst [vmem:[#allocation291_spill] sm:$0xff] %v9557_v8  ;;  %v9559_v62 = vcombine.high %v909_v51, %v913_v52 }
 0x22a   : > { %4288 = vmatpush1.bf16.msra.mxu1 %v9525_v30  ;;  %v1041_v15 = vld [vmem:[%s8313_s25 + $0x7f0] sm:$0xff]  ;;  %v9553_v30 = vcombine.low %v789_v12, %v793_v19 }
 0x22b   : > { %4289 = vmatprep.subr.bf16.mxu1 %v9530_v47  ;;  %12080 = vst [vmem:[#allocation292_spill] sm:$0xff] %v9559_v62  ;;  %v9562_v47 = vcombine.high %v1037_v21, %v1041_v15  ;;  %v901_v29 = vld [vmem:[%s8313_s25 + $0x390] sm:$0xff]  ;;  %v9573_v58 = vcombine.low %v1037_v21, %v1041_v15 }
 0x22c   : > { %4249 = vmatpush1.bf16.msra.mxu0 %v9537_v39  ;;  %12078 = vst [vmem:[#allocation290_spill] sm:$0xff] %v9553_v30  ;;  %v905_v39 = vld [vmem:[%s8313_s25 + $0x3b0] sm:$0xff] }
 0x22d   : > { %4250 = vmatprep.subr.bf16.mxu0 %v9543_v42  ;;  %12081 = vst [vmem:[#allocation293_spill] sm:$0xff] %v9562_v47  ;;  %v1029_v19 = vld [vmem:[%s8313_s25 + $0x790] sm:$0xff]  ;;  %12083 = vst [vmem:[#allocation295_spill] sm:$0xff] %v9573_v58  ;;  %v9575_v41 = vcombine.high %v901_v29, %v905_v39 }
 0x22e   : > { %4290 = vmatpush1.bf16.msra.mxu1 %v9541_v32  ;;  %v1033_v12 = vld [vmem:[%s8313_s25 + $0x7b0] sm:$0xff]  ;;  %v9569_v32 = vcombine.low %v909_v51, %v913_v52 }
 0x22f   : > { %4291 = vmatprep.subr.bf16.mxu1 %v9546_v63  ;;  %12084 = vst [vmem:[#allocation296_spill] sm:$0xff] %v9575_v41  ;;  %v9578_v63 = vcombine.high %v1029_v19, %v1033_v12  ;;  %v893_v42 = vld [vmem:[%s8313_s25 + $0x350] sm:$0xff]  ;;  %v9589_v21 = vcombine.low %v1029_v19, %v1033_v12 }
 0x230   : > { %4251 = vmatpush1.bf16.msra.mxu0 %v9553_v30  ;;  %12082 = vst [vmem:[#allocation294_spill] sm:$0xff] %v9569_v32  ;;  %v897_v30 = vld [vmem:[%s8313_s25 + $0x370] sm:$0xff] }
 0x231   : > { %4252 = vmatprep.subr.bf16.mxu0 %v9559_v62  ;;  %12085 = vst [vmem:[#allocation297_spill] sm:$0xff] %v9578_v63  ;;  %v1021_v52 = vld [vmem:[%s8313_s25 + $0x750] sm:$0xff]  ;;  %12087 = vst [vmem:[#allocation299_spill] sm:$0xff] %v9589_v21  ;;  %v9591_v15 = vcombine.high %v893_v42, %v897_v30 }
 0x232   : > { %4292 = vmatpush1.bf16.msra.mxu1 %v9557_v8  ;;  %v1025_v51 = vld [vmem:[%s8313_s25 + $0x770] sm:$0xff]  ;;  %v9585_v8 = vcombine.low %v901_v29, %v905_v39 }
 0x233   : > { %4293 = vmatprep.subr.bf16.mxu1 %v9562_v47  ;;  %12088 = vst [vmem:[#allocation300_spill] sm:$0xff] %v9591_v15  ;;  %v9594_v47 = vcombine.high %v1021_v52, %v1025_v51  ;;  %v885_v62 = vld [vmem:[%s8313_s25 + $0x310] sm:$0xff]  ;;  %v9605_v19 = vcombine.low %v1021_v52, %v1025_v51 }
 0x234   : > { %4253 = vmatpush2.bf16.msra.mxu0 %v9569_v32  ;;  %12086 = vst [vmem:[#allocation298_spill] sm:$0xff] %v9585_v8  ;;  %v889_v32 = vld [vmem:[%s8313_s25 + $0x330] sm:$0xff] }
 0x235   : > { %4254 = vmatprep.subr.bf16.mxu0 %v9575_v41  ;;  %12089 = vst [vmem:[#allocation301_spill] sm:$0xff] %v9594_v47  ;;  %v1013_v39 = vld [vmem:[%s8313_s25 + $0x710] sm:$0xff]  ;;  %12091 = vst [vmem:[#allocation303_spill] sm:$0xff] %v9605_v19  ;;  %v9607_v12 = vcombine.high %v885_v62, %v889_v32 }
 0x236   : > { %4294 = vmatpush2.bf16.msra.mxu1 %v9573_v58  ;;  %v1017_v29 = vld [vmem:[%s8313_s25 + $0x730] sm:$0xff]  ;;  %v9601_v58 = vcombine.low %v893_v42, %v897_v30 }
 0x237   : > { %4295 = vmatprep.subr.bf16.mxu1 %v9578_v63  ;;  %12092 = vst [vmem:[#allocation304_spill] sm:$0xff] %v9607_v12  ;;  %v9610_v63 = vcombine.high %v1013_v39, %v1017_v29  ;;  %v877_v41 = vld [vmem:[%s8313_s25 + $0x2d0] sm:$0xff]  ;;  %v9621_v52 = vcombine.low %v1013_v39, %v1017_v29 }
 0x238   : > { %4255 = vmatpush2.bf16.msra.mxu0 %v9585_v8  ;;  %12090 = vst [vmem:[#allocation302_spill] sm:$0xff] %v9601_v58  ;;  %v881_v8 = vld [vmem:[%s8313_s25 + $0x2f0] sm:$0xff] }
 0x239   : > { %4256 = vmatprep.subr.bf16.mxu0 %v9591_v15  ;;  %12093 = vst [vmem:[#allocation305_spill] sm:$0xff] %v9610_v63  ;;  %v1005_v30 = vld [vmem:[%s8313_s25 + $0x6d0] sm:$0xff]  ;;  %12095 = vst [vmem:[#allocation307_spill] sm:$0xff] %v9621_v52  ;;  %v9623_v51 = vcombine.high %v877_v41, %v881_v8 }
 0x23a   : > { %4296 = vmatpush2.bf16.msra.mxu1 %v9589_v21  ;;  %v1009_v42 = vld [vmem:[%s8313_s25 + $0x6f0] sm:$0xff]  ;;  %v9617_v21 = vcombine.low %v885_v62, %v889_v32 }
 0x23b   : > { %4297 = vmatprep.subr.bf16.mxu1 %v9594_v47  ;;  %12096 = vst [vmem:[#allocation308_spill] sm:$0xff] %v9623_v51  ;;  %v9626_v47 = vcombine.high %v1005_v30, %v1009_v42  ;;  %v869_v15 = vld [vmem:[%s8313_s25 + $0x290] sm:$0xff]  ;;  %v9637_v39 = vcombine.low %v1005_v30, %v1009_v42 }
 0x23c   : > { %4257 = vmatpush2.bf16.msra.mxu0 %v9601_v58  ;;  %12094 = vst [vmem:[#allocation306_spill] sm:$0xff] %v9617_v21  ;;  %v873_v58 = vld [vmem:[%s8313_s25 + $0x2b0] sm:$0xff] }
 0x23d   : > { %4258 = vmatprep.subr.bf16.mxu0 %v9607_v12  ;;  %12097 = vst [vmem:[#allocation309_spill] sm:$0xff] %v9626_v47  ;;  %v997_v32 = vld [vmem:[%s8313_s25 + $0x690] sm:$0xff]  ;;  %12099 = vst [vmem:[#allocation311_spill] sm:$0xff] %v9637_v39  ;;  %v9639_v29 = vcombine.high %v869_v15, %v873_v58 }
 0x23e   : > { %4298 = vmatpush2.bf16.msra.mxu1 %v9605_v19  ;;  %v1001_v62 = vld [vmem:[%s8313_s25 + $0x6b0] sm:$0xff]  ;;  %v9633_v19 = vcombine.low %v877_v41, %v881_v8 }
 0x23f   : > { %4299 = vmatprep.subr.bf16.mxu1 %v9610_v63  ;;  %12100 = vst [vmem:[#allocation312_spill] sm:$0xff] %v9639_v29  ;;  %v9642_v63 = vcombine.high %v997_v32, %v1001_v62  ;;  %v861_v12 = vld [vmem:[%s8313_s25 + $0x250] sm:$0xff]  ;;  %v9653_v30 = vcombine.low %v997_v32, %v1001_v62 }
 0x240   : > { %4259 = vmatpush2.bf16.msra.mxu0 %v9617_v21  ;;  %12098 = vst [vmem:[#allocation310_spill] sm:$0xff] %v9633_v19  ;;  %v865_v21 = vld [vmem:[%s8313_s25 + $0x270] sm:$0xff] }
 0x241   : > { %4260 = vmatprep.subr.bf16.mxu0 %v9623_v51  ;;  %12101 = vst [vmem:[#allocation313_spill] sm:$0xff] %v9642_v63  ;;  %v989_v8 = vld [vmem:[%s8313_s25 + $0x650] sm:$0xff]  ;;  %12103 = vst [vmem:[#allocation315_spill] sm:$0xff] %v9653_v30  ;;  %v9655_v42 = vcombine.high %v861_v12, %v865_v21 }
 0x242   : > { %4300 = vmatpush2.bf16.msra.mxu1 %v9621_v52  ;;  %v993_v41 = vld [vmem:[%s8313_s25 + $0x670] sm:$0xff]  ;;  %v9649_v52 = vcombine.low %v869_v15, %v873_v58 }
 0x243   : > { %4301 = vmatprep.subr.bf16.mxu1 %v9626_v47  ;;  %12104 = vst [vmem:[#allocation316_spill] sm:$0xff] %v9655_v42  ;;  %v9658_v47 = vcombine.high %v989_v8, %v993_v41  ;;  %v853_v51 = vld [vmem:[%s8313_s25 + $0x210] sm:$0xff]  ;;  %v9669_v32 = vcombine.low %v989_v8, %v993_v41 }
 0x244   : > { %4261 = vmatpush2.bf16.msra.mxu0 %v9633_v19  ;;  %12102 = vst [vmem:[#allocation314_spill] sm:$0xff] %v9649_v52  ;;  %v857_v19 = vld [vmem:[%s8313_s25 + $0x230] sm:$0xff] }
 0x245   : > { %4262 = vmatprep.subr.bf16.mxu0 %v9639_v29  ;;  %12105 = vst [vmem:[#allocation317_spill] sm:$0xff] %v9658_v47  ;;  %v981_v58 = vld [vmem:[%s8313_s25 + $0x610] sm:$0xff]  ;;  %12107 = vst [vmem:[#allocation319_spill] sm:$0xff] %v9669_v32  ;;  %v9671_v62 = vcombine.high %v853_v51, %v857_v19 }
 0x246   : > { %4302 = vmatpush2.bf16.msra.mxu1 %v9637_v39  ;;  %v985_v15 = vld [vmem:[%s8313_s25 + $0x630] sm:$0xff]  ;;  %v9665_v39 = vcombine.low %v861_v12, %v865_v21 }
 0x247   : > { %4303 = vmatprep.subr.bf16.mxu1 %v9642_v63  ;;  %12108 = vst [vmem:[#allocation320_spill] sm:$0xff] %v9671_v62  ;;  %v9674_v63 = vcombine.high %v981_v58, %v985_v15  ;;  %v1101_v29 = vld [vmem:[%s8313_s25 + $0x9d0] sm:$0xff]  ;;  %v9685_v8 = vcombine.low %v981_v58, %v985_v15 }
 0x248   : > { %4263 = vmatpush2.bf16.msra.mxu0 %v9649_v52  ;;  %12106 = vst [vmem:[#allocation318_spill] sm:$0xff] %v9665_v39  ;;  %v1105_v52 = vld [vmem:[%s8313_s25 + $0x9f0] sm:$0xff] }
 0x249   : > { %4264 = vmatprep.subr.bf16.mxu0 %v9655_v42  ;;  %12109 = vst [vmem:[#allocation321_spill] sm:$0xff] %v9674_v63  ;;  %v1229_v21 = vld [vmem:[%s8313_s25 + $0xdd0] sm:$0xff]  ;;  %12111 = vst [vmem:[#allocation323_spill] sm:$0xff] %v9685_v8  ;;  %v9687_v41 = vcombine.high %v1101_v29, %v1105_v52 }
 0x24a   : > { %4304 = vmatpush2.bf16.msra.mxu1 %v9653_v30  ;;  %v1233_v12 = vld [vmem:[%s8313_s25 + $0xdf0] sm:$0xff]  ;;  %v9681_v30 = vcombine.low %v853_v51, %v857_v19 }
 0x24b   : > { %4305 = vmatprep.subr.bf16.mxu1 %v9658_v47  ;;  %12112 = vst [vmem:[#allocation324_spill] sm:$0xff] %v9687_v41  ;;  %v9690_v47 = vcombine.high %v1229_v21, %v1233_v12  ;;  %v1093_v42 = vld [vmem:[%s8313_s25 + $0x990] sm:$0xff]  ;;  %v9701_v58 = vcombine.low %v1229_v21, %v1233_v12 }
 0x24c   : > { %4265 = vmatpush2.bf16.msra.mxu0 %v9665_v39  ;;  %12110 = vst [vmem:[#allocation322_spill] sm:$0xff] %v9681_v30  ;;  %v1097_v9 = vld [vmem:[%s8313_s25 + $0x9b0] sm:$0xff] }
 0x24d   : > { %4266 = vmatprep.subr.bf16.mxu0 %v9671_v62  ;;  %12113 = vst [vmem:[#allocation325_spill] sm:$0xff] %v9690_v47  ;;  %v1221_v19 = vld [vmem:[%s8313_s25 + $0xd90] sm:$0xff]  ;;  %12115 = vst [vmem:[#allocation327_spill] sm:$0xff] %v9701_v58  ;;  %v9703_v15 = vcombine.high %v1093_v42, %v1097_v9  ;;  %v9716_v21 = vcombine.low %v1093_v42, %v1097_v9 }
 0x24e   : > { %4306 = vmatpush2.bf16.msra.mxu1 %v9669_v32  ;;  %v1225_v51 = vld [vmem:[%s8313_s25 + $0xdb0] sm:$0xff]  ;;  %v9697_v32 = vcombine.low %v1101_v29, %v1105_v52 }
 0x24f   : > { %4307 = vmatprep.subr.bf16.mxu1 %v9674_v63  ;;  %12116 = vst [vmem:[#allocation328_spill] sm:$0xff] %v9703_v15  ;;  %v9706_v63 = vcombine.high %v1221_v19, %v1225_v51  ;;  %v1085_v62 = vld [vmem:[%s8313_s25 + $0x950] sm:$0xff]  ;;  %12118 = vst [vmem:[#allocation330_spill] sm:$0xff] %v9716_v21 }
 0x250   : > { %4267 = vmatpush2.bf16.msra.mxu0 %v9681_v30  ;;  %12114 = vst [vmem:[#allocation326_spill] sm:$0xff] %v9697_v32  ;;  %v1089_v39 = vld [vmem:[%s8313_s25 + $0x970] sm:$0xff] }
 0x251   : > { %4318 = vmatprep.subr.bf16.mxu0 %v9687_v41  ;;  %12117 = vst [vmem:[#allocation329_spill] sm:$0xff] %v9706_v63  ;;  %v1213_v30 = vld [vmem:[%s8313_s25 + $0xd50] sm:$0xff]  ;;  %v9722_v41 = vcombine.high %v1085_v62, %v1089_v39 }
 0x252   : > { %4308 = vmatpush2.bf16.msra.mxu1 %v9685_v8  ;;  %v1217_v52 = vld [vmem:[%s8313_s25 + $0xd70] sm:$0xff] }
 0x253   : > { %4359 = vmatprep.subr.bf16.mxu1 %v9690_v47  ;;  %v4024_v27 = vpop.f32.mrf.mxu0  ;;  %4269 = vmatmul.mubr.bf16.vlgmr.msra.gmra.mxu0 %v8454_v0  ;;  %v9720_v47 = vcombine.low %v1221_v19, %v1225_v51  ;;  %12120 = vst [vmem:[#allocation332_spill] sm:$0xff] %v9722_v41  ;;  %v1077_v9 = vld [vmem:[%s8313_s25 + $0x910] sm:$0xff]  ;;  %v9739_v51 = vcombine.low %v1085_v62, %v1089_v39 }
 0x254   : > { %v4025_v29 = vadd.f32 %v4024_v27, %v9465_v24  ;;  %4319 = vmatpush1.bf16.msra.mxu0 %v9697_v32  ;;  %v9728_v32 = vcombine.high %v1213_v30, %v1217_v52  ;;  %v1081_v42 = vld [vmem:[%s8313_s25 + $0x930] sm:$0xff]  ;;  %4350 = vmatprep.mubr.bf16.mxu0 %v8656_v61 }
 0x255   : > { %v4065_v8 = vpop.f32.mrf.mxu1  ;;  %4310 = vmatmul.mubr.bf16.vlgmr.msra.gmra.mxu1 %v8466_v11  ;;  %v4026_v12 = vpop.f32.mrf.mxu0  ;;  %4320 = vmatprep.subr.bf16.mxu0 %v9703_v15  ;;  %12119 = vst [vmem:[#allocation331_spill] sm:$0xff] %v9720_v47  ;;  %v1205_v15 = vld [vmem:[%s8313_s25 + $0xd10] sm:$0xff]  ;;  %12122 = vst [vmem:[#allocation334_spill] sm:$0xff] %v9739_v51 }
 0x256   : > { %4360 = vmatpush1.bf16.msra.mxu1 %v9701_v58  ;;  %v9724_v27 = vadd.f32 %v4065_v8, %v4025_v29  ;;  %v4027_v24 = vadd.f32 %v4026_v12, %v9470_v16  ;;  %12121 = vst [vmem:[#allocation333_spill] sm:$0xff] %v9728_v32  ;;  %v1209_v19 = vld [vmem:[%s8313_s25 + $0xd30] sm:$0xff]  ;;  %4391 = vmatprep.mubr.bf16.mxu1 %v8663_v44 }
 0x257   : > { %v4067_v14 = vpop.f32.mrf.mxu1  ;;  %4361 = vmatprep.subr.bf16.mxu1 %v9706_v63  ;;  %v4028_v58 = vpop.f32.mrf.mxu0  ;;  %v9745_v12 = vcombine.high %v1077_v9, %v1081_v42  ;;  %v1069_v39 = vld [vmem:[%s8313_s25 + $0x8d0] sm:$0xff] }
 0x258   : > { %v9736_v8 = vadd.f32 %v4067_v14, %v4027_v24  ;;  %4321 = vmatpush1.bf16.msra.mxu0 %v9716_v21  ;;  %v9743_v58 = vcombine.low %v1213_v30, %v1217_v52  ;;  %v9748_v14 = vcombine.high %v1205_v15, %v1209_v19  ;;  %v1073_v62 = vld [vmem:[%s8313_s25 + $0x8f0] sm:$0xff] }
 0x259   : > { %v4069_v16 = vpop.f32.mrf.mxu1  ;;  %v4029_v29 = vpop.f32.mrf.mxu0  ;;  %4322 = vmatprep.subr.bf16.mxu0 %v9722_v41  ;;  %12124 = vst [vmem:[#allocation336_spill] sm:$0xff] %v9745_v12  ;;  %v1197_v24 = vld [vmem:[%s8313_s25 + $0xcd0] sm:$0xff]  ;;  %v9761_v30 = vcombine.high %v1069_v39, %v1073_v62  ;;  %v834_v41 = vld [vmem:[%s8313_s25 + $0x178] sm:$0xff] }
 0x25a   : > { %4362 = vmatpush1.bf16.msra.mxu1 %v9720_v47  ;;  %12123 = vst [vmem:[#allocation335_spill] sm:$0xff] %v9743_v58  ;;  %12125 = vst [vmem:[#allocation337_spill] sm:$0xff] %v9748_v14  ;;  %v1201_v16 = vld [vmem:[%s8313_s25 + $0xcf0] sm:$0xff]  ;;  %v9755_v29 = vcombine.low %v1077_v9, %v1081_v42 }
 0x25b   : > { %v4070_v63 = vpop.f32.mrf.mxu1  ;;  %4363 = vmatprep.subr.bf16.mxu1 %v9728_v32  ;;  %12128 = vst [vmem:[#allocation340_spill] sm:$0xff] %v9761_v30  ;;  %v9764_v52 = vcombine.high %v1197_v24, %v1201_v16  ;;  %v1061_v32 = vld [vmem:[%s8313_s25 + $0x890] sm:$0xff] }
 0x25c   : > { %4323 = vmatpush1.bf16.msra.mxu0 %v9739_v51  ;;  %12126 = vst [vmem:[#allocation338_spill] sm:$0xff] %v9755_v29  ;;  %v9759_v63 = vcombine.low %v1205_v15, %v1209_v19  ;;  %v1065_v47 = vld [vmem:[%s8313_s25 + $0x8b0] sm:$0xff]  ;;  %v9775_v15 = vcombine.low %v1197_v24, %v1201_v16  ;;  %v842_v51 = vld [vmem:[%s8313_s25 + $0x1b8] sm:$0xff] }
 0x25d   : > { %4324 = vmatprep.subr.bf16.mxu0 %v9745_v12  ;;  %12129 = vst [vmem:[#allocation341_spill] sm:$0xff] %v9764_v52  ;;  %v1189_v9 = vld [vmem:[%s8313_s25 + $0xc90] sm:$0xff]  ;;  %v9777_v19 = vcombine.high %v1061_v32, %v1065_v47 }
 0x25e   : > { %4364 = vmatpush1.bf16.msra.mxu1 %v9743_v58  ;;  %12127 = vst [vmem:[#allocation339_spill] sm:$0xff] %v9759_v63  ;;  %v1193_v42 = vld [vmem:[%s8313_s25 + $0xcb0] sm:$0xff]  ;;  %v9771_v58 = vcombine.low %v1069_v39, %v1073_v62  ;;  %12131 = vst [vmem:[#allocation343_spill] sm:$0xff] %v9775_v15 }
 0x25f   : > { %4365 = vmatprep.subr.bf16.mxu1 %v9748_v14  ;;  %12132 = vst [vmem:[#allocation344_spill] sm:$0xff] %v9777_v19  ;;  %v9780_v14 = vcombine.high %v1189_v9, %v1193_v42  ;;  %v1053_v12 = vld [vmem:[%s8313_s25 + $0x850] sm:$0xff]  ;;  %v9791_v24 = vcombine.low %v1189_v9, %v1193_v42 }
 0x260   : > { %4325 = vmatpush1.bf16.msra.mxu0 %v9755_v29  ;;  %12130 = vst [vmem:[#allocation342_spill] sm:$0xff] %v9771_v58  ;;  %v1057_v29 = vld [vmem:[%s8313_s25 + $0x870] sm:$0xff] }
 0x261   : > { %4326 = vmatprep.subr.bf16.mxu0 %v9761_v30  ;;  %12133 = vst [vmem:[#allocation345_spill] sm:$0xff] %v9780_v14  ;;  %v1181_v39 = vld [vmem:[%s8313_s25 + $0xc50] sm:$0xff]  ;;  %12135 = vst [vmem:[#allocation347_spill] sm:$0xff] %v9791_v24  ;;  %v9793_v16 = vcombine.high %v1053_v12, %v1057_v29 }
 0x262   : > { %4366 = vmatpush1.bf16.msra.mxu1 %v9759_v63  ;;  %v1185_v62 = vld [vmem:[%s8313_s25 + $0xc70] sm:$0xff]  ;;  %v9787_v63 = vcombine.low %v1061_v32, %v1065_v47 }
 0x263   : > { %4367 = vmatprep.subr.bf16.mxu1 %v9764_v52  ;;  %12136 = vst [vmem:[#allocation348_spill] sm:$0xff] %v9793_v16  ;;  %v9796_v52 = vcombine.high %v1181_v39, %v1185_v62  ;;  %v1045_v30 = vld [vmem:[%s8313_s25 + $0x810] sm:$0xff]  ;;  %v9807_v9 = vcombine.low %v1181_v39, %v1185_v62 }
 0x264   : > { %4327 = vmatpush1.bf16.msra.mxu0 %v9771_v58  ;;  %12134 = vst [vmem:[#allocation346_spill] sm:$0xff] %v9787_v63  ;;  %v1049_v58 = vld [vmem:[%s8313_s25 + $0x830] sm:$0xff] }
 0x265   : > { %4328 = vmatprep.subr.bf16.mxu0 %v9777_v19  ;;  %12137 = vst [vmem:[#allocation349_spill] sm:$0xff] %v9796_v52  ;;  %v1173_v47 = vld [vmem:[%s8313_s25 + $0xc10] sm:$0xff]  ;;  %12139 = vst [vmem:[#allocation351_spill] sm:$0xff] %v9807_v9  ;;  %v9809_v42 = vcombine.high %v1045_v30, %v1049_v58 }
 0x266   : > { %4368 = vmatpush1.bf16.msra.mxu1 %v9775_v15  ;;  %v1177_v32 = vld [vmem:[%s8313_s25 + $0xc30] sm:$0xff]  ;;  %v9803_v15 = vcombine.low %v1053_v12, %v1057_v29 }
 0x267   : > { %4369 = vmatprep.subr.bf16.mxu1 %v9780_v14  ;;  %12140 = vst [vmem:[#allocation352_spill] sm:$0xff] %v9809_v42  ;;  %v9812_v14 = vcombine.high %v1173_v47, %v1177_v32  ;;  %v1165_v19 = vld [vmem:[%s8313_s25 + $0xbd0] sm:$0xff]  ;;  %v9823_v39 = vcombine.low %v1173_v47, %v1177_v32 }
 0x268   : > { %4329 = vmatpush1.bf16.msra.mxu0 %v9787_v63  ;;  %12138 = vst [vmem:[#allocation350_spill] sm:$0xff] %v9803_v15  ;;  %v1169_v63 = vld [vmem:[%s8313_s25 + $0xbf0] sm:$0xff] }
 0x269   : > { %4330 = vmatprep.subr.bf16.mxu0 %v9793_v16  ;;  %12141 = vst [vmem:[#allocation353_spill] sm:$0xff] %v9812_v14  ;;  %v1293_v12 = vld [vmem:[%s8313_s25 + $0xfd0] sm:$0xff]  ;;  %12143 = vst [vmem:[#allocation355_spill] sm:$0xff] %v9823_v39  ;;  %v9825_v62 = vcombine.high %v1165_v19, %v1169_v63 }
 0x26a   : > { %4370 = vmatpush1.bf16.msra.mxu1 %v9791_v24  ;;  %v1297_v29 = vld [vmem:[%s8313_s25 + $0xff0] sm:$0xff]  ;;  %v9819_v24 = vcombine.low %v1045_v30, %v1049_v58 }
 0x26b   : > { %4371 = vmatprep.subr.bf16.mxu1 %v9796_v52  ;;  %12144 = vst [vmem:[#allocation356_spill] sm:$0xff] %v9825_v62  ;;  %v9828_v52 = vcombine.high %v1293_v12, %v1297_v29  ;;  %v1157_v16 = vld [vmem:[%s8313_s25 + $0xb90] sm:$0xff]  ;;  %v9839_v47 = vcombine.low %v1293_v12, %v1297_v29 }
 0x26c   : > { %4331 = vmatpush1.bf16.msra.mxu0 %v9803_v15  ;;  %12142 = vst [vmem:[#allocation354_spill] sm:$0xff] %v9819_v24  ;;  %v1161_v15 = vld [vmem:[%s8313_s25 + $0xbb0] sm:$0xff] }
 0x26d   : > { %4332 = vmatprep.subr.bf16.mxu0 %v9809_v42  ;;  %12145 = vst [vmem:[#allocation357_spill] sm:$0xff] %v9828_v52  ;;  %v1285_v58 = vld [vmem:[%s8313_s25 + $0xf90] sm:$0xff]  ;;  %12147 = vst [vmem:[#allocation359_spill] sm:$0xff] %v9839_v47  ;;  %v9841_v32 = vcombine.high %v1157_v16, %v1161_v15 }
 0x26e   : > { %4372 = vmatpush1.bf16.msra.mxu1 %v9807_v9  ;;  %v1289_v30 = vld [vmem:[%s8313_s25 + $0xfb0] sm:$0xff]  ;;  %v9835_v9 = vcombine.low %v1165_v19, %v1169_v63 }
 0x26f   : > { %4373 = vmatprep.subr.bf16.mxu1 %v9812_v14  ;;  %12148 = vst [vmem:[#allocation360_spill] sm:$0xff] %v9841_v32  ;;  %v9844_v14 = vcombine.high %v1285_v58, %v1289_v30  ;;  %v1149_v42 = vld [vmem:[%s8313_s25 + $0xb50] sm:$0xff]  ;;  %v9855_v12 = vcombine.low %v1285_v58, %v1289_v30 }
 0x270   : > { %4333 = vmatpush1.bf16.msra.mxu0 %v9819_v24  ;;  %12146 = vst [vmem:[#allocation358_spill] sm:$0xff] %v9835_v9  ;;  %v1153_v24 = vld [vmem:[%s8313_s25 + $0xb70] sm:$0xff] }
 0x271   : > { %4334 = vmatprep.subr.bf16.mxu0 %v9825_v62  ;;  %12149 = vst [vmem:[#allocation361_spill] sm:$0xff] %v9844_v14  ;;  %v1277_v63 = vld [vmem:[%s8313_s25 + $0xf50] sm:$0xff]  ;;  %12151 = vst [vmem:[#allocation363_spill] sm:$0xff] %v9855_v12  ;;  %v9857_v29 = vcombine.high %v1149_v42, %v1153_v24 }
 0x272   : > { %4374 = vmatpush1.bf16.msra.mxu1 %v9823_v39  ;;  %v1281_v19 = vld [vmem:[%s8313_s25 + $0xf70] sm:$0xff]  ;;  %v9851_v39 = vcombine.low %v1157_v16, %v1161_v15 }
 0x273   : > { %4375 = vmatprep.subr.bf16.mxu1 %v9828_v52  ;;  %12152 = vst [vmem:[#allocation364_spill] sm:$0xff] %v9857_v29  ;;  %v9860_v52 = vcombine.high %v1277_v63, %v1281_v19  ;;  %v1141_v62 = vld [vmem:[%s8313_s25 + $0xb10] sm:$0xff]  ;;  %v9871_v58 = vcombine.low %v1277_v63, %v1281_v19 }
 0x274   : > { %4335 = vmatpush2.bf16.msra.mxu0 %v9835_v9  ;;  %12150 = vst [vmem:[#allocation362_spill] sm:$0xff] %v9851_v39  ;;  %v1145_v9 = vld [vmem:[%s8313_s25 + $0xb30] sm:$0xff] }
 0x275   : > { %4336 = vmatprep.subr.bf16.mxu0 %v9841_v32  ;;  %12153 = vst [vmem:[#allocation365_spill] sm:$0xff] %v9860_v52  ;;  %v1269_v15 = vld [vmem:[%s8313_s25 + $0xf10] sm:$0xff]  ;;  %12155 = vst [vmem:[#allocation367_spill] sm:$0xff] %v9871_v58  ;;  %v9873_v30 = vcombine.high %v1141_v62, %v1145_v9 }
 0x276   : > { %4376 = vmatpush2.bf16.msra.mxu1 %v9839_v47  ;;  %v1273_v16 = vld [vmem:[%s8313_s25 + $0xf30] sm:$0xff]  ;;  %v9867_v47 = vcombine.low %v1149_v42, %v1153_v24 }
 0x277   : > { %4377 = vmatprep.subr.bf16.mxu1 %v9844_v14  ;;  %12156 = vst [vmem:[#allocation368_spill] sm:$0xff] %v9873_v30  ;;  %v9876_v14 = vcombine.high %v1269_v15, %v1273_v16  ;;  %v1133_v32 = vld [vmem:[%s8313_s25 + $0xad0] sm:$0xff]  ;;  %v9887_v63 = vcombine.low %v1269_v15, %v1273_v16 }
 0x278   : > { %4337 = vmatpush2.bf16.msra.mxu0 %v9851_v39  ;;  %12154 = vst [vmem:[#allocation366_spill] sm:$0xff] %v9867_v47  ;;  %v1137_v39 = vld [vmem:[%s8313_s25 + $0xaf0] sm:$0xff] }
 0x279   : > { %4338 = vmatprep.subr.bf16.mxu0 %v9857_v29  ;;  %12157 = vst [vmem:[#allocation369_spill] sm:$0xff] %v9876_v14  ;;  %v1261_v24 = vld [vmem:[%s8313_s25 + $0xed0] sm:$0xff]  ;;  %12159 = vst [vmem:[#allocation371_spill] sm:$0xff] %v9887_v63  ;;  %v9889_v19 = vcombine.high %v1133_v32, %v1137_v39 }
 0x27a   : > { %4378 = vmatpush2.bf16.msra.mxu1 %v9855_v12  ;;  %v1265_v42 = vld [vmem:[%s8313_s25 + $0xef0] sm:$0xff]  ;;  %v9883_v12 = vcombine.low %v1141_v62, %v1145_v9 }
 0x27b   : > { %4379 = vmatprep.subr.bf16.mxu1 %v9860_v52  ;;  %12160 = vst [vmem:[#allocation372_spill] sm:$0xff] %v9889_v19  ;;  %v9892_v52 = vcombine.high %v1261_v24, %v1265_v42  ;;  %v1125_v29 = vld [vmem:[%s8313_s25 + $0xa90] sm:$0xff]  ;;  %v9903_v15 = vcombine.low %v1261_v24, %v1265_v42 }
 0x27c   : > { %4339 = vmatpush2.bf16.msra.mxu0 %v9867_v47  ;;  %12158 = vst [vmem:[#allocation370_spill] sm:$0xff] %v9883_v12  ;;  %v1129_v47 = vld [vmem:[%s8313_s25 + $0xab0] sm:$0xff] }
 0x27d   : > { %4340 = vmatprep.subr.bf16.mxu0 %v9873_v30  ;;  %12161 = vst [vmem:[#allocation373_spill] sm:$0xff] %v9892_v52  ;;  %v1253_v9 = vld [vmem:[%s8313_s25 + $0xe90] sm:$0xff]  ;;  %12163 = vst [vmem:[#allocation375_spill] sm:$0xff] %v9903_v15  ;;  %v9905_v16 = vcombine.high %v1125_v29, %v1129_v47 }
 0x27e   : > { %4380 = vmatpush2.bf16.msra.mxu1 %v9871_v58  ;;  %v1257_v62 = vld [vmem:[%s8313_s25 + $0xeb0] sm:$0xff]  ;;  %v9899_v58 = vcombine.low %v1133_v32, %v1137_v39 }
 0x27f   : > { %4381 = vmatprep.subr.bf16.mxu1 %v9876_v14  ;;  %12164 = vst [vmem:[#allocation376_spill] sm:$0xff] %v9905_v16  ;;  %v9908_v14 = vcombine.high %v1253_v9, %v1257_v62  ;;  %v1117_v30 = vld [vmem:[%s8313_s25 + $0xa50] sm:$0xff]  ;;  %v9919_v24 = vcombine.low %v1253_v9, %v1257_v62 }
 0x280   : > { %4341 = vmatpush2.bf16.msra.mxu0 %v9883_v12  ;;  %12162 = vst [vmem:[#allocation374_spill] sm:$0xff] %v9899_v58  ;;  %v1121_v12 = vld [vmem:[%s8313_s25 + $0xa70] sm:$0xff] }
 0x281   : > { %4342 = vmatprep.subr.bf16.mxu0 %v9889_v19  ;;  %12165 = vst [vmem:[#allocation377_spill] sm:$0xff] %v9908_v14  ;;  %v1245_v39 = vld [vmem:[%s8313_s25 + $0xe50] sm:$0xff]  ;;  %12167 = vst [vmem:[#allocation379_spill] sm:$0xff] %v9919_v24  ;;  %v9921_v42 = vcombine.high %v1117_v30, %v1121_v12 }
 0x282   : > { %4382 = vmatpush2.bf16.msra.mxu1 %v9887_v63  ;;  %v1249_v32 = vld [vmem:[%s8313_s25 + $0xe70] sm:$0xff]  ;;  %v9915_v63 = vcombine.low %v1125_v29, %v1129_v47 }
 0x283   : > { %4383 = vmatprep.subr.bf16.mxu1 %v9892_v52  ;;  %12168 = vst [vmem:[#allocation380_spill] sm:$0xff] %v9921_v42  ;;  %v9924_v52 = vcombine.high %v1245_v39, %v1249_v32  ;;  %v1109_v19 = vld [vmem:[%s8313_s25 + $0xa10] sm:$0xff]  ;;  %v9935_v9 = vcombine.low %v1245_v39, %v1249_v32 }
 0x284   : > { %4343 = vmatpush2.bf16.msra.mxu0 %v9899_v58  ;;  %12166 = vst [vmem:[#allocation378_spill] sm:$0xff] %v9915_v63  ;;  %v1113_v58 = vld [vmem:[%s8313_s25 + $0xa30] sm:$0xff] }
 0x285   : > { %4344 = vmatprep.subr.bf16.mxu0 %v9905_v16  ;;  %12169 = vst [vmem:[#allocation381_spill] sm:$0xff] %v9924_v52  ;;  %v1237_v47 = vld [vmem:[%s8313_s25 + $0xe10] sm:$0xff]  ;;  %12171 = vst [vmem:[#allocation383_spill] sm:$0xff] %v9935_v9  ;;  %v9937_v62 = vcombine.high %v1109_v19, %v1113_v58  ;;  %v846_v16 = vld [vmem:[%s8313_s25 + $0x1d8] sm:$0xff] }
 0x286   : > { %4384 = vmatpush2.bf16.msra.mxu1 %v9903_v15  ;;  %v1241_v29 = vld [vmem:[%s8313_s25 + $0xe30] sm:$0xff]  ;;  %v9931_v15 = vcombine.low %v1117_v30, %v1121_v12  ;;  %v974_v12 = vld [vmem:[%s8313_s25 + $0x5d8] sm:$0xff] }
 0x287   : > { %4385 = vmatprep.subr.bf16.mxu1 %v9908_v14  ;;  %12172 = vst [vmem:[#allocation384_spill] sm:$0xff] %v9937_v62  ;;  %v9940_v14 = vcombine.high %v1237_v47, %v1241_v29  ;;  %v978_v30 = vld [vmem:[%s8313_s25 + $0x5f8] sm:$0xff]  ;;  %v9951_v39 = vcombine.low %v1237_v47, %v1241_v29 }
 0x288   : > { %4345 = vmatpush2.bf16.msra.mxu0 %v9915_v63  ;;  %12170 = vst [vmem:[#allocation382_spill] sm:$0xff] %v9931_v15  ;;  %v850_v63 = vld [vmem:[%s8313_s25 + $0x1f8] sm:$0xff]  ;;  %v9970_v29 = vcombine.low %v974_v12, %v978_v30 }
 0x289   : > { %4346 = vmatprep.subr.bf16.mxu0 %v9921_v42  ;;  %12173 = vst [vmem:[#allocation385_spill] sm:$0xff] %v9940_v14  ;;  %12175 = vst [vmem:[#allocation387_spill] sm:$0xff] %v9951_v39  ;;  %v9953_v32 = vcombine.high %v846_v16, %v850_v63  ;;  %v838_v42 = vld [vmem:[%s8313_s25 + $0x198] sm:$0xff]  ;;  %v9966_v47 = vcombine.low %v846_v16, %v850_v63 }
 0x28a   : > { %4386 = vmatpush2.bf16.msra.mxu1 %v9919_v24  ;;  %v9947_v24 = vcombine.low %v1109_v19, %v1113_v58  ;;  %v778_v58 = vld [vmem:[%s12178_s22] sm:$0xf]  ;;  %v966_v19 = vld [vmem:[%s8313_s25 + $0x598] sm:$0xff]  ;;  %12180 = vst [vmem:[#allocation391_spill] sm:$0xff] %v9970_v29  ;;  %s773_s22 = scalar_lea.vmem [#allocation26], %s8309_s26 }
 0x28b   : > { %4387 = vmatprep.subr.bf16.mxu1 %v9924_v52  ;;  %12176 = vst [vmem:[#allocation388_spill] sm:$0xff] %v9953_v32  ;;  %v9956_v52 = vcombine.high %v974_v12, %v978_v30  ;;  %4895 = vperm.xlu0 %7433, %v778_v58   ;;  %12179 = vst [vmem:[#allocation390_spill] sm:$0xff] %v9966_v47  ;;  %v958_v58 = vld [vmem:[%s8313_s25 + $0x558] sm:$0xff]  ;;  %v9985_v12 = vcombine.low %v838_v42, %v842_v51  ;;  %s6293_s5 = sshll.u32 %s773_s22, 4  ;;  %s6294_s5 = int_to_ptr.vmem [resolvable:$true] %s6293_s5 }
 0x28c   : > { %4347 = vmatpush2.bf16.msra.mxu0 %v9931_v15  ;;  %12174 = vst [vmem:[#allocation386_spill] sm:$0xff] %v9947_v24  ;;  %v830_v15 = vld [vmem:[%s8313_s25 + $0x158] sm:$0xff] }
 0x28d   : > { %4348 = vmatprep.subr.bf16.mxu0 %v9937_v62  ;;  %12177 = vst [vmem:[#allocation389_spill] sm:$0xff] %v9956_v52  ;;  %v962_v63 = vld [vmem:[%s8313_s25 + $0x578] sm:$0xff] }
 0x28e   : > { %4388 = vmatpush2.bf16.msra.mxu1 %v9935_v9  ;;  %v970_v9 = vld [vmem:[%s8313_s25 + $0x5b8] sm:$0xff] }
 0x28f   : > { %4389 = vmatprep.subr.bf16.mxu1 %v9940_v14  ;;  %v9972_v14 = vcombine.high %v838_v42, %v842_v51  ;;  %v9975_v62 = vcombine.high %v966_v19, %v970_v9  ;;  %v822_v51 = vld [vmem:[%s8313_s25 + $0x118] sm:$0xff] }
 0x290   : > { %4349 = vmatpush2.bf16.msra.mxu0 %v9947_v24  ;;  %v826_v42 = vld [vmem:[%s8313_s25 + $0x138] sm:$0xff] }
 0x291   : > { %4400 = vmatprep.subr.bf16.mxu0 %v9953_v32  ;;  %12181 = vst [vmem:[#allocation392_spill] sm:$0xff] %v9972_v14  ;;  %12182 = vst [vmem:[#allocation393_spill] sm:$0xff] %v9975_v62  ;;  %v9991_v32 = vcombine.high %v830_v15, %v834_v41 }
 0x292   : > { %4390 = vmatpush2.bf16.msra.mxu1 %v9951_v39 }
 0x293   : > { %4441 = vmatprep.subr.bf16.mxu1 %v9956_v52  ;;  %v4106_v21 = vpop.f32.mrf.mxu0  ;;  %4351 = vmatmul.mubr.bf16.vlgmr.msra.gmra.mxu0 %v8633_v49  ;;  %v9989_v52 = vcombine.low %v966_v19, %v970_v9  ;;  %12184 = vst [vmem:[#allocation395_spill] sm:$0xff] %v9991_v32  ;;  %v954_v9 = vld [vmem:[%s8313_s25 + $0x538] sm:$0xff] }
 0x294   : > { %v4107_v16 = vadd.f32 %v4106_v21, %v9435_v54  ;;  %4401 = vmatpush1.bf16.msra.mxu0 %v9966_v47  ;;  %v9997_v47 = vcombine.high %v958_v58, %v962_v63  ;;  %4432 = vmatprep.mubr.bf16.mxu0 %v8463_v7  ;;  %v10012_v7 = vcombine.low %v958_v58, %v962_v63 }
 0x295   : > { %v4147_v39 = vpop.f32.mrf.mxu1  ;;  %4392 = vmatmul.mubr.bf16.vlgmr.msra.gmra.mxu1 %v8638_v60  ;;  %v4108_v30 = vpop.f32.mrf.mxu0  ;;  %4402 = vmatprep.subr.bf16.mxu0 %v9972_v14  ;;  %12183 = vst [vmem:[#allocation394_spill] sm:$0xff] %v9989_v52  ;;  %v950_v14 = vld [vmem:[%s8313_s25 + $0x518] sm:$0xff] }
 0x296   : > { %4442 = vmatpush1.bf16.msra.mxu1 %v9970_v29  ;;  %v9993_v21 = vadd.f32 %v4147_v39, %v4107_v16  ;;  %v4109_v24 = vadd.f32 %v4108_v30, %v9435_v54  ;;  %12185 = vst [vmem:[#allocation396_spill] sm:$0xff] %v9997_v47  ;;  %4473 = vmatprep.mubr.bf16.mxu1 %v8482_v22  ;;  %12187 = vst [vmem:[#allocation398_spill] sm:$0xff] %v10012_v7 }
 0x297   : > { %v4149_v33 = vpop.f32.mrf.mxu1  ;;  %4443 = vmatprep.subr.bf16.mxu1 %v9975_v62  ;;  %v4110_v29 = vpop.f32.mrf.mxu0  ;;  %v10008_v16 = vcombine.low %v830_v15, %v834_v41  ;;  %v10017_v22 = vcombine.high %v950_v14, %v954_v9  ;;  %v818_v41 = vld [vmem:[%s8313_s25 + $0xf8] sm:$0xff] }
 0x298   : > { %v10005_v39 = vadd.f32 %v4149_v33, %v4109_v24  ;;  %4403 = vmatpush1.bf16.msra.mxu0 %v9985_v12  ;;  %v10014_v29 = vcombine.high %v822_v51, %v826_v42  ;;  %v814_v33 = vld [vmem:[%s8313_s25 + $0xd8] sm:$0xff] }
 0x299   : > { %v4151_v19 = vpop.f32.mrf.mxu1  ;;  %12186 = vst [vmem:[#allocation397_spill] sm:$0xff] %v10008_v16  ;;  %v4111_v30 = vpop.f32.mrf.mxu0  ;;  %4404 = vmatprep.subr.bf16.mxu0 %v9991_v32  ;;  %12189 = vst [vmem:[#allocation400_spill] sm:$0xff] %v10017_v22  ;;  %v942_v15 = vld [vmem:[%s8313_s25 + $0x4d8] sm:$0xff]  ;;  %v10030_v58 = vcombine.high %v814_v33, %v818_v41 }
 0x29a   : > { %4444 = vmatpush1.bf16.msra.mxu1 %v9989_v52  ;;  %12188 = vst [vmem:[#allocation399_spill] sm:$0xff] %v10014_v29  ;;  %v946_v24 = vld [vmem:[%s8313_s25 + $0x4f8] sm:$0xff]  ;;  %v10024_v19 = vcombine.low %v822_v51, %v826_v42 }
 0x29b   : > { %v4152_v62 = vpop.f32.mrf.mxu1  ;;  %4445 = vmatprep.subr.bf16.mxu1 %v9997_v47  ;;  %12192 = vst [vmem:[#allocation403_spill] sm:$0xff] %v10030_v58  ;;  %v10033_v63 = vcombine.high %v942_v15, %v946_v24  ;;  %v806_v30 = vld [vmem:[%s8313_s25 + $0x98] sm:$0xff] }
 0x29c   : > { %4405 = vmatpush1.bf16.msra.mxu0 %v10008_v16  ;;  %12190 = vst [vmem:[#allocation401_spill] sm:$0xff] %v10024_v19  ;;  %v10028_v62 = vcombine.low %v950_v14, %v954_v9  ;;  %v810_v47 = vld [vmem:[%s8313_s25 + $0xb8] sm:$0xff]  ;;  %v10044_v14 = vcombine.low %v942_v15, %v946_v24 }
 0x29d   : > { %4406 = vmatprep.subr.bf16.mxu0 %v10014_v29  ;;  %12193 = vst [vmem:[#allocation404_spill] sm:$0xff] %v10033_v63  ;;  %v934_v51 = vld [vmem:[%s8313_s25 + $0x498] sm:$0xff]  ;;  %v10046_v9 = vcombine.high %v806_v30, %v810_v47 }
 0x29e   : > { %4446 = vmatpush1.bf16.msra.mxu1 %v10012_v7  ;;  %12191 = vst [vmem:[#allocation402_spill] sm:$0xff] %v10028_v62  ;;  %v938_v42 = vld [vmem:[%s8313_s25 + $0x4b8] sm:$0xff]  ;;  %v10040_v7 = vcombine.low %v814_v33, %v818_v41  ;;  %12195 = vst [vmem:[#allocation406_spill] sm:$0xff] %v10044_v14 }
 0x29f   : > { %4447 = vmatprep.subr.bf16.mxu1 %v10017_v22  ;;  %12196 = vst [vmem:[#allocation407_spill] sm:$0xff] %v10046_v9  ;;  %v10049_v22 = vcombine.high %v934_v51, %v938_v42  ;;  %v798_v52 = vld [vmem:[%s8313_s25 + $0x58] sm:$0xff]  ;;  %v10060_v15 = vcombine.low %v934_v51, %v938_v42 }
 0x2a0   : > { %4407 = vmatpush1.bf16.msra.mxu0 %v10024_v19  ;;  %12194 = vst [vmem:[#allocation405_spill] sm:$0xff] %v10040_v7  ;;  %v802_v19 = vld [vmem:[%s8313_s25 + $0x78] sm:$0xff] }
 0x2a1   : > { %4408 = vmatprep.subr.bf16.mxu0 %v10030_v58  ;;  %12197 = vst [vmem:[#allocation408_spill] sm:$0xff] %v10049_v22  ;;  %v926_v33 = vld [vmem:[%s8313_s25 + $0x458] sm:$0xff]  ;;  %12199 = vst [vmem:[#allocation410_spill] sm:$0xff] %v10060_v15  ;;  %v10062_v24 = vcombine.high %v798_v52, %v802_v19 }
 0x2a2   : > { %4448 = vmatpush1.bf16.msra.mxu1 %v10028_v62  ;;  %v930_v41 = vld [vmem:[%s8313_s25 + $0x478] sm:$0xff]  ;;  %v10056_v62 = vcombine.low %v806_v30, %v810_v47 }
 0x2a3   : > { %4449 = vmatprep.subr.bf16.mxu1 %v10033_v63  ;;  %12200 = vst [vmem:[#allocation411_spill] sm:$0xff] %v10062_v24  ;;  %v10065_v63 = vcombine.high %v926_v33, %v930_v41  ;;  %v790_v58 = vld [vmem:[%s8313_s25 + $0x18] sm:$0xff]  ;;  %v10076_v51 = vcombine.low %v926_v33, %v930_v41 }
 0x2a4   : > { %4409 = vmatpush1.bf16.msra.mxu0 %v10040_v7  ;;  %12198 = vst [vmem:[#allocation409_spill] sm:$0xff] %v10056_v62  ;;  %v794_v7 = vld [vmem:[%s8313_s25 + $0x38] sm:$0xff] }
 0x2a5   : > { %4410 = vmatprep.subr.bf16.mxu0 %v10046_v9  ;;  %12201 = vst [vmem:[#allocation412_spill] sm:$0xff] %v10065_v63  ;;  %v918_v47 = vld [vmem:[%s8313_s25 + $0x418] sm:$0xff]  ;;  %12203 = vst [vmem:[#allocation414_spill] sm:$0xff] %v10076_v51  ;;  %v10078_v42 = vcombine.high %v790_v58, %v794_v7 }
 0x2a6   : > { %4450 = vmatpush1.bf16.msra.mxu1 %v10044_v14  ;;  %v922_v30 = vld [vmem:[%s8313_s25 + $0x438] sm:$0xff]  ;;  %v10072_v14 = vcombine.low %v798_v52, %v802_v19 }
 0x2a7   : > { %4451 = vmatprep.subr.bf16.mxu1 %v10049_v22  ;;  %12204 = vst [vmem:[#allocation415_spill] sm:$0xff] %v10078_v42  ;;  %v10081_v22 = vcombine.high %v918_v47, %v922_v30  ;;  %v910_v9 = vld [vmem:[%s8313_s25 + $0x3d8] sm:$0xff]  ;;  %v10092_v33 = vcombine.low %v918_v47, %v922_v30 }
 0x2a8   : > { %4411 = vmatpush1.bf16.msra.mxu0 %v10056_v62  ;;  %12202 = vst [vmem:[#allocation413_spill] sm:$0xff] %v10072_v14  ;;  %v914_v62 = vld [vmem:[%s8313_s25 + $0x3f8] sm:$0xff] }
 0x2a9   : > { %4412 = vmatprep.subr.bf16.mxu0 %v10062_v24  ;;  %12205 = vst [vmem:[#allocation416_spill] sm:$0xff] %v10081_v22  ;;  %v1038_v52 = vld [vmem:[%s8313_s25 + $0x7d8] sm:$0xff]  ;;  %12207 = vst [vmem:[#allocation418_spill] sm:$0xff] %v10092_v33  ;;  %v10094_v41 = vcombine.high %v910_v9, %v914_v62 }
 0x2aa   : > { %4452 = vmatpush1.bf16.msra.mxu1 %v10060_v15  ;;  %v1042_v19 = vld [vmem:[%s8313_s25 + $0x7f8] sm:$0xff]  ;;  %v10088_v15 = vcombine.low %v790_v58, %v794_v7 }
 0x2ab   : > { %4453 = vmatprep.subr.bf16.mxu1 %v10065_v63  ;;  %12208 = vst [vmem:[#allocation419_spill] sm:$0xff] %v10094_v41  ;;  %v10097_v63 = vcombine.high %v1038_v52, %v1042_v19  ;;  %v902_v24 = vld [vmem:[%s8313_s25 + $0x398] sm:$0xff]  ;;  %v10108_v47 = vcombine.low %v1038_v52, %v1042_v19 }
 0x2ac   : > { %4413 = vmatpush1.bf16.msra.mxu0 %v10072_v14  ;;  %12206 = vst [vmem:[#allocation417_spill] sm:$0xff] %v10088_v15  ;;  %v906_v14 = vld [vmem:[%s8313_s25 + $0x3b8] sm:$0xff] }
 0x2ad   : > { %4414 = vmatprep.subr.bf16.mxu0 %v10078_v42  ;;  %12209 = vst [vmem:[#allocation420_spill] sm:$0xff] %v10097_v63  ;;  %v1030_v7 = vld [vmem:[%s8313_s25 + $0x798] sm:$0xff]  ;;  %12211 = vst [vmem:[#allocation422_spill] sm:$0xff] %v10108_v47  ;;  %v10110_v30 = vcombine.high %v902_v24, %v906_v14 }
 0x2ae   : > { %4454 = vmatpush1.bf16.msra.mxu1 %v10076_v51  ;;  %v1034_v58 = vld [vmem:[%s8313_s25 + $0x7b8] sm:$0xff]  ;;  %v10104_v51 = vcombine.low %v910_v9, %v914_v62 }
 0x2af   : > { %4455 = vmatprep.subr.bf16.mxu1 %v10081_v22  ;;  %12212 = vst [vmem:[#allocation423_spill] sm:$0xff] %v10110_v30  ;;  %v10113_v22 = vcombine.high %v1030_v7, %v1034_v58  ;;  %v894_v42 = vld [vmem:[%s8313_s25 + $0x358] sm:$0xff]  ;;  %v10124_v52 = vcombine.low %v1030_v7, %v1034_v58 }
 0x2b0   : > { %4415 = vmatpush1.bf16.msra.mxu0 %v10088_v15  ;;  %12210 = vst [vmem:[#allocation421_spill] sm:$0xff] %v10104_v51  ;;  %v898_v15 = vld [vmem:[%s8313_s25 + $0x378] sm:$0xff] }
 0x2b1   : > { %4416 = vmatprep.subr.bf16.mxu0 %v10094_v41  ;;  %12213 = vst [vmem:[#allocation424_spill] sm:$0xff] %v10113_v22  ;;  %v1022_v62 = vld [vmem:[%s8313_s25 + $0x758] sm:$0xff]  ;;  %12215 = vst [vmem:[#allocation426_spill] sm:$0xff] %v10124_v52  ;;  %v10126_v19 = vcombine.high %v894_v42, %v898_v15 }
 0x2b2   : > { %4456 = vmatpush1.bf16.msra.mxu1 %v10092_v33  ;;  %v1026_v9 = vld [vmem:[%s8313_s25 + $0x778] sm:$0xff]  ;;  %v10120_v33 = vcombine.low %v902_v24, %v906_v14 }
 0x2b3   : > { %4457 = vmatprep.subr.bf16.mxu1 %v10097_v63  ;;  %12216 = vst [vmem:[#allocation427_spill] sm:$0xff] %v10126_v19  ;;  %v10129_v63 = vcombine.high %v1022_v62, %v1026_v9  ;;  %v886_v41 = vld [vmem:[%s8313_s25 + $0x318] sm:$0xff]  ;;  %v10140_v7 = vcombine.low %v1022_v62, %v1026_v9 }
 0x2b4   : > { %4417 = vmatpush2.bf16.msra.mxu0 %v10104_v51  ;;  %12214 = vst [vmem:[#allocation425_spill] sm:$0xff] %v10120_v33  ;;  %v890_v51 = vld [vmem:[%s8313_s25 + $0x338] sm:$0xff] }
 0x2b5   : > { %4418 = vmatprep.subr.bf16.mxu0 %v10110_v30  ;;  %12217 = vst [vmem:[#allocation428_spill] sm:$0xff] %v10129_v63  ;;  %v1014_v14 = vld [vmem:[%s8313_s25 + $0x718] sm:$0xff]  ;;  %12219 = vst [vmem:[#allocation430_spill] sm:$0xff] %v10140_v7  ;;  %v10142_v58 = vcombine.high %v886_v41, %v890_v51 }
 0x2b6   : > { %4458 = vmatpush2.bf16.msra.mxu1 %v10108_v47  ;;  %v1018_v24 = vld [vmem:[%s8313_s25 + $0x738] sm:$0xff]  ;;  %v10136_v47 = vcombine.low %v894_v42, %v898_v15 }
 0x2b7   : > { %4459 = vmatprep.subr.bf16.mxu1 %v10113_v22  ;;  %12220 = vst [vmem:[#allocation431_spill] sm:$0xff] %v10142_v58  ;;  %v10145_v22 = vcombine.high %v1014_v14, %v1018_v24  ;;  %v878_v30 = vld [vmem:[%s8313_s25 + $0x2d8] sm:$0xff]  ;;  %v10156_v62 = vcombine.low %v1014_v14, %v1018_v24 }
 0x2b8   : > { %4419 = vmatpush2.bf16.msra.mxu0 %v10120_v33  ;;  %12218 = vst [vmem:[#allocation429_spill] sm:$0xff] %v10136_v47  ;;  %v882_v33 = vld [vmem:[%s8313_s25 + $0x2f8] sm:$0xff] }
 0x2b9   : > { %4420 = vmatprep.subr.bf16.mxu0 %v10126_v19  ;;  %12221 = vst [vmem:[#allocation432_spill] sm:$0xff] %v10145_v22  ;;  %v1006_v15 = vld [vmem:[%s8313_s25 + $0x6d8] sm:$0xff]  ;;  %12223 = vst [vmem:[#allocation434_spill] sm:$0xff] %v10156_v62  ;;  %v10158_v9 = vcombine.high %v878_v30, %v882_v33 }
 0x2ba   : > { %4460 = vmatpush2.bf16.msra.mxu1 %v10124_v52  ;;  %v1010_v42 = vld [vmem:[%s8313_s25 + $0x6f8] sm:$0xff]  ;;  %v10152_v52 = vcombine.low %v886_v41, %v890_v51 }
 0x2bb   : > { %4461 = vmatprep.subr.bf16.mxu1 %v10129_v63  ;;  %12224 = vst [vmem:[#allocation435_spill] sm:$0xff] %v10158_v9  ;;  %v10161_v63 = vcombine.high %v1006_v15, %v1010_v42  ;;  %v870_v19 = vld [vmem:[%s8313_s25 + $0x298] sm:$0xff]  ;;  %v10172_v14 = vcombine.low %v1006_v15, %v1010_v42 }
 0x2bc   : > { %4421 = vmatpush2.bf16.msra.mxu0 %v10136_v47  ;;  %12222 = vst [vmem:[#allocation433_spill] sm:$0xff] %v10152_v52  ;;  %v874_v47 = vld [vmem:[%s8313_s25 + $0x2b8] sm:$0xff] }
 0x2bd   : > { %4422 = vmatprep.subr.bf16.mxu0 %v10142_v58  ;;  %12225 = vst [vmem:[#allocation436_spill] sm:$0xff] %v10161_v63  ;;  %v998_v51 = vld [vmem:[%s8313_s25 + $0x698] sm:$0xff]  ;;  %12227 = vst [vmem:[#allocation438_spill] sm:$0xff] %v10172_v14  ;;  %v10174_v24 = vcombine.high %v870_v19, %v874_v47 }
 0x2be   : > { %4462 = vmatpush2.bf16.msra.mxu1 %v10140_v7  ;;  %v1002_v41 = vld [vmem:[%s8313_s25 + $0x6b8] sm:$0xff]  ;;  %v10168_v7 = vcombine.low %v878_v30, %v882_v33 }
 0x2bf   : > { %4463 = vmatprep.subr.bf16.mxu1 %v10145_v22  ;;  %12228 = vst [vmem:[#allocation439_spill] sm:$0xff] %v10174_v24  ;;  %v10177_v22 = vcombine.high %v998_v51, %v1002_v41  ;;  %v862_v58 = vld [vmem:[%s8313_s25 + $0x258] sm:$0xff]  ;;  %v10188_v15 = vcombine.low %v998_v51, %v1002_v41 }
 0x2c0   : > { %4423 = vmatpush2.bf16.msra.mxu0 %v10152_v52  ;;  %12226 = vst [vmem:[#allocation437_spill] sm:$0xff] %v10168_v7  ;;  %v866_v52 = vld [vmem:[%s8313_s25 + $0x278] sm:$0xff] }
 0x2c1   : > { %4424 = vmatprep.subr.bf16.mxu0 %v10158_v9  ;;  %12229 = vst [vmem:[#allocation440_spill] sm:$0xff] %v10177_v22  ;;  %v990_v33 = vld [vmem:[%s8313_s25 + $0x658] sm:$0xff]  ;;  %12231 = vst [vmem:[#allocation442_spill] sm:$0xff] %v10188_v15  ;;  %v10190_v42 = vcombine.high %v862_v58, %v866_v52 }
 0x2c2   : > { %4464 = vmatpush2.bf16.msra.mxu1 %v10156_v62  ;;  %v994_v30 = vld [vmem:[%s8313_s25 + $0x678] sm:$0xff]  ;;  %v10184_v62 = vcombine.low %v870_v19, %v874_v47 }
 0x2c3   : > { %4465 = vmatprep.subr.bf16.mxu1 %v10161_v63  ;;  %12232 = vst [vmem:[#allocation443_spill] sm:$0xff] %v10190_v42  ;;  %v10193_v63 = vcombine.high %v990_v33, %v994_v30  ;;  %v854_v9 = vld [vmem:[%s8313_s25 + $0x218] sm:$0xff]  ;;  %v10204_v51 = vcombine.low %v990_v33, %v994_v30 }
 0x2c4   : > { %4425 = vmatpush2.bf16.msra.mxu0 %v10168_v7  ;;  %12230 = vst [vmem:[#allocation441_spill] sm:$0xff] %v10184_v62  ;;  %v858_v7 = vld [vmem:[%s8313_s25 + $0x238] sm:$0xff] }
 0x2c5   : > { %4426 = vmatprep.subr.bf16.mxu0 %v10174_v24  ;;  %12233 = vst [vmem:[#allocation444_spill] sm:$0xff] %v10193_v63  ;;  %v982_v47 = vld [vmem:[%s8313_s25 + $0x618] sm:$0xff]  ;;  %12235 = vst [vmem:[#allocation446_spill] sm:$0xff] %v10204_v51  ;;  %v10206_v41 = vcombine.high %v854_v9, %v858_v7 }
 0x2c6   : > { %4466 = vmatpush2.bf16.msra.mxu1 %v10172_v14  ;;  %v986_v19 = vld [vmem:[%s8313_s25 + $0x638] sm:$0xff]  ;;  %v10200_v14 = vcombine.low %v862_v58, %v866_v52 }
 0x2c7   : > { %4467 = vmatprep.subr.bf16.mxu1 %v10177_v22  ;;  %12236 = vst [vmem:[#allocation447_spill] sm:$0xff] %v10206_v41  ;;  %v10209_v22 = vcombine.high %v982_v47, %v986_v19  ;;  %v1102_v24 = vld [vmem:[%s8313_s25 + $0x9d8] sm:$0xff]  ;;  %v10220_v33 = vcombine.low %v982_v47, %v986_v19 }
 0x2c8   : > { %4427 = vmatpush2.bf16.msra.mxu0 %v10184_v62  ;;  %12234 = vst [vmem:[#allocation445_spill] sm:$0xff] %v10200_v14  ;;  %v1106_v62 = vld [vmem:[%s8313_s25 + $0x9f8] sm:$0xff] }
 0x2c9   : > { %4428 = vmatprep.subr.bf16.mxu0 %v10190_v42  ;;  %12237 = vst [vmem:[#allocation448_spill] sm:$0xff] %v10209_v22  ;;  %v1230_v52 = vld [vmem:[%s8313_s25 + $0xdd8] sm:$0xff]  ;;  %12239 = vst [vmem:[#allocation450_spill] sm:$0xff] %v10220_v33  ;;  %v10222_v30 = vcombine.high %v1102_v24, %v1106_v62 }
 0x2ca   : > { %4468 = vmatpush2.bf16.msra.mxu1 %v10188_v15  ;;  %v1234_v58 = vld [vmem:[%s8313_s25 + $0xdf8] sm:$0xff]  ;;  %v10216_v15 = vcombine.low %v854_v9, %v858_v7 }
 0x2cb   : > { %4469 = vmatprep.subr.bf16.mxu1 %v10193_v63  ;;  %12240 = vst [vmem:[#allocation451_spill] sm:$0xff] %v10222_v30  ;;  %v10225_v63 = vcombine.high %v1230_v52, %v1234_v58  ;;  %v1094_v42 = vld [vmem:[%s8313_s25 + $0x998] sm:$0xff]  ;;  %v10236_v47 = vcombine.low %v1230_v52, %v1234_v58 }
 0x2cc   : > { %4429 = vmatpush2.bf16.msra.mxu0 %v10200_v14  ;;  %12238 = vst [vmem:[#allocation449_spill] sm:$0xff] %v10216_v15  ;;  %v1098_v29 = vld [vmem:[%s8313_s25 + $0x9b8] sm:$0xff] }
 0x2cd   : > { %4430 = vmatprep.subr.bf16.mxu0 %v10206_v41  ;;  %12241 = vst [vmem:[#allocation452_spill] sm:$0xff] %v10225_v63  ;;  %v1222_v7 = vld [vmem:[%s8313_s25 + $0xd98] sm:$0xff]  ;;  %12243 = vst [vmem:[#allocation454_spill] sm:$0xff] %v10236_v47  ;;  %v10238_v19 = vcombine.high %v1094_v42, %v1098_v29  ;;  %v10251_v52 = vcombine.low %v1094_v42, %v1098_v29 }
 0x2ce   : > { %4470 = vmatpush2.bf16.msra.mxu1 %v10204_v51  ;;  %v1226_v9 = vld [vmem:[%s8313_s25 + $0xdb8] sm:$0xff]  ;;  %v10232_v51 = vcombine.low %v1102_v24, %v1106_v62 }
 0x2cf   : > { %4471 = vmatprep.subr.bf16.mxu1 %v10209_v22  ;;  %v10241_v22 = vcombine.high %v1222_v7, %v1226_v9  ;;  %v1086_v41 = vld [vmem:[%s8313_s25 + $0x958] sm:$0xff] }
 0x2d0   : > { %4431 = vmatpush2.bf16.msra.mxu0 %v10216_v15  ;;  %12242 = vst [vmem:[#allocation453_spill] sm:$0xff] %v10232_v51  ;;  %v1090_v14 = vld [vmem:[%s8313_s25 + $0x978] sm:$0xff] }
 0x2d1   : > { %4482 = vmatprep.subr.bf16.mxu0 %v10222_v30  ;;  %12244 = vst [vmem:[#allocation455_spill] sm:$0xff] %v10241_v22  ;;  %v1214_v15 = vld [vmem:[%s8313_s25 + $0xd58] sm:$0xff] }
 0x2d2   : > { %4472 = vmatpush2.bf16.msra.mxu1 %v10220_v33  ;;  %v1218_v62 = vld [vmem:[%s8313_s25 + $0xd78] sm:$0xff] }
 0x2d3   : > { %4523 = vmatprep.subr.bf16.mxu1 %v10225_v63  ;;  %v4188_v16 = vpop.f32.mrf.mxu0  ;;  %4433 = vmatmul.mubr.bf16.vlgmr.msra.gmra.mxu0 %v8454_v0  ;;  %v10255_v0 = vcombine.low %v1222_v7, %v1226_v9  ;;  %v10257_v63 = vcombine.high %v1086_v41, %v1090_v14  ;;  %v1078_v29 = vld [vmem:[%s8313_s25 + $0x918] sm:$0xff] }
 0x2d4   : > { %v4189_v24 = vadd.f32 %v4188_v16, %v9993_v21  ;;  %4483 = vmatpush1.bf16.msra.mxu0 %v10232_v51  ;;  %v1082_v42 = vld [vmem:[%s8313_s25 + $0x938] sm:$0xff]  ;;  %4514 = vmatprep.mubr.bf16.mxu0 %v8656_v61  ;;  %v10274_v61 = vcombine.low %v1214_v15, %v1218_v62 }
 0x2d5   : > { %v4229_v33 = vpop.f32.mrf.mxu1  ;;  %4474 = vmatmul.mubr.bf16.vlgmr.msra.gmra.mxu1 %v8466_v11  ;;  %v4190_v58 = vpop.f32.mrf.mxu0  ;;  %4484 = vmatprep.subr.bf16.mxu0 %v10238_v19  ;;  %12245 = vst [vmem:[#allocation456_spill] sm:$0xff] %v10255_v0  ;;  %v10261_v11 = vcombine.high %v1214_v15, %v1218_v62  ;;  %v1206_v51 = vld [vmem:[%s8313_s25 + $0xd18] sm:$0xff]  ;;  %v10286_v15 = vcombine.low %v1078_v29, %v1082_v42 }
 0x2d6   : > { %4524 = vmatpush1.bf16.msra.mxu1 %v10236_v47  ;;  %v4230_v21 = vadd.f32 %v4229_v33, %v4189_v24  ;;  %v4191_v16 = vadd.f32 %v4190_v58, %v10005_v39  ;;  %v1210_v32 = vld [vmem:[%s8313_s25 + $0xd38] sm:$0xff]  ;;  %4555 = vmatprep.mubr.bf16.mxu1 %v8663_v44  ;;  %v10270_v39 = vcombine.low %v1086_v41, %v1090_v14 }
 0x2d7   : > { %v4231_v30 = vpop.f32.mrf.mxu1  ;;  %4525 = vmatprep.subr.bf16.mxu1 %v10241_v22  ;;  %12246 = vst [vmem:[#allocation457_spill] sm:$0xff] %v10261_v11  ;;  %v4192_v47 = vpop.f32.mrf.mxu0  ;;  %12247 = vst [vmem:[#allocation458_spill] sm:$0xff] %v10274_v61  ;;  %v1070_v14 = vld [vmem:[%s8313_s25 + $0x8d8] sm:$0xff]  ;;  %v10290_v62 = vcombine.low %v1206_v51, %v1210_v32 }
 0x2d8   : > { %v4232_v7 = vadd.f32 %v4231_v30, %v4191_v16  ;;  %4485 = vmatpush1.bf16.msra.mxu0 %v10251_v52  ;;  %7436 = vtanh.f32 %v4230_v21  ;;  %v10276_v47 = vcombine.high %v1078_v29, %v1082_v42  ;;  %v10279_v30 = vcombine.high %v1206_v51, %v1210_v32  ;;  %v1074_v41 = vld [vmem:[%s8313_s25 + $0x8f8] sm:$0xff] }
 0x2d9   : > { %v4233_v33 = vpop.f32.mrf.mxu1  ;;  %v4193_v9 = vpop.f32.mrf.mxu0  ;;  %4486 = vmatprep.subr.bf16.mxu0 %v10257_v63  ;;  %v1198_v24 = vld [vmem:[%s8313_s25 + $0xcd8] sm:$0xff]  ;;  %12249 = vst [vmem:[#allocation460_spill] sm:$0xff] %v10290_v62  ;;  %v10292_v21 = vcombine.high %v1070_v14, %v1074_v41 }
 0x2da   : > { %4526 = vmatpush1.bf16.msra.mxu1 %v10255_v0  ;;  %7438 = vtanh.f32 %v4232_v7  ;;  %12248 = vst [vmem:[#allocation459_spill] sm:$0xff] %v10279_v30  ;;  %v1202_v58 = vld [vmem:[%s8313_s25 + $0xcf8] sm:$0xff]  ;;  %v10302_v9 = vcombine.low %v1070_v14, %v1074_v41 }
 0x2db   : > { %v4234_v44 = vpop.f32.mrf.mxu1  ;;  %4527 = vmatprep.subr.bf16.mxu1 %v10261_v11  ;;  %12250 = vst [vmem:[#allocation461_spill] sm:$0xff] %v10292_v21  ;;  %v10295_v16 = vcombine.high %v1198_v24, %v1202_v58  ;;  %v1062_v7 = vld [vmem:[%s8313_s25 + $0x898] sm:$0xff]  ;;  %v10306_v32 = vcombine.low %v1198_v24, %v1202_v58  ;;  %7440 = vtanh.f32 %v9736_v8 }
 0x2dc   : > { %4487 = vmatpush1.bf16.msra.mxu0 %v10270_v39  ;;  %v1066_v33 = vld [vmem:[%s8313_s25 + $0x8b8] sm:$0xff]  ;;  %12252 = vst [vmem:[#allocation463_spill] sm:$0xff] %v10302_v9  ;;  %7442 = vtanh.f32 %v9724_v27 }
 0x2dd   : > { %4488 = vmatprep.subr.bf16.mxu0 %v10276_v47  ;;  %12251 = vst [vmem:[#allocation462_spill] sm:$0xff] %v10295_v16  ;;  %v1190_v29 = vld [vmem:[%s8313_s25 + $0xc98] sm:$0xff]  ;;  %12253 = vst [vmem:[#allocation464_spill] sm:$0xff] %v10306_v32  ;;  %v10308_v51 = vcombine.high %v1062_v7, %v1066_v33 }
 0x2de   : > { %4528 = vmatpush1.bf16.msra.mxu1 %v10274_v61  ;;  %v1194_v42 = vld [vmem:[%s8313_s25 + $0xcb8] sm:$0xff] }
 0x2df   : > { %4529 = vmatprep.subr.bf16.mxu1 %v10279_v30  ;;  %12254 = vst [vmem:[#allocation465_spill] sm:$0xff] %v10308_v51  ;;  %v10311_v44 = vcombine.high %v1190_v29, %v1194_v42  ;;  %v1054_v30 = vld [vmem:[%s8313_s25 + $0x858] sm:$0xff]  ;;  %v10322_v24 = vcombine.low %v1190_v29, %v1194_v42 }
 0x2e0   : > { %4489 = vmatpush1.bf16.msra.mxu0 %v10286_v15  ;;  %v1058_v61 = vld [vmem:[%s8313_s25 + $0x878] sm:$0xff] }
 0x2e1   : > { %4490 = vmatprep.subr.bf16.mxu0 %v10292_v21  ;;  %12255 = vst [vmem:[#allocation466_spill] sm:$0xff] %v10311_v44  ;;  %v1182_v14 = vld [vmem:[%s8313_s25 + $0xc58] sm:$0xff]  ;;  %12257 = vst [vmem:[#allocation468_spill] sm:$0xff] %v10322_v24  ;;  %v10324_v58 = vcombine.high %v1054_v30, %v1058_v61  ;;  %v10338_v29 = vcombine.low %v1054_v30, %v1058_v61 }
 0x2e2   : > { %4530 = vmatpush1.bf16.msra.mxu1 %v10290_v62  ;;  %v1186_v41 = vld [vmem:[%s8313_s25 + $0xc78] sm:$0xff]  ;;  %v10318_v62 = vcombine.low %v1062_v7, %v1066_v33 }
 0x2e3   : > { %4531 = vmatprep.subr.bf16.mxu1 %v10295_v16  ;;  %12258 = vst [vmem:[#allocation469_spill] sm:$0xff] %v10324_v58  ;;  %v10329_v11 = vcombine.high %v1182_v14, %v1186_v41  ;;  %v1046_v0 = vld [vmem:[%s8313_s25 + $0x818] sm:$0xff]  ;;  %12262 = vst [vmem:[#allocation473_spill] sm:$0xff] %v10338_v29 }
 0x2e4   : > { %4491 = vmatpush1.bf16.msra.mxu0 %v10302_v9  ;;  %12256 = vst [vmem:[#allocation467_spill] sm:$0xff] %v10318_v62  ;;  %v1050_v7 = vld [vmem:[%s8313_s25 + $0x838] sm:$0xff] }
 0x2e5   : > { %4492 = vmatprep.subr.bf16.mxu0 %v10308_v51  ;;  %v10326_v16 = vpop.eup %7436  ;;  %12260 = vst [vmem:[#allocation471_spill] sm:$0xff] %v10329_v11  ;;  %v1178_v22 = vld [vmem:[%s8313_s25 + $0xc38] sm:$0xff]  ;;  %v10346_v51 = vcombine.high %v1046_v0, %v1050_v7 }
 0x2e6   : > { %4532 = vmatpush1.bf16.msra.mxu1 %v10306_v32  ;;  %12259 = vst [vmem:[#allocation470_spill] sm:$0xff] %v10326_v16  ;;  %v1174_v32 = vld [vmem:[%s8313_s25 + $0xc18] sm:$0xff] }
 0x2e7   : > { %4533 = vmatprep.subr.bf16.mxu1 %v10311_v44  ;;  %v10333_v33 = vpop.eup %7438  ;;  %v10344_v44 = vcombine.low %v1182_v14, %v1186_v41  ;;  %12264 = vst [vmem:[#allocation475_spill] sm:$0xff] %v10346_v51  ;;  %v10349_v9 = vcombine.high %v1174_v32, %v1178_v22  ;;  %v1166_v61 = vld [vmem:[%s8313_s25 + $0xbd8] sm:$0xff]  ;;  %v10360_v14 = vcombine.low %v1174_v32, %v1178_v22 }
 0x2e8   : > { %12261 = vst [vmem:[#allocation472_spill] sm:$0xff] %v10333_v33  ;;  %4493 = vmatpush1.bf16.msra.mxu0 %v10318_v62  ;;  %v1170_v30 = vld [vmem:[%s8313_s25 + $0xbf8] sm:$0xff] }
 0x2e9   : > { %4494 = vmatprep.subr.bf16.mxu0 %v10324_v58  ;;  %12263 = vst [vmem:[#allocation474_spill] sm:$0xff] %v10344_v44  ;;  %12265 = vst [vmem:[#allocation476_spill] sm:$0xff] %v10349_v9  ;;  %v1294_v62 = vld [vmem:[%s8313_s25 + $0xfd8] sm:$0xff]  ;;  %v10362_v41 = vcombine.high %v1166_v61, %v1170_v30 }
 0x2ea   : > { %4534 = vmatpush1.bf16.msra.mxu1 %v10322_v24  ;;  %v1298_v42 = vld [vmem:[%s8313_s25 + $0xff8] sm:$0xff]  ;;  %v10356_v24 = vcombine.low %v1046_v0, %v1050_v7  ;;  %12267 = vst [vmem:[#allocation478_spill] sm:$0xff] %v10360_v14 }
 0x2eb   : > { %4535 = vmatprep.subr.bf16.mxu1 %v10329_v11  ;;  %12268 = vst [vmem:[#allocation479_spill] sm:$0xff] %v10362_v41  ;;  %v10365_v11 = vcombine.high %v1294_v62, %v1298_v42  ;;  %v1158_v58 = vld [vmem:[%s8313_s25 + $0xb98] sm:$0xff]  ;;  %v10376_v22 = vcombine.low %v1294_v62, %v1298_v42 }
 0x2ec   : > { %4495 = vmatpush1.bf16.msra.mxu0 %v10338_v29  ;;  %12266 = vst [vmem:[#allocation477_spill] sm:$0xff] %v10356_v24  ;;  %v1162_v29 = vld [vmem:[%s8313_s25 + $0xbb8] sm:$0xff] }
 0x2ed   : > { %4496 = vmatprep.subr.bf16.mxu0 %v10346_v51  ;;  %12269 = vst [vmem:[#allocation480_spill] sm:$0xff] %v10365_v11  ;;  %v1286_v0 = vld [vmem:[%s8313_s25 + $0xf98] sm:$0xff]  ;;  %12271 = vst [vmem:[#allocation482_spill] sm:$0xff] %v10376_v22  ;;  %v10378_v32 = vcombine.high %v1158_v58, %v1162_v29 }
 0x2ee   : > { %4536 = vmatpush1.bf16.msra.mxu1 %v10344_v44  ;;  %v1290_v7 = vld [vmem:[%s8313_s25 + $0xfb8] sm:$0xff]  ;;  %v10372_v44 = vcombine.low %v1166_v61, %v1170_v30 }
 0x2ef   : > { %4537 = vmatprep.subr.bf16.mxu1 %v10349_v9  ;;  %12272 = vst [vmem:[#allocation483_spill] sm:$0xff] %v10378_v32  ;;  %v10381_v9 = vcombine.high %v1286_v0, %v1290_v7  ;;  %v1150_v51 = vld [vmem:[%s8313_s25 + $0xb58] sm:$0xff]  ;;  %v10392_v62 = vcombine.low %v1286_v0, %v1290_v7 }
 0x2f0   : > { %4497 = vmatpush1.bf16.msra.mxu0 %v10356_v24  ;;  %12270 = vst [vmem:[#allocation481_spill] sm:$0xff] %v10372_v44  ;;  %v1154_v24 = vld [vmem:[%s8313_s25 + $0xb78] sm:$0xff] }
 0x2f1   : > { %4498 = vmatprep.subr.bf16.mxu0 %v10362_v41  ;;  %12273 = vst [vmem:[#allocation484_spill] sm:$0xff] %v10381_v9  ;;  %v1278_v61 = vld [vmem:[%s8313_s25 + $0xf58] sm:$0xff]  ;;  %12275 = vst [vmem:[#allocation486_spill] sm:$0xff] %v10392_v62  ;;  %v10394_v42 = vcombine.high %v1150_v51, %v1154_v24 }
 0x2f2   : > { %4538 = vmatpush1.bf16.msra.mxu1 %v10360_v14  ;;  %v1282_v30 = vld [vmem:[%s8313_s25 + $0xf78] sm:$0xff]  ;;  %v10388_v14 = vcombine.low %v1158_v58, %v1162_v29 }
 0x2f3   : > { %4539 = vmatprep.subr.bf16.mxu1 %v10365_v11  ;;  %12276 = vst [vmem:[#allocation487_spill] sm:$0xff] %v10394_v42  ;;  %v10397_v11 = vcombine.high %v1278_v61, %v1282_v30  ;;  %v1142_v41 = vld [vmem:[%s8313_s25 + $0xb18] sm:$0xff]  ;;  %v10408_v0 = vcombine.low %v1278_v61, %v1282_v30 }
 0x2f4   : > { %4499 = vmatpush2.bf16.msra.mxu0 %v10372_v44  ;;  %12274 = vst [vmem:[#allocation485_spill] sm:$0xff] %v10388_v14  ;;  %v1146_v44 = vld [vmem:[%s8313_s25 + $0xb38] sm:$0xff] }
 0x2f5   : > { %4500 = vmatprep.subr.bf16.mxu0 %v10378_v32  ;;  %12277 = vst [vmem:[#allocation488_spill] sm:$0xff] %v10397_v11  ;;  %v1270_v58 = vld [vmem:[%s8313_s25 + $0xf18] sm:$0xff]  ;;  %12279 = vst [vmem:[#allocation490_spill] sm:$0xff] %v10408_v0  ;;  %v10410_v7 = vcombine.high %v1142_v41, %v1146_v44 }
 0x2f6   : > { %4540 = vmatpush2.bf16.msra.mxu1 %v10376_v22  ;;  %v1274_v29 = vld [vmem:[%s8313_s25 + $0xf38] sm:$0xff]  ;;  %v10404_v22 = vcombine.low %v1150_v51, %v1154_v24 }
 0x2f7   : > { %4541 = vmatprep.subr.bf16.mxu1 %v10381_v9  ;;  %12280 = vst [vmem:[#allocation491_spill] sm:$0xff] %v10410_v7  ;;  %v10413_v9 = vcombine.high %v1270_v58, %v1274_v29  ;;  %v1134_v32 = vld [vmem:[%s8313_s25 + $0xad8] sm:$0xff]  ;;  %v10424_v61 = vcombine.low %v1270_v58, %v1274_v29 }
 0x2f8   : > { %4501 = vmatpush2.bf16.msra.mxu0 %v10388_v14  ;;  %12278 = vst [vmem:[#allocation489_spill] sm:$0xff] %v10404_v22  ;;  %v1138_v14 = vld [vmem:[%s8313_s25 + $0xaf8] sm:$0xff] }
 0x2f9   : > { %4502 = vmatprep.subr.bf16.mxu0 %v10394_v42  ;;  %12281 = vst [vmem:[#allocation492_spill] sm:$0xff] %v10413_v9  ;;  %v1262_v51 = vld [vmem:[%s8313_s25 + $0xed8] sm:$0xff]  ;;  %12283 = vst [vmem:[#allocation494_spill] sm:$0xff] %v10424_v61  ;;  %v10426_v30 = vcombine.high %v1134_v32, %v1138_v14 }
 0x2fa   : > { %4542 = vmatpush2.bf16.msra.mxu1 %v10392_v62  ;;  %v1266_v24 = vld [vmem:[%s8313_s25 + $0xef8] sm:$0xff]  ;;  %v10420_v62 = vcombine.low %v1142_v41, %v1146_v44 }
 0x2fb   : > { %4543 = vmatprep.subr.bf16.mxu1 %v10397_v11  ;;  %12284 = vst [vmem:[#allocation495_spill] sm:$0xff] %v10426_v30  ;;  %v10429_v11 = vcombine.high %v1262_v51, %v1266_v24  ;;  %v1126_v42 = vld [vmem:[%s8313_s25 + $0xa98] sm:$0xff]  ;;  %v10440_v58 = vcombine.low %v1262_v51, %v1266_v24 }
 0x2fc   : > { %4503 = vmatpush2.bf16.msra.mxu0 %v10404_v22  ;;  %12282 = vst [vmem:[#allocation493_spill] sm:$0xff] %v10420_v62  ;;  %v1130_v22 = vld [vmem:[%s8313_s25 + $0xab8] sm:$0xff] }
 0x2fd   : > { %4504 = vmatprep.subr.bf16.mxu0 %v10410_v7  ;;  %12285 = vst [vmem:[#allocation496_spill] sm:$0xff] %v10429_v11  ;;  %v1254_v44 = vld [vmem:[%s8313_s25 + $0xe98] sm:$0xff]  ;;  %12287 = vst [vmem:[#allocation498_spill] sm:$0xff] %v10440_v58  ;;  %v10442_v29 = vcombine.high %v1126_v42, %v1130_v22  ;;  %v10453_v51 = vcombine.low %v1126_v42, %v1130_v22 }
 0x2fe   : > { %4544 = vmatpush2.bf16.msra.mxu1 %v10408_v0  ;;  %v1258_v41 = vld [vmem:[%s8313_s25 + $0xeb8] sm:$0xff]  ;;  %v10436_v0 = vcombine.low %v1134_v32, %v1138_v14 }
 0x2ff   : > { %4545 = vmatprep.subr.bf16.mxu1 %v10413_v9  ;;  %v10445_v9 = vcombine.high %v1254_v44, %v1258_v41  ;;  %v1118_v7 = vld [vmem:[%s8313_s25 + $0xa58] sm:$0xff]  ;;  %v10457_v24 = vcombine.low %v1254_v44, %v1258_v41 }
 0x300   : > { %4505 = vmatpush2.bf16.msra.mxu0 %v10420_v62  ;;  %12286 = vst [vmem:[#allocation497_spill] sm:$0xff] %v10436_v0  ;;  %v1122_v21 = vld [vmem:[%s8313_s25 + $0xa78] sm:$0xff] }
 0x301   : > { %4506 = vmatprep.subr.bf16.mxu0 %v10426_v30  ;;  %12288 = vst [vmem:[#allocation499_spill] sm:$0xff] %v10445_v9  ;;  %v1246_v14 = vld [vmem:[%s8313_s25 + $0xe58] sm:$0xff]  ;;  %12289 = vst [vmem:[#allocation500_spill] sm:$0xff] %v10457_v24  ;;  %v10470_v22 = vcombine.low %v1118_v7, %v1122_v21 }
 0x302   : > { %4546 = vmatpush2.bf16.msra.mxu1 %v10424_v61  ;;  %v1250_v32 = vld [vmem:[%s8313_s25 + $0xe78] sm:$0xff] }
 0x303   : > { %4547 = vmatprep.subr.bf16.mxu1 %v10429_v11  ;;  %v10459_v11 = vcombine.high %v1118_v7, %v1122_v21  ;;  %v10463_v61 = vcombine.high %v1246_v14, %v1250_v32  ;;  %v1110_v8 = vld [vmem:[%s8313_s25 + $0xa18] sm:$0xff]  ;;  %12292 = vst [vmem:[#allocation503_spill] sm:$0xff] %v10470_v22  ;;  %v10474_v42 = vcombine.low %v1246_v14, %v1250_v32  ;;  %v10489_v7 = vpop.eup %7440  ;;  %v11771_v32 = vmov 0.0  }
 0x304   : > { %4507 = vmatpush2.bf16.msra.mxu0 %v10436_v0  ;;  %v1114_v30 = vld [vmem:[%s8313_s25 + $0xa38] sm:$0xff]  ;;  %12298 = vst [vmem:[#allocation509_spill] sm:$0xff] %v10489_v7 }
 0x305   : > { %4508 = vmatprep.subr.bf16.mxu0 %v10442_v29  ;;  %12290 = vst [vmem:[#allocation501_spill] sm:$0xff] %v10459_v11  ;;  %12291 = vst [vmem:[#allocation502_spill] sm:$0xff] %v10463_v61  ;;  %v1238_v62 = vld [vmem:[%s8313_s25 + $0xe18] sm:$0xff]  ;;  %v10476_v44 = vcombine.high %v1110_v8, %v1114_v30  ;;  %v10482_v41 = vcombine.low %v1110_v8, %v1114_v30  ;;  %v10497_v30 = vpop.eup %7442 }
 0x306   : > { %4548 = vmatpush2.bf16.msra.mxu1 %v10440_v58  ;;  %v1242_v0 = vld [vmem:[%s8313_s25 + $0xe38] sm:$0xff]  ;;  %12293 = vst [vmem:[#allocation504_spill] sm:$0xff] %v10474_v42  ;;  %12299 = vst [vmem:[#allocation510_spill] sm:$0xff] %v10497_v30  ;;  %s7976_s25 = smov 32  }
 0x307   : > { %4549 = vmatprep.subr.bf16.mxu1 %v10445_v9  ;;  %12294 = vst [vmem:[#allocation505_spill] sm:$0xff] %v10476_v44  ;;  %v10479_v27 = vcombine.high %v1238_v62, %v1242_v0  ;;  %12296 = vst [vmem:[#allocation507_spill] sm:$0xff] %v10482_v41  ;;  %v10486_v21 = vcombine.low %v1238_v62, %v1242_v0 }
 0x308   : > { %4509 = vmatpush2.bf16.msra.mxu0 %v10453_v51 }
 0x309   : > { %4510 = vmatprep.subr.bf16.mxu0 %v10459_v11  ;;  %12295 = vst [vmem:[#allocation506_spill] sm:$0xff] %v10479_v27  ;;  %12297 = vst [vmem:[#allocation508_spill] sm:$0xff] %v10486_v21 }
 0x30a   : > { %4550 = vmatpush2.bf16.msra.mxu1 %v10457_v24 }
 0x30b   : > { %4551 = vmatprep.subr.bf16.mxu1 %v10463_v61 }
 0x30c   : > { %4511 = vmatpush2.bf16.msra.mxu0 %v10470_v22 }
 0x30d   : > { %4512 = vmatprep.subr.bf16.mxu0 %v10476_v44 }
 0x30e   : > { %4552 = vmatpush2.bf16.msra.mxu1 %v10474_v42  ;;  %v10507_v42 = vld [vmem:[#allocation7] sm:$0xf] }
 0x30f   : > { %4553 = vmatprep.subr.bf16.mxu1 %v10479_v27 }
 0x310   : > { %4513 = vmatpush2.bf16.msra.mxu0 %v10482_v41 }
 0x311   : > { %7040 = vmatprep.subr.msk.mxu0 %vm4576_vm0, %v10489_v7 }
 0x312   : > { %4554 = vmatpush2.bf16.msra.mxu1 %v10486_v21 }
 0x313   : > { %7043 = vmatprep.subr.msk.mxu1 %vm4576_vm0, %v10333_v33  ;;  %v4270_v14 = vpop.f32.mrf.mxu0  ;;  %4515 = vmatmul.mubr.bf16.vlgmr.msra.gmra.mxu0 %v8633_v49 }
 0x314   : > { %7041 = vmatpush1.msk.msra.mxu0 %vm4576_vm0, %v10497_v30  ;;  %4665 = vmatprep.mubr.f32.mxu0 %v11771_v32  ;;  %v4271_v61 = vadd.f32 %v4270_v14, %v9435_v54 }
 0x315   : > { %v4311_v62 = vpop.f32.mrf.mxu1  ;;  %4556 = vmatmul.mubr.bf16.vlgmr.msra.gmra.mxu1 %v8638_v60  ;;  %v4272_v0 = vpop.f32.mrf.mxu0 }
 0x316   : > { %7044 = vmatpush1.msk.msra.mxu1 %vm4576_vm0, %v10326_v16  ;;  %4736 = vmatprep.mubr.f32.mxu1 %v11771_v32 }
 0x317   : > { %v4313_v8 = vpop.f32.mrf.mxu1  ;;  %v4274_v21 = vpop.f32.mrf.mxu0 }
 0x318   : > { %v4273_v21 = vadd.f32 %v4272_v0, %v9435_v54  ;;  %v12310_v0 = vld [vmem:[#allocation39_spill] sm:$0xff] }
 0x319   : > { %v4315_v27 = vpop.f32.mrf.mxu1  ;;  %v4275_v49 = vpop.f32.mrf.mxu0 }
 0x31a   : > { %v4312_v27 = vadd.f32 %v4311_v62, %v4271_v61  ;;  %v4314_v9 = vadd.f32 %v4313_v8, %v4273_v21  ;;  %v12309_v62 = vld [vmem:[#allocation80_spill] sm:$0xff] }
 0x31b   : > { %v4316_v60 = vpop.f32.mrf.mxu1  ;;  %7042 = vmatmul.mubr.msk.f32.vlgmr.msra.gmra.mxu0 %vm4572_vm1, %v10507_v42  ;;  %v12312_v8 = vld [vmem:[#allocation40_spill] sm:$0xff] }
 0x31c   : > { %4807 = vmatprep.mubr.f32.mxu0 %v11771_v32  ;;  %v12313_v21 = vld [vmem:[#allocation84_spill] sm:$0xff] }
 0x31d   : > { %7045 = vmatmul.mubr.msk.f32.vlgmr.msra.gmra.mxu1 %vm4572_vm1, %v10507_v42 }
 0x31e   : > { %4878 = vmatprep.mubr.f32.mxu1 %v11771_v32 }
 0x353   : > { %v4352_v24 = vpop.f32.mrf.mxu0 }
 0x354   : > { %v4353_v58 = vadd.f32 %v4352_v24, %v4312_v27  ;;  %v12315_v27 = vld [vmem:[#allocation86_spill] sm:$0xff] }
 0x355   : > { %v4393_v49 = vpop.f32.mrf.mxu1  ;;  %v4354_v60 = vpop.f32.mrf.mxu0 }
 0x356   : > { %v4394_v33 = vadd.f32 %v4393_v49, %v4353_v58  ;;  %v4355_v16 = vadd.f32 %v4354_v60, %v4314_v9  ;;  %v12304_v58 = vld [vmem:[#allocation76_spill] sm:$0xff]  ;;  %v12316_v49 = vld [vmem:[#allocation42_spill] sm:$0xff] }
 0x357   : > { %v4395_v41 = vpop.f32.mrf.mxu1  ;;  %v4356_v44 = vpop.f32.mrf.mxu0  ;;  %v12317_v60 = vld [vmem:[#allocation88_spill] sm:$0xff] }
 0x358   : > { %v4396_v22 = vadd.f32 %v4395_v41, %v4355_v16  ;;  %7444 = vtanh.f32 %v4394_v33  ;;  %v12303_v16 = vld [vmem:[#allocation74_spill] sm:$0xff]  ;;  %v12305_v44 = vld [vmem:[#allocation36_spill] sm:$0xff]  ;;  %v12306_v41 = vld [vmem:[#allocation37_spill] sm:$0xff] }
 0x359   : > { %v4397_v30 = vpop.f32.mrf.mxu1  ;;  %v4357_v7 = vpop.f32.mrf.mxu0 }
 0x35a   : > { %7446 = vtanh.f32 %v4396_v22  ;;  %v12307_v7 = vld [vmem:[#allocation78_spill] sm:$0xff] }
 0x35b   : > { %v4398_v32 = vpop.f32.mrf.mxu1  ;;  %v12308_v30 = vld [vmem:[#allocation38_spill] sm:$0xff] }
 0x35c   : > { %v12311_v32 = vld [vmem:[#allocation82_spill] sm:$0xff] }
 0x365   : > { %v10517_v11 = vpop.eup %7444 }
 0x367   : > { %v10519_v14 = vpop.eup %7446 }
 0x368   : > { %7046 = vmatprep.subr.msk.mxu0 %vm4576_vm0, %v10519_v14  ;;  %v5564_v61 = vcombine.low %v10517_v11, %v10519_v14 }
 0x369   : > { %7047 = vmatpush1.msk.msra.mxu0 %vm4576_vm0, %v10517_v11 }
 0x36a   : > { %7048 = vmatmul.mubr.msk.f32.vlgmr.msra.gmra.mxu0 %vm4572_vm1, %v10507_v42  ;;  %4898 = vmatprep.subr.bf16.mxu0 %v8350_v3 }
 0x36b   : > { %4899 = vmatpush1.bf16.msra.mxu0 %v8353_v5 }
 0x36c   : > { %4900 = vmatprep.subr.bf16.mxu0 %v8361_v10 }
 0x36f   : > { %4901 = vmatpush1.bf16.msra.mxu0 %v8374_v18 }
 0x370   : > { %4902 = vmatprep.subr.bf16.mxu0 %v8380_v20 }
 0x373   : > { %4903 = vmatpush1.bf16.msra.mxu0 %v8390_v26 }
 0x374   : > { %4904 = vmatprep.subr.bf16.mxu0 %v8396_v28 }
 0x377   : > { %4905 = vmatpush1.bf16.msra.mxu0 %v8406_v38 }
 0x378   : > { %4906 = vmatprep.subr.bf16.mxu0 %v8412_v40  ;;  %v12300_v40 = vld [vmem:[#allocation68_spill] sm:$0xff] }
 0x37b   : > { %4907 = vmatpush1.bf16.msra.mxu0 %v8422_v48 }
 0x37c   : > { %4908 = vmatprep.subr.bf16.mxu0 %v8428_v50 }
 0x37f   : > { %4909 = vmatpush1.bf16.msra.mxu0 %v8440_v57 }
 0x380   : > { %4910 = vmatprep.subr.bf16.mxu0 %v8446_v59 }
 0x383   : > { %4911 = vmatpush1.bf16.msra.mxu0 %v8459_v6 }
 0x384   : > { %4912 = vmatprep.subr.bf16.mxu0 %v8472_v13 }
 0x387   : > { %4913 = vmatpush1.bf16.msra.mxu0 %v8487_v25 }
 0x388   : > { %4914 = vmatprep.subr.bf16.mxu0 %v8494_v31 }
 0x38b   : > { %4915 = vmatpush2.bf16.msra.mxu0 %v8504_v37 }
 0x38c   : > { %4916 = vmatprep.subr.bf16.mxu0 %v8510_v43 }
 0x38f   : > { %4917 = vmatpush2.bf16.msra.mxu0 %v8520_v53 }
 0x390   : > { %4918 = vmatprep.subr.bf16.mxu0 %v8526_v56 }
 0x393   : > { %v4434_v3 = vpop.f32.mrf.mxu0  ;;  %4919 = vmatpush2.bf16.msra.mxu0 %v8536_v4 }
 0x394   : > { %4920 = vmatprep.subr.bf16.mxu0 %v8542_v17  ;;  %v4435_v48 = vadd.f32 %v4434_v3, %v9435_v54  ;;  %v12318_v3 = vld [vmem:[#allocation43_spill] sm:$0xff] }
 0x395   : > { %v4475_v5 = vpop.f32.mrf.mxu1  ;;  %v4436_v10 = vpop.f32.mrf.mxu0 }
 0x396   : > { %v4437_v50 = vadd.f32 %v4436_v10, %v9435_v54  ;;  %v4476_v57 = vadd.f32 %v4475_v5, %v4435_v48  ;;  %v12319_v5 = vld [vmem:[#allocation90_spill] sm:$0xff]  ;;  %v12320_v10 = vld [vmem:[#allocation44_spill] sm:$0xff] }
 0x397   : > { %v4477_v18 = vpop.f32.mrf.mxu1  ;;  %v4438_v20 = vpop.f32.mrf.mxu0  ;;  %4921 = vmatpush2.bf16.msra.mxu0 %v8552_v36  ;;  %v12327_v48 = vld [vmem:[#allocation98_spill] sm:$0xff] }
 0x398   : > { %4922 = vmatprep.subr.bf16.mxu0 %v8558_v46  ;;  %v4478_v6 = vadd.f32 %v4477_v18, %v4437_v50  ;;  %v12321_v18 = vld [vmem:[#allocation92_spill] sm:$0xff]  ;;  %v12322_v20 = vld [vmem:[#allocation45_spill] sm:$0xff] }
 0x399   : > { %v4479_v26 = vpop.f32.mrf.mxu1  ;;  %v4439_v28 = vpop.f32.mrf.mxu0  ;;  %v12328_v50 = vld [vmem:[#allocation48_spill] sm:$0xff] }
 0x39a   : > { %v12323_v26 = vld [vmem:[#allocation94_spill] sm:$0xff] }
 0x39b   : > { %v4480_v38 = vpop.f32.mrf.mxu1  ;;  %4923 = vmatpush2.bf16.msra.mxu0 %v8571_v1  ;;  %v12324_v28 = vld [vmem:[#allocation46_spill] sm:$0xff] }
 0x39c   : > { %4924 = vmatprep.subr.bf16.mxu0 %v8577_v23  ;;  %v12325_v38 = vld [vmem:[#allocation96_spill] sm:$0xff] }
 0x39f   : > { %4925 = vmatpush2.bf16.msra.mxu0 %v8587_v45 }
 0x3a0   : > { %4926 = vmatprep.subr.bf16.mxu0 %v8593_v35  ;;  %v12302_v35 = vld [vmem:[#allocation72_spill] sm:$0xff] }
 0x3a3   : > { %4927 = vmatpush2.bf16.msra.mxu0 %v8603_v2  ;;  %v12301_v2 = vld [vmem:[#allocation70_spill] sm:$0xff] }
 0x3a4   : > { %4928 = vmatprep.subr.bf16.mxu0 %v8609_v55 }
 0x3a7   : > { %4929 = vmatpush2.bf16.msra.mxu0 %v8619_v34 }
 0x3a8   : > { %4980 = vmatprep.subr.bf16.mxu0 %v12300_v40  ;;  %v12326_v40 = vld [vmem:[#allocation47_spill] sm:$0xff] }
 0x3d3   : > { %v4516_v59 = vpop.f32.mrf.mxu0 }
 0x3d4   : > { %v4517_v13 = vadd.f32 %v4516_v59, %v4476_v57  ;;  %v12329_v57 = vld [vmem:[#allocation100_spill] sm:$0xff]  ;;  %v12330_v59 = vld [vmem:[#allocation49_spill] sm:$0xff] }
 0x3d5   : > { %v4557_v25 = vpop.f32.mrf.mxu1  ;;  %v4518_v31 = vpop.f32.mrf.mxu0 }
 0x3d6   : > { %v4558_v37 = vadd.f32 %v4557_v25, %v4517_v13  ;;  %v4519_v43 = vadd.f32 %v4518_v31, %v4478_v6  ;;  %v12331_v6 = vld [vmem:[#allocation102_spill] sm:$0xff]  ;;  %v12333_v25 = vld [vmem:[#allocation104_spill] sm:$0xff]  ;;  %v12334_v31 = vld [vmem:[#allocation51_spill] sm:$0xff] }
 0x3d7   : > { %v4559_v53 = vpop.f32.mrf.mxu1  ;;  %v4520_v56 = vpop.f32.mrf.mxu0  ;;  %v12332_v13 = vld [vmem:[#allocation50_spill] sm:$0xff] }
 0x3d8   : > { %v4560_v4 = vadd.f32 %v4559_v53, %v4519_v43  ;;  %7448 = vtanh.f32 %v4558_v37  ;;  %v12335_v37 = vld [vmem:[#allocation106_spill] sm:$0xff]  ;;  %v12336_v43 = vld [vmem:[#allocation52_spill] sm:$0xff]  ;;  %v12338_v56 = vld [vmem:[#allocation53_spill] sm:$0xff] }
 0x3d9   : > { %v4561_v55 = vpop.f32.mrf.mxu1  ;;  %v4521_v17 = vpop.f32.mrf.mxu0  ;;  %v12337_v53 = vld [vmem:[#allocation108_spill] sm:$0xff] }
 0x3da   : > { %7450 = vtanh.f32 %v4560_v4  ;;  %v12339_v4 = vld [vmem:[#allocation110_spill] sm:$0xff]  ;;  %v12341_v17 = vld [vmem:[#allocation112_spill] sm:$0xff] }
 0x3db   : > { %v4562_v23 = vpop.f32.mrf.mxu1  ;;  %v4667_v36 = vpop.f32.mrf.mxu0  ;;  %v12340_v55 = vld [vmem:[#allocation54_spill] sm:$0xff] }
 0x3dc   : > { %v10564_v45 = vpack.c.bf16 %v4667_v36, %v4667_v36  ;;  %v12342_v23 = vld [vmem:[#allocation55_spill] sm:$0xff]  ;;  %v12343_v36 = vld [vmem:[#allocation114_spill] sm:$0xff] }
 0x3dd   : > { %v4669_v46 = vpop.f32.mrf.mxu0  ;;  %v10571_v34 = vpop.f32.mrf.mxu1 }
 0x3de   : > { %v10566_v1 = vpack.c.bf16 %v4669_v46, %v4669_v46  ;;  %v12344_v46 = vld [vmem:[#allocation56_spill] sm:$0xff] }
 0x3df   : > { %v4740_v9 = vpop.f32.mrf.mxu1 }
 0x3e0   : > { %4930 = vmatprep.mubr.bf16.mxu0 %v10566_v1  ;;  %v10586_v22 = vpack.c.bf16 %v4740_v9, %v4740_v9  ;;  %v12348_v9 = vld [vmem:[#allocation58_spill] sm:$0xff] }
 0x3e1   : > { %4931 = vmatmul.mubr.bf16.vlgmr.msra.gmra.mxu0 %v10564_v45 }
 0x3e2   : > { %4981 = vmatpush1.bf16.msra.mxu0 %v12301_v2  ;;  %v12345_v2 = vld [vmem:[#allocation116_spill] sm:$0xff] }
 0x3e3   : > { %4982 = vmatprep.subr.bf16.mxu0 %v12302_v35  ;;  %v12346_v35 = vld [vmem:[#allocation57_spill] sm:$0xff] }
 0x3e5   : > { %v10574_v54 = vpop.eup %7448 }
 0x3e6   : > { %4983 = vmatpush1.bf16.msra.mxu0 %v12303_v16  ;;  %v12347_v16 = vld [vmem:[#allocation118_spill] sm:$0xff] }
 0x3e7   : > { %v10577_v33 = vpop.eup %7450  ;;  %4984 = vmatprep.subr.bf16.mxu0 %v12304_v58  ;;  %v12349_v58 = vld [vmem:[#allocation120_spill] sm:$0xff] }
 0x3e8   : > { %7049 = vmatprep.subr.msk.mxu1 %vm4576_vm0, %v10577_v33  ;;  %v5565_v24 = vcombine.low %v10574_v54, %v10577_v33  ;;  %v6042_v33 = vld [vmem:[%s12777_s4 + $0x18] sm:$0xff] }
 0x3e9   : > { %7050 = vmatpush1.msk.msra.mxu1 %vm4576_vm0, %v10574_v54 }
 0x3ea   : > { %7051 = vmatmul.mubr.msk.f32.vlgmr.msra.gmra.mxu1 %vm4572_vm1, %v10507_v42  ;;  %4939 = vmatprep.subr.bf16.mxu1 %v12305_v44  ;;  %v12314_v42 = vld [vmem:[#allocation41_spill] sm:$0xff]  ;;  %v12350_v44 = vld [vmem:[#allocation59_spill] sm:$0xff] }
 0x3eb   : > { %4940 = vmatpush1.bf16.msra.mxu1 %v12306_v41  ;;  %4985 = vmatpush1.bf16.msra.mxu0 %v12307_v7  ;;  %v12351_v41 = vld [vmem:[#allocation122_spill] sm:$0xff]  ;;  %v12352_v7 = vld [vmem:[#allocation60_spill] sm:$0xff] }
 0x3ec   : > { %4941 = vmatprep.subr.bf16.mxu1 %v12308_v30  ;;  %4986 = vmatprep.subr.bf16.mxu0 %v12309_v62  ;;  %v12353_v30 = vld [vmem:[#allocation124_spill] sm:$0xff]  ;;  %v12354_v62 = vld [vmem:[#allocation61_spill] sm:$0xff] }
 0x3ed   : > { %4971 = vmatprep.mubr.bf16.mxu1 %v10586_v22 }
 0x3ef   : > { %4942 = vmatpush1.bf16.msra.mxu1 %v12310_v0  ;;  %4987 = vmatpush1.bf16.msra.mxu0 %v12311_v32  ;;  %v12355_v0 = vld [vmem:[#allocation126_spill] sm:$0xff] }
 0x3f0   : > { %4943 = vmatprep.subr.bf16.mxu1 %v12312_v8  ;;  %4988 = vmatprep.subr.bf16.mxu0 %v12313_v21  ;;  %v12356_v32 = vld [vmem:[#allocation62_spill] sm:$0xff]  ;;  %v12357_v8 = vld [vmem:[#allocation128_spill] sm:$0xff]  ;;  %v12358_v21 = vld [vmem:[#allocation63_spill] sm:$0xff] }
 0x3f3   : > { %4944 = vmatpush1.bf16.msra.mxu1 %v12314_v42  ;;  %4989 = vmatpush1.bf16.msra.mxu0 %v12315_v27  ;;  %v12359_v42 = vld [vmem:[#allocation130_spill] sm:$0xff]  ;;  %v12360_v27 = vld [vmem:[#allocation64_spill] sm:$0xff] }
 0x3f4   : > { %4945 = vmatprep.subr.bf16.mxu1 %v12316_v49  ;;  %4990 = vmatprep.subr.bf16.mxu0 %v12317_v60  ;;  %v12361_v49 = vld [vmem:[#allocation132_spill] sm:$0xff]  ;;  %v12362_v60 = vld [vmem:[#allocation65_spill] sm:$0xff] }
 0x3f7   : > { %4946 = vmatpush1.bf16.msra.mxu1 %v12318_v3  ;;  %4991 = vmatpush1.bf16.msra.mxu0 %v12319_v5  ;;  %v12363_v3 = vld [vmem:[#allocation66_spill] sm:$0xff]  ;;  %v10652_v5 = vpack.c.bf16 %v10571_v34, %v10571_v34  ;;  %v12368_v34 = vld [vmem:[#allocation75_spill] sm:$0xff] }
 0x3f8   : > { %4947 = vmatprep.subr.bf16.mxu1 %v12320_v10  ;;  %4992 = vmatprep.subr.bf16.mxu0 %v12321_v18  ;;  %v12364_v10 = vld [vmem:[#allocation67_spill] sm:$0xff]  ;;  %v12365_v18 = vld [vmem:[#allocation69_spill] sm:$0xff] }
 0x3fb   : > { %4948 = vmatpush1.bf16.msra.mxu1 %v12322_v20  ;;  %4993 = vmatpush1.bf16.msra.mxu0 %v12323_v26  ;;  %v12366_v26 = vld [vmem:[#allocation71_spill] sm:$0xff] }
 0x3fc   : > { %4949 = vmatprep.subr.bf16.mxu1 %v12324_v28  ;;  %4994 = vmatprep.subr.bf16.mxu0 %v12325_v38 }
 0x3ff   : > { %4950 = vmatpush1.bf16.msra.mxu1 %v12326_v40  ;;  %4995 = vmatpush1.bf16.msra.mxu0 %v12327_v48  ;;  %v12367_v40 = vld [vmem:[#allocation73_spill] sm:$0xff] }
 0x400   : > { %4951 = vmatprep.subr.bf16.mxu1 %v12328_v50  ;;  %4996 = vmatprep.subr.bf16.mxu0 %v12329_v57  ;;  %v12369_v50 = vld [vmem:[#allocation77_spill] sm:$0xff]  ;;  %v12370_v57 = vld [vmem:[#allocation134_spill] sm:$0xff] }
 0x403   : > { %4952 = vmatpush1.bf16.msra.mxu1 %v12330_v59  ;;  %4997 = vmatpush2.bf16.msra.mxu0 %v12331_v6  ;;  %v12371_v59 = vld [vmem:[#allocation136_spill] sm:$0xff]  ;;  %v12372_v6 = vld [vmem:[#allocation79_spill] sm:$0xff] }
 0x404   : > { %4953 = vmatprep.subr.bf16.mxu1 %v12332_v13  ;;  %4998 = vmatprep.subr.bf16.mxu0 %v12333_v25  ;;  %v12373_v13 = vld [vmem:[#allocation81_spill] sm:$0xff]  ;;  %v12374_v25 = vld [vmem:[#allocation138_spill] sm:$0xff] }
 0x407   : > { %4954 = vmatpush1.bf16.msra.mxu1 %v12334_v31  ;;  %4999 = vmatpush2.bf16.msra.mxu0 %v12335_v37  ;;  %v12375_v31 = vld [vmem:[#allocation140_spill] sm:$0xff]  ;;  %v12376_v37 = vld [vmem:[#allocation83_spill] sm:$0xff] }
 0x408   : > { %4955 = vmatprep.subr.bf16.mxu1 %v12336_v43  ;;  %5000 = vmatprep.subr.bf16.mxu0 %v12337_v53  ;;  %v12377_v43 = vld [vmem:[#allocation85_spill] sm:$0xff]  ;;  %v12378_v53 = vld [vmem:[#allocation142_spill] sm:$0xff] }
 0x40b   : > { %4956 = vmatpush2.bf16.msra.mxu1 %v12338_v56  ;;  %5001 = vmatpush2.bf16.msra.mxu0 %v12339_v4  ;;  %v12379_v56 = vld [vmem:[#allocation144_spill] sm:$0xff]  ;;  %v12380_v4 = vld [vmem:[#allocation87_spill] sm:$0xff] }
 0x40c   : > { %4957 = vmatprep.subr.bf16.mxu1 %v12340_v55  ;;  %5002 = vmatprep.subr.bf16.mxu0 %v12341_v17  ;;  %v12381_v55 = vld [vmem:[#allocation89_spill] sm:$0xff]  ;;  %v12382_v17 = vld [vmem:[#allocation146_spill] sm:$0xff] }
 0x40f   : > { %4958 = vmatpush2.bf16.msra.mxu1 %v12342_v23  ;;  %5003 = vmatpush2.bf16.msra.mxu0 %v12343_v36  ;;  %v12383_v23 = vld [vmem:[#allocation148_spill] sm:$0xff]  ;;  %v12384_v36 = vld [vmem:[#allocation91_spill] sm:$0xff] }
 0x410   : > { %4959 = vmatprep.subr.bf16.mxu1 %v12344_v46  ;;  %5004 = vmatprep.subr.bf16.mxu0 %v12345_v2  ;;  %v12385_v46 = vld [vmem:[#allocation93_spill] sm:$0xff]  ;;  %v12386_v2 = vld [vmem:[#allocation150_spill] sm:$0xff] }
 0x413   : > { %4960 = vmatpush2.bf16.msra.mxu1 %v12346_v35  ;;  %5005 = vmatpush2.bf16.msra.mxu0 %v12347_v16  ;;  %v12387_v35 = vld [vmem:[#allocation152_spill] sm:$0xff]  ;;  %v12388_v16 = vld [vmem:[#allocation95_spill] sm:$0xff] }
 0x414   : > { %4961 = vmatprep.subr.bf16.mxu1 %v12348_v9  ;;  %5006 = vmatprep.subr.bf16.mxu0 %v12349_v58  ;;  %v12389_v9 = vld [vmem:[#allocation97_spill] sm:$0xff]  ;;  %v12390_v58 = vld [vmem:[#allocation154_spill] sm:$0xff] }
 0x417   : > { %4962 = vmatpush2.bf16.msra.mxu1 %v12350_v44  ;;  %5007 = vmatpush2.bf16.msra.mxu0 %v12351_v41  ;;  %v12391_v44 = vld [vmem:[#allocation156_spill] sm:$0xff]  ;;  %v12392_v41 = vld [vmem:[#allocation99_spill] sm:$0xff] }
 0x418   : > { %4963 = vmatprep.subr.bf16.mxu1 %v12352_v7  ;;  %5008 = vmatprep.subr.bf16.mxu0 %v12353_v30  ;;  %v12393_v7 = vld [vmem:[#allocation101_spill] sm:$0xff]  ;;  %v12394_v30 = vld [vmem:[#allocation158_spill] sm:$0xff] }
 0x41b   : > { %4964 = vmatpush2.bf16.msra.mxu1 %v12354_v62  ;;  %5009 = vmatpush2.bf16.msra.mxu0 %v12355_v0  ;;  %v12395_v62 = vld [vmem:[#allocation160_spill] sm:$0xff]  ;;  %v12396_v0 = vld [vmem:[#allocation103_spill] sm:$0xff] }
 0x41c   : > { %4965 = vmatprep.subr.bf16.mxu1 %v12356_v32  ;;  %5010 = vmatprep.subr.bf16.mxu0 %v12357_v8  ;;  %v12397_v32 = vld [vmem:[#allocation105_spill] sm:$0xff]  ;;  %v12398_v8 = vld [vmem:[#allocation162_spill] sm:$0xff] }
 0x41f   : > { %4966 = vmatpush2.bf16.msra.mxu1 %v12358_v21  ;;  %5011 = vmatpush2.bf16.msra.mxu0 %v12359_v42  ;;  %v12399_v21 = vld [vmem:[#allocation164_spill] sm:$0xff]  ;;  %v12400_v42 = vld [vmem:[#allocation107_spill] sm:$0xff] }
 0x420   : > { %4967 = vmatprep.subr.bf16.mxu1 %v12360_v27  ;;  %5062 = vmatprep.subr.bf16.mxu0 %v12361_v49  ;;  %v12401_v27 = vld [vmem:[#allocation109_spill] sm:$0xff]  ;;  %v12402_v49 = vld [vmem:[#allocation166_spill] sm:$0xff] }
 0x423   : > { %4968 = vmatpush2.bf16.msra.mxu1 %v12362_v60  ;;  %v12403_v60 = vld [vmem:[#allocation168_spill] sm:$0xff] }
 0x424   : > { %4969 = vmatprep.subr.bf16.mxu1 %v12363_v3  ;;  %v12404_v3 = vld [vmem:[#allocation111_spill] sm:$0xff] }
 0x427   : > { %4970 = vmatpush2.bf16.msra.mxu1 %v12364_v10  ;;  %v12405_v10 = vld [vmem:[#allocation113_spill] sm:$0xff] }
 0x428   : > { %5021 = vmatprep.subr.bf16.mxu1 %v12365_v18  ;;  %v12406_v18 = vld [vmem:[#allocation170_spill] sm:$0xff] }
 0x42a   : > { %v4809_v20 = vpop.f32.mrf.mxu0  ;;  %4972 = vmatmul.mubr.bf16.vlgmr.msra.gmra.mxu1 %v10652_v5 }
 0x42b   : > { %5022 = vmatpush1.bf16.msra.mxu1 %v12366_v26  ;;  %v10658_v28 = vpack.c.bf16 %v4809_v20, %v4809_v20  ;;  %v12407_v20 = vld [vmem:[#allocation172_spill] sm:$0xff]  ;;  %v12408_v26 = vld [vmem:[#allocation115_spill] sm:$0xff] }
 0x42c   : > { %v4811_v38 = vpop.f32.mrf.mxu0  ;;  %5023 = vmatprep.subr.bf16.mxu1 %v12367_v40  ;;  %v12410_v40 = vld [vmem:[#allocation174_spill] sm:$0xff] }
 0x42d   : > { %v10661_v48 = vpack.c.bf16 %v4811_v38, %v4811_v38  ;;  %v12409_v38 = vld [vmem:[#allocation117_spill] sm:$0xff] }
 0x42f   : > { %5012 = vmatprep.mubr.bf16.mxu0 %v10661_v48  ;;  %5024 = vmatpush1.bf16.msra.mxu1 %v12368_v34  ;;  %v12411_v34 = vld [vmem:[#allocation176_spill] sm:$0xff] }
 0x430   : > { %5013 = vmatmul.mubr.bf16.vlgmr.msra.gmra.mxu0 %v10658_v28  ;;  %5025 = vmatprep.subr.bf16.mxu1 %v12369_v50  ;;  %v12412_v50 = vld [vmem:[#allocation119_spill] sm:$0xff] }
 0x431   : > { %5063 = vmatpush1.bf16.msra.mxu0 %v12370_v57  ;;  %5094 = vmatprep.mubr.bf16.mxu0 %v10566_v1  ;;  %v12413_v57 = vld [vmem:[#allocation121_spill] sm:$0xff] }
 0x432   : > { %5064 = vmatprep.subr.bf16.mxu0 %v12371_v59  ;;  %v12414_v59 = vld [vmem:[#allocation178_spill] sm:$0xff] }
 0x433   : > { %5026 = vmatpush1.bf16.msra.mxu1 %v12372_v6  ;;  %v12415_v6 = vld [vmem:[#allocation180_spill] sm:$0xff] }
 0x434   : > { %5027 = vmatprep.subr.bf16.mxu1 %v12373_v13  ;;  %v12416_v13 = vld [vmem:[#allocation123_spill] sm:$0xff] }
 0x435   : > { %5065 = vmatpush1.bf16.msra.mxu0 %v12374_v25  ;;  %v12417_v25 = vld [vmem:[#allocation125_spill] sm:$0xff] }
 0x436   : > { %5066 = vmatprep.subr.bf16.mxu0 %v12375_v31  ;;  %v12418_v31 = vld [vmem:[#allocation182_spill] sm:$0xff] }
 0x437   : > { %5028 = vmatpush1.bf16.msra.mxu1 %v12376_v37  ;;  %v12419_v37 = vld [vmem:[#allocation184_spill] sm:$0xff] }
 0x438   : > { %5029 = vmatprep.subr.bf16.mxu1 %v12377_v43  ;;  %v12420_v43 = vld [vmem:[#allocation127_spill] sm:$0xff] }
 0x439   : > { %5067 = vmatpush1.bf16.msra.mxu0 %v12378_v53  ;;  %v12421_v53 = vld [vmem:[#allocation129_spill] sm:$0xff] }
 0x43a   : > { %5068 = vmatprep.subr.bf16.mxu0 %v12379_v56  ;;  %v12422_v56 = vld [vmem:[#allocation186_spill] sm:$0xff] }
 0x43b   : > { %5030 = vmatpush1.bf16.msra.mxu1 %v12380_v4  ;;  %v12423_v4 = vld [vmem:[#allocation188_spill] sm:$0xff] }
 0x43c   : > { %5031 = vmatprep.subr.bf16.mxu1 %v12381_v55  ;;  %v12424_v55 = vld [vmem:[#allocation131_spill] sm:$0xff] }
 0x43d   : > { %5069 = vmatpush1.bf16.msra.mxu0 %v12382_v17  ;;  %v12425_v17 = vld [vmem:[#allocation133_spill] sm:$0xff] }
 0x43e   : > { %5070 = vmatprep.subr.bf16.mxu0 %v12383_v23  ;;  %v12426_v23 = vld [vmem:[#allocation190_spill] sm:$0xff] }
 0x43f   : > { %5032 = vmatpush1.bf16.msra.mxu1 %v12384_v36  ;;  %v12427_v36 = vld [vmem:[#allocation192_spill] sm:$0xff] }
 0x440   : > { %5033 = vmatprep.subr.bf16.mxu1 %v12385_v46  ;;  %v12428_v46 = vld [vmem:[#allocation194_spill] sm:$0xff] }
 0x441   : > { %5071 = vmatpush1.bf16.msra.mxu0 %v12386_v2  ;;  %v12429_v2 = vld [vmem:[#allocation196_spill] sm:$0xff] }
 0x442   : > { %5072 = vmatprep.subr.bf16.mxu0 %v12387_v35  ;;  %v12430_v35 = vld [vmem:[#allocation198_spill] sm:$0xff] }
 0x443   : > { %5034 = vmatpush1.bf16.msra.mxu1 %v12388_v16  ;;  %v12431_v16 = vld [vmem:[#allocation200_spill] sm:$0xff] }
 0x444   : > { %5035 = vmatprep.subr.bf16.mxu1 %v12389_v9  ;;  %v12432_v9 = vld [vmem:[#allocation202_spill] sm:$0xff] }
 0x445   : > { %5073 = vmatpush1.bf16.msra.mxu0 %v12390_v58  ;;  %v12433_v58 = vld [vmem:[#allocation204_spill] sm:$0xff] }
 0x446   : > { %5074 = vmatprep.subr.bf16.mxu0 %v12391_v44  ;;  %v12434_v44 = vld [vmem:[#allocation206_spill] sm:$0xff] }
 0x447   : > { %5036 = vmatpush1.bf16.msra.mxu1 %v12392_v41  ;;  %v12435_v41 = vld [vmem:[#allocation208_spill] sm:$0xff] }
 0x448   : > { %5037 = vmatprep.subr.bf16.mxu1 %v12393_v7  ;;  %v12436_v7 = vld [vmem:[#allocation210_spill] sm:$0xff] }
 0x449   : > { %5075 = vmatpush1.bf16.msra.mxu0 %v12394_v30  ;;  %v12437_v30 = vld [vmem:[#allocation212_spill] sm:$0xff] }
 0x44a   : > { %5076 = vmatprep.subr.bf16.mxu0 %v12395_v62  ;;  %v12438_v62 = vld [vmem:[#allocation214_spill] sm:$0xff] }
 0x44b   : > { %5038 = vmatpush2.bf16.msra.mxu1 %v12396_v0  ;;  %v12439_v0 = vld [vmem:[#allocation216_spill] sm:$0xff] }
 0x44c   : > { %5039 = vmatprep.subr.bf16.mxu1 %v12397_v32  ;;  %v12440_v32 = vld [vmem:[#allocation218_spill] sm:$0xff] }
 0x44d   : > { %5077 = vmatpush1.bf16.msra.mxu0 %v12398_v8  ;;  %v12441_v8 = vld [vmem:[#allocation220_spill] sm:$0xff] }
 0x44e   : > { %5078 = vmatprep.subr.bf16.mxu0 %v12399_v21  ;;  %v12442_v21 = vld [vmem:[#allocation222_spill] sm:$0xff] }
 0x44f   : > { %5040 = vmatpush2.bf16.msra.mxu1 %v12400_v42  ;;  %v12443_v42 = vld [vmem:[#allocation224_spill] sm:$0xff] }
 0x450   : > { %5041 = vmatprep.subr.bf16.mxu1 %v12401_v27  ;;  %v12444_v27 = vld [vmem:[#allocation226_spill] sm:$0xff] }
 0x451   : > { %5079 = vmatpush2.bf16.msra.mxu0 %v12402_v49  ;;  %v12445_v49 = vld [vmem:[#allocation228_spill] sm:$0xff] }
 0x452   : > { %5080 = vmatprep.subr.bf16.mxu0 %v12403_v60  ;;  %v12446_v60 = vld [vmem:[#allocation230_spill] sm:$0xff] }
 0x453   : > { %5042 = vmatpush2.bf16.msra.mxu1 %v12404_v3  ;;  %v12447_v3 = vld [vmem:[#allocation232_spill] sm:$0xff] }
 0x454   : > { %5043 = vmatprep.subr.bf16.mxu1 %v12405_v10  ;;  %v12448_v10 = vld [vmem:[#allocation234_spill] sm:$0xff] }
 0x455   : > { %5081 = vmatpush2.bf16.msra.mxu0 %v12406_v18  ;;  %v12449_v18 = vld [vmem:[#allocation236_spill] sm:$0xff] }
 0x456   : > { %5082 = vmatprep.subr.bf16.mxu0 %v12407_v20  ;;  %v12450_v20 = vld [vmem:[#allocation238_spill] sm:$0xff] }
 0x457   : > { %5044 = vmatpush2.bf16.msra.mxu1 %v12408_v26  ;;  %v12451_v26 = vld [vmem:[#allocation240_spill] sm:$0xff] }
 0x458   : > { %5045 = vmatprep.subr.bf16.mxu1 %v12409_v38  ;;  %v12452_v38 = vld [vmem:[#allocation242_spill] sm:$0xff] }
 0x459   : > { %5083 = vmatpush2.bf16.msra.mxu0 %v12410_v40  ;;  %v12453_v40 = vld [vmem:[#allocation244_spill] sm:$0xff] }
 0x45a   : > { %5084 = vmatprep.subr.bf16.mxu0 %v12411_v34  ;;  %v12454_v34 = vld [vmem:[#allocation246_spill] sm:$0xff] }
 0x45b   : > { %5046 = vmatpush2.bf16.msra.mxu1 %v12412_v50 }
 0x45c   : > { %5047 = vmatprep.subr.bf16.mxu1 %v12413_v57  ;;  %v12455_v57 = vld [vmem:[#allocation248_spill] sm:$0xff] }
 0x45d   : > { %5085 = vmatpush2.bf16.msra.mxu0 %v12414_v59 }
 0x45e   : > { %5086 = vmatprep.subr.bf16.mxu0 %v12415_v6  ;;  %v12456_v6 = vld [vmem:[#allocation250_spill] sm:$0xff] }
 0x45f   : > { %5048 = vmatpush2.bf16.msra.mxu1 %v12416_v13 }
 0x460   : > { %5049 = vmatprep.subr.bf16.mxu1 %v12417_v25  ;;  %v12457_v25 = vld [vmem:[#allocation252_spill] sm:$0xff] }
 0x461   : > { %5087 = vmatpush2.bf16.msra.mxu0 %v12418_v31 }
 0x462   : > { %5088 = vmatprep.subr.bf16.mxu0 %v12419_v37  ;;  %v12458_v37 = vld [vmem:[#allocation254_spill] sm:$0xff] }
 0x463   : > { %5050 = vmatpush2.bf16.msra.mxu1 %v12420_v43 }
 0x464   : > { %5051 = vmatprep.subr.bf16.mxu1 %v12421_v53  ;;  %v12459_v53 = vld [vmem:[#allocation256_spill] sm:$0xff] }
 0x465   : > { %5089 = vmatpush2.bf16.msra.mxu0 %v12422_v56 }
 0x466   : > { %5090 = vmatprep.subr.bf16.mxu0 %v12423_v4 }
 0x467   : > { %5052 = vmatpush2.bf16.msra.mxu1 %v12424_v55  ;;  %v12460_v55 = vld [vmem:[#allocation258_spill] sm:$0xff] }
 0x468   : > { %5103 = vmatprep.subr.bf16.mxu1 %v12425_v17 }
 0x469   : > { %5091 = vmatpush2.bf16.msra.mxu0 %v12426_v23  ;;  %v12461_v23 = vld [vmem:[#allocation260_spill] sm:$0xff] }
 0x46a   : > { %5092 = vmatprep.subr.bf16.mxu0 %v12427_v36  ;;  %v12462_v36 = vld [vmem:[#allocation135_spill] sm:$0xff] }
 0x46d   : > { %5093 = vmatpush2.bf16.msra.mxu0 %v12428_v46  ;;  %v12463_v46 = vld [vmem:[#allocation262_spill] sm:$0xff] }
 0x46e   : > { %5144 = vmatprep.subr.bf16.mxu0 %v12429_v2  ;;  %v12464_v2 = vld [vmem:[#allocation137_spill] sm:$0xff] }
 0x470   : > { %5095 = vmatmul.mubr.bf16.vlgmr.msra.gmra.mxu0 %v10564_v45 }
 0x471   : > { %5145 = vmatpush1.bf16.msra.mxu0 %v12430_v35  ;;  %5176 = vmatprep.mubr.bf16.mxu0 %v10661_v48  ;;  %v12465_v35 = vld [vmem:[#allocation264_spill] sm:$0xff] }
 0x472   : > { %5146 = vmatprep.subr.bf16.mxu0 %v12431_v16  ;;  %v12466_v16 = vld [vmem:[#allocation139_spill] sm:$0xff] }
 0x475   : > { %5147 = vmatpush1.bf16.msra.mxu0 %v12432_v9  ;;  %v12467_v9 = vld [vmem:[#allocation266_spill] sm:$0xff] }
 0x476   : > { %5148 = vmatprep.subr.bf16.mxu0 %v12433_v58  ;;  %v12468_v58 = vld [vmem:[#allocation141_spill] sm:$0xff] }
 0x479   : > { %5149 = vmatpush1.bf16.msra.mxu0 %v12434_v44  ;;  %v12469_v44 = vld [vmem:[#allocation268_spill] sm:$0xff] }
 0x47a   : > { %5150 = vmatprep.subr.bf16.mxu0 %v12435_v41  ;;  %v12470_v41 = vld [vmem:[#allocation143_spill] sm:$0xff] }
 0x47d   : > { %5151 = vmatpush1.bf16.msra.mxu0 %v12436_v7  ;;  %v12471_v7 = vld [vmem:[#allocation270_spill] sm:$0xff] }
 0x47e   : > { %5152 = vmatprep.subr.bf16.mxu0 %v12437_v30  ;;  %v12472_v30 = vld [vmem:[#allocation145_spill] sm:$0xff] }
 0x481   : > { %5153 = vmatpush1.bf16.msra.mxu0 %v12438_v62  ;;  %v12473_v62 = vld [vmem:[#allocation272_spill] sm:$0xff] }
 0x482   : > { %5154 = vmatprep.subr.bf16.mxu0 %v12439_v0  ;;  %v12474_v0 = vld [vmem:[#allocation147_spill] sm:$0xff] }
 0x485   : > { %5155 = vmatpush1.bf16.msra.mxu0 %v12440_v32  ;;  %v12475_v32 = vld [vmem:[#allocation274_spill] sm:$0xff] }
 0x486   : > { %5156 = vmatprep.subr.bf16.mxu0 %v12441_v8  ;;  %v12476_v8 = vld [vmem:[#allocation149_spill] sm:$0xff] }
 0x489   : > { %5157 = vmatpush1.bf16.msra.mxu0 %v12442_v21  ;;  %v12477_v21 = vld [vmem:[#allocation276_spill] sm:$0xff] }
 0x48a   : > { %5158 = vmatprep.subr.bf16.mxu0 %v12443_v42  ;;  %v12478_v42 = vld [vmem:[#allocation151_spill] sm:$0xff] }
 0x48d   : > { %5159 = vmatpush1.bf16.msra.mxu0 %v12444_v27  ;;  %v12479_v27 = vld [vmem:[#allocation278_spill] sm:$0xff] }
 0x48e   : > { %5160 = vmatprep.subr.bf16.mxu0 %v12445_v49  ;;  %v12480_v49 = vld [vmem:[#allocation153_spill] sm:$0xff] }
 0x491   : > { %5161 = vmatpush2.bf16.msra.mxu0 %v12446_v60  ;;  %v12481_v60 = vld [vmem:[#allocation280_spill] sm:$0xff] }
 0x492   : > { %5162 = vmatprep.subr.bf16.mxu0 %v12447_v3  ;;  %v12482_v3 = vld [vmem:[#allocation155_spill] sm:$0xff] }
 0x495   : > { %5163 = vmatpush2.bf16.msra.mxu0 %v12448_v10  ;;  %v12483_v10 = vld [vmem:[#allocation282_spill] sm:$0xff] }
 0x496   : > { %5164 = vmatprep.subr.bf16.mxu0 %v12449_v18  ;;  %v12484_v18 = vld [vmem:[#allocation157_spill] sm:$0xff] }
 0x499   : > { %5165 = vmatpush2.bf16.msra.mxu0 %v12450_v20  ;;  %v12485_v20 = vld [vmem:[#allocation284_spill] sm:$0xff] }
 0x49a   : > { %5166 = vmatprep.subr.bf16.mxu0 %v12451_v26  ;;  %v12486_v26 = vld [vmem:[#allocation159_spill] sm:$0xff] }
 0x49d   : > { %5167 = vmatpush2.bf16.msra.mxu0 %v12452_v38  ;;  %v12487_v38 = vld [vmem:[#allocation286_spill] sm:$0xff] }
 0x49e   : > { %5168 = vmatprep.subr.bf16.mxu0 %v12453_v40  ;;  %v12488_v40 = vld [vmem:[#allocation161_spill] sm:$0xff] }
 0x4a1   : > { %5169 = vmatpush2.bf16.msra.mxu0 %v12454_v34  ;;  %v10755_v50 = vpop.f32.mrf.mxu0  ;;  %v12489_v34 = vld [vmem:[#allocation288_spill] sm:$0xff] }
 0x4a2   : > { %5170 = vmatprep.subr.bf16.mxu0 %v12455_v57  ;;  %v12490_v57 = vld [vmem:[#allocation163_spill] sm:$0xff] }
 0x4a3   : > { %v10758_v59 = vpop.f32.mrf.mxu0 }
 0x4a5   : > { %5171 = vmatpush2.bf16.msra.mxu0 %v12456_v6  ;;  %v4936_v13 = vpop.f32.mrf.mxu0  ;;  %v12491_v6 = vld [vmem:[#allocation290_spill] sm:$0xff] }
 0x4a6   : > { %5172 = vmatprep.subr.bf16.mxu0 %v12457_v25  ;;  %v12492_v13 = vld [vmem:[#allocation165_spill] sm:$0xff]  ;;  %v12493_v25 = vld [vmem:[#allocation292_spill] sm:$0xff] }
 0x4a7   : > { %v4937_v31 = vpop.f32.mrf.mxu0 }
 0x4a8   : > { %v12494_v31 = vld [vmem:[#allocation167_spill] sm:$0xff] }
 0x4a9   : > { %5173 = vmatpush2.bf16.msra.mxu0 %v12458_v37  ;;  %v12495_v37 = vld [vmem:[#allocation294_spill] sm:$0xff] }
 0x4aa   : > { %v4880_v43 = vpop.f32.mrf.mxu1  ;;  %5174 = vmatprep.subr.bf16.mxu0 %v12459_v53  ;;  %v12497_v53 = vld [vmem:[#allocation296_spill] sm:$0xff] }
 0x4ab   : > { %v10767_v17 = vpack.c.bf16 %v4880_v43, %v4880_v43  ;;  %v12496_v43 = vld [vmem:[#allocation169_spill] sm:$0xff] }
 0x4ac   : > { %v4882_v56 = vpop.f32.mrf.mxu1 }
 0x4ad   : > { %v10764_v4 = vpack.c.bf16 %v4882_v56, %v4882_v56  ;;  %5175 = vmatpush2.bf16.msra.mxu0 %v12460_v55  ;;  %v12498_v56 = vld [vmem:[#allocation171_spill] sm:$0xff]  ;;  %v12499_v55 = vld [vmem:[#allocation298_spill] sm:$0xff] }
 0x4ae   : > { %5226 = vmatprep.subr.bf16.mxu0 %v12461_v23  ;;  %v12500_v23 = vld [vmem:[#allocation173_spill] sm:$0xff] }
 0x4af   : > { %5053 = vmatprep.mubr.bf16.mxu1 %v10764_v4 }
 0x4b0   : > { %5177 = vmatmul.mubr.bf16.vlgmr.msra.gmra.mxu0 %v10658_v28  ;;  %5054 = vmatmul.mubr.bf16.vlgmr.msra.gmra.mxu1 %v10767_v17 }
 0x4b1   : > { %5104 = vmatpush1.bf16.msra.mxu1 %v12462_v36  ;;  %5227 = vmatpush1.bf16.msra.mxu0 %v12463_v46  ;;  %v12501_v36 = vld [vmem:[#allocation300_spill] sm:$0xff]  ;;  %v12502_v46 = vld [vmem:[#allocation175_spill] sm:$0xff] }
 0x4b2   : > { %5258 = vmatprep.mubr.bf16.mxu0 %v10566_v1  ;;  %5135 = vmatprep.mubr.bf16.mxu1 %v10586_v22 }
 0x4b3   : > { %5105 = vmatprep.subr.bf16.mxu1 %v12464_v2  ;;  %5228 = vmatprep.subr.bf16.mxu0 %v12465_v35  ;;  %v12503_v2 = vld [vmem:[#allocation302_spill] sm:$0xff]  ;;  %v12504_v35 = vld [vmem:[#allocation177_spill] sm:$0xff] }
 0x4b5   : > { %5106 = vmatpush1.bf16.msra.mxu1 %v12466_v16  ;;  %5229 = vmatpush1.bf16.msra.mxu0 %v12467_v9  ;;  %v12505_v16 = vld [vmem:[#allocation304_spill] sm:$0xff]  ;;  %v12506_v9 = vld [vmem:[#allocation179_spill] sm:$0xff] }
 0x4b6   : > { %5107 = vmatprep.subr.bf16.mxu1 %v12468_v58  ;;  %5230 = vmatprep.subr.bf16.mxu0 %v12469_v44  ;;  %v12507_v58 = vld [vmem:[#allocation306_spill] sm:$0xff]  ;;  %v12508_v44 = vld [vmem:[#allocation181_spill] sm:$0xff] }
 0x4b9   : > { %5108 = vmatpush1.bf16.msra.mxu1 %v12470_v41  ;;  %5231 = vmatpush1.bf16.msra.mxu0 %v12471_v7  ;;  %v12509_v41 = vld [vmem:[#allocation308_spill] sm:$0xff]  ;;  %v12510_v7 = vld [vmem:[#allocation183_spill] sm:$0xff] }
 0x4ba   : > { %5109 = vmatprep.subr.bf16.mxu1 %v12472_v30  ;;  %5232 = vmatprep.subr.bf16.mxu0 %v12473_v62  ;;  %v12511_v30 = vld [vmem:[#allocation310_spill] sm:$0xff]  ;;  %v12512_v62 = vld [vmem:[#allocation185_spill] sm:$0xff] }
 0x4bd   : > { %5110 = vmatpush1.bf16.msra.mxu1 %v12474_v0  ;;  %5233 = vmatpush1.bf16.msra.mxu0 %v12475_v32  ;;  %v12513_v0 = vld [vmem:[#allocation312_spill] sm:$0xff]  ;;  %v12514_v32 = vld [vmem:[#allocation187_spill] sm:$0xff] }
 0x4be   : > { %5111 = vmatprep.subr.bf16.mxu1 %v12476_v8  ;;  %5234 = vmatprep.subr.bf16.mxu0 %v12477_v21  ;;  %v12515_v8 = vld [vmem:[#allocation314_spill] sm:$0xff]  ;;  %v12516_v21 = vld [vmem:[#allocation189_spill] sm:$0xff] }
 0x4c1   : > { %5112 = vmatpush1.bf16.msra.mxu1 %v12478_v42  ;;  %5235 = vmatpush1.bf16.msra.mxu0 %v12479_v27  ;;  %v12517_v42 = vld [vmem:[#allocation316_spill] sm:$0xff]  ;;  %v10831_v27 = vpop.permute.xlu0 %4895 }
 0x4c2   : > { %5113 = vmatprep.subr.bf16.mxu1 %v12480_v49  ;;  %5236 = vmatprep.subr.bf16.mxu0 %v12481_v60  ;;  %v4933_v49 = vadd.f32 %v10755_v50, %v10831_v27  ;;  %v12518_v60 = vld [vmem:[#allocation191_spill] sm:$0xff]  ;;  %v12524_v50 = vld [vmem:[#allocation197_spill] sm:$0xff] }
 0x4c5   : > { %5114 = vmatpush1.bf16.msra.mxu1 %v12482_v3  ;;  %5237 = vmatpush1.bf16.msra.mxu0 %v12483_v10  ;;  %v12519_v3 = vld [vmem:[#allocation318_spill] sm:$0xff] }
 0x4c6   : > { %5115 = vmatprep.subr.bf16.mxu1 %v12484_v18  ;;  %5238 = vmatprep.subr.bf16.mxu0 %v12485_v20  ;;  %v12520_v18 = vld [vmem:[#allocation193_spill] sm:$0xff]  ;;  %v12521_v20 = vld [vmem:[#allocation320_spill] sm:$0xff] }
 0x4c9   : > { %5116 = vmatpush1.bf16.msra.mxu1 %v12486_v26  ;;  %5239 = vmatpush1.bf16.msra.mxu0 %v12487_v38  ;;  %v4935_v26 = vadd.f32 %v10758_v59, %v10831_v27  ;;  %v12526_v59 = vld [vmem:[#allocation199_spill] sm:$0xff] }
 0x4ca   : > { %5117 = vmatprep.subr.bf16.mxu1 %v12488_v40  ;;  %5240 = vmatprep.subr.bf16.mxu0 %v12489_v34 }
 0x4cd   : > { %5118 = vmatpush1.bf16.msra.mxu1 %v12490_v57  ;;  %5241 = vmatpush1.bf16.msra.mxu0 %v12491_v6  ;;  %v12522_v57 = vld [vmem:[#allocation195_spill] sm:$0xff]  ;;  %v12523_v6 = vld [vmem:[#allocation322_spill] sm:$0xff] }
 0x4ce   : > { %5119 = vmatprep.subr.bf16.mxu1 %v12492_v13  ;;  %5242 = vmatprep.subr.bf16.mxu0 %v12493_v25  ;;  %v12525_v13 = vld [vmem:[#allocation324_spill] sm:$0xff] }
 0x4d1   : > { %5120 = vmatpush2.bf16.msra.mxu1 %v12494_v31  ;;  %5243 = vmatpush2.bf16.msra.mxu0 %v12495_v37 }
 0x4d2   : > { %5121 = vmatprep.subr.bf16.mxu1 %v12496_v43  ;;  %5244 = vmatprep.subr.bf16.mxu0 %v12497_v53  ;;  %v12527_v53 = vld [vmem:[#allocation326_spill] sm:$0xff] }
 0x4d5   : > { %5122 = vmatpush2.bf16.msra.mxu1 %v12498_v56  ;;  %5245 = vmatpush2.bf16.msra.mxu0 %v12499_v55 }
 0x4d6   : > { %5123 = vmatprep.subr.bf16.mxu1 %v12500_v23  ;;  %5246 = vmatprep.subr.bf16.mxu0 %v12501_v36  ;;  %v12528_v23 = vld [vmem:[#allocation201_spill] sm:$0xff]  ;;  %v12529_v36 = vld [vmem:[#allocation328_spill] sm:$0xff] }
 0x4d9   : > { %5124 = vmatpush2.bf16.msra.mxu1 %v12502_v46  ;;  %5247 = vmatpush2.bf16.msra.mxu0 %v12503_v2  ;;  %v12530_v2 = vld [vmem:[#allocation203_spill] sm:$0xff] }
 0x4da   : > { %5125 = vmatprep.subr.bf16.mxu1 %v12504_v35  ;;  %5248 = vmatprep.subr.bf16.mxu0 %v12505_v16  ;;  %v12531_v35 = vld [vmem:[#allocation330_spill] sm:$0xff]  ;;  %v12532_v16 = vld [vmem:[#allocation205_spill] sm:$0xff] }
 0x4dd   : > { %5126 = vmatpush2.bf16.msra.mxu1 %v12506_v9  ;;  %5249 = vmatpush2.bf16.msra.mxu0 %v12507_v58  ;;  %v12533_v58 = vld [vmem:[#allocation332_spill] sm:$0xff] }
 0x4de   : > { %5127 = vmatprep.subr.bf16.mxu1 %v12508_v44  ;;  %5250 = vmatprep.subr.bf16.mxu0 %v12509_v41  ;;  %v12534_v44 = vld [vmem:[#allocation207_spill] sm:$0xff]  ;;  %v12535_v41 = vld [vmem:[#allocation334_spill] sm:$0xff] }
 0x4e1   : > { %5128 = vmatpush2.bf16.msra.mxu1 %v12510_v7  ;;  %5251 = vmatpush2.bf16.msra.mxu0 %v12511_v30  ;;  %v12536_v7 = vld [vmem:[#allocation209_spill] sm:$0xff]  ;;  %v12537_v30 = vld [vmem:[#allocation336_spill] sm:$0xff] }
 0x4e2   : > { %5129 = vmatprep.subr.bf16.mxu1 %v12512_v62  ;;  %5252 = vmatprep.subr.bf16.mxu0 %v12513_v0  ;;  %v12538_v62 = vld [vmem:[#allocation211_spill] sm:$0xff]  ;;  %v12539_v0 = vld [vmem:[#allocation338_spill] sm:$0xff] }
 0x4e5   : > { %5130 = vmatpush2.bf16.msra.mxu1 %v12514_v32  ;;  %5253 = vmatpush2.bf16.msra.mxu0 %v12515_v8  ;;  %v12540_v32 = vld [vmem:[#allocation213_spill] sm:$0xff]  ;;  %v12541_v8 = vld [vmem:[#allocation340_spill] sm:$0xff] }
 0x4e6   : > { %5131 = vmatprep.subr.bf16.mxu1 %v12516_v21  ;;  %5254 = vmatprep.subr.bf16.mxu0 %v12517_v42  ;;  %v12542_v21 = vld [vmem:[#allocation215_spill] sm:$0xff]  ;;  %v12543_v42 = vld [vmem:[#allocation342_spill] sm:$0xff] }
 0x4e9   : > { %5132 = vmatpush2.bf16.msra.mxu1 %v12518_v60  ;;  %5255 = vmatpush2.bf16.msra.mxu0 %v12519_v3  ;;  %v12545_v60 = vld [vmem:[#allocation344_spill] sm:$0xff]  ;;  %v12546_v3 = vld [vmem:[#allocation219_spill] sm:$0xff] }
 0x4ea   : > { %v4973_v10 = vpop.f32.mrf.mxu1  ;;  %5133 = vmatprep.subr.bf16.mxu1 %v12520_v18  ;;  %5256 = vmatprep.subr.bf16.mxu0 %v12521_v20  ;;  %v12548_v18 = vld [vmem:[#allocation221_spill] sm:$0xff]  ;;  %v12549_v20 = vld [vmem:[#allocation348_spill] sm:$0xff] }
 0x4eb   : > { %v4974_v38 = vadd.f32 %v4973_v10, %v4933_v49  ;;  %v12544_v49 = vld [vmem:[#allocation217_spill] sm:$0xff]  ;;  %v12547_v10 = vld [vmem:[#allocation346_spill] sm:$0xff] }
 0x4ec   : > { %v4975_v40 = vpop.f32.mrf.mxu1 }
 0x4ed   : > { %v4976_v34 = vadd.f32 %v4975_v40, %v4935_v26  ;;  %5134 = vmatpush2.bf16.msra.mxu1 %v12522_v57  ;;  %5257 = vmatpush2.bf16.msra.mxu0 %v12523_v6  ;;  %v12550_v26 = vld [vmem:[#allocation223_spill] sm:$0xff]  ;;  %v12552_v40 = vld [vmem:[#allocation225_spill] sm:$0xff]  ;;  %v12555_v6 = vld [vmem:[#allocation354_spill] sm:$0xff] }
 0x4ee   : > { %5185 = vmatprep.subr.bf16.mxu1 %v12524_v50  ;;  %5308 = vmatprep.subr.bf16.mxu0 %v12525_v13  ;;  %v4977_v25 = vpop.f32.mrf.mxu1  ;;  %v12554_v57 = vld [vmem:[#allocation227_spill] sm:$0xff]  ;;  %v12556_v50 = vld [vmem:[#allocation229_spill] sm:$0xff]  ;;  %v12557_v13 = vld [vmem:[#allocation356_spill] sm:$0xff] }
 0x4ef   : > { %v12558_v25 = vld [vmem:[#allocation231_spill] sm:$0xff] }
 0x4f0   : > { %5136 = vmatmul.mubr.bf16.vlgmr.msra.gmra.mxu1 %v10652_v5  ;;  %5259 = vmatmul.mubr.bf16.vlgmr.msra.gmra.mxu0 %v10564_v45  ;;  %v5014_v31 = vpop.f32.mrf.mxu0  ;;  %v4978_v37 = vpop.f32.mrf.mxu1 }
 0x4f1   : > { %v10847_v43 = vadd.f32 %v5014_v31, %v4974_v38  ;;  %5186 = vmatpush1.bf16.msra.mxu1 %v12526_v59  ;;  %5217 = vmatprep.mubr.bf16.mxu1 %v10764_v4  ;;  %v12551_v38 = vld [vmem:[#allocation350_spill] sm:$0xff]  ;;  %v12560_v37 = vld [vmem:[#allocation233_spill] sm:$0xff]  ;;  %v12561_v59 = vld [vmem:[#allocation360_spill] sm:$0xff] }
 0x4f2   : > { %5309 = vmatpush1.bf16.msra.mxu0 %v12527_v53  ;;  %5340 = vmatprep.mubr.bf16.mxu0 %v10661_v48  ;;  %v5016_v56 = vpop.f32.mrf.mxu0  ;;  %v12559_v31 = vld [vmem:[#allocation358_spill] sm:$0xff]  ;;  %v12562_v53 = vld [vmem:[#allocation235_spill] sm:$0xff] }
 0x4f3   : > { %v10853_v55 = vadd.f32 %v5016_v56, %v4976_v34  ;;  %5187 = vmatprep.subr.bf16.mxu1 %v12528_v23  ;;  %5310 = vmatprep.subr.bf16.mxu0 %v12529_v36  ;;  %v12553_v34 = vld [vmem:[#allocation352_spill] sm:$0xff]  ;;  %v12563_v56 = vld [vmem:[#allocation362_spill] sm:$0xff]  ;;  %v12564_v23 = vld [vmem:[#allocation237_spill] sm:$0xff] }
 0x4f4   : > { %v5018_v46 = vpop.f32.mrf.mxu0  ;;  %v12565_v36 = vld [vmem:[#allocation364_spill] sm:$0xff] }
 0x4f5   : > { %5188 = vmatpush1.bf16.msra.mxu1 %v12530_v2  ;;  %v12566_v46 = vld [vmem:[#allocation239_spill] sm:$0xff]  ;;  %v12567_v2 = vld [vmem:[#allocation366_spill] sm:$0xff] }
 0x4f6   : > { %5311 = vmatpush1.bf16.msra.mxu0 %v12531_v35  ;;  %5189 = vmatprep.subr.bf16.mxu1 %v12532_v16  ;;  %v5019_v9 = vpop.f32.mrf.mxu0  ;;  %v12568_v35 = vld [vmem:[#allocation241_spill] sm:$0xff]  ;;  %v12569_v16 = vld [vmem:[#allocation368_spill] sm:$0xff] }
 0x4f7   : > { %5312 = vmatprep.subr.bf16.mxu0 %v12533_v58  ;;  %v12570_v9 = vld [vmem:[#allocation243_spill] sm:$0xff]  ;;  %v12571_v58 = vld [vmem:[#allocation370_spill] sm:$0xff] }
 0x4f9   : > { %5190 = vmatpush1.bf16.msra.mxu1 %v12534_v44  ;;  %v12572_v44 = vld [vmem:[#allocation245_spill] sm:$0xff] }
 0x4fa   : > { %5313 = vmatpush1.bf16.msra.mxu0 %v12535_v41  ;;  %5191 = vmatprep.subr.bf16.mxu1 %v12536_v7  ;;  %v12573_v41 = vld [vmem:[#allocation372_spill] sm:$0xff]  ;;  %v12574_v7 = vld [vmem:[#allocation247_spill] sm:$0xff] }
 0x4fb   : > { %5314 = vmatprep.subr.bf16.mxu0 %v12537_v30  ;;  %v12575_v30 = vld [vmem:[#allocation374_spill] sm:$0xff] }
 0x4fd   : > { %5192 = vmatpush1.bf16.msra.mxu1 %v12538_v62  ;;  %v12576_v62 = vld [vmem:[#allocation249_spill] sm:$0xff] }
 0x4fe   : > { %5315 = vmatpush1.bf16.msra.mxu0 %v12539_v0  ;;  %5193 = vmatprep.subr.bf16.mxu1 %v12540_v32  ;;  %v12577_v0 = vld [vmem:[#allocation376_spill] sm:$0xff]  ;;  %v12578_v32 = vld [vmem:[#allocation251_spill] sm:$0xff] }
 0x4ff   : > { %5316 = vmatprep.subr.bf16.mxu0 %v12541_v8  ;;  %v12579_v8 = vld [vmem:[#allocation378_spill] sm:$0xff] }
 0x501   : > { %5194 = vmatpush1.bf16.msra.mxu1 %v12542_v21  ;;  %v12580_v21 = vld [vmem:[#allocation253_spill] sm:$0xff] }
 0x502   : > { %5317 = vmatpush1.bf16.msra.mxu0 %v12543_v42  ;;  %5195 = vmatprep.subr.bf16.mxu1 %v12544_v49  ;;  %v12581_v42 = vld [vmem:[#allocation380_spill] sm:$0xff]  ;;  %v12582_v49 = vld [vmem:[#allocation255_spill] sm:$0xff] }
 0x503   : > { %5318 = vmatprep.subr.bf16.mxu0 %v12545_v60  ;;  %v12583_v60 = vld [vmem:[#allocation382_spill] sm:$0xff] }
 0x505   : > { %5196 = vmatpush1.bf16.msra.mxu1 %v12546_v3  ;;  %v12584_v3 = vld [vmem:[#allocation257_spill] sm:$0xff] }
 0x506   : > { %5319 = vmatpush1.bf16.msra.mxu0 %v12547_v10  ;;  %5197 = vmatprep.subr.bf16.mxu1 %v12548_v18  ;;  %v12585_v10 = vld [vmem:[#allocation384_spill] sm:$0xff]  ;;  %v12586_v18 = vld [vmem:[#allocation259_spill] sm:$0xff] }
 0x507   : > { %5320 = vmatprep.subr.bf16.mxu0 %v12549_v20  ;;  %v12587_v20 = vld [vmem:[#allocation386_spill] sm:$0xff] }
 0x509   : > { %5198 = vmatpush1.bf16.msra.mxu1 %v12550_v26  ;;  %v12588_v26 = vld [vmem:[#allocation261_spill] sm:$0xff] }
 0x50a   : > { %5321 = vmatpush1.bf16.msra.mxu0 %v12551_v38  ;;  %5199 = vmatprep.subr.bf16.mxu1 %v12552_v40  ;;  %v12589_v38 = vld [vmem:[#allocation388_spill] sm:$0xff] }
 0x50b   : > { %5322 = vmatprep.subr.bf16.mxu0 %v12553_v34  ;;  %v12590_v34 = vld [vmem:[#allocation263_spill] sm:$0xff] }
 0x50d   : > { %5200 = vmatpush1.bf16.msra.mxu1 %v12554_v57  ;;  %v12591_v57 = vld [vmem:[#allocation390_spill] sm:$0xff] }
 0x50e   : > { %5323 = vmatpush1.bf16.msra.mxu0 %v12555_v6  ;;  %5201 = vmatprep.subr.bf16.mxu1 %v12556_v50  ;;  %v12592_v50 = vld [vmem:[#allocation265_spill] sm:$0xff] }
 0x50f   : > { %5324 = vmatprep.subr.bf16.mxu0 %v12557_v13 }
 0x511   : > { %5202 = vmatpush2.bf16.msra.mxu1 %v12558_v25  ;;  %v12593_v25 = vld [vmem:[#allocation392_spill] sm:$0xff] }
 0x512   : > { %5325 = vmatpush2.bf16.msra.mxu0 %v12559_v31  ;;  %5203 = vmatprep.subr.bf16.mxu1 %v12560_v37  ;;  %v12594_v31 = vld [vmem:[#allocation267_spill] sm:$0xff] }
 0x513   : > { %5326 = vmatprep.subr.bf16.mxu0 %v12561_v59  ;;  %v12595_v59 = vld [vmem:[#allocation269_spill] sm:$0xff] }
 0x515   : > { %5204 = vmatpush2.bf16.msra.mxu1 %v12562_v53  ;;  %v12596_v53 = vld [vmem:[#allocation395_spill] sm:$0xff] }
 0x516   : > { %5327 = vmatpush2.bf16.msra.mxu0 %v12563_v56  ;;  %5205 = vmatprep.subr.bf16.mxu1 %v12564_v23  ;;  %v12597_v56 = vld [vmem:[#allocation271_spill] sm:$0xff]  ;;  %v12598_v23 = vld [vmem:[#allocation397_spill] sm:$0xff] }
 0x517   : > { %5328 = vmatprep.subr.bf16.mxu0 %v12565_v36  ;;  %v12599_v36 = vld [vmem:[#allocation273_spill] sm:$0xff] }
 0x519   : > { %5206 = vmatpush2.bf16.msra.mxu1 %v12566_v46  ;;  %v12601_v46 = vld [vmem:[#allocation275_spill] sm:$0xff] }
 0x51a   : > { %5329 = vmatpush2.bf16.msra.mxu0 %v12567_v2  ;;  %5207 = vmatprep.subr.bf16.mxu1 %v12568_v35  ;;  %v12602_v2 = vld [vmem:[#allocation401_spill] sm:$0xff] }
 0x51b   : > { %5330 = vmatprep.subr.bf16.mxu0 %v12569_v16  ;;  %v12603_v35 = vld [vmem:[#allocation277_spill] sm:$0xff]  ;;  %v12605_v16 = vld [vmem:[#allocation279_spill] sm:$0xff] }
 0x51d   : > { %5208 = vmatpush2.bf16.msra.mxu1 %v12570_v9  ;;  %v12606_v9 = vld [vmem:[#allocation405_spill] sm:$0xff] }
 0x51e   : > { %5331 = vmatpush2.bf16.msra.mxu0 %v12571_v58  ;;  %5209 = vmatprep.subr.bf16.mxu1 %v12572_v44  ;;  %v12607_v58 = vld [vmem:[#allocation281_spill] sm:$0xff]  ;;  %v12608_v44 = vld [vmem:[#allocation407_spill] sm:$0xff] }
 0x51f   : > { %5332 = vmatprep.subr.bf16.mxu0 %v12573_v41  ;;  %v12609_v41 = vld [vmem:[#allocation283_spill] sm:$0xff] }
 0x521   : > { %5210 = vmatpush2.bf16.msra.mxu1 %v12574_v7  ;;  %v12610_v7 = vld [vmem:[#allocation409_spill] sm:$0xff] }
 0x522   : > { %5333 = vmatpush2.bf16.msra.mxu0 %v12575_v30  ;;  %5211 = vmatprep.subr.bf16.mxu1 %v12576_v62  ;;  %v12611_v30 = vld [vmem:[#allocation285_spill] sm:$0xff]  ;;  %v12612_v62 = vld [vmem:[#allocation411_spill] sm:$0xff] }
 0x523   : > { %5334 = vmatprep.subr.bf16.mxu0 %v12577_v0  ;;  %v12613_v0 = vld [vmem:[#allocation287_spill] sm:$0xff] }
 0x525   : > { %5212 = vmatpush2.bf16.msra.mxu1 %v12578_v32  ;;  %v12614_v32 = vld [vmem:[#allocation413_spill] sm:$0xff] }
 0x526   : > { %5335 = vmatpush2.bf16.msra.mxu0 %v12579_v8  ;;  %5213 = vmatprep.subr.bf16.mxu1 %v12580_v21  ;;  %v12615_v8 = vld [vmem:[#allocation289_spill] sm:$0xff]  ;;  %v12616_v21 = vld [vmem:[#allocation415_spill] sm:$0xff] }
 0x527   : > { %5336 = vmatprep.subr.bf16.mxu0 %v12581_v42  ;;  %v12617_v42 = vld [vmem:[#allocation291_spill] sm:$0xff] }
 0x529   : > { %5214 = vmatpush2.bf16.msra.mxu1 %v12582_v49  ;;  %v12618_v49 = vld [vmem:[#allocation417_spill] sm:$0xff] }
 0x52a   : > { %5337 = vmatpush2.bf16.msra.mxu0 %v12583_v60  ;;  %5215 = vmatprep.subr.bf16.mxu1 %v12584_v3  ;;  %v12619_v60 = vld [vmem:[#allocation293_spill] sm:$0xff]  ;;  %v12620_v3 = vld [vmem:[#allocation419_spill] sm:$0xff] }
 0x52b   : > { %5338 = vmatprep.subr.bf16.mxu0 %v12585_v10  ;;  %v12621_v10 = vld [vmem:[#allocation295_spill] sm:$0xff] }
 0x52d   : > { %5216 = vmatpush2.bf16.msra.mxu1 %v12586_v18  ;;  %v12622_v18 = vld [vmem:[#allocation421_spill] sm:$0xff] }
 0x52e   : > { %5339 = vmatpush2.bf16.msra.mxu0 %v12587_v20  ;;  %5267 = vmatprep.subr.bf16.mxu1 %v12588_v26  ;;  %v12623_v20 = vld [vmem:[#allocation297_spill] sm:$0xff]  ;;  %v12624_v26 = vld [vmem:[#allocation423_spill] sm:$0xff] }
 0x52f   : > { %5390 = vmatprep.subr.bf16.mxu0 %v12589_v38  ;;  %v12625_v38 = vld [vmem:[#allocation299_spill] sm:$0xff] }
 0x530   : > { %v10917_v40 = vpop.f32.mrf.mxu0  ;;  %5218 = vmatmul.mubr.bf16.vlgmr.msra.gmra.mxu1 %v10767_v17 }
 0x531   : > { %5341 = vmatmul.mubr.bf16.vlgmr.msra.gmra.mxu0 %v10658_v28  ;;  %5268 = vmatpush1.bf16.msra.mxu1 %v12590_v34  ;;  %v12626_v34 = vld [vmem:[#allocation425_spill] sm:$0xff] }
 0x532   : > { %5299 = vmatprep.mubr.bf16.mxu1 %v10586_v22  ;;  %5391 = vmatpush1.bf16.msra.mxu0 %v12591_v57  ;;  %v10924_v6 = vpop.f32.mrf.mxu0  ;;  %v12627_v57 = vld [vmem:[#allocation301_spill] sm:$0xff] }
 0x533   : > { %5422 = vmatprep.mubr.bf16.mxu0 %v10566_v1  ;;  %5269 = vmatprep.subr.bf16.mxu1 %v12592_v50  ;;  %v12600_v1 = vld [vmem:[#allocation399_spill] sm:$0xff] }
 0x534   : > { %v5100_v13 = vpop.f32.mrf.mxu0  ;;  %5392 = vmatprep.subr.bf16.mxu0 %v12593_v25  ;;  %v12628_v50 = vld [vmem:[#allocation427_spill] sm:$0xff]  ;;  %v12630_v25 = vld [vmem:[#allocation429_spill] sm:$0xff] }
 0x535   : > { %5270 = vmatpush1.bf16.msra.mxu1 %v12594_v31  ;;  %v12629_v13 = vld [vmem:[#allocation303_spill] sm:$0xff]  ;;  %v12631_v31 = vld [vmem:[#allocation305_spill] sm:$0xff] }
 0x536   : > { %5393 = vmatpush1.bf16.msra.mxu0 %v9985_v12  ;;  %v5101_v37 = vpop.f32.mrf.mxu0  ;;  %5271 = vmatprep.subr.bf16.mxu1 %v12595_v59  ;;  %v12604_v12 = vld [vmem:[#allocation403_spill] sm:$0xff] }
 0x537   : > { %5394 = vmatprep.subr.bf16.mxu0 %v12596_v53  ;;  %v12632_v37 = vld [vmem:[#allocation431_spill] sm:$0xff]  ;;  %v12634_v53 = vld [vmem:[#allocation433_spill] sm:$0xff] }
 0x538   : > { %v12633_v59 = vld [vmem:[#allocation307_spill] sm:$0xff] }
 0x539   : > { %5272 = vmatpush1.bf16.msra.mxu1 %v12597_v56  ;;  %v12635_v56 = vld [vmem:[#allocation309_spill] sm:$0xff] }
 0x53a   : > { %5395 = vmatpush1.bf16.msra.mxu0 %v12598_v23  ;;  %5273 = vmatprep.subr.bf16.mxu1 %v12599_v36  ;;  %v12636_v23 = vld [vmem:[#allocation435_spill] sm:$0xff] }
 0x53b   : > { %5396 = vmatprep.subr.bf16.mxu0 %v12600_v1  ;;  %v12637_v36 = vld [vmem:[#allocation311_spill] sm:$0xff]  ;;  %v12638_v1 = vld [vmem:[#allocation437_spill] sm:$0xff] }
 0x53d   : > { %5274 = vmatpush1.bf16.msra.mxu1 %v12601_v46  ;;  %v12639_v46 = vld [vmem:[#allocation313_spill] sm:$0xff] }
 0x53e   : > { %5397 = vmatpush1.bf16.msra.mxu0 %v12602_v2  ;;  %5275 = vmatprep.subr.bf16.mxu1 %v12603_v35  ;;  %v12640_v2 = vld [vmem:[#allocation439_spill] sm:$0xff] }
 0x53f   : > { %5398 = vmatprep.subr.bf16.mxu0 %v12604_v12  ;;  %v12641_v35 = vld [vmem:[#allocation315_spill] sm:$0xff]  ;;  %v12642_v12 = vld [vmem:[#allocation441_spill] sm:$0xff] }
 0x541   : > { %5276 = vmatpush1.bf16.msra.mxu1 %v12605_v16  ;;  %v12643_v16 = vld [vmem:[#allocation317_spill] sm:$0xff] }
 0x542   : > { %5399 = vmatpush1.bf16.msra.mxu0 %v12606_v9  ;;  %5277 = vmatprep.subr.bf16.mxu1 %v12607_v58  ;;  %v12644_v9 = vld [vmem:[#allocation443_spill] sm:$0xff] }
 0x543   : > { %5400 = vmatprep.subr.bf16.mxu0 %v12608_v44  ;;  %v12645_v58 = vld [vmem:[#allocation319_spill] sm:$0xff]  ;;  %v12646_v44 = vld [vmem:[#allocation445_spill] sm:$0xff] }
 0x545   : > { %5278 = vmatpush1.bf16.msra.mxu1 %v12609_v41  ;;  %v12647_v41 = vld [vmem:[#allocation321_spill] sm:$0xff] }
 0x546   : > { %5401 = vmatpush1.bf16.msra.mxu0 %v12610_v7  ;;  %5279 = vmatprep.subr.bf16.mxu1 %v12611_v30  ;;  %v12648_v7 = vld [vmem:[#allocation447_spill] sm:$0xff] }
 0x547   : > { %5402 = vmatprep.subr.bf16.mxu0 %v12612_v62  ;;  %v12649_v30 = vld [vmem:[#allocation323_spill] sm:$0xff]  ;;  %v12650_v62 = vld [vmem:[#allocation449_spill] sm:$0xff] }
 0x549   : > { %5280 = vmatpush1.bf16.msra.mxu1 %v12613_v0  ;;  %v12651_v0 = vld [vmem:[#allocation325_spill] sm:$0xff] }
 0x54a   : > { %5403 = vmatpush1.bf16.msra.mxu0 %v12614_v32  ;;  %5281 = vmatprep.subr.bf16.mxu1 %v12615_v8  ;;  %v12652_v32 = vld [vmem:[#allocation451_spill] sm:$0xff] }
 0x54b   : > { %5404 = vmatprep.subr.bf16.mxu0 %v12616_v21 }
 0x54d   : > { %5282 = vmatpush1.bf16.msra.mxu1 %v12617_v42 }
 0x54e   : > { %5405 = vmatpush1.bf16.msra.mxu0 %v12618_v49  ;;  %5283 = vmatprep.subr.bf16.mxu1 %v12619_v60  ;;  %v12653_v49 = vld [vmem:[#allocation327_spill] sm:$0xff]  ;;  %v12654_v60 = vld [vmem:[#allocation453_spill] sm:$0xff] }
 0x54f   : > { %5406 = vmatprep.subr.bf16.mxu0 %v12620_v3 }
 0x551   : > { %5284 = vmatpush2.bf16.msra.mxu1 %v12621_v10 }
 0x552   : > { %5407 = vmatpush2.bf16.msra.mxu0 %v12622_v18  ;;  %5285 = vmatprep.subr.bf16.mxu1 %v12623_v20  ;;  %v12655_v20 = vld [vmem:[#allocation329_spill] sm:$0xff] }
 0x553   : > { %5408 = vmatprep.subr.bf16.mxu0 %v12624_v26 }
 0x555   : > { %5286 = vmatpush2.bf16.msra.mxu1 %v12625_v38 }
 0x556   : > { %5409 = vmatpush2.bf16.msra.mxu0 %v12626_v34  ;;  %5287 = vmatprep.subr.bf16.mxu1 %v12627_v57  ;;  %v12657_v57 = vld [vmem:[#allocation333_spill] sm:$0xff] }
 0x557   : > { %5410 = vmatprep.subr.bf16.mxu0 %v12628_v50  ;;  %v12661_v50 = vld [vmem:[#allocation341_spill] sm:$0xff] }
 0x559   : > { %5288 = vmatpush2.bf16.msra.mxu1 %v12629_v13 }
 0x55a   : > { %5411 = vmatpush2.bf16.msra.mxu0 %v12630_v25  ;;  %5289 = vmatprep.subr.bf16.mxu1 %v12631_v31  ;;  %v12663_v25 = vld [vmem:[#allocation343_spill] sm:$0xff] }
 0x55b   : > { %5412 = vmatprep.subr.bf16.mxu0 %v12632_v37  ;;  %v12664_v31 = vld [vmem:[#allocation463_spill] sm:$0xff]  ;;  %v12665_v37 = vld [vmem:[#allocation345_spill] sm:$0xff] }
 0x55d   : > { %5290 = vmatpush2.bf16.msra.mxu1 %v12633_v59 }
 0x55e   : > { %5413 = vmatpush2.bf16.msra.mxu0 %v12634_v53  ;;  %5291 = vmatprep.subr.bf16.mxu1 %v12635_v56  ;;  %v12668_v53 = vld [vmem:[#allocation467_spill] sm:$0xff]  ;;  %v12670_v56 = vld [vmem:[#allocation469_spill] sm:$0xff] }
 0x55f   : > { %5414 = vmatprep.subr.bf16.mxu0 %v12636_v23  ;;  %v12671_v23 = vld [vmem:[#allocation351_spill] sm:$0xff] }
 0x561   : > { %5292 = vmatpush2.bf16.msra.mxu1 %v12637_v36  ;;  %v12672_v36 = vld [vmem:[#allocation473_spill] sm:$0xff] }
 0x562   : > { %5415 = vmatpush2.bf16.msra.mxu0 %v12638_v1  ;;  %5293 = vmatprep.subr.bf16.mxu1 %v12639_v46  ;;  %v12673_v1 = vld [vmem:[#allocation353_spill] sm:$0xff]  ;;  %v12674_v46 = vld [vmem:[#allocation475_spill] sm:$0xff] }
 0x563   : > { %5416 = vmatprep.subr.bf16.mxu0 %v12640_v2  ;;  %v12675_v2 = vld [vmem:[#allocation355_spill] sm:$0xff] }
 0x565   : > { %5294 = vmatpush2.bf16.msra.mxu1 %v12641_v35  ;;  %v12676_v35 = vld [vmem:[#allocation477_spill] sm:$0xff] }
 0x566   : > { %5417 = vmatpush2.bf16.msra.mxu0 %v12642_v12  ;;  %5295 = vmatprep.subr.bf16.mxu1 %v12643_v16  ;;  %v12677_v12 = vld [vmem:[#allocation357_spill] sm:$0xff]  ;;  %v12678_v16 = vld [vmem:[#allocation479_spill] sm:$0xff] }
 0x567   : > { %5418 = vmatprep.subr.bf16.mxu0 %v12644_v9  ;;  %v12679_v9 = vld [vmem:[#allocation359_spill] sm:$0xff] }
 0x569   : > { %5296 = vmatpush2.bf16.msra.mxu1 %v12645_v58  ;;  %v12680_v58 = vld [vmem:[#allocation481_spill] sm:$0xff] }
 0x56a   : > { %5419 = vmatpush2.bf16.msra.mxu0 %v12646_v44  ;;  %5297 = vmatprep.subr.bf16.mxu1 %v12647_v41  ;;  %v12681_v44 = vld [vmem:[#allocation361_spill] sm:$0xff]  ;;  %v12682_v41 = vld [vmem:[#allocation483_spill] sm:$0xff] }
 0x56b   : > { %5420 = vmatprep.subr.bf16.mxu0 %v12648_v7  ;;  %v12683_v7 = vld [vmem:[#allocation363_spill] sm:$0xff] }
 0x56d   : > { %5298 = vmatpush2.bf16.msra.mxu1 %v12649_v30  ;;  %v12684_v30 = vld [vmem:[#allocation485_spill] sm:$0xff] }
 0x56e   : > { %5421 = vmatpush2.bf16.msra.mxu0 %v12650_v62  ;;  %5349 = vmatprep.subr.bf16.mxu1 %v12651_v0  ;;  %v12685_v62 = vld [vmem:[#allocation365_spill] sm:$0xff]  ;;  %v12686_v0 = vld [vmem:[#allocation487_spill] sm:$0xff] }
 0x56f   : > { %5472 = vmatprep.subr.bf16.mxu0 %v12652_v32  ;;  %v12687_v32 = vld [vmem:[#allocation367_spill] sm:$0xff] }
 0x570   : > { %v10989_v8 = vpop.f32.mrf.mxu0  ;;  %5300 = vmatmul.mubr.bf16.vlgmr.msra.gmra.mxu1 %v10652_v5  ;;  %v5055_v21 = vpop.f32.mrf.mxu1 }
 0x571   : > { %5423 = vmatmul.mubr.bf16.vlgmr.msra.gmra.mxu0 %v10564_v45  ;;  %v5056_v42 = vadd.f32 %v5055_v21, %v10847_v43  ;;  %5350 = vmatpush1.bf16.msra.mxu1 %v12653_v49  ;;  %v12656_v43 = vld [vmem:[#allocation331_spill] sm:$0xff]  ;;  %v12688_v21 = vld [vmem:[#allocation489_spill] sm:$0xff] }
 0x572   : > { %5381 = vmatprep.mubr.bf16.mxu1 %v10764_v4  ;;  %5473 = vmatpush1.bf16.msra.mxu0 %v12654_v60  ;;  %v10997_v3 = vpop.f32.mrf.mxu0  ;;  %v5057_v10 = vpop.f32.mrf.mxu1  ;;  %v12690_v49 = vld [vmem:[#allocation491_spill] sm:$0xff] }
 0x573   : > { %5504 = vmatprep.mubr.bf16.mxu0 %v10661_v48  ;;  %v5058_v18 = vadd.f32 %v5057_v10, %v10853_v55  ;;  %5351 = vmatprep.subr.bf16.mxu1 %v12655_v20  ;;  %7452 = vtanh.f32 %v5056_v42  ;;  %v12658_v48 = vld [vmem:[#allocation335_spill] sm:$0xff]  ;;  %v12659_v55 = vld [vmem:[#allocation337_spill] sm:$0xff] }
 0x574   : > { %v5182_v26 = vpop.f32.mrf.mxu0  ;;  %5474 = vmatprep.subr.bf16.mxu0 %v10238_v19  ;;  %v5059_v45 = vpop.f32.mrf.mxu1  ;;  %v12660_v19 = vld [vmem:[#allocation339_spill] sm:$0xff]  ;;  %v12689_v42 = vld [vmem:[#allocation369_spill] sm:$0xff] }
 0x575   : > { %7454 = vtanh.f32 %v5058_v18  ;;  %5352 = vmatpush1.bf16.msra.mxu1 %v12656_v43  ;;  %v12691_v60 = vld [vmem:[#allocation371_spill] sm:$0xff]  ;;  %v12692_v10 = vld [vmem:[#allocation493_spill] sm:$0xff] }
 0x576   : > { %5475 = vmatpush1.bf16.msra.mxu0 %v10251_v52  ;;  %v5183_v38 = vpop.f32.mrf.mxu0  ;;  %v5060_v34 = vpop.f32.mrf.mxu1  ;;  %5353 = vmatprep.subr.bf16.mxu1 %v12657_v57  ;;  %v12662_v52 = vld [vmem:[#allocation461_spill] sm:$0xff]  ;;  %v12694_v20 = vld [vmem:[#allocation495_spill] sm:$0xff]  ;;  %v783_v57 = vld [vmem:[#allocation10] sm:$0xff] }
 0x577   : > { %5476 = vmatprep.subr.bf16.mxu0 %v10257_v63  ;;  %v12693_v18 = vld [vmem:[#allocation373_spill] sm:$0xff]  ;;  %v12695_v26 = vld [vmem:[#allocation375_spill] sm:$0xff] }
 0x578   : > { %v12696_v45 = vld [vmem:[#allocation497_spill] sm:$0xff]  ;;  %v12698_v38 = vld [vmem:[#allocation379_spill] sm:$0xff] }
 0x579   : > { %5354 = vmatpush1.bf16.msra.mxu1 %v12658_v48  ;;  %v12697_v43 = vld [vmem:[#allocation377_spill] sm:$0xff] }
 0x57a   : > { %5477 = vmatpush1.bf16.msra.mxu0 %v10270_v39  ;;  %5355 = vmatprep.subr.bf16.mxu1 %v12659_v55  ;;  %v12666_v39 = vld [vmem:[#allocation465_spill] sm:$0xff] }
 0x57b   : > { %5478 = vmatprep.subr.bf16.mxu0 %v10276_v47  ;;  %v12667_v47 = vld [vmem:[#allocation347_spill] sm:$0xff]  ;;  %v12699_v34 = vld [vmem:[#allocation381_spill] sm:$0xff] }
 0x57c   : > { %v12700_v48 = vld [vmem:[#allocation501_spill] sm:$0xff] }
 0x57d   : > { %5356 = vmatpush1.bf16.msra.mxu1 %v12660_v19  ;;  %v12701_v55 = vld [vmem:[#allocation509_spill] sm:$0xff]  ;;  %v12702_v19 = vld [vmem:[#allocation510_spill] sm:$0xff] }
 0x57e   : > { %5479 = vmatpush1.bf16.msra.mxu0 %v10286_v15  ;;  %5357 = vmatprep.subr.bf16.mxu1 %v12661_v50  ;;  %v12669_v15 = vld [vmem:[#allocation349_spill] sm:$0xff]  ;;  %v5562_v50 = vcombine.low %v12702_v19, %v12701_v55  ;;  %v5620_v19 = vld [vmem:[#allocation11 + $0xb0] sm:$0xff] }
 0x57f   : > { %5480 = vmatprep.subr.bf16.mxu0 %v12662_v52  ;;  %v779_v52 = vld [vmem:[#allocation8] sm:$0xff]  ;;  %v5605_v55 = vld [vmem:[#allocation11 + $0x38] sm:$0xff] }
 0x580   : > { %v7453_v13 = vpop.eup %7452 }
 0x581   : > { %5358 = vmatpush1.bf16.msra.mxu1 %v12663_v25 }
 0x582   : > { %v7455_v63 = vpop.eup %7454  ;;  %5481 = vmatpush1.bf16.msra.mxu0 %v12664_v31  ;;  %5359 = vmatprep.subr.bf16.mxu1 %v12665_v37  ;;  %v12705_v31 = vld [vmem:[#allocation385_spill] sm:$0xff]  ;;  %v5570_v37 = vmul.f32 %v5562_v50, %v779_v52  ;;  %v12718_v50 = vld [vmem:[#allocation406_spill] sm:$0xff]  ;;  %v5604_v52 = vld [vmem:[#allocation11 + $0x30] sm:$0xff] }
 0x583   : > { %5482 = vmatprep.subr.bf16.mxu0 %v12666_v39  ;;  %v5582_v59 = vcombine.low %v7453_v13, %v7455_v63  ;;  %v12703_v13 = vld [vmem:[#allocation383_spill] sm:$0xff] }
 0x584   : > { %v12704_v63 = vld [vmem:[#allocation503_spill] sm:$0xff] }
 0x585   : > { %5360 = vmatpush1.bf16.msra.mxu1 %v12667_v47  ;;  %v5590_v25 = vmul.f32 %v5582_v59, %v783_v57  ;;  %v12707_v39 = vld [vmem:[#allocation387_spill] sm:$0xff]  ;;  %v5613_v59 = vld [vmem:[#allocation11 + $0x78] sm:$0xff]  ;;  %v12717_v57 = vld [vmem:[#allocation404_spill] sm:$0xff] }
 0x586   : > { %5483 = vmatpush1.bf16.msra.mxu0 %v12668_v53  ;;  %5361 = vmatprep.subr.bf16.mxu1 %v12669_v15  ;;  %v12708_v53 = vld [vmem:[#allocation507_spill] sm:$0xff]  ;;  %v12709_v15 = vld [vmem:[#allocation389_spill] sm:$0xff] }
 0x587   : > { %5484 = vmatprep.subr.bf16.mxu0 %v12670_v56  ;;  %v11062_v47 = vadd.f32 %v5590_v25, %v5570_v37  ;;  %v5097_v56 = vadd.f32 %v10917_v40, %v10831_v27  ;;  %v5619_v25 = vld [vmem:[#allocation11 + $0xa8] sm:$0xff]  ;;  %v5602_v37 = vld [vmem:[#allocation11 + $0x20] sm:$0xff] }
 0x589   : > { %5362 = vmatpush1.bf16.msra.mxu1 %v12671_v23  ;;  %v5730_v40 = vcombine.high %v11062_v47, %v11062_v47 }
 0x58a   : > { %5485 = vmatpush1.bf16.msra.mxu0 %v12672_v36  ;;  %5363 = vmatprep.subr.bf16.mxu1 %v12673_v1  ;;  %v5628_v1 = vld [vmem:[#allocation11 + $0xf0] sm:$0xff] }
 0x58b   : > { %5486 = vmatprep.subr.bf16.mxu0 %v12674_v46  ;;  %v5099_v46 = vadd.f32 %v10924_v6, %v10831_v27  ;;  %v5611_v6 = vld [vmem:[#allocation11 + $0x68] sm:$0xff] }
 0x58d   : > { %5364 = vmatpush1.bf16.msra.mxu1 %v12675_v2 }
 0x58e   : > { %5487 = vmatpush1.bf16.msra.mxu0 %v12676_v35  ;;  %5365 = vmatprep.subr.bf16.mxu1 %v12677_v12  ;;  %v12710_v35 = vld [vmem:[#allocation391_spill] sm:$0xff]  ;;  %v5612_v12 = vld [vmem:[#allocation11 + $0x70] sm:$0xff] }
 0x58f   : > { %5488 = vmatprep.subr.bf16.mxu0 %v12678_v16 }
 0x591   : > { %5366 = vmatpush2.bf16.msra.mxu1 %v12679_v9 }
 0x592   : > { %5489 = vmatpush2.bf16.msra.mxu0 %v12680_v58  ;;  %5367 = vmatprep.subr.bf16.mxu1 %v12681_v44  ;;  %v5627_v58 = vld [vmem:[#allocation11 + $0xe8] sm:$0xff] }
 0x593   : > { %5490 = vmatprep.subr.bf16.mxu0 %v12682_v41 }
 0x595   : > { %5368 = vmatpush2.bf16.msra.mxu1 %v12683_v7  ;;  %v12711_v7 = vld [vmem:[#allocation393_spill] sm:$0xff] }
 0x596   : > { %5491 = vmatpush2.bf16.msra.mxu0 %v12684_v30  ;;  %5369 = vmatprep.subr.bf16.mxu1 %v12685_v62  ;;  %v5626_v30 = vld [vmem:[#allocation11 + $0xe0] sm:$0xff] }
 0x597   : > { %5492 = vmatprep.subr.bf16.mxu0 %v12686_v0  ;;  %v12712_v62 = vld [vmem:[#allocation394_spill] sm:$0xff] }
 0x599   : > { %5370 = vmatpush2.bf16.msra.mxu1 %v12687_v32 }
 0x59a   : > { %5493 = vmatpush2.bf16.msra.mxu0 %v12688_v21  ;;  %5371 = vmatprep.subr.bf16.mxu1 %v12689_v42  ;;  %v12713_v21 = vld [vmem:[#allocation396_spill] sm:$0xff]  ;;  %v5625_v42 = vld [vmem:[#allocation11 + $0xd8] sm:$0xff] }
 0x59b   : > { %5494 = vmatprep.subr.bf16.mxu0 %v12690_v49  ;;  %v5609_v49 = vld [vmem:[#allocation11 + $0x58] sm:$0xff] }
 0x59d   : > { %5372 = vmatpush2.bf16.msra.mxu1 %v12691_v60  ;;  %v5624_v60 = vld [vmem:[#allocation11 + $0xd0] sm:$0xff] }
 0x59e   : > { %5495 = vmatpush2.bf16.msra.mxu0 %v12692_v10  ;;  %5373 = vmatprep.subr.bf16.mxu1 %v12693_v18  ;;  %v12714_v10 = vld [vmem:[#allocation398_spill] sm:$0xff]  ;;  %v5608_v18 = vld [vmem:[#allocation11 + $0x50] sm:$0xff] }
 0x59f   : > { %5496 = vmatprep.subr.bf16.mxu0 %v12694_v20  ;;  %v12715_v20 = vld [vmem:[#allocation400_spill] sm:$0xff] }
 0x5a1   : > { %5374 = vmatpush2.bf16.msra.mxu1 %v12695_v26  ;;  %v5623_v26 = vld [vmem:[#allocation11 + $0xc8] sm:$0xff] }
 0x5a2   : > { %5497 = vmatpush2.bf16.msra.mxu0 %v12696_v45  ;;  %5375 = vmatprep.subr.bf16.mxu1 %v12697_v43  ;;  %v5607_v45 = vld [vmem:[#allocation11 + $0x48] sm:$0xff]  ;;  %v5622_v43 = vld [vmem:[#allocation11 + $0xc0] sm:$0xff] }
 0x5a3   : > { %5498 = vmatprep.subr.bf16.mxu0 %v10442_v29  ;;  %v12706_v29 = vld [vmem:[#allocation505_spill] sm:$0xff] }
 0x5a5   : > { %5376 = vmatpush2.bf16.msra.mxu1 %v12698_v38  ;;  %v12716_v38 = vld [vmem:[#allocation402_spill] sm:$0xff] }
 0x5a6   : > { %5499 = vmatpush2.bf16.msra.mxu0 %v10453_v51  ;;  %5377 = vmatprep.subr.bf16.mxu1 %v12699_v34  ;;  %v5629_v51 = vld [vmem:[#allocation11 + $0xf8] sm:$0xff]  ;;  %v5606_v34 = vld [vmem:[#allocation11 + $0x40] sm:$0xff] }
 0x5a7   : > { %5500 = vmatprep.subr.bf16.mxu0 %v12700_v48  ;;  %v5621_v48 = vld [vmem:[#allocation11 + $0xb8] sm:$0xff] }
 0x5a9   : > { %5378 = vmatpush2.bf16.msra.mxu1 %v12703_v13  ;;  %v12719_v13 = vld [vmem:[#allocation408_spill] sm:$0xff] }
 0x5aa   : > { %5501 = vmatpush2.bf16.msra.mxu0 %v12704_v63  ;;  %5379 = vmatprep.subr.bf16.mxu1 %v12705_v31  ;;  %v5603_v63 = vld [vmem:[#allocation11 + $0x28] sm:$0xff]  ;;  %v5618_v31 = vld [vmem:[#allocation11 + $0xa0] sm:$0xff] }
 0x5ab   : > { %5502 = vmatprep.subr.bf16.mxu0 %v12706_v29  ;;  %v12720_v29 = vld [vmem:[#allocation410_spill] sm:$0xff] }
 0x5ad   : > { %5380 = vmatpush2.bf16.msra.mxu1 %v12707_v39  ;;  %v5617_v39 = vld [vmem:[#allocation11 + $0x98] sm:$0xff] }
 0x5ae   : > { %5503 = vmatpush2.bf16.msra.mxu0 %v12708_v53  ;;  %5431 = vmatprep.subr.bf16.mxu1 %v12709_v15  ;;  %v5601_v53 = vld [vmem:[#allocation11 + $0x18] sm:$0xff]  ;;  %v5616_v15 = vld [vmem:[#allocation11 + $0x90] sm:$0xff] }
 0x5af   : > { %7059 = vmatprep.subr.mxu0 %v5629_v51  ;;  %v12721_v51 = vld [vmem:[#allocation412_spill] sm:$0xff] }
 0x5b0   : > { %v5137_v23 = vpop.f32.mrf.mxu1  ;;  %v11068_v36 = vpop.f32.mrf.mxu0  ;;  %5382 = vmatmul.mubr.bf16.vlgmr.msra.gmra.mxu1 %v10767_v17 }
 0x5b1   : > { %v11073_v2 = vadd.f32 %v5137_v23, %v5097_v56  ;;  %5505 = vmatmul.mubr.bf16.vlgmr.msra.gmra.mxu0 %v10658_v28  ;;  %5432 = vmatpush1.bf16.msra.mxu1 %v12710_v35  ;;  %v12722_v56 = vld [vmem:[#allocation414_spill] sm:$0xff]  ;;  %v12723_v23 = vld [vmem:[#allocation416_spill] sm:$0xff] }
 0x5b2   : > { %5463 = vmatprep.mubr.bf16.mxu1 %v10586_v22  ;;  %7060 = vmatpush3.msra.mxu0 %v5613_v59  ;;  %v5139_v16 = vpop.f32.mrf.mxu1  ;;  %v11080_v9 = vpop.f32.mrf.mxu0  ;;  %v5610_v22 = vld [vmem:[#allocation11 + $0x60] sm:$0xff]  ;;  %v5600_v59 = vld [vmem:[#allocation11 + $0x10] sm:$0xff] }
 0x5b3   : > { %5802 = vmatprep.mubr.f32.mxu0 %v5730_v40  ;;  %v11082_v44 = vadd.f32 %v5139_v16, %v5099_v46  ;;  %7061 = vmatprep.subr.mxu0 %v5628_v1  ;;  %v5615_v1 = vld [vmem:[#allocation11 + $0x88] sm:$0xff]  ;;  %v5614_v35 = vld [vmem:[#allocation11 + $0x80] sm:$0xff]  ;;  %v12725_v16 = vld [vmem:[#allocation420_spill] sm:$0xff] }
 0x5b4   : > { %7062 = vmatpush3.msra.mxu0 %v5612_v12  ;;  %v5141_v28 = vpop.f32.mrf.mxu1  ;;  %v5264_v41 = vpop.f32.mrf.mxu0  ;;  %5433 = vmatprep.subr.bf16.mxu1 %v12711_v7  ;;  %v5599_v46 = vld [vmem:[#allocation11 + $0x8] sm:$0xff]  ;;  %v12724_v40 = vld [vmem:[#allocation418_spill] sm:$0xff]  ;;  %v12727_v7 = vld [vmem:[#allocation424_spill] sm:$0xff] }
 0x5b5   : > { %7063 = vmatprep.subr.mxu0 %v5627_v58  ;;  %5434 = vmatpush1.bf16.msra.mxu1 %v12712_v62  ;;  %v5598_v12 = vld [vmem:[#allocation11] sm:$0xff]  ;;  %v5693_v58 = vld [vmem:[#allocation11 + $0x2f8] sm:$0xff]  ;;  %v5692_v41 = vld [vmem:[#allocation11 + $0x2f0] sm:$0xff] }
 0x5b6   : > { %7064 = vmatpush3.msra.mxu0 %v5611_v6  ;;  %v5142_v0 = vpop.f32.mrf.mxu1  ;;  %v5265_v32 = vpop.f32.mrf.mxu0  ;;  %5435 = vmatprep.subr.bf16.mxu1 %v12713_v21  ;;  %v5677_v6 = vld [vmem:[#allocation11 + $0x278] sm:$0xff]  ;;  %v12726_v28 = vld [vmem:[#allocation422_spill] sm:$0xff] }
 0x5b7   : > { %7065 = vmatprep.subr.mxu0 %v5626_v30  ;;  %v5676_v30 = vld [vmem:[#allocation11 + $0x270] sm:$0xff]  ;;  %v12728_v62 = vld [vmem:[#allocation426_spill] sm:$0xff] }
 0x5b8   : > { %7066 = vmatpush3.msra.mxu0 %v5610_v22  ;;  %v12729_v22 = vld [vmem:[#allocation428_spill] sm:$0xff]  ;;  %v12730_v0 = vld [vmem:[#allocation430_spill] sm:$0xff] }
 0x5b9   : > { %7067 = vmatprep.subr.mxu0 %v5625_v42  ;;  %5436 = vmatpush1.bf16.msra.mxu1 %v12714_v10  ;;  %v12731_v32 = vld [vmem:[#allocation432_spill] sm:$0xff]  ;;  %v12732_v21 = vld [vmem:[#allocation434_spill] sm:$0xff] }
 0x5ba   : > { %7068 = vmatpush3.msra.mxu0 %v5609_v49  ;;  %5437 = vmatprep.subr.bf16.mxu1 %v12715_v20  ;;  %v12734_v42 = vld [vmem:[#allocation438_spill] sm:$0xff]  ;;  %v12735_v49 = vld [vmem:[#allocation440_spill] sm:$0xff] }
 0x5bb   : > { %7069 = vmatprep.subr.mxu0 %v5624_v60  ;;  %v12736_v60 = vld [vmem:[#allocation442_spill] sm:$0xff]  ;;  %v12737_v10 = vld [vmem:[#allocation444_spill] sm:$0xff] }
 0x5bc   : > { %7070 = vmatpush3.msra.mxu0 %v5608_v18  ;;  %v12738_v18 = vld [vmem:[#allocation446_spill] sm:$0xff]  ;;  %v12739_v20 = vld [vmem:[#allocation448_spill] sm:$0xff] }
 0x5bd   : > { %7071 = vmatprep.subr.mxu0 %v5623_v26  ;;  %5438 = vmatpush1.bf16.msra.mxu1 %v12716_v38  ;;  %v12740_v26 = vld [vmem:[#allocation450_spill] sm:$0xff] }
 0x5be   : > { %7072 = vmatpush3.msra.mxu0 %v5607_v45  ;;  %5439 = vmatprep.subr.bf16.mxu1 %v12717_v57  ;;  %v12741_v45 = vld [vmem:[#allocation452_spill] sm:$0xff] }
 0x5bf   : > { %7073 = vmatprep.subr.mxu0 %v5622_v43  ;;  %v5179_v43 = vadd.f32 %v10989_v8, %v11073_v2 }
 0x5c0   : > { %7074 = vmatpush3.msra.mxu0 %v5606_v34 }
 0x5c1   : > { %7075 = vmatprep.subr.mxu0 %v5621_v48  ;;  %5440 = vmatpush1.bf16.msra.mxu1 %v12718_v50  ;;  %v12742_v48 = vld [vmem:[#allocation454_spill] sm:$0xff] }
 0x5c2   : > { %7076 = vmatpush3.msra.mxu0 %v5605_v55  ;;  %5441 = vmatprep.subr.bf16.mxu1 %v12719_v13  ;;  %v5181_v55 = vadd.f32 %v10997_v3, %v11082_v44  ;;  %v5675_v13 = vld [vmem:[#allocation11 + $0x268] sm:$0xff]  ;;  %v5689_v3 = vld [vmem:[#allocation11 + $0x2d8] sm:$0xff] }
 0x5c3   : > { %7077 = vmatprep.subr.mxu0 %v5620_v19  ;;  %v5691_v19 = vld [vmem:[#allocation11 + $0x2e8] sm:$0xff]  ;;  %v5673_v44 = vld [vmem:[#allocation11 + $0x258] sm:$0xff] }
 0x5c4   : > { %7078 = vmatpush3.msra.mxu0 %v5604_v52  ;;  %v12743_v52 = vld [vmem:[#allocation455_spill] sm:$0xff] }
 0x5c5   : > { %7079 = vmatprep.subr.mxu0 %v5619_v25  ;;  %5442 = vmatpush1.bf16.msra.mxu1 %v12720_v29 }
 0x5c6   : > { %7080 = vmatpush3.msra.mxu0 %v5603_v63  ;;  %5443 = vmatprep.subr.bf16.mxu1 %v12721_v51  ;;  %v5674_v63 = vld [vmem:[#allocation11 + $0x260] sm:$0xff] }
 0x5c7   : > { %7081 = vmatprep.subr.mxu0 %v5618_v31  ;;  %v12744_v31 = vld [vmem:[#allocation456_spill] sm:$0xff] }
 0x5c8   : > { %7082 = vmatpush3.msra.mxu0 %v5602_v37  ;;  %v12745_v37 = vld [vmem:[#allocation457_spill] sm:$0xff] }
 0x5c9   : > { %7083 = vmatprep.subr.mxu0 %v5617_v39  ;;  %5444 = vmatpush1.bf16.msra.mxu1 %v12722_v56  ;;  %v5688_v39 = vld [vmem:[#allocation11 + $0x2d0] sm:$0xff]  ;;  %v5671_v56 = vld [vmem:[#allocation11 + $0x248] sm:$0xff] }
 0x5ca   : > { %7084 = vmatpush3.msra.mxu0 %v5601_v53  ;;  %5445 = vmatprep.subr.bf16.mxu1 %v12723_v23  ;;  %v5672_v53 = vld [vmem:[#allocation11 + $0x250] sm:$0xff]  ;;  %v5686_v23 = vld [vmem:[#allocation11 + $0x2c0] sm:$0xff] }
 0x5cb   : > { %7085 = vmatprep.subr.mxu0 %v5616_v15  ;;  %v5687_v15 = vld [vmem:[#allocation11 + $0x2c8] sm:$0xff] }
 0x5cc   : > { %7086 = vmatpush3.msra.mxu0 %v5600_v59  ;;  %v12746_v59 = vld [vmem:[#allocation458_spill] sm:$0xff] }
 0x5cd   : > { %7087 = vmatprep.subr.mxu0 %v5615_v1  ;;  %5446 = vmatpush1.bf16.msra.mxu1 %v12724_v40  ;;  %v12747_v1 = vld [vmem:[#allocation459_spill] sm:$0xff]  ;;  %v5669_v40 = vld [vmem:[#allocation11 + $0x238] sm:$0xff] }
 0x5ce   : > { %7088 = vmatpush3.msra.mxu0 %v5599_v46  ;;  %5447 = vmatprep.subr.bf16.mxu1 %v12725_v16  ;;  %v5670_v46 = vld [vmem:[#allocation11 + $0x240] sm:$0xff]  ;;  %v5684_v16 = vld [vmem:[#allocation11 + $0x2b0] sm:$0xff] }
 0x5cf   : > { %7089 = vmatprep.subr.mxu0 %v5614_v35  ;;  %v5685_v35 = vld [vmem:[#allocation11 + $0x2b8] sm:$0xff] }
 0x5d0   : > { %7090 = vmatpush3.msra.mxu0 %v5598_v12  ;;  %v12748_v12 = vld [vmem:[#allocation460_spill] sm:$0xff] }
 0x5d1   : > { %5803 = vmatmul.mubr.f32.vlgmr.msra.gmra.mxu0 %v11062_v47  ;;  %5448 = vmatpush2.bf16.msra.mxu1 %v12726_v28  ;;  %v12733_v47 = vld [vmem:[#allocation436_spill] sm:$0xff]  ;;  %v5683_v28 = vld [vmem:[#allocation11 + $0x2a8] sm:$0xff] }
 0x5d2   : > { %5449 = vmatprep.subr.bf16.mxu1 %v12727_v7  ;;  %7129 = vmatprep.subr.mxu0 %v5693_v58  ;;  %v12749_v58 = vld [vmem:[#allocation462_spill] sm:$0xff] }
 0x5d3   : > { %7130 = vmatpush3.msra.mxu0 %v5677_v6  ;;  %v5668_v6 = vld [vmem:[#allocation11 + $0x230] sm:$0xff] }
 0x5d4   : > { %7131 = vmatprep.subr.mxu0 %v5692_v41  ;;  %v5667_v41 = vld [vmem:[#allocation11 + $0x228] sm:$0xff] }
 0x5d5   : > { %5450 = vmatpush2.bf16.msra.mxu1 %v12728_v62  ;;  %7132 = vmatpush3.msra.mxu0 %v5676_v30  ;;  %v12750_v30 = vld [vmem:[#allocation464_spill] sm:$0xff]  ;;  %v5682_v62 = vld [vmem:[#allocation11 + $0x2a0] sm:$0xff] }
 0x5d6   : > { %5451 = vmatprep.subr.bf16.mxu1 %v12729_v22  ;;  %7133 = vmatprep.subr.mxu0 %v5691_v19  ;;  %v5679_v19 = vld [vmem:[#allocation11 + $0x288] sm:$0xff] }
 0x5d7   : > { %7134 = vmatpush3.msra.mxu0 %v5675_v13  ;;  %v5678_v13 = vld [vmem:[#allocation11 + $0x280] sm:$0xff] }
 0x5d9   : > { %5452 = vmatpush2.bf16.msra.mxu1 %v12730_v0  ;;  %v12751_v0 = vld [vmem:[#allocation466_spill] sm:$0xff] }
 0x5da   : > { %5453 = vmatprep.subr.bf16.mxu1 %v12731_v32  ;;  %v780_v32 = vld [vmem:[#allocation8 + $0x8] sm:$0xff] }
 0x5dd   : > { %5454 = vmatpush2.bf16.msra.mxu1 %v12732_v21  ;;  %v784_v21 = vld [vmem:[#allocation10 + $0x8] sm:$0xff] }
 0x5de   : > { %5455 = vmatprep.subr.bf16.mxu1 %v12733_v47  ;;  %v5666_v47 = vld [vmem:[#allocation11 + $0x220] sm:$0xff] }
 0x5e1   : > { %5456 = vmatpush2.bf16.msra.mxu1 %v12734_v42 }
 0x5e2   : > { %5457 = vmatprep.subr.bf16.mxu1 %v12735_v49  ;;  %v5681_v49 = vld [vmem:[#allocation11 + $0x298] sm:$0xff] }
 0x5e5   : > { %5458 = vmatpush2.bf16.msra.mxu1 %v12736_v60  ;;  %v5665_v60 = vld [vmem:[#allocation11 + $0x218] sm:$0xff] }
 0x5e6   : > { %5459 = vmatprep.subr.bf16.mxu1 %v12737_v10  ;;  %v12752_v10 = vld [vmem:[#allocation468_spill] sm:$0xff] }
 0x5e9   : > { %5460 = vmatpush2.bf16.msra.mxu1 %v12738_v18  ;;  %v12753_v18 = vld [vmem:[#allocation470_spill] sm:$0xff] }
 0x5ea   : > { %5461 = vmatprep.subr.bf16.mxu1 %v12739_v20  ;;  %v12754_v20 = vld [vmem:[#allocation472_spill] sm:$0xff] }
 0x5ed   : > { %5462 = vmatpush2.bf16.msra.mxu1 %v12740_v26  ;;  %v12755_v26 = vcombine.low %v12753_v18, %v12754_v20  ;;  %v5641_v20 = vld [vmem:[#allocation11 + $0x158] sm:$0xff] }
 0x5ee   : > { %5513 = vmatprep.subr.bf16.mxu1 %v12741_v45 }
 0x5ef   : > { %v5571_v45 = vmul.f32 %v12755_v26, %v780_v32 }
 0x5f0   : > { %v5219_v38 = vpop.f32.mrf.mxu1  ;;  %5464 = vmatmul.mubr.bf16.vlgmr.msra.gmra.mxu1 %v10652_v5  ;;  %v5690_v5 = vld [vmem:[#allocation11 + $0x2e0] sm:$0xff] }
 0x5f1   : > { %v5220_v34 = vadd.f32 %v5219_v38, %v5179_v43  ;;  %v11119_v57 = vpop.f32.mrf.mxu0  ;;  %5514 = vmatpush1.bf16.msra.mxu1 %v12742_v48  ;;  %5545 = vmatprep.mubr.bf16.mxu1 %v10764_v4  ;;  %v5680_v38 = vld [vmem:[#allocation11 + $0x290] sm:$0xff] }
 0x5f2   : > { %v5221_v50 = vpop.f32.mrf.mxu1  ;;  %5515 = vmatprep.subr.bf16.mxu1 %v12743_v52  ;;  %7135 = vmatprep.subr.mxu0 %v5690_v5  ;;  %v5664_v48 = vld [vmem:[#allocation11 + $0x210] sm:$0xff]  ;;  %v12757_v52 = vld [vmem:[#allocation474_spill] sm:$0xff] }
 0x5f3   : > { %v5222_v8 = vadd.f32 %v5221_v50, %v5181_v55  ;;  %v11126_v2 = vpop.f32.mrf.mxu0  ;;  %7456 = vtanh.f32 %v5220_v34  ;;  %7136 = vmatpush3.msra.mxu0 %v5674_v63  ;;  %v12756_v34 = vld [vmem:[#allocation471_spill] sm:$0xff]  ;;  %v5662_v5 = vld [vmem:[#allocation11 + $0x200] sm:$0xff]  ;;  %v12760_v63 = vld [vmem:[#allocation480_spill] sm:$0xff] }
 0x5f4   : > { %v5223_v25 = vpop.f32.mrf.mxu1  ;;  %7137 = vmatprep.subr.mxu0 %v5689_v3  ;;  %v5663_v50 = vld [vmem:[#allocation11 + $0x208] sm:$0xff]  ;;  %v12763_v3 = vld [vmem:[#allocation484_spill] sm:$0xff] }
 0x5f5   : > { %7458 = vtanh.f32 %v5222_v8  ;;  %v5346_v4 = vpop.f32.mrf.mxu0  ;;  %5516 = vmatpush1.bf16.msra.mxu1 %v12744_v31  ;;  %7138 = vmatpush3.msra.mxu0 %v5673_v44  ;;  %v12758_v8 = vld [vmem:[#allocation476_spill] sm:$0xff]  ;;  %v12759_v25 = vld [vmem:[#allocation478_spill] sm:$0xff] }
 0x5f6   : > { %v5224_v29 = vpop.f32.mrf.mxu1  ;;  %5517 = vmatprep.subr.bf16.mxu1 %v12745_v37  ;;  %7139 = vmatprep.subr.mxu0 %v5688_v39  ;;  %v12761_v4 = vmov 0.0   ;;  %v12762_v31 = vld [vmem:[#allocation482_spill] sm:$0xff] }
 0x5f7   : > { %v5347_v51 = vpop.f32.mrf.mxu0  ;;  %7140 = vmatpush3.msra.mxu0 %v5672_v53  ;;  %v12764_v44 = vld [vmem:[#allocation486_spill] sm:$0xff]  ;;  %v12765_v29 = vld [vmem:[#allocation488_spill] sm:$0xff] }
 0x5f8   : > { %7141 = vmatprep.subr.mxu0 %v5687_v15  ;;  %v12766_v37 = vld [vmem:[#allocation490_spill] sm:$0xff]  ;;  %v12767_v51 = vld [vmem:[#allocation492_spill] sm:$0xff] }
 0x5f9   : > { %5518 = vmatpush1.bf16.msra.mxu1 %v12746_v59  ;;  %7142 = vmatpush3.msra.mxu0 %v5671_v56  ;;  %v12768_v39 = vld [vmem:[#allocation494_spill] sm:$0xff]  ;;  %v12769_v53 = vld [vmem:[#allocation496_spill] sm:$0xff]  ;;  %v12771_v56 = vld [vmem:[#allocation499_spill] sm:$0xff] }
 0x5fa   : > { %5519 = vmatprep.subr.bf16.mxu1 %v12747_v1  ;;  %7143 = vmatprep.subr.mxu0 %v5686_v23  ;;  %v12770_v15 = vld [vmem:[#allocation498_spill] sm:$0xff]  ;;  %v12772_v59 = vld [vmem:[#allocation500_spill] sm:$0xff] }
 0x5fb   : > { %7144 = vmatpush3.msra.mxu0 %v5670_v46  ;;  %v12773_v23 = vld [vmem:[#allocation502_spill] sm:$0xff]  ;;  %v12774_v1 = vld [vmem:[#allocation504_spill] sm:$0xff] }
 0x5fc   : > { %7145 = vmatprep.subr.mxu0 %v5685_v35  ;;  %v12775_v46 = vld [vmem:[#allocation506_spill] sm:$0xff]  ;;  %v5661_v35 = vld [vmem:[#allocation11 + $0x1f8] sm:$0xff] }
 0x5fd   : > { %5520 = vmatpush1.bf16.msra.mxu1 %v12748_v12  ;;  %7146 = vmatpush3.msra.mxu0 %v5669_v40  ;;  %v12776_v40 = vld [vmem:[#allocation508_spill] sm:$0xff]  ;;  %v5645_v12 = vld [vmem:[#allocation11 + $0x178] sm:$0xff] }
 0x5fe   : > { %5521 = vmatprep.subr.bf16.mxu1 %v12749_v58  ;;  %7147 = vmatprep.subr.mxu0 %v5684_v16  ;;  %v5261_v16 = vadd.f32 %v11068_v36, %v10831_v27  ;;  %v5643_v36 = vld [vmem:[#allocation11 + $0x168] sm:$0xff] }
 0x5ff   : > { %7148 = vmatpush3.msra.mxu0 %v5668_v6  ;;  %v5660_v6 = vld [vmem:[#allocation11 + $0x1f0] sm:$0xff] }
 0x600   : > { %v7457_v7 = vpop.eup %7456  ;;  %7149 = vmatprep.subr.mxu0 %v5683_v28 }
 0x601   : > { %5522 = vmatpush1.bf16.msra.mxu1 %v12750_v30  ;;  %7150 = vmatpush3.msra.mxu0 %v5667_v41  ;;  %v5644_v41 = vld [vmem:[#allocation11 + $0x170] sm:$0xff] }
 0x602   : > { %v7459_v22 = vpop.eup %7458  ;;  %5523 = vmatprep.subr.bf16.mxu1 %v12751_v0  ;;  %7151 = vmatprep.subr.mxu0 %v5682_v62 }
 0x603   : > { %v5583_v42 = vcombine.low %v7457_v7, %v7459_v22  ;;  %7152 = vmatpush3.msra.mxu0 %v5666_v47  ;;  %v5263_v7 = vadd.f32 %v11080_v9, %v10831_v27  ;;  %v5659_v22 = vld [vmem:[#allocation11 + $0x1e8] sm:$0xff]  ;;  %v5658_v47 = vld [vmem:[#allocation11 + $0x1e0] sm:$0xff] }
 0x604   : > { %7153 = vmatprep.subr.mxu0 %v5681_v49  ;;  %v5642_v9 = vld [vmem:[#allocation11 + $0x160] sm:$0xff] }
 0x605   : > { %5524 = vmatpush1.bf16.msra.mxu1 %v12752_v10  ;;  %v5591_v43 = vmul.f32 %v5583_v42, %v784_v21  ;;  %7154 = vmatpush3.msra.mxu0 %v5665_v60  ;;  %v5657_v60 = vld [vmem:[#allocation11 + $0x1d8] sm:$0xff] }
 0x606   : > { %5525 = vmatprep.subr.bf16.mxu1 %v12756_v34  ;;  %7155 = vmatprep.subr.mxu0 %v5680_v38  ;;  %v5639_v38 = vld [vmem:[#allocation11 + $0x148] sm:$0xff]  ;;  %v5654_v34 = vld [vmem:[#allocation11 + $0x1c0] sm:$0xff] }
 0x607   : > { %v11141_v55 = vadd.f32 %v5591_v43, %v5571_v45  ;;  %7156 = vmatpush3.msra.mxu0 %v5664_v48  ;;  %v5656_v45 = vld [vmem:[#allocation11 + $0x1d0] sm:$0xff]  ;;  %v5638_v48 = vld [vmem:[#allocation11 + $0x140] sm:$0xff] }
 0x608   : > { %7157 = vmatprep.subr.mxu0 %v5679_v19  ;;  %v5640_v43 = vld [vmem:[#allocation11 + $0x150] sm:$0xff]  ;;  %v5653_v19 = vld [vmem:[#allocation11 + $0x1b8] sm:$0xff] }
 0x609   : > { %5526 = vmatpush1.bf16.msra.mxu1 %v12757_v52  ;;  %7158 = vmatpush3.msra.mxu0 %v5663_v50  ;;  %v5731_v58 = vcombine.high %v11141_v55, %v11141_v55  ;;  %v5652_v50 = vld [vmem:[#allocation11 + $0x1b0] sm:$0xff] }
 0x60a   : > { %5527 = vmatprep.subr.bf16.mxu1 %v12758_v8  ;;  %7159 = vmatprep.subr.mxu0 %v5678_v13  ;;  %v5636_v52 = vld [vmem:[#allocation11 + $0x130] sm:$0xff]  ;;  %v5651_v13 = vld [vmem:[#allocation11 + $0x1a8] sm:$0xff] }
 0x60b   : > { %7160 = vmatpush3.msra.mxu0 %v5662_v5  ;;  %v5635_v8 = vld [vmem:[#allocation11 + $0x128] sm:$0xff]  ;;  %v5650_v5 = vld [vmem:[#allocation11 + $0x1a0] sm:$0xff] }
 0x60c   : > { %7210 = vmatprep.subr.mxu0 %v12761_v4 }
 0x60d   : > { %5528 = vmatpush1.bf16.msra.mxu1 %v12759_v25  ;;  %v5634_v25 = vld [vmem:[#allocation11 + $0x120] sm:$0xff] }
 0x60e   : > { %5529 = vmatprep.subr.bf16.mxu1 %v12760_v63  ;;  %v5649_v63 = vld [vmem:[#allocation11 + $0x198] sm:$0xff] }
 0x611   : > { %5530 = vmatpush2.bf16.msra.mxu1 %v12762_v31  ;;  %v5633_v31 = vld [vmem:[#allocation11 + $0x118] sm:$0xff] }
 0x612   : > { %5531 = vmatprep.subr.bf16.mxu1 %v12763_v3  ;;  %v5648_v3 = vld [vmem:[#allocation11 + $0x190] sm:$0xff] }
 0x615   : > { %5532 = vmatpush2.bf16.msra.mxu1 %v12764_v44  ;;  %v5632_v44 = vld [vmem:[#allocation11 + $0x110] sm:$0xff] }
 0x616   : > { %5533 = vmatprep.subr.bf16.mxu1 %v12765_v29  ;;  %v5647_v29 = vld [vmem:[#allocation11 + $0x188] sm:$0xff] }
 0x619   : > { %5534 = vmatpush2.bf16.msra.mxu1 %v12766_v37  ;;  %v5631_v37 = vld [vmem:[#allocation11 + $0x108] sm:$0xff] }
 0x61a   : > { %5535 = vmatprep.subr.bf16.mxu1 %v12767_v51  ;;  %v5646_v51 = vld [vmem:[#allocation11 + $0x180] sm:$0xff] }
 0x61d   : > { %5536 = vmatpush2.bf16.msra.mxu1 %v12768_v39  ;;  %v5630_v39 = vld [vmem:[#allocation11 + $0x100] sm:$0xff] }
 0x61e   : > { %5537 = vmatprep.subr.bf16.mxu1 %v12769_v53  ;;  %v5725_v53 = vld [vmem:[#allocation11 + $0x3f8] sm:$0xff] }
 0x621   : > { %5538 = vmatpush2.bf16.msra.mxu1 %v12770_v15  ;;  %v5709_v15 = vld [vmem:[#allocation11 + $0x378] sm:$0xff] }
 0x622   : > { %5539 = vmatprep.subr.bf16.mxu1 %v12771_v56  ;;  %v5724_v56 = vld [vmem:[#allocation11 + $0x3f0] sm:$0xff] }
 0x625   : > { %5540 = vmatpush2.bf16.msra.mxu1 %v12772_v59  ;;  %v5708_v59 = vld [vmem:[#allocation11 + $0x370] sm:$0xff] }
 0x626   : > { %5541 = vmatprep.subr.bf16.mxu1 %v12773_v23 }
 0x629   : > { %5542 = vmatpush2.bf16.msra.mxu1 %v12774_v1 }
 0x62a   : > { %5543 = vmatprep.subr.bf16.mxu1 %v12775_v46 }
 0x62d   : > { %5544 = vmatpush2.bf16.msra.mxu1 %v12776_v40 }
 0x62e   : > { %7094 = vmatprep.subr.mxu1 %v5661_v35  ;;  %v5723_v35 = vld [vmem:[#allocation11 + $0x3e8] sm:$0xff] }
 0x630   : > { %v5301_v28 = vpop.f32.mrf.mxu1  ;;  %5546 = vmatmul.mubr.bf16.vlgmr.msra.gmra.mxu1 %v10767_v17 }
 0x631   : > { %v5302_v30 = vadd.f32 %v5301_v28, %v5261_v16  ;;  %v11170_v62 = vpop.f32.mrf.mxu0  ;;  %7095 = vmatpush3.msra.mxu1 %v5645_v12  ;;  %5872 = vmatprep.mubr.f32.mxu1 %v5731_v58  ;;  %v5707_v12 = vld [vmem:[#allocation11 + $0x368] sm:$0xff]  ;;  %v5706_v28 = vld [vmem:[#allocation11 + $0x360] sm:$0xff] }
 0x632   : > { %v5303_v0 = vpop.f32.mrf.mxu1  ;;  %7096 = vmatprep.subr.mxu1 %v5660_v6  ;;  %v5425_v11 = vadd.f32 %v11170_v62, %v10831_v27 }
 0x633   : > { %v5304_v32 = vadd.f32 %v5303_v0, %v5263_v7  ;;  %v11172_v21 = vpop.f32.mrf.mxu0  ;;  %7097 = vmatpush3.msra.mxu1 %v5644_v41  ;;  %v11175_v17 = vadd.f32 %v11119_v57, %v5302_v30  ;;  %v5655_v57 = vld [vmem:[#allocation11 + $0x1c8] sm:$0xff]  ;;  %v5721_v7 = vld [vmem:[#allocation11 + $0x3d8] sm:$0xff]  ;;  %v5720_v0 = vld [vmem:[#allocation11 + $0x3d0] sm:$0xff] }
 0x634   : > { %v5305_v42 = vpop.f32.mrf.mxu1  ;;  %7098 = vmatprep.subr.mxu1 %v5659_v22  ;;  %v5705_v30 = vld [vmem:[#allocation11 + $0x358] sm:$0xff] }
 0x635   : > { %v5428_v49 = vpop.f32.mrf.mxu0  ;;  %7099 = vmatpush3.msra.mxu1 %v5643_v36  ;;  %v11178_v10 = vadd.f32 %v11126_v2, %v5304_v32  ;;  %v5637_v2 = vld [vmem:[#allocation11 + $0x138] sm:$0xff]  ;;  %v5704_v36 = vld [vmem:[#allocation11 + $0x350] sm:$0xff]  ;;  %v5718_v42 = vld [vmem:[#allocation11 + $0x3c0] sm:$0xff] }
 0x636   : > { %v5306_v18 = vpop.f32.mrf.mxu1  ;;  %7100 = vmatprep.subr.mxu1 %v5658_v47  ;;  %v5719_v47 = vld [vmem:[#allocation11 + $0x3c8] sm:$0xff]  ;;  %v5717_v49 = vld [vmem:[#allocation11 + $0x3b8] sm:$0xff] }
 0x637   : > { %v5429_v26 = vpop.f32.mrf.mxu0  ;;  %7101 = vmatpush3.msra.mxu1 %v5642_v9  ;;  %v5702_v9 = vld [vmem:[#allocation11 + $0x340] sm:$0xff]  ;;  %v5700_v18 = vld [vmem:[#allocation11 + $0x330] sm:$0xff] }
 0x638   : > { %7102 = vmatprep.subr.mxu1 %v5657_v60  ;;  %v5701_v60 = vld [vmem:[#allocation11 + $0x338] sm:$0xff]  ;;  %v5699_v26 = vld [vmem:[#allocation11 + $0x328] sm:$0xff] }
 0x639   : > { %7103 = vmatpush3.msra.mxu1 %v5641_v20  ;;  %v5715_v20 = vld [vmem:[#allocation11 + $0x3a8] sm:$0xff] }
 0x63a   : > { %7104 = vmatprep.subr.mxu1 %v5656_v45 }
 0x63b   : > { %7105 = vmatpush3.msra.mxu1 %v5640_v43  ;;  %v5714_v43 = vld [vmem:[#allocation11 + $0x3a0] sm:$0xff] }
 0x63c   : > { %7106 = vmatprep.subr.mxu1 %v5655_v57 }
 0x63d   : > { %7107 = vmatpush3.msra.mxu1 %v5639_v38  ;;  %v781_v38 = vld [vmem:[#allocation8 + $0x10] sm:$0xff] }
 0x63e   : > { %7108 = vmatprep.subr.mxu1 %v5654_v34  ;;  %v785_v34 = vld [vmem:[#allocation10 + $0x10] sm:$0xff] }
 0x63f   : > { %7109 = vmatpush3.msra.mxu1 %v5638_v48  ;;  %v5698_v48 = vld [vmem:[#allocation11 + $0x320] sm:$0xff] }
 0x640   : > { %7110 = vmatprep.subr.mxu1 %v5653_v19 }
 0x641   : > { %7111 = vmatpush3.msra.mxu1 %v5637_v2  ;;  %v5713_v2 = vld [vmem:[#allocation11 + $0x398] sm:$0xff] }
 0x642   : > { %7112 = vmatprep.subr.mxu1 %v5652_v50  ;;  %v5697_v50 = vld [vmem:[#allocation11 + $0x318] sm:$0xff] }
 0x643   : > { %7113 = vmatpush3.msra.mxu1 %v5636_v52  ;;  %v5572_v52 = vmul.f32 %v5564_v61, %v781_v38  ;;  %v5427_v61 = vadd.f32 %v11172_v21, %v10831_v27  ;;  %v782_v27 = vld [vmem:[#allocation8 + $0x18] sm:$0xff] }
 0x644   : > { %7114 = vmatprep.subr.mxu1 %v5651_v13  ;;  %v786_v21 = vld [vmem:[#allocation10 + $0x18] sm:$0xff] }
 0x645   : > { %7115 = vmatpush3.msra.mxu1 %v5635_v8  ;;  %v5712_v8 = vld [vmem:[#allocation11 + $0x390] sm:$0xff] }
 0x646   : > { %7116 = vmatprep.subr.mxu1 %v5650_v5  ;;  %v5696_v5 = vld [vmem:[#allocation11 + $0x310] sm:$0xff] }
 0x647   : > { %7117 = vmatpush3.msra.mxu1 %v5634_v25 }
 0x648   : > { %7118 = vmatprep.subr.mxu1 %v5649_v63  ;;  %v5711_v63 = vld [vmem:[#allocation11 + $0x388] sm:$0xff] }
 0x649   : > { %7119 = vmatpush3.msra.mxu1 %v5633_v31  ;;  %v5695_v31 = vld [vmem:[#allocation11 + $0x308] sm:$0xff] }
 0x64a   : > { %7120 = vmatprep.subr.mxu1 %v5648_v3 }
 0x64b   : > { %7121 = vmatpush3.msra.mxu1 %v5632_v44  ;;  %v5710_v44 = vld [vmem:[#allocation11 + $0x380] sm:$0xff] }
 0x64c   : > { %7122 = vmatprep.subr.mxu1 %v5647_v29  ;;  %v5694_v29 = vld [vmem:[#allocation11 + $0x300] sm:$0xff] }
 0x64d   : > { %7123 = vmatpush3.msra.mxu1 %v5631_v37 }
 0x64e   : > { %7124 = vmatprep.subr.mxu1 %v5646_v51 }
 0x64f   : > { %7125 = vmatpush3.msra.mxu1 %v5630_v39 }
 0x650   : > { %5873 = vmatmul.mubr.f32.vlgmr.msra.gmra.mxu1 %v11141_v55  ;;  %7164 = vmatprep.subr.mxu1 %v5725_v53  ;;  %v5722_v55 = vld [vmem:[#allocation11 + $0x3e0] sm:$0xff] }
 0x651   : > { %7165 = vmatpush3.msra.mxu1 %v5709_v15 }
 0x652   : > { %7166 = vmatprep.subr.mxu1 %v5724_v56 }
 0x653   : > { %7167 = vmatpush3.msra.mxu1 %v5708_v59 }
 0x654   : > { %7168 = vmatprep.subr.mxu1 %v5723_v35 }
 0x655   : > { %7169 = vmatpush3.msra.mxu1 %v5707_v12 }
 0x656   : > { %7170 = vmatprep.subr.mxu1 %v5722_v55 }
 0x657   : > { %7171 = vmatpush3.msra.mxu1 %v5706_v28 }
 0x658   : > { %7172 = vmatprep.subr.mxu1 %v5721_v7 }
 0x659   : > { %7173 = vmatpush3.msra.mxu1 %v5705_v30 }
 0x65a   : > { %7174 = vmatprep.subr.mxu1 %v5720_v0 }
 0x65b   : > { %7175 = vmatpush3.msra.mxu1 %v5704_v36 }
 0x65c   : > { %7176 = vmatprep.subr.mxu1 %v5719_v47 }
 0x670   : > { %v5383_v23 = vpop.f32.mrf.mxu1 }
 0x671   : > { %v5384_v1 = vadd.f32 %v5383_v23, %v11175_v17  ;;  %v11182_v46 = vpop.f32.mrf.mxu0  ;;  %v5703_v17 = vld [vmem:[#allocation11 + $0x348] sm:$0xff] }
 0x672   : > { %v5385_v40 = vpop.f32.mrf.mxu1  ;;  %7177 = vmatpush3.msra.mxu1 %v5703_v17 }
 0x673   : > { %v5386_v16 = vadd.f32 %v5385_v40, %v11178_v10  ;;  %v11185_v58 = vpop.f32.mrf.mxu0  ;;  %7460 = vtanh.f32 %v5384_v1  ;;  %7178 = vmatprep.subr.mxu1 %v5718_v42  ;;  %v5716_v10 = vld [vmem:[#allocation11 + $0x3b0] sm:$0xff] }
 0x674   : > { %v5387_v6 = vpop.f32.mrf.mxu1  ;;  %7179 = vmatpush3.msra.mxu1 %v5702_v9 }
 0x675   : > { %7462 = vtanh.f32 %v5386_v16  ;;  %v5510_v41 = vpop.f32.mrf.mxu0  ;;  %7180 = vmatprep.subr.mxu1 %v5717_v49 }
 0x676   : > { %v5388_v22 = vpop.f32.mrf.mxu1  ;;  %7181 = vmatpush3.msra.mxu1 %v5701_v60 }
 0x677   : > { %v5511_v32 = vpop.f32.mrf.mxu0  ;;  %7182 = vmatprep.subr.mxu1 %v5716_v10 }
 0x678   : > { %7183 = vmatpush3.msra.mxu1 %v5700_v18  ;;  %v6041_v18 = vld [vmem:[%s12777_s4 + $0x10] sm:$0xff] }
 0x679   : > { %7184 = vmatprep.subr.mxu1 %v5715_v20 }
 0x67a   : > { %7185 = vmatpush3.msra.mxu1 %v5699_v26 }
 0x67b   : > { %7186 = vmatprep.subr.mxu1 %v5714_v43  ;;  %v6039_v43 = vld [vmem:[%s12777_s4] sm:$0xff] }
 0x67c   : > { %7187 = vmatpush3.msra.mxu1 %v5698_v48 }
 0x67d   : > { %7188 = vmatprep.subr.mxu1 %v5713_v2 }
 0x67e   : > { %7189 = vmatpush3.msra.mxu1 %v5697_v50  ;;  %v6034_v50 = vld [vmem:[#allocation13] sm:$0x1] }
 0x67f   : > { %7190 = vmatprep.subr.mxu1 %v5712_v8 }
 0x680   : > { %v7461_v45 = vpop.eup %7460  ;;  %7191 = vmatpush3.msra.mxu1 %v5696_v5 }
 0x681   : > { %7192 = vmatprep.subr.mxu1 %v5711_v63  ;;  %v6123_v63 = vld [vmem:[#allocation19 + $0x8] sm:$0xff] }
 0x682   : > { %v7463_v57 = vpop.eup %7462  ;;  %7193 = vmatpush3.msra.mxu1 %v5695_v31  ;;  %v6122_v31 = vld [vmem:[#allocation19] sm:$0xff] }
 0x683   : > { %v5584_v19 = vcombine.low %v7461_v45, %v7463_v57  ;;  %7194 = vmatprep.subr.mxu1 %v5710_v44  ;;  %v6040_v45 = vld [vmem:[%s12777_s4 + $0x8] sm:$0xff] }
 0x684   : > { %7195 = vmatpush3.msra.mxu1 %v5694_v29  ;;  %v6119_v29 = vld [vmem:[#allocation17] sm:$0x1] }
 0x685   : > { %v5592_v13 = vmul.f32 %v5584_v19, %v785_v34  ;;  %7221 = vmatprep.subr.mxu1 %v12761_v4 }
 0x687   : > { %v5596_v25 = vadd.f32 %v5592_v13, %v5572_v52  ;;  %v6036_v13 = vld [vmem:[#allocation14] sm:$0x1] }
 0x689   : > { %v5732_v3 = vcombine.high %v5596_v25, %v5596_v25 }
 0x68b   : > { %5942 = vmatprep.mubr.f32.mxu0 %v5732_v3  ;;  %v6117_v3 = vld [vmem:[#allocation16] sm:$0x1] }
 0x68c   : > { %5943 = vmatmul.mubr.f32.vlgmr.msra.gmra.mxu0 %v5596_v25 }
 0x68d   : > { %7211 = vmatpush3.msra.mxu0 %v6042_v33  ;;  %7218 = vmatprep.mubr.msk.f32.mxu0 %vm7978_vm2, %v12761_v4 }
 0x68e   : > { %7212 = vmatprep.subr.mxu0 %v12761_v4 }
 0x68f   : > { %7213 = vmatpush3.msra.mxu0 %v6041_v18 }
 0x690   : > { %7214 = vmatprep.subr.mxu0 %v12761_v4 }
 0x691   : > { %v7091_v7 = vpop.f32.mrf.mxu0  ;;  %7215 = vmatpush3.msra.mxu0 %v6040_v45 }
 0x692   : > { %7216 = vmatprep.subr.mxu0 %v12761_v4 }
 0x693   : > { %v7092_v30 = vpop.f32.mrf.mxu0  ;;  %7217 = vmatpush3.msra.mxu0 %v6039_v43 }
 0x694   : > { %v7093_v17 = vadd.f32 %v7092_v30, %v7091_v7 }
 0x6b0   : > { %v5465_v14 = vpop.f32.mrf.mxu1 }
 0x6b1   : > { %v5466_v37 = vadd.f32 %v5465_v14, %v5425_v11 }
 0x6b2   : > { %v5467_v51 = vpop.f32.mrf.mxu1 }
 0x6b3   : > { %v5468_v39 = vadd.f32 %v5467_v51, %v5427_v61  ;;  %v5507_v53 = vadd.f32 %v11182_v46, %v5466_v37  ;;  %v5573_v46 = vmul.f32 %v5565_v24, %v782_v27  ;;  %v6204_v51 = vld [vmem:[#allocation23 + $0x8] sm:$0xff] }
 0x6b4   : > { %v5469_v15 = vpop.f32.mrf.mxu1 }
 0x6b5   : > { %v5509_v56 = vadd.f32 %v11185_v58, %v5468_v39  ;;  %v6203_v39 = vld [vmem:[#allocation23] sm:$0xff] }
 0x6b6   : > { %v5470_v59 = vpop.f32.mrf.mxu1 }
 0x6f0   : > { %v5547_v23 = vpop.f32.mrf.mxu1 }
 0x6f1   : > { %v5548_v1 = vadd.f32 %v5547_v23, %v5507_v53  ;;  %v6198_v53 = vld [vmem:[#allocation20] sm:$0x1] }
 0x6f2   : > { %v5549_v35 = vpop.f32.mrf.mxu1 }
 0x6f3   : > { %v5550_v40 = vadd.f32 %v5549_v35, %v5509_v56  ;;  %7464 = vtanh.f32 %v5548_v1  ;;  %v6200_v56 = vld [vmem:[#allocation22] sm:$0x1] }
 0x6f4   : > { %v5551_v12 = vpop.f32.mrf.mxu1 }
 0x6f5   : > { %7466 = vtanh.f32 %v5550_v40  ;;  %v6205_v40 = vld [vmem:[#allocation25] sm:$0x1] }
 0x6f6   : > { %v5552_v62 = vpop.f32.mrf.mxu1 }
 0x700   : > { %v7465_v16 = vpop.eup %7464 }
 0x702   : > { %v7467_v55 = vpop.eup %7466 }
 0x703   : > { %v5585_v6 = vcombine.low %v7465_v16, %v7467_v55 }
 0x705   : > { %v5593_v28 = vmul.f32 %v5585_v6, %v786_v21 }
 0x707   : > { %v5597_v58 = vadd.f32 %v5593_v28, %v5573_v46 }
 0x709   : > { %v5733_v41 = vcombine.high %v5597_v58, %v5597_v58 }
 0x70b   : > { %6012 = vmatprep.mubr.f32.mxu1 %v5733_v41 }
 0x70c   : > { %6013 = vmatmul.mubr.f32.vlgmr.msra.gmra.mxu1 %v5597_v58 }
 0x70d   : > { %7225 = vmatprep.mubr.msk.f32.mxu1 %vm7978_vm2, %v12761_v4  ;;  %7222 = vmatpush3.msra.mxu1 %v6123_v63 }
 0x70e   : > { %7223 = vmatprep.subr.mxu1 %v12761_v4 }
 0x70f   : > { %7224 = vmatpush3.msra.mxu1 %v6122_v31 }
 0x710   : > { %v7126_v22 = vpop.f32.mrf.mxu1  ;;  %7228 = vmatprep.subr.mxu1 %v12761_v4 }
 0x712   : > { %v7127_v36 = vpop.f32.mrf.mxu1 }
 0x713   : > { %v7128_v47 = vadd.f32 %v7127_v36, %v7126_v22 }
 0x715   : > { %v5875_v49 = vadd.f32 %v7128_v47, %v7093_v17 }
 0x74c   : > { %v7161_v0 = vpop.f32.mrf.mxu0 }
 0x74e   : > { %v7162_v32 = vpop.f32.mrf.mxu0 }
 0x74f   : > { %v7163_v42 = vadd.f32 %v7162_v32, %v7161_v0 }
 0x751   : > { %v5945_v10 = vadd.f32 %v7163_v42, %v5875_v49 }
 0x7cc   : > { %v7196_v9 = vpop.f32.mrf.mxu1 }
 0x7ce   : > { %v7197_v60 = vpop.f32.mrf.mxu1 }
 0x7cf   : > { %v7198_v54 = vadd.f32 %v7197_v60, %v7196_v9 }
 0x7d1   : > { %v6015_v24 = vadd.f32 %v7198_v54, %v5945_v10 }
 0x7d3   : > { %v6029_v20 = vrot.slane %v6015_v24, 3  ;;  %v6019_v26 = vrot.slane %v6015_v24, 1  ;;  %v6024_v57 = vrot.slane %v6015_v24, 2 }
 0x7d5   : > { %6030 = vrot.lane.b32.xlu0 %v6029_v20, %s7976_s25  ;;  %6020 = vrot.lane.b32.xlu1 %v6019_v26, %s7977_s3  ;;  %s7860_s25 = scalar_lea.vmem %s6294_s5, 16  ;;  %s7980_s3 = smov [#allocation26]  }
 0x7d6   : > { %p7861_p2 = scmp.ne.s32.totalorder %s6294_s5, %s7860_s25  ;;  %s7864_s1 = sshll.u32 %s7980_s3, 4  ;;  %s7865_s1 = int_to_ptr.vmem [resolvable:$false] %s7864_s1 }
 0x7d7   : > { %s7866_s6 = scalar_lea.vmem %s7865_s1, 32  ;;  %p7867_p12 = scmp.lt.s32.totalorder %s6294_s5, %s7865_s1 }
 0x7d8   : > { %p7862_p8 = pnand %p7861_p2, %p12779_p5  ;;  %p7868_p13 = scmp.lt.s32.totalorder %s7866_s6, %s7860_s25 }
 0x7d9   : > { %6025 = vrot.lane.b32.xlu1 %v6024_v57, %s7979_s8 }
 0x7da   : > { %p7863_p11 = pneg %p7862_p8  ;;  %p7869_p1 = por %p7868_p13, %p7867_p12 }
 0x7dc   : > { %p7870_p4 = pnand %p7869_p1, %p7863_p11 }
 0x847   : > { %v6021_v38 = vpop.permute.xlu1 %6020  ;;  %v6031_v2 = vpop.permute.xlu0 %6030 }
 0x848   : > { %v6023_v34 = vadd.f32 %v6021_v38, %v6015_v24 }
 0x84b   : > { %v6026_v48 = vpop.permute.xlu1 %6025 }
 0x84c   : > { %v6028_v19 = vadd.f32 %v6026_v48, %v6023_v34 }
 0x84e   : > { %v6033_v52 = vadd.f32 %v6031_v2, %v6028_v19 }
 0x850   : > { %v6035_v8 = vmul.f32 %v6034_v50, %v6033_v52 }
 0x852   : > { %v6037_v5 = vadd.f32 %v6036_v13, %v6035_v8 }
 0x854   : > { %v6038_v25 = vmax.f32 %v6037_v5, 0.0 }
 0x856   : > { %7219 = vmatmul.mubr.msk.f32.vlgmr.msra.gmra.mxu0 %vm6043_vm3, %v6038_v25 }
 0x916   : > { %v6113_v44 = vpop.f32.mrf.mxu0 }
 0x917   : > { %v6118_v11 = vmul.f32 %v6117_v3, %v6113_v44 }
 0x918   : > { %v7220_v14 = vpop.f32.mrf.mxu0 }
 0x919   : > { %v6120_v61 = vadd.f32 %v6119_v29, %v6118_v11 }
 0x91b   : > { %v6121_v37 = vmax.f32 %v6120_v61, 0.0 }
 0x91d   : > { %7226 = vmatmul.mubr.msk.f32.vlgmr.msra.gmra.mxu1 %vm6124_vm4, %v6121_v37 }
 0x91e   : > { %7232 = vmatprep.mubr.msk.f32.mxu1 %vm7978_vm2, %v12761_v4  ;;  %7229 = vmatpush3.msra.mxu1 %v6204_v51 }
 0x91f   : > { %7230 = vmatprep.subr.mxu1 %v12761_v4 }
 0x920   : > { %7231 = vmatpush3.msra.mxu1 %v6203_v39 }
 0x9dd   : > { %v6194_v15 = vpop.f32.mrf.mxu1 }
 0x9de   : > { %v6199_v59 = vmul.f32 %v6198_v53, %v6194_v15 }
 0x9df   : > { %v7227_v23 = vpop.f32.mrf.mxu1 }
 0x9e0   : > { %v6201_v1 = vadd.f32 %v6200_v56, %v6199_v59 }
 0x9e2   : > { %v6202_v35 = vmax.f32 %v6201_v1, 0.0 }
 0x9e4   : > { %7233 = vmatmul.mubr.msk.f32.vlgmr.msra.gmra.mxu1 %vm6124_vm4, %v6202_v35 }
 0xaa4   : > { %v6275_v12 = vpop.f32.mrf.mxu1 }
 0xaa5   : > { %v6276_v62 = vadd.f32 %v6275_v12, %v6205_v40 }
 0xaa6   : > { %v7234_v4 = vpop.f32.mrf.mxu1 }
 0xaa7   : > { %6279 = vst [vmem:[%s773_s22] sm:$0x1] %v6276_v62 }
 0xaa8   : > { %7873 = shalt.err (!%p7870_p4)
}
 0xaa9   : > { %s7874_s7 = scalar_lea.hbm %s11231_s11, 16  ;;  %s7878_s20 = scalar_lea.hbm %s12778_s0, 32 }
 0xaaa   : > { %p7875_p3 = scmp.ne.s32.totalorder %s11231_s11, %s7874_s7  ;;  %p7879_p10 = scmp.lt.s32.totalorder %s11231_s11, %s12778_s0 }
 0xaab   : > { %p7880_p7 = scmp.lt.s32.totalorder %s7878_s20, %s7874_s7 }
 0xaac   : > { %p7876_p0 = pnand %p7875_p3, %p12779_p5 }
 0xaad   : > { %p7881_p6 = por %p7880_p7, %p7879_p10 }
 0xaae   : > { %p7877_p9 = pneg %p7876_p0 }
 0xab0   : > { %p7882_p2 = pnand %p7881_p6, %p7877_p9 }
 0xab2   : > { %7885 = shalt.err (!%p7882_p2)
}
 0xab3   : > { %7293 = dma.vmem_to_hbm [thread:$0]  (%p12779_p5), %s6294_s5, 16, %s11231_s11, %s6281_s21  }
 0xab4 PF: > { %s6305_s9 = sand.u32 1, %s7940_s27   ;;  %p12780_p8 = scmp.ne.s32.totalorder %s11804_s2, 0 }
 0xab5   : > { %p12781_p11 = scmp.ge.s32.totalorder %s7952_s30, 2  ;;  %s6306_s25 = scalar_lea.sflag [#allocation4], %s6305_s9 }
 0xab7   : > { %p7343_p12 = pnand %p12781_p11, %p12780_p8 }
 0xab9   : > { %p7344_p13 = pneg %p7343_p12 }
 0xabb   : > { %7935 = dma.done.wait (%p7344_p13), %s6306_s25, 16  }
 0xabc   : > { %7937 = vsyncadd (%p7344_p13), %s6306_s25, 4294967280  ;;  %p38_p1 = scmp.ge.s32.totalorder %s8237_s24, 4   ;;  %s12782_s27 = smov %s7944_s28 }
 0xabd   : > { %s12783_s28 = smov %s7948_s29  ;;  %s12784_s29 = smov %s8248_s10 }
 0xabe   : > { %s12785_s30 = smov %s8237_s24  ;;  %40 = sbr.rel (!%p38_p1) target bundleno = 26 (0x1a), region = 193 }
 0xac3   :  { %6310 = vsyncpa [#allocation3], 1 }
 0xac4   :  { %6312 = vsyncpa [#allocation3 + $0x1], 1 }
 0xac5   :  { %6313 = vsyncpa [#allocation6], 1 }
 0xac6   :  { %6314 = vsyncpa [#allocation9], 1 }
 0xac7   :  { %6315 = vsyncpa [#allocation12], 1 }
 0xac8   :  { %6316 = vsyncpa [#allocation15], 1 }
 0xac9   :  { %6317 = vsyncpa [#allocation18], 1 }
 0xaca   :  { %6318 = vsyncpa [#allocation21], 1 }
 0xacb   :  { %6319 = vsyncpa [#allocation24], 1 }
 0xacc   :  { %6320 = vsyncpa [#allocation4], 1 }
 0xacd   :  { %6322 = vsyncpa [#allocation4 + $0x1], 1 }

</bundles_post_ra>
